<compile_context>
chip_gen: v7x
topology: tpu7x:2x2x1
jax: 0.10.0
libtpu: 0.0.40
codegen_flags: <defaults>
</compile_context>

<pallas_src>
import functools

import numpy as np
import jax
import jax.numpy as jnp
from jax import lax
from jax.experimental import pallas as pl
from jax.experimental.pallas import tpu as pltpu

BN_EPS = 1e-5
LANE = 128


def _swish(y):
    return y * jax.nn.sigmoid(y)


# ----------------------------------------------------------------------------
# Static geometry + constant (non-learned) matrices: interior masks, stride-2
# selection matrices, avg-pool matrix.
# ----------------------------------------------------------------------------
def build_geometry(cfg, h, w, b_tile, num_classes):
    assert num_classes <= LANE
    c0 = cfg[0] if isinstance(cfg[0], int) else cfg[0][0]
    # per-image flattened segment length; b_tile * seg must be a multiple of 128
    unit = LANE // int(np.gcd(b_tile, LANE))

    def seg(hp, wp):
        return ((hp * wp + unit - 1) // unit) * unit

    blocks = []
    c_in, H, W = c0, h, w
    for spec in cfg[1:]:
        c_out = spec if isinstance(spec, int) else spec[0]
        st = 1 if isinstance(spec, int) else spec[1]
        Ho, Wo = H // st, W // st
        blocks.append(dict(c_in=c_in, c_out=c_out, stride=st,
                           h_in=H, w_in=W, h_out=Ho, w_out=Wo,
                           wp_in=W + 2, wp_out=Wo + 2,
                           seg_in=seg(H + 2, W + 2),
                           seg_out=seg(Ho + 2, Wo + 2)))
        c_in, H, W = c_out, Ho, Wo
    assert H == 2 and W == 2, "head expects a 2x2 pre-pool feature map"

    # Interior masks: 1 at valid (non-border, non-tail) positions of a grid.
    mask_chunks, mask_offs = [], {}

    def mask_off(hp, wp, sg):
        key = (hp, wp, sg)
        if key not in mask_offs:
            m = np.zeros((sg,), np.float32)
            for i in range(1, hp - 1):
                for j in range(1, wp - 1):
                    m[i * wp + j] = 1.0
            mask_offs[key] = sum(c.shape[0] for c in mask_chunks)
            mask_chunks.append(np.tile(m, b_tile))
        return mask_offs[key]

    stem_mask_off = mask_off(h + 2, w + 2, seg(h + 2, w + 2))
    for bidx, L in enumerate(blocks):
        if bidx + 1 < len(blocks):
            L["mask_off_out"] = mask_off(L["h_out"] + 2, L["w_out"] + 2,
                                         L["seg_out"])
    masks_np = np.concatenate(mask_chunks)[None, :]

    # Stride-2 blocks: subsample + re-pad as one exact 0/1 selection matmul.
    s_mats_np = []
    for L in blocks:
        if L["stride"] == 1:
            continue
        st = L["stride"]
        S = np.zeros((b_tile * L["seg_in"], b_tile * L["seg_out"]), np.float32)
        for bb in range(b_tile):
            for oi in range(L["h_out"]):
                for oj in range(L["w_out"]):
                    p = bb * L["seg_in"] + (st * oi + 1) * L["wp_in"] + (st * oj + 1)
                    q = bb * L["seg_out"] + (oi + 1) * L["wp_out"] + (oj + 1)
                    S[p, q] = 1.0
        L["s_index"] = len(s_mats_np)
        s_mats_np.append(S)

    # avg_pool2d(2) over the last block's 2x2 interior, as a matmul.
    L = blocks[-1]
    pool_np = np.zeros((b_tile, b_tile * L["seg_out"]), np.float32)
    inv = 1.0 / float(L["h_out"] * L["w_out"])
    for bb in range(b_tile):
        for i in range(1, L["h_out"] + 1):
            for j in range(1, L["w_out"] + 1):
                pool_np[bb, bb * L["seg_out"] + i * L["wp_out"] + j] = inv

    c_max = max([c0] + [L["c_out"] for L in blocks])
    c_max = ((c_max + 7) // 8) * 8

    return dict(cfg=cfg, c0=c0, blocks=blocks, b_tile=b_tile, h=h, w=w,
                num_classes=num_classes, seg0=seg(h + 2, w + 2),
                stem_mask_off=stem_mask_off, n_s=len(s_mats_np), c_max=c_max,
                masks_np=masks_np, s_mats_np=s_mats_np, pool_np=pool_np)


# ----------------------------------------------------------------------------
# Fused whole-network kernel.
# ----------------------------------------------------------------------------
def _make_kernel(geo):
    c0 = geo["c0"]
    blocks = geo["blocks"]
    nb = len(blocks)
    b_tile = geo["b_tile"]
    n_s = geo["n_s"]
    seg0 = geo["seg0"]
    wp0 = geo["w"] + 2
    np0 = b_tile * seg0
    c_last = blocks[-1]["c_out"]
    stem_mask_off = geo["stem_mask_off"]

    def kernel(*refs):
        x_ref, chan_ref, wmm_ref, linb_ref = refs[:4]
        s_refs = refs[4:4 + n_s]
        mask_ref, pool_ref, o_ref = refs[4 + n_s:]

        # ----- stem: 3x3 dense conv (3->c0) as an im2col matmul, computed as
        # ----- 9 K-slices (one per tap) to keep vreg pressure low.
        # Shift convention: value at flattened position p of the rolled copy is
        # the input at p + s (roll by -s, cyclic; wrap only touches border
        # positions, which are discarded by the interior mask below).
        x0 = x_ref[...]                                        # (3, np0) f32
        y = None
        for di in range(3):
            for dj in range(3):
                k = di * 3 + dj
                s = (di - 1) * wp0 + (dj - 1)
                xs = x0 if s == 0 else pltpu.roll(x0, shift=(-s) % np0, axis=1)
                wk = wmm_ref[0:c0, 3 * k:3 * k + 3]            # (c0, 3) bf16
                t = jnp.dot(wk, xs.astype(jnp.bfloat16),
                            preferred_element_type=jnp.float32)
                y = t if y is None else y + t
        y = _swish(y * chan_ref[0:c0, 0:1] + chan_ref[0:c0, 1:2])
        x_cur = y * mask_ref[:, stem_mask_off:stem_mask_off + np0]

        # ----- depthwise-separable blocks -------------------------------------
        for bidx, L in enumerate(blocks):
            cin, cout, st = L["c_in"], L["c_out"], L["stride"]
            wp = L["wp_in"]
            np_in = b_tile * L["seg_in"]
            np_out = b_tile * L["seg_out"]
            ccol = 2 + 13 * bidx

            # depthwise 3x3: 9 lane-rolls + FMAs over the flattened padded grid
            d = None
            for di in range(3):
                for dj in range(3):
                    k = di * 3 + dj
                    s = (di - 1) * wp + (dj - 1)
                    xs = (x_cur if s == 0
                          else pltpu.roll(x_cur, shift=(-s) % np_in, axis=1))
                    t = xs * chan_ref[0:cin, ccol + k:ccol + k + 1]
                    d = t if d is None else d + t

            # stride-2: subsample + re-pad onto the output grid (exact 0/1
            # gather on the MXU) BEFORE BN1/swish and the 1x1 conv.
            if st == 2:
                d = jnp.dot(d, s_refs[L["s_index"]][...],
                            preferred_element_type=jnp.float32)   # (cin, np_out)

            d = _swish(d * chan_ref[0:cin, ccol + 9:ccol + 10]
                       + chan_ref[0:cin, ccol + 10:ccol + 11])

            # pointwise 1x1 conv: one matmul per block (bf16 in, f32 acc)
            pw = wmm_ref[0:cout, LANE * (1 + bidx):LANE * (1 + bidx) + cin]
            z = jnp.dot(pw, d.astype(jnp.bfloat16),
                        preferred_element_type=jnp.float32)       # (cout, np_out)
            z = _swish(z * chan_ref[0:cout, ccol + 11:ccol + 12]
                       + chan_ref[0:cout, ccol + 12:ccol + 13])

            if bidx + 1 < nb:
                off = L["mask_off_out"]
                x_cur = z * mask_ref[:, off:off + np_out]   # re-zero the halo
            else:
                x_cur = z   # last block: pooling matrix ignores non-interior

        # ----- head: avg_pool2d(2) + linear -----------------------------------
        pooled = lax.dot_general(pool_ref[...], x_cur,
                                 (((1,), (1,)), ((), ())),
                                 preferred_element_type=jnp.float32)  # (B, c_last)
        w_lin = wmm_ref[0:c_last, LANE * (1 + nb):LANE * (2 + nb)]    # bf16
        logits = jnp.dot(pooled.astype(jnp.bfloat16), w_lin,
                         preferred_element_type=jnp.float32) + linb_ref[...]
        o_ref[0] = logits                                             # (B, 128)

    return kernel


# ----------------------------------------------------------------------------
# Wrapper: lane-dense input layout + pallas_call.
# ----------------------------------------------------------------------------
def mobilenetv1_forward(params, x_nchw, *, geo):
    n, cin, h, w = x_nchw.shape
    assert cin == 3 and h == geo["h"] and w == geo["w"]
    b_tile = geo["b_tile"]
    assert n % b_tile == 0
    g = n // b_tile
    seg0 = geo["seg0"]
    hp, wp = h + 2, w + 2

    # Lane-dense input: (3, N*seg0); each image's zero-padded (H+2, W+2) grid
    # is flattened row-major into a seg0-long (128-aligned) lane segment.
    xp = jnp.pad(x_nchw.astype(jnp.float32), ((0, 0), (0, 0), (1, 1), (1, 1)))
    xp = xp.reshape(n, 3, hp * wp)
    xp = jnp.pad(xp, ((0, 0), (0, 0), (0, seg0 - hp * wp)))
    x_flat = jnp.transpose(xp, (1, 0, 2)).reshape(3, n * seg0)

    inputs = [x_flat, params["chan"], params["wmm"], params["lin_b"],
              *params["s_mats"], params["masks"], params["pool"]]
    in_specs = [pl.BlockSpec((3, b_tile * seg0), lambda i: (0, i))]
    in_specs += [pl.BlockSpec(a.shape, lambda i: (0, 0)) for a in inputs[1:]]

    out = pl.pallas_call(
        _make_kernel(geo),
        out_shape=jax.ShapeDtypeStruct((g, b_tile, LANE), jnp.float32),
        grid=(g,),
        in_specs=in_specs,
        out_specs=pl.BlockSpec((1, b_tile, LANE), lambda i: (i, 0, 0)),
        compiler_params=pltpu.CompilerParams(
            dimension_semantics=("parallel",)),
    )(*inputs)
    return out.reshape(n, LANE)[:, :geo["num_classes"]]


# ----------------------------------------------------------------------------
# Deterministic synthetic parameters (folded inference-mode BN), packed into
# two arrays: per-channel params (channels on sublanes) + bf16 matmul weights
# in 128-aligned column blocks.
# ----------------------------------------------------------------------------
def init_params(key, geo):
    c0, blocks = geo["c0"], geo["blocks"]
    nb = len(blocks)
    cmax = geo["c_max"]
    nc = geo["num_classes"]

    keys = iter(jax.random.split(key, 6 * nb + 8))

    def nrm(shape, s=0.1):
        return np.asarray(s * jax.random.normal(next(keys), shape, jnp.float32))

    def bn_fold(c):
        gamma = 1.0 + 0.1 * np.asarray(jax.random.normal(next(keys), (c,), jnp.float32))
        beta = 0.1 * np.asarray(jax.random.normal(next(keys), (c,), jnp.float32))
        scale = gamma / np.sqrt(1.0 + BN_EPS)   # running stats: mean=0, var=1
        bias = beta
        return scale.astype(np.float32), bias.astype(np.float32)

    chan = np.zeros((cmax, 2 + 13 * nb), np.float32)
    wmm = np.zeros((cmax, LANE * (2 + nb)), np.float32)

    # stem: conv weight column k = (di*3 + dj)*3 + ci
    wmm[:c0, 0:27] = nrm((c0, 27))
    s, b = bn_fold(c0)
    chan[:c0, 0], chan[:c0, 1] = s, b

    for bidx, L in enumerate(blocks):
        cin, cout = L["c_in"], L["c_out"]
        col = 2 + 13 * bidx
        chan[:cin, col:col + 9] = nrm((cin, 9))          # depthwise taps
        s1, b1 = bn_fold(cin)
        chan[:cin, col + 9], chan[:cin, col + 10] = s1, b1
        s2, b2 = bn_fold(cout)
        chan[:cout, col + 11], chan[:cout, col + 12] = s2, b2
        wmm[:cout, LANE * (1 + bidx):LANE * (1 + bidx) + cin] = nrm((cout, cin))

    c_last = blocks[-1]["c_out"]
    wmm[:c_last, LANE * (1 + nb):LANE * (1 + nb) + nc] = nrm((c_last, nc))
    lin_b = np.zeros((1, LANE), np.float32)
    lin_b[0, :nc] = nrm((nc,))

    return dict(chan=jnp.asarray(chan),
                wmm=jnp.asarray(wmm).astype(jnp.bfloat16),
                lin_b=jnp.asarray(lin_b),
                s_mats=tuple(jnp.asarray(S) for S in geo["s_mats_np"]),
                masks=jnp.asarray(geo["masks_np"]),
                pool=jnp.asarray(geo["pool_np"]))


if __name__ == "__main__":
    # cfg consistent with the module: ConvBlock(3, cfg[0]) + MbBlocks over
    # cfg[1:]; tuples are (out_planes, stride).  With 16x16 input and three
    # stride-2 blocks the pre-pool spatial is 2x2, so flatten == cfg[-1].
    cfg = [8, 16, (32, 2), (64, 2), (64, 2), 64]
    num_classes = 100                     # dataset='cifar100'
    b_tile = 2                            # images per grid step
    n, h, w = 8, 16, 16                   # grid = 4 steps (2 per v7x core)

    geo = build_geometry(cfg, h, w, b_tile, num_classes)
    key = jax.random.PRNGKey(0)
    kp, kx = jax.random.split(key)
    params = init_params(kp, geo)
    x = jax.random.normal(kx, (n, 3, h, w), jnp.float32)   # NCHW, like PyTorch

    fwd = jax.jit(functools.partial(mobilenetv1_forward, geo=geo))
    logits = jax.block_until_ready(fwd(params, x))
    assert logits.shape == (n, num_classes)
    assert bool(jnp.all(jnp.isfinite(logits)))
    print("KERNEL_OK")
</pallas_src>

<mosaic_0001>
module attributes {stable_mosaic.version = 11 : i64} {
  func.func @kernel(%arg0: i32, %arg1: memref<3x768xf32, #tpu.memory_space<vmem>>, %arg2: memref<64x67xf32, #tpu.memory_space<vmem>>, %arg3: memref<64x896xbf16, #tpu.memory_space<vmem>>, %arg4: memref<1x128xf32, #tpu.memory_space<vmem>>, %arg5: memref<768x256xf32, #tpu.memory_space<vmem>>, %arg6: memref<256x128xf32, #tpu.memory_space<vmem>>, %arg7: memref<128x128xf32, #tpu.memory_space<vmem>>, %arg8: memref<1x1280xf32, #tpu.memory_space<vmem>>, %arg9: memref<2x128xf32, #tpu.memory_space<vmem>>, %arg10: memref<1x2x128xf32, #tpu.memory_space<vmem>>) attributes {dimension_semantics = [#tpu.dimension_semantics<parallel>], iteration_bounds = array<i64: 4>, scalar_prefetch = 0 : i64, scratch_operands = 0 : i64, tpu.core_type = #tpu.core_type<tc>, window_params = [{transform_indices = @transform_0, window_bounds = array<i64: 3, 768>}, {pipeline_mode = #tpu.pipeline_mode<synchronous>, transform_indices = @transform_1, window_bounds = array<i64: 64, 67>}, {pipeline_mode = #tpu.pipeline_mode<synchronous>, transform_indices = @transform_2, window_bounds = array<i64: 64, 896>}, {pipeline_mode = #tpu.pipeline_mode<synchronous>, transform_indices = @transform_3, window_bounds = array<i64: 1, 128>}, {pipeline_mode = #tpu.pipeline_mode<synchronous>, transform_indices = @transform_4, window_bounds = array<i64: 768, 256>}, {pipeline_mode = #tpu.pipeline_mode<synchronous>, transform_indices = @transform_5, window_bounds = array<i64: 256, 128>}, {pipeline_mode = #tpu.pipeline_mode<synchronous>, transform_indices = @transform_6, window_bounds = array<i64: 128, 128>}, {pipeline_mode = #tpu.pipeline_mode<synchronous>, transform_indices = @transform_7, window_bounds = array<i64: 1, 1280>}, {pipeline_mode = #tpu.pipeline_mode<synchronous>, transform_indices = @transform_8, window_bounds = array<i64: 2, 128>}, {transform_indices = @transform_9, window_bounds = array<i64: 1, 2, 128>}]} {
    %c0 = arith.constant 0 : index
    %c0_0 = arith.constant 0 : index
    %0 = vector.load %arg1[%c0, %c0_0] : memref<3x768xf32, #tpu.memory_space<vmem>>, vector<3x768xf32>
    %c19_i32 = arith.constant 19 : i32
    %1 = tpu.dynamic_rotate %0 by %c19_i32 dim 1 : vector<3x768xf32>, i32 -> vector<3x768xf32>
    %c0_1 = arith.constant 0 : index
    %c0_2 = arith.constant 0 : index
    %2 = vector.load %arg3[%c0_1, %c0_2] : memref<64x896xbf16, #tpu.memory_space<vmem>>, vector<8x3xbf16>
    %3 = arith.truncf %1 : vector<3x768xf32> to vector<3x768xbf16>
    %cst = arith.constant dense<0.000000e+00> : vector<8x768xf32>
    %4 = tpu.matmul %2, %3, %cst {dimension_numbers = #tpu.dot_dimension_numbers<[1], [0], [0], [1], [0, 0, 1, 1], [], []>} : vector<8x3xbf16>, vector<3x768xbf16>, vector<8x768xf32> -> vector<8x768xf32>
    %c18_i32 = arith.constant 18 : i32
    %5 = tpu.dynamic_rotate %0 by %c18_i32 dim 1 : vector<3x768xf32>, i32 -> vector<3x768xf32>
    %c0_3 = arith.constant 0 : index
    %c3 = arith.constant 3 : index
    %6 = vector.load %arg3[%c0_3, %c3] : memref<64x896xbf16, #tpu.memory_space<vmem>>, vector<8x3xbf16>
    %7 = arith.truncf %5 : vector<3x768xf32> to vector<3x768xbf16>
    %cst_4 = arith.constant dense<0.000000e+00> : vector<8x768xf32>
    %8 = tpu.matmul %6, %7, %cst_4 {dimension_numbers = #tpu.dot_dimension_numbers<[1], [0], [0], [1], [0, 0, 1, 1], [], []>} : vector<8x3xbf16>, vector<3x768xbf16>, vector<8x768xf32> -> vector<8x768xf32>
    %9 = arith.addf %4, %8 : vector<8x768xf32>
    %c17_i32 = arith.constant 17 : i32
    %10 = tpu.dynamic_rotate %0 by %c17_i32 dim 1 : vector<3x768xf32>, i32 -> vector<3x768xf32>
    %c0_5 = arith.constant 0 : index
    %c6 = arith.constant 6 : index
    %11 = vector.load %arg3[%c0_5, %c6] : memref<64x896xbf16, #tpu.memory_space<vmem>>, vector<8x3xbf16>
    %12 = arith.truncf %10 : vector<3x768xf32> to vector<3x768xbf16>
    %cst_6 = arith.constant dense<0.000000e+00> : vector<8x768xf32>
    %13 = tpu.matmul %11, %12, %cst_6 {dimension_numbers = #tpu.dot_dimension_numbers<[1], [0], [0], [1], [0, 0, 1, 1], [], []>} : vector<8x3xbf16>, vector<3x768xbf16>, vector<8x768xf32> -> vector<8x768xf32>
    %14 = arith.addf %9, %13 : vector<8x768xf32>
    %c1_i32 = arith.constant 1 : i32
    %15 = tpu.dynamic_rotate %0 by %c1_i32 dim 1 : vector<3x768xf32>, i32 -> vector<3x768xf32>
    %c0_7 = arith.constant 0 : index
    %c9 = arith.constant 9 : index
    %16 = vector.load %arg3[%c0_7, %c9] : memref<64x896xbf16, #tpu.memory_space<vmem>>, vector<8x3xbf16>
    %17 = arith.truncf %15 : vector<3x768xf32> to vector<3x768xbf16>
    %cst_8 = arith.constant dense<0.000000e+00> : vector<8x768xf32>
    %18 = tpu.matmul %16, %17, %cst_8 {dimension_numbers = #tpu.dot_dimension_numbers<[1], [0], [0], [1], [0, 0, 1, 1], [], []>} : vector<8x3xbf16>, vector<3x768xbf16>, vector<8x768xf32> -> vector<8x768xf32>
    %19 = arith.addf %14, %18 : vector<8x768xf32>
    %c0_9 = arith.constant 0 : index
    %c12 = arith.constant 12 : index
    %20 = vector.load %arg3[%c0_9, %c12] : memref<64x896xbf16, #tpu.memory_space<vmem>>, vector<8x3xbf16>
    %21 = arith.truncf %0 : vector<3x768xf32> to vector<3x768xbf16>
    %cst_10 = arith.constant dense<0.000000e+00> : vector<8x768xf32>
    %22 = tpu.matmul %20, %21, %cst_10 {dimension_numbers = #tpu.dot_dimension_numbers<[1], [0], [0], [1], [0, 0, 1, 1], [], []>} : vector<8x3xbf16>, vector<3x768xbf16>, vector<8x768xf32> -> vector<8x768xf32>
    %23 = arith.addf %19, %22 : vector<8x768xf32>
    %c767_i32 = arith.constant 767 : i32
    %24 = tpu.dynamic_rotate %0 by %c767_i32 dim 1 : vector<3x768xf32>, i32 -> vector<3x768xf32>
    %c0_11 = arith.constant 0 : index
    %c15 = arith.constant 15 : index
    %25 = vector.load %arg3[%c0_11, %c15] : memref<64x896xbf16, #tpu.memory_space<vmem>>, vector<8x3xbf16>
    %26 = arith.truncf %24 : vector<3x768xf32> to vector<3x768xbf16>
    %cst_12 = arith.constant dense<0.000000e+00> : vector<8x768xf32>
    %27 = tpu.matmul %25, %26, %cst_12 {dimension_numbers = #tpu.dot_dimension_numbers<[1], [0], [0], [1], [0, 0, 1, 1], [], []>} : vector<8x3xbf16>, vector<3x768xbf16>, vector<8x768xf32> -> vector<8x768xf32>
    %28 = arith.addf %23, %27 : vector<8x768xf32>
    %c751_i32 = arith.constant 751 : i32
    %29 = tpu.dynamic_rotate %0 by %c751_i32 dim 1 : vector<3x768xf32>, i32 -> vector<3x768xf32>
    %c0_13 = arith.constant 0 : index
    %c18 = arith.constant 18 : index
    %30 = vector.load %arg3[%c0_13, %c18] : memref<64x896xbf16, #tpu.memory_space<vmem>>, vector<8x3xbf16>
    %31 = arith.truncf %29 : vector<3x768xf32> to vector<3x768xbf16>
    %cst_14 = arith.constant dense<0.000000e+00> : vector<8x768xf32>
    %32 = tpu.matmul %30, %31, %cst_14 {dimension_numbers = #tpu.dot_dimension_numbers<[1], [0], [0], [1], [0, 0, 1, 1], [], []>} : vector<8x3xbf16>, vector<3x768xbf16>, vector<8x768xf32> -> vector<8x768xf32>
    %33 = arith.addf %28, %32 : vector<8x768xf32>
    %c750_i32 = arith.constant 750 : i32
    %34 = tpu.dynamic_rotate %0 by %c750_i32 dim 1 : vector<3x768xf32>, i32 -> vector<3x768xf32>
    %c0_15 = arith.constant 0 : index
    %c21 = arith.constant 21 : index
    %35 = vector.load %arg3[%c0_15, %c21] : memref<64x896xbf16, #tpu.memory_space<vmem>>, vector<8x3xbf16>
    %36 = arith.truncf %34 : vector<3x768xf32> to vector<3x768xbf16>
    %cst_16 = arith.constant dense<0.000000e+00> : vector<8x768xf32>
    %37 = tpu.matmul %35, %36, %cst_16 {dimension_numbers = #tpu.dot_dimension_numbers<[1], [0], [0], [1], [0, 0, 1, 1], [], []>} : vector<8x3xbf16>, vector<3x768xbf16>, vector<8x768xf32> -> vector<8x768xf32>
    %38 = arith.addf %33, %37 : vector<8x768xf32>
    %c749_i32 = arith.constant 749 : i32
    %39 = tpu.dynamic_rotate %0 by %c749_i32 dim 1 : vector<3x768xf32>, i32 -> vector<3x768xf32>
    %c0_17 = arith.constant 0 : index
    %c24 = arith.constant 24 : index
    %40 = vector.load %arg3[%c0_17, %c24] : memref<64x896xbf16, #tpu.memory_space<vmem>>, vector<8x3xbf16>
    %41 = arith.truncf %39 : vector<3x768xf32> to vector<3x768xbf16>
    %cst_18 = arith.constant dense<0.000000e+00> : vector<8x768xf32>
    %42 = tpu.matmul %40, %41, %cst_18 {dimension_numbers = #tpu.dot_dimension_numbers<[1], [0], [0], [1], [0, 0, 1, 1], [], []>} : vector<8x3xbf16>, vector<3x768xbf16>, vector<8x768xf32> -> vector<8x768xf32>
    %43 = arith.addf %38, %42 : vector<8x768xf32>
    %c0_19 = arith.constant 0 : index
    %c0_20 = arith.constant 0 : index
    %44 = vector.load %arg2[%c0_19, %c0_20] : memref<64x67xf32, #tpu.memory_space<vmem>>, vector<8x1xf32>
    %45 = vector.broadcast %44 : vector<8x1xf32> to vector<8x768xf32>
    %46 = arith.mulf %43, %45 : vector<8x768xf32>
    %c0_21 = arith.constant 0 : index
    %c1 = arith.constant 1 : index
    %47 = vector.load %arg2[%c0_21, %c1] : memref<64x67xf32, #tpu.memory_space<vmem>>, vector<8x1xf32>
    %48 = vector.broadcast %47 : vector<8x1xf32> to vector<8x768xf32>
    %49 = arith.addf %46, %48 : vector<8x768xf32>
    %50 = arith.negf %49 : vector<8x768xf32>
    %51 = math.exp %50 : vector<8x768xf32>
    %cst_22 = arith.constant 1.000000e+00 : f32
    %52 = vector.broadcast %cst_22 : f32 to vector<8x768xf32>
    %53 = arith.addf %52, %51 : vector<8x768xf32>
    %54 = arith.divf %52, %53 : vector<8x768xf32>
    %55 = arith.mulf %49, %54 : vector<8x768xf32>
    %c0_23 = arith.constant 0 : index
    %c0_24 = arith.constant 0 : index
    %56 = vector.load %arg8[%c0_23, %c0_24] : memref<1x1280xf32, #tpu.memory_space<vmem>>, vector<1x768xf32>
    %57 = vector.broadcast %56 : vector<1x768xf32> to vector<8x768xf32>
    %58 = arith.mulf %55, %57 : vector<8x768xf32>
    %c19_i32_25 = arith.constant 19 : i32
    %59 = tpu.dynamic_rotate %58 by %c19_i32_25 dim 1 : vector<8x768xf32>, i32 -> vector<8x768xf32>
    %c0_26 = arith.constant 0 : index
    %c2 = arith.constant 2 : index
    %60 = vector.load %arg2[%c0_26, %c2] : memref<64x67xf32, #tpu.memory_space<vmem>>, vector<8x1xf32>
    %61 = vector.broadcast %60 : vector<8x1xf32> to vector<8x768xf32>
    %62 = arith.mulf %59, %61 : vector<8x768xf32>
    %c18_i32_27 = arith.constant 18 : i32
    %63 = tpu.dynamic_rotate %58 by %c18_i32_27 dim 1 : vector<8x768xf32>, i32 -> vector<8x768xf32>
    %c0_28 = arith.constant 0 : index
    %c3_29 = arith.constant 3 : index
    %64 = vector.load %arg2[%c0_28, %c3_29] : memref<64x67xf32, #tpu.memory_space<vmem>>, vector<8x1xf32>
    %65 = vector.broadcast %64 : vector<8x1xf32> to vector<8x768xf32>
    %66 = arith.mulf %63, %65 : vector<8x768xf32>
    %67 = arith.addf %62, %66 : vector<8x768xf32>
    %c17_i32_30 = arith.constant 17 : i32
    %68 = tpu.dynamic_rotate %58 by %c17_i32_30 dim 1 : vector<8x768xf32>, i32 -> vector<8x768xf32>
    %c0_31 = arith.constant 0 : index
    %c4 = arith.constant 4 : index
    %69 = vector.load %arg2[%c0_31, %c4] : memref<64x67xf32, #tpu.memory_space<vmem>>, vector<8x1xf32>
    %70 = vector.broadcast %69 : vector<8x1xf32> to vector<8x768xf32>
    %71 = arith.mulf %68, %70 : vector<8x768xf32>
    %72 = arith.addf %67, %71 : vector<8x768xf32>
    %c1_i32_32 = arith.constant 1 : i32
    %73 = tpu.dynamic_rotate %58 by %c1_i32_32 dim 1 : vector<8x768xf32>, i32 -> vector<8x768xf32>
    %c0_33 = arith.constant 0 : index
    %c5 = arith.constant 5 : index
    %74 = vector.load %arg2[%c0_33, %c5] : memref<64x67xf32, #tpu.memory_space<vmem>>, vector<8x1xf32>
    %75 = vector.broadcast %74 : vector<8x1xf32> to vector<8x768xf32>
    %76 = arith.mulf %73, %75 : vector<8x768xf32>
    %77 = arith.addf %72, %76 : vector<8x768xf32>
    %c0_34 = arith.constant 0 : index
    %c6_35 = arith.constant 6 : index
    %78 = vector.load %arg2[%c0_34, %c6_35] : memref<64x67xf32, #tpu.memory_space<vmem>>, vector<8x1xf32>
    %79 = vector.broadcast %78 : vector<8x1xf32> to vector<8x768xf32>
    %80 = arith.mulf %58, %79 : vector<8x768xf32>
    %81 = arith.addf %77, %80 : vector<8x768xf32>
    %c767_i32_36 = arith.constant 767 : i32
    %82 = tpu.dynamic_rotate %58 by %c767_i32_36 dim 1 : vector<8x768xf32>, i32 -> vector<8x768xf32>
    %c0_37 = arith.constant 0 : index
    %c7 = arith.constant 7 : index
    %83 = vector.load %arg2[%c0_37, %c7] : memref<64x67xf32, #tpu.memory_space<vmem>>, vector<8x1xf32>
    %84 = vector.broadcast %83 : vector<8x1xf32> to vector<8x768xf32>
    %85 = arith.mulf %82, %84 : vector<8x768xf32>
    %86 = arith.addf %81, %85 : vector<8x768xf32>
    %c751_i32_38 = arith.constant 751 : i32
    %87 = tpu.dynamic_rotate %58 by %c751_i32_38 dim 1 : vector<8x768xf32>, i32 -> vector<8x768xf32>
    %c0_39 = arith.constant 0 : index
    %c8 = arith.constant 8 : index
    %88 = vector.load %arg2[%c0_39, %c8] : memref<64x67xf32, #tpu.memory_space<vmem>>, vector<8x1xf32>
    %89 = vector.broadcast %88 : vector<8x1xf32> to vector<8x768xf32>
    %90 = arith.mulf %87, %89 : vector<8x768xf32>
    %91 = arith.addf %86, %90 : vector<8x768xf32>
    %c750_i32_40 = arith.constant 750 : i32
    %92 = tpu.dynamic_rotate %58 by %c750_i32_40 dim 1 : vector<8x768xf32>, i32 -> vector<8x768xf32>
    %c0_41 = arith.constant 0 : index
    %c9_42 = arith.constant 9 : index
    %93 = vector.load %arg2[%c0_41, %c9_42] : memref<64x67xf32, #tpu.memory_space<vmem>>, vector<8x1xf32>
    %94 = vector.broadcast %93 : vector<8x1xf32> to vector<8x768xf32>
    %95 = arith.mulf %92, %94 : vector<8x768xf32>
    %96 = arith.addf %91, %95 : vector<8x768xf32>
    %c749_i32_43 = arith.constant 749 : i32
    %97 = tpu.dynamic_rotate %58 by %c749_i32_43 dim 1 : vector<8x768xf32>, i32 -> vector<8x768xf32>
    %c0_44 = arith.constant 0 : index
    %c10 = arith.constant 10 : index
    %98 = vector.load %arg2[%c0_44, %c10] : memref<64x67xf32, #tpu.memory_space<vmem>>, vector<8x1xf32>
    %99 = vector.broadcast %98 : vector<8x1xf32> to vector<8x768xf32>
    %100 = arith.mulf %97, %99 : vector<8x768xf32>
    %101 = arith.addf %96, %100 : vector<8x768xf32>
    %c0_45 = arith.constant 0 : index
    %c11 = arith.constant 11 : index
    %102 = vector.load %arg2[%c0_45, %c11] : memref<64x67xf32, #tpu.memory_space<vmem>>, vector<8x1xf32>
    %103 = vector.broadcast %102 : vector<8x1xf32> to vector<8x768xf32>
    %104 = arith.mulf %101, %103 : vector<8x768xf32>
    %c0_46 = arith.constant 0 : index
    %c12_47 = arith.constant 12 : index
    %105 = vector.load %arg2[%c0_46, %c12_47] : memref<64x67xf32, #tpu.memory_space<vmem>>, vector<8x1xf32>
    %106 = vector.broadcast %105 : vector<8x1xf32> to vector<8x768xf32>
    %107 = arith.addf %104, %106 : vector<8x768xf32>
    %108 = arith.negf %107 : vector<8x768xf32>
    %109 = math.exp %108 : vector<8x768xf32>
    %cst_48 = arith.constant 1.000000e+00 : f32
    %110 = vector.broadcast %cst_48 : f32 to vector<8x768xf32>
    %111 = arith.addf %110, %109 : vector<8x768xf32>
    %112 = arith.divf %110, %111 : vector<8x768xf32>
    %113 = arith.mulf %107, %112 : vector<8x768xf32>
    %c0_49 = arith.constant 0 : index
    %c128 = arith.constant 128 : index
    %114 = vector.load %arg3[%c0_49, %c128] : memref<64x896xbf16, #tpu.memory_space<vmem>>, vector<16x8xbf16>
    %115 = arith.truncf %113 : vector<8x768xf32> to vector<8x768xbf16>
    %cst_50 = arith.constant dense<0.000000e+00> : vector<16x768xf32>
    %116 = tpu.matmul %114, %115, %cst_50 {dimension_numbers = #tpu.dot_dimension_numbers<[1], [0], [0], [1], [0, 0, 1, 1], [], []>} : vector<16x8xbf16>, vector<8x768xbf16>, vector<16x768xf32> -> vector<16x768xf32>
    %c0_51 = arith.constant 0 : index
    %c13 = arith.constant 13 : index
    %117 = vector.load %arg2[%c0_51, %c13] : memref<64x67xf32, #tpu.memory_space<vmem>>, vector<16x1xf32>
    %118 = vector.broadcast %117 : vector<16x1xf32> to vector<16x768xf32>
    %119 = arith.mulf %116, %118 : vector<16x768xf32>
    %c0_52 = arith.constant 0 : index
    %c14 = arith.constant 14 : index
    %120 = vector.load %arg2[%c0_52, %c14] : memref<64x67xf32, #tpu.memory_space<vmem>>, vector<16x1xf32>
    %121 = vector.broadcast %120 : vector<16x1xf32> to vector<16x768xf32>
    %122 = arith.addf %119, %121 : vector<16x768xf32>
    %123 = arith.negf %122 : vector<16x768xf32>
    %124 = math.exp %123 : vector<16x768xf32>
    %cst_53 = arith.constant 1.000000e+00 : f32
    %125 = vector.broadcast %cst_53 : f32 to vector<16x768xf32>
    %126 = arith.addf %125, %124 : vector<16x768xf32>
    %127 = arith.divf %125, %126 : vector<16x768xf32>
    %128 = arith.mulf %122, %127 : vector<16x768xf32>
    %c0_54 = arith.constant 0 : index
    %c0_55 = arith.constant 0 : index
    %129 = vector.load %arg8[%c0_54, %c0_55] : memref<1x1280xf32, #tpu.memory_space<vmem>>, vector<1x768xf32>
    %130 = vector.broadcast %129 : vector<1x768xf32> to vector<16x768xf32>
    %131 = arith.mulf %128, %130 : vector<16x768xf32>
    %c19_i32_56 = arith.constant 19 : i32
    %132 = tpu.dynamic_rotate %131 by %c19_i32_56 dim 1 : vector<16x768xf32>, i32 -> vector<16x768xf32>
    %c0_57 = arith.constant 0 : index
    %c15_58 = arith.constant 15 : index
    %133 = vector.load %arg2[%c0_57, %c15_58] : memref<64x67xf32, #tpu.memory_space<vmem>>, vector<16x1xf32>
    %134 = vector.broadcast %133 : vector<16x1xf32> to vector<16x768xf32>
    %135 = arith.mulf %132, %134 : vector<16x768xf32>
    %c18_i32_59 = arith.constant 18 : i32
    %136 = tpu.dynamic_rotate %131 by %c18_i32_59 dim 1 : vector<16x768xf32>, i32 -> vector<16x768xf32>
    %c0_60 = arith.constant 0 : index
    %c16 = arith.constant 16 : index
    %137 = vector.load %arg2[%c0_60, %c16] : memref<64x67xf32, #tpu.memory_space<vmem>>, vector<16x1xf32>
    %138 = vector.broadcast %137 : vector<16x1xf32> to vector<16x768xf32>
    %139 = arith.mulf %136, %138 : vector<16x768xf32>
    %140 = arith.addf %135, %139 : vector<16x768xf32>
    %c17_i32_61 = arith.constant 17 : i32
    %141 = tpu.dynamic_rotate %131 by %c17_i32_61 dim 1 : vector<16x768xf32>, i32 -> vector<16x768xf32>
    %c0_62 = arith.constant 0 : index
    %c17 = arith.constant 17 : index
    %142 = vector.load %arg2[%c0_62, %c17] : memref<64x67xf32, #tpu.memory_space<vmem>>, vector<16x1xf32>
    %143 = vector.broadcast %142 : vector<16x1xf32> to vector<16x768xf32>
    %144 = arith.mulf %141, %143 : vector<16x768xf32>
    %145 = arith.addf %140, %144 : vector<16x768xf32>
    %c1_i32_63 = arith.constant 1 : i32
    %146 = tpu.dynamic_rotate %131 by %c1_i32_63 dim 1 : vector<16x768xf32>, i32 -> vector<16x768xf32>
    %c0_64 = arith.constant 0 : index
    %c18_65 = arith.constant 18 : index
    %147 = vector.load %arg2[%c0_64, %c18_65] : memref<64x67xf32, #tpu.memory_space<vmem>>, vector<16x1xf32>
    %148 = vector.broadcast %147 : vector<16x1xf32> to vector<16x768xf32>
    %149 = arith.mulf %146, %148 : vector<16x768xf32>
    %150 = arith.addf %145, %149 : vector<16x768xf32>
    %c0_66 = arith.constant 0 : index
    %c19 = arith.constant 19 : index
    %151 = vector.load %arg2[%c0_66, %c19] : memref<64x67xf32, #tpu.memory_space<vmem>>, vector<16x1xf32>
    %152 = vector.broadcast %151 : vector<16x1xf32> to vector<16x768xf32>
    %153 = arith.mulf %131, %152 : vector<16x768xf32>
    %154 = arith.addf %150, %153 : vector<16x768xf32>
    %c767_i32_67 = arith.constant 767 : i32
    %155 = tpu.dynamic_rotate %131 by %c767_i32_67 dim 1 : vector<16x768xf32>, i32 -> vector<16x768xf32>
    %c0_68 = arith.constant 0 : index
    %c20 = arith.constant 20 : index
    %156 = vector.load %arg2[%c0_68, %c20] : memref<64x67xf32, #tpu.memory_space<vmem>>, vector<16x1xf32>
    %157 = vector.broadcast %156 : vector<16x1xf32> to vector<16x768xf32>
    %158 = arith.mulf %155, %157 : vector<16x768xf32>
    %159 = arith.addf %154, %158 : vector<16x768xf32>
    %c751_i32_69 = arith.constant 751 : i32
    %160 = tpu.dynamic_rotate %131 by %c751_i32_69 dim 1 : vector<16x768xf32>, i32 -> vector<16x768xf32>
    %c0_70 = arith.constant 0 : index
    %c21_71 = arith.constant 21 : index
    %161 = vector.load %arg2[%c0_70, %c21_71] : memref<64x67xf32, #tpu.memory_space<vmem>>, vector<16x1xf32>
    %162 = vector.broadcast %161 : vector<16x1xf32> to vector<16x768xf32>
    %163 = arith.mulf %160, %162 : vector<16x768xf32>
    %164 = arith.addf %159, %163 : vector<16x768xf32>
    %c750_i32_72 = arith.constant 750 : i32
    %165 = tpu.dynamic_rotate %131 by %c750_i32_72 dim 1 : vector<16x768xf32>, i32 -> vector<16x768xf32>
    %c0_73 = arith.constant 0 : index
    %c22 = arith.constant 22 : index
    %166 = vector.load %arg2[%c0_73, %c22] : memref<64x67xf32, #tpu.memory_space<vmem>>, vector<16x1xf32>
    %167 = vector.broadcast %166 : vector<16x1xf32> to vector<16x768xf32>
    %168 = arith.mulf %165, %167 : vector<16x768xf32>
    %169 = arith.addf %164, %168 : vector<16x768xf32>
    %c749_i32_74 = arith.constant 749 : i32
    %170 = tpu.dynamic_rotate %131 by %c749_i32_74 dim 1 : vector<16x768xf32>, i32 -> vector<16x768xf32>
    %c0_75 = arith.constant 0 : index
    %c23 = arith.constant 23 : index
    %171 = vector.load %arg2[%c0_75, %c23] : memref<64x67xf32, #tpu.memory_space<vmem>>, vector<16x1xf32>
    %172 = vector.broadcast %171 : vector<16x1xf32> to vector<16x768xf32>
    %173 = arith.mulf %170, %172 : vector<16x768xf32>
    %174 = arith.addf %169, %173 : vector<16x768xf32>
    %c0_76 = arith.constant 0 : index
    %c0_77 = arith.constant 0 : index
    %175 = vector.load %arg5[%c0_76, %c0_77] : memref<768x256xf32, #tpu.memory_space<vmem>>, vector<768x256xf32>
    %cst_78 = arith.constant dense<0.000000e+00> : vector<16x256xf32>
    %176 = tpu.matmul %174, %175, %cst_78 {dimension_numbers = #tpu.dot_dimension_numbers<[1], [0], [0], [1], [0, 0, 1, 1], [], []>} : vector<16x768xf32>, vector<768x256xf32>, vector<16x256xf32> -> vector<16x256xf32>
    %c0_79 = arith.constant 0 : index
    %c24_80 = arith.constant 24 : index
    %177 = vector.load %arg2[%c0_79, %c24_80] : memref<64x67xf32, #tpu.memory_space<vmem>>, vector<16x1xf32>
    %178 = vector.broadcast %177 : vector<16x1xf32> to vector<16x256xf32>
    %179 = arith.mulf %176, %178 : vector<16x256xf32>
    %c0_81 = arith.constant 0 : index
    %c25 = arith.constant 25 : index
    %180 = vector.load %arg2[%c0_81, %c25] : memref<64x67xf32, #tpu.memory_space<vmem>>, vector<16x1xf32>
    %181 = vector.broadcast %180 : vector<16x1xf32> to vector<16x256xf32>
    %182 = arith.addf %179, %181 : vector<16x256xf32>
    %183 = arith.negf %182 : vector<16x256xf32>
    %184 = math.exp %183 : vector<16x256xf32>
    %cst_82 = arith.constant 1.000000e+00 : f32
    %185 = vector.broadcast %cst_82 : f32 to vector<16x256xf32>
    %186 = arith.addf %185, %184 : vector<16x256xf32>
    %187 = arith.divf %185, %186 : vector<16x256xf32>
    %188 = arith.mulf %182, %187 : vector<16x256xf32>
    %c0_83 = arith.constant 0 : index
    %c256 = arith.constant 256 : index
    %189 = vector.load %arg3[%c0_83, %c256] : memref<64x896xbf16, #tpu.memory_space<vmem>>, vector<32x16xbf16>
    %190 = arith.truncf %188 : vector<16x256xf32> to vector<16x256xbf16>
    %cst_84 = arith.constant dense<0.000000e+00> : vector<32x256xf32>
    %191 = tpu.matmul %189, %190, %cst_84 {dimension_numbers = #tpu.dot_dimension_numbers<[1], [0], [0], [1], [0, 0, 1, 1], [], []>} : vector<32x16xbf16>, vector<16x256xbf16>, vector<32x256xf32> -> vector<32x256xf32>
    %c0_85 = arith.constant 0 : index
    %c26 = arith.constant 26 : index
    %192 = vector.load %arg2[%c0_85, %c26] : memref<64x67xf32, #tpu.memory_space<vmem>>, vector<32x1xf32>
    %193 = vector.broadcast %192 : vector<32x1xf32> to vector<32x256xf32>
    %194 = arith.mulf %191, %193 : vector<32x256xf32>
    %c0_86 = arith.constant 0 : index
    %c27 = arith.constant 27 : index
    %195 = vector.load %arg2[%c0_86, %c27] : memref<64x67xf32, #tpu.memory_space<vmem>>, vector<32x1xf32>
    %196 = vector.broadcast %195 : vector<32x1xf32> to vector<32x256xf32>
    %197 = arith.addf %194, %196 : vector<32x256xf32>
    %198 = arith.negf %197 : vector<32x256xf32>
    %199 = math.exp %198 : vector<32x256xf32>
    %cst_87 = arith.constant 1.000000e+00 : f32
    %200 = vector.broadcast %cst_87 : f32 to vector<32x256xf32>
    %201 = arith.addf %200, %199 : vector<32x256xf32>
    %202 = arith.divf %200, %201 : vector<32x256xf32>
    %203 = arith.mulf %197, %202 : vector<32x256xf32>
    %c0_88 = arith.constant 0 : index
    %c768 = arith.constant 768 : index
    %204 = vector.load %arg8[%c0_88, %c768] : memref<1x1280xf32, #tpu.memory_space<vmem>>, vector<1x256xf32>
    %205 = vector.broadcast %204 : vector<1x256xf32> to vector<32x256xf32>
    %206 = arith.mulf %203, %205 : vector<32x256xf32>
    %c11_i32 = arith.constant 11 : i32
    %207 = tpu.dynamic_rotate %206 by %c11_i32 dim 1 : vector<32x256xf32>, i32 -> vector<32x256xf32>
    %c0_89 = arith.constant 0 : index
    %c28 = arith.constant 28 : index
    %208 = vector.load %arg2[%c0_89, %c28] : memref<64x67xf32, #tpu.memory_space<vmem>>, vector<32x1xf32>
    %209 = vector.broadcast %208 : vector<32x1xf32> to vector<32x256xf32>
    %210 = arith.mulf %207, %209 : vector<32x256xf32>
    %c10_i32 = arith.constant 10 : i32
    %211 = tpu.dynamic_rotate %206 by %c10_i32 dim 1 : vector<32x256xf32>, i32 -> vector<32x256xf32>
    %c0_90 = arith.constant 0 : index
    %c29 = arith.constant 29 : index
    %212 = vector.load %arg2[%c0_90, %c29] : memref<64x67xf32, #tpu.memory_space<vmem>>, vector<32x1xf32>
    %213 = vector.broadcast %212 : vector<32x1xf32> to vector<32x256xf32>
    %214 = arith.mulf %211, %213 : vector<32x256xf32>
    %215 = arith.addf %210, %214 : vector<32x256xf32>
    %c9_i32 = arith.constant 9 : i32
    %216 = tpu.dynamic_rotate %206 by %c9_i32 dim 1 : vector<32x256xf32>, i32 -> vector<32x256xf32>
    %c0_91 = arith.constant 0 : index
    %c30 = arith.constant 30 : index
    %217 = vector.load %arg2[%c0_91, %c30] : memref<64x67xf32, #tpu.memory_space<vmem>>, vector<32x1xf32>
    %218 = vector.broadcast %217 : vector<32x1xf32> to vector<32x256xf32>
    %219 = arith.mulf %216, %218 : vector<32x256xf32>
    %220 = arith.addf %215, %219 : vector<32x256xf32>
    %c1_i32_92 = arith.constant 1 : i32
    %221 = tpu.dynamic_rotate %206 by %c1_i32_92 dim 1 : vector<32x256xf32>, i32 -> vector<32x256xf32>
    %c0_93 = arith.constant 0 : index
    %c31 = arith.constant 31 : index
    %222 = vector.load %arg2[%c0_93, %c31] : memref<64x67xf32, #tpu.memory_space<vmem>>, vector<32x1xf32>
    %223 = vector.broadcast %222 : vector<32x1xf32> to vector<32x256xf32>
    %224 = arith.mulf %221, %223 : vector<32x256xf32>
    %225 = arith.addf %220, %224 : vector<32x256xf32>
    %c0_94 = arith.constant 0 : index
    %c32 = arith.constant 32 : index
    %226 = vector.load %arg2[%c0_94, %c32] : memref<64x67xf32, #tpu.memory_space<vmem>>, vector<32x1xf32>
    %227 = vector.broadcast %226 : vector<32x1xf32> to vector<32x256xf32>
    %228 = arith.mulf %206, %227 : vector<32x256xf32>
    %229 = arith.addf %225, %228 : vector<32x256xf32>
    %c255_i32 = arith.constant 255 : i32
    %230 = tpu.dynamic_rotate %206 by %c255_i32 dim 1 : vector<32x256xf32>, i32 -> vector<32x256xf32>
    %c0_95 = arith.constant 0 : index
    %c33 = arith.constant 33 : index
    %231 = vector.load %arg2[%c0_95, %c33] : memref<64x67xf32, #tpu.memory_space<vmem>>, vector<32x1xf32>
    %232 = vector.broadcast %231 : vector<32x1xf32> to vector<32x256xf32>
    %233 = arith.mulf %230, %232 : vector<32x256xf32>
    %234 = arith.addf %229, %233 : vector<32x256xf32>
    %c247_i32 = arith.constant 247 : i32
    %235 = tpu.dynamic_rotate %206 by %c247_i32 dim 1 : vector<32x256xf32>, i32 -> vector<32x256xf32>
    %c0_96 = arith.constant 0 : index
    %c34 = arith.constant 34 : index
    %236 = vector.load %arg2[%c0_96, %c34] : memref<64x67xf32, #tpu.memory_space<vmem>>, vector<32x1xf32>
    %237 = vector.broadcast %236 : vector<32x1xf32> to vector<32x256xf32>
    %238 = arith.mulf %235, %237 : vector<32x256xf32>
    %239 = arith.addf %234, %238 : vector<32x256xf32>
    %c246_i32 = arith.constant 246 : i32
    %240 = tpu.dynamic_rotate %206 by %c246_i32 dim 1 : vector<32x256xf32>, i32 -> vector<32x256xf32>
    %c0_97 = arith.constant 0 : index
    %c35 = arith.constant 35 : index
    %241 = vector.load %arg2[%c0_97, %c35] : memref<64x67xf32, #tpu.memory_space<vmem>>, vector<32x1xf32>
    %242 = vector.broadcast %241 : vector<32x1xf32> to vector<32x256xf32>
    %243 = arith.mulf %240, %242 : vector<32x256xf32>
    %244 = arith.addf %239, %243 : vector<32x256xf32>
    %c245_i32 = arith.constant 245 : i32
    %245 = tpu.dynamic_rotate %206 by %c245_i32 dim 1 : vector<32x256xf32>, i32 -> vector<32x256xf32>
    %c0_98 = arith.constant 0 : index
    %c36 = arith.constant 36 : index
    %246 = vector.load %arg2[%c0_98, %c36] : memref<64x67xf32, #tpu.memory_space<vmem>>, vector<32x1xf32>
    %247 = vector.broadcast %246 : vector<32x1xf32> to vector<32x256xf32>
    %248 = arith.mulf %245, %247 : vector<32x256xf32>
    %249 = arith.addf %244, %248 : vector<32x256xf32>
    %c0_99 = arith.constant 0 : index
    %c0_100 = arith.constant 0 : index
    %250 = vector.load %arg6[%c0_99, %c0_100] : memref<256x128xf32, #tpu.memory_space<vmem>>, vector<256x128xf32>
    %cst_101 = arith.constant dense<0.000000e+00> : vector<32x128xf32>
    %251 = tpu.matmul %249, %250, %cst_101 {dimension_numbers = #tpu.dot_dimension_numbers<[1], [0], [0], [1], [0, 0, 1, 1], [], []>} : vector<32x256xf32>, vector<256x128xf32>, vector<32x128xf32> -> vector<32x128xf32>
    %c0_102 = arith.constant 0 : index
    %c37 = arith.constant 37 : index
    %252 = vector.load %arg2[%c0_102, %c37] : memref<64x67xf32, #tpu.memory_space<vmem>>, vector<32x1xf32>
    %253 = vector.broadcast %252 : vector<32x1xf32> to vector<32x128xf32>
    %254 = arith.mulf %251, %253 : vector<32x128xf32>
    %c0_103 = arith.constant 0 : index
    %c38 = arith.constant 38 : index
    %255 = vector.load %arg2[%c0_103, %c38] : memref<64x67xf32, #tpu.memory_space<vmem>>, vector<32x1xf32>
    %256 = vector.broadcast %255 : vector<32x1xf32> to vector<32x128xf32>
    %257 = arith.addf %254, %256 : vector<32x128xf32>
    %258 = arith.negf %257 : vector<32x128xf32>
    %259 = math.exp %258 : vector<32x128xf32>
    %cst_104 = arith.constant 1.000000e+00 : f32
    %260 = vector.broadcast %cst_104 : f32 to vector<32x128xf32>
    %261 = arith.addf %260, %259 : vector<32x128xf32>
    %262 = arith.divf %260, %261 : vector<32x128xf32>
    %263 = arith.mulf %257, %262 : vector<32x128xf32>
    %c0_105 = arith.constant 0 : index
    %c384 = arith.constant 384 : index
    %264 = vector.load %arg3[%c0_105, %c384] : memref<64x896xbf16, #tpu.memory_space<vmem>>, vector<64x32xbf16>
    %265 = arith.truncf %263 : vector<32x128xf32> to vector<32x128xbf16>
    %cst_106 = arith.constant dense<0.000000e+00> : vector<64x128xf32>
    %266 = tpu.matmul %264, %265, %cst_106 {dimension_numbers = #tpu.dot_dimension_numbers<[1], [0], [0], [1], [0, 0, 1, 1], [], []>} : vector<64x32xbf16>, vector<32x128xbf16>, vector<64x128xf32> -> vector<64x128xf32>
    %c0_107 = arith.constant 0 : index
    %c39 = arith.constant 39 : index
    %267 = vector.load %arg2[%c0_107, %c39] : memref<64x67xf32, #tpu.memory_space<vmem>>, vector<64x1xf32>
    %268 = vector.broadcast %267 : vector<64x1xf32> to vector<64x128xf32>
    %269 = arith.mulf %266, %268 : vector<64x128xf32>
    %c0_108 = arith.constant 0 : index
    %c40 = arith.constant 40 : index
    %270 = vector.load %arg2[%c0_108, %c40] : memref<64x67xf32, #tpu.memory_space<vmem>>, vector<64x1xf32>
    %271 = vector.broadcast %270 : vector<64x1xf32> to vector<64x128xf32>
    %272 = arith.addf %269, %271 : vector<64x128xf32>
    %273 = arith.negf %272 : vector<64x128xf32>
    %274 = math.exp %273 : vector<64x128xf32>
    %cst_109 = arith.constant 1.000000e+00 : f32
    %275 = vector.broadcast %cst_109 : f32 to vector<64x128xf32>
    %276 = arith.addf %275, %274 : vector<64x128xf32>
    %277 = arith.divf %275, %276 : vector<64x128xf32>
    %278 = arith.mulf %272, %277 : vector<64x128xf32>
    %c0_110 = arith.constant 0 : index
    %c1024 = arith.constant 1024 : index
    %279 = vector.load %arg8[%c0_110, %c1024] : memref<1x1280xf32, #tpu.memory_space<vmem>>, vector<1x128xf32>
    %280 = vector.broadcast %279 : vector<1x128xf32> to vector<64x128xf32>
    %281 = arith.mulf %278, %280 : vector<64x128xf32>
    %c7_i32 = arith.constant 7 : i32
    %282 = tpu.dynamic_rotate %281 by %c7_i32 dim 1 : vector<64x128xf32>, i32 -> vector<64x128xf32>
    %c0_111 = arith.constant 0 : index
    %c41 = arith.constant 41 : index
    %283 = vector.load %arg2[%c0_111, %c41] : memref<64x67xf32, #tpu.memory_space<vmem>>, vector<64x1xf32>
    %284 = vector.broadcast %283 : vector<64x1xf32> to vector<64x128xf32>
    %285 = arith.mulf %282, %284 : vector<64x128xf32>
    %c6_i32 = arith.constant 6 : i32
    %286 = tpu.dynamic_rotate %281 by %c6_i32 dim 1 : vector<64x128xf32>, i32 -> vector<64x128xf32>
    %c0_112 = arith.constant 0 : index
    %c42 = arith.constant 42 : index
    %287 = vector.load %arg2[%c0_112, %c42] : memref<64x67xf32, #tpu.memory_space<vmem>>, vector<64x1xf32>
    %288 = vector.broadcast %287 : vector<64x1xf32> to vector<64x128xf32>
    %289 = arith.mulf %286, %288 : vector<64x128xf32>
    %290 = arith.addf %285, %289 : vector<64x128xf32>
    %c5_i32 = arith.constant 5 : i32
    %291 = tpu.dynamic_rotate %281 by %c5_i32 dim 1 : vector<64x128xf32>, i32 -> vector<64x128xf32>
    %c0_113 = arith.constant 0 : index
    %c43 = arith.constant 43 : index
    %292 = vector.load %arg2[%c0_113, %c43] : memref<64x67xf32, #tpu.memory_space<vmem>>, vector<64x1xf32>
    %293 = vector.broadcast %292 : vector<64x1xf32> to vector<64x128xf32>
    %294 = arith.mulf %291, %293 : vector<64x128xf32>
    %295 = arith.addf %290, %294 : vector<64x128xf32>
    %c1_i32_114 = arith.constant 1 : i32
    %296 = tpu.dynamic_rotate %281 by %c1_i32_114 dim 1 : vector<64x128xf32>, i32 -> vector<64x128xf32>
    %c0_115 = arith.constant 0 : index
    %c44 = arith.constant 44 : index
    %297 = vector.load %arg2[%c0_115, %c44] : memref<64x67xf32, #tpu.memory_space<vmem>>, vector<64x1xf32>
    %298 = vector.broadcast %297 : vector<64x1xf32> to vector<64x128xf32>
    %299 = arith.mulf %296, %298 : vector<64x128xf32>
    %300 = arith.addf %295, %299 : vector<64x128xf32>
    %c0_116 = arith.constant 0 : index
    %c45 = arith.constant 45 : index
    %301 = vector.load %arg2[%c0_116, %c45] : memref<64x67xf32, #tpu.memory_space<vmem>>, vector<64x1xf32>
    %302 = vector.broadcast %301 : vector<64x1xf32> to vector<64x128xf32>
    %303 = arith.mulf %281, %302 : vector<64x128xf32>
    %304 = arith.addf %300, %303 : vector<64x128xf32>
    %c127_i32 = arith.constant 127 : i32
    %305 = tpu.dynamic_rotate %281 by %c127_i32 dim 1 : vector<64x128xf32>, i32 -> vector<64x128xf32>
    %c0_117 = arith.constant 0 : index
    %c46 = arith.constant 46 : index
    %306 = vector.load %arg2[%c0_117, %c46] : memref<64x67xf32, #tpu.memory_space<vmem>>, vector<64x1xf32>
    %307 = vector.broadcast %306 : vector<64x1xf32> to vector<64x128xf32>
    %308 = arith.mulf %305, %307 : vector<64x128xf32>
    %309 = arith.addf %304, %308 : vector<64x128xf32>
    %c123_i32 = arith.constant 123 : i32
    %310 = tpu.dynamic_rotate %281 by %c123_i32 dim 1 : vector<64x128xf32>, i32 -> vector<64x128xf32>
    %c0_118 = arith.constant 0 : index
    %c47 = arith.constant 47 : index
    %311 = vector.load %arg2[%c0_118, %c47] : memref<64x67xf32, #tpu.memory_space<vmem>>, vector<64x1xf32>
    %312 = vector.broadcast %311 : vector<64x1xf32> to vector<64x128xf32>
    %313 = arith.mulf %310, %312 : vector<64x128xf32>
    %314 = arith.addf %309, %313 : vector<64x128xf32>
    %c122_i32 = arith.constant 122 : i32
    %315 = tpu.dynamic_rotate %281 by %c122_i32 dim 1 : vector<64x128xf32>, i32 -> vector<64x128xf32>
    %c0_119 = arith.constant 0 : index
    %c48 = arith.constant 48 : index
    %316 = vector.load %arg2[%c0_119, %c48] : memref<64x67xf32, #tpu.memory_space<vmem>>, vector<64x1xf32>
    %317 = vector.broadcast %316 : vector<64x1xf32> to vector<64x128xf32>
    %318 = arith.mulf %315, %317 : vector<64x128xf32>
    %319 = arith.addf %314, %318 : vector<64x128xf32>
    %c121_i32 = arith.constant 121 : i32
    %320 = tpu.dynamic_rotate %281 by %c121_i32 dim 1 : vector<64x128xf32>, i32 -> vector<64x128xf32>
    %c0_120 = arith.constant 0 : index
    %c49 = arith.constant 49 : index
    %321 = vector.load %arg2[%c0_120, %c49] : memref<64x67xf32, #tpu.memory_space<vmem>>, vector<64x1xf32>
    %322 = vector.broadcast %321 : vector<64x1xf32> to vector<64x128xf32>
    %323 = arith.mulf %320, %322 : vector<64x128xf32>
    %324 = arith.addf %319, %323 : vector<64x128xf32>
    %c0_121 = arith.constant 0 : index
    %c0_122 = arith.constant 0 : index
    %325 = vector.load %arg7[%c0_121, %c0_122] : memref<128x128xf32, #tpu.memory_space<vmem>>, vector<128x128xf32>
    %cst_123 = arith.constant dense<0.000000e+00> : vector<64x128xf32>
    %326 = tpu.matmul %324, %325, %cst_123 {dimension_numbers = #tpu.dot_dimension_numbers<[1], [0], [0], [1], [0, 0, 1, 1], [], []>} : vector<64x128xf32>, vector<128x128xf32>, vector<64x128xf32> -> vector<64x128xf32>
    %c0_124 = arith.constant 0 : index
    %c50 = arith.constant 50 : index
    %327 = vector.load %arg2[%c0_124, %c50] : memref<64x67xf32, #tpu.memory_space<vmem>>, vector<64x1xf32>
    %328 = vector.broadcast %327 : vector<64x1xf32> to vector<64x128xf32>
    %329 = arith.mulf %326, %328 : vector<64x128xf32>
    %c0_125 = arith.constant 0 : index
    %c51 = arith.constant 51 : index
    %330 = vector.load %arg2[%c0_125, %c51] : memref<64x67xf32, #tpu.memory_space<vmem>>, vector<64x1xf32>
    %331 = vector.broadcast %330 : vector<64x1xf32> to vector<64x128xf32>
    %332 = arith.addf %329, %331 : vector<64x128xf32>
    %333 = arith.negf %332 : vector<64x128xf32>
    %334 = math.exp %333 : vector<64x128xf32>
    %cst_126 = arith.constant 1.000000e+00 : f32
    %335 = vector.broadcast %cst_126 : f32 to vector<64x128xf32>
    %336 = arith.addf %335, %334 : vector<64x128xf32>
    %337 = arith.divf %335, %336 : vector<64x128xf32>
    %338 = arith.mulf %332, %337 : vector<64x128xf32>
    %c0_127 = arith.constant 0 : index
    %c512 = arith.constant 512 : index
    %339 = vector.load %arg3[%c0_127, %c512] : memref<64x896xbf16, #tpu.memory_space<vmem>>, vector<64x64xbf16>
    %340 = arith.truncf %338 : vector<64x128xf32> to vector<64x128xbf16>
    %cst_128 = arith.constant dense<0.000000e+00> : vector<64x128xf32>
    %341 = tpu.matmul %339, %340, %cst_128 {dimension_numbers = #tpu.dot_dimension_numbers<[1], [0], [0], [1], [0, 0, 1, 1], [], []>} : vector<64x64xbf16>, vector<64x128xbf16>, vector<64x128xf32> -> vector<64x128xf32>
    %c0_129 = arith.constant 0 : index
    %c52 = arith.constant 52 : index
    %342 = vector.load %arg2[%c0_129, %c52] : memref<64x67xf32, #tpu.memory_space<vmem>>, vector<64x1xf32>
    %343 = vector.broadcast %342 : vector<64x1xf32> to vector<64x128xf32>
    %344 = arith.mulf %341, %343 : vector<64x128xf32>
    %c0_130 = arith.constant 0 : index
    %c53 = arith.constant 53 : index
    %345 = vector.load %arg2[%c0_130, %c53] : memref<64x67xf32, #tpu.memory_space<vmem>>, vector<64x1xf32>
    %346 = vector.broadcast %345 : vector<64x1xf32> to vector<64x128xf32>
    %347 = arith.addf %344, %346 : vector<64x128xf32>
    %348 = arith.negf %347 : vector<64x128xf32>
    %349 = math.exp %348 : vector<64x128xf32>
    %cst_131 = arith.constant 1.000000e+00 : f32
    %350 = vector.broadcast %cst_131 : f32 to vector<64x128xf32>
    %351 = arith.addf %350, %349 : vector<64x128xf32>
    %352 = arith.divf %350, %351 : vector<64x128xf32>
    %353 = arith.mulf %347, %352 : vector<64x128xf32>
    %c0_132 = arith.constant 0 : index
    %c1152 = arith.constant 1152 : index
    %354 = vector.load %arg8[%c0_132, %c1152] : memref<1x1280xf32, #tpu.memory_space<vmem>>, vector<1x128xf32>
    %355 = vector.broadcast %354 : vector<1x128xf32> to vector<64x128xf32>
    %356 = arith.mulf %353, %355 : vector<64x128xf32>
    %c5_i32_133 = arith.constant 5 : i32
    %357 = tpu.dynamic_rotate %356 by %c5_i32_133 dim 1 : vector<64x128xf32>, i32 -> vector<64x128xf32>
    %c0_134 = arith.constant 0 : index
    %c54 = arith.constant 54 : index
    %358 = vector.load %arg2[%c0_134, %c54] : memref<64x67xf32, #tpu.memory_space<vmem>>, vector<64x1xf32>
    %359 = vector.broadcast %358 : vector<64x1xf32> to vector<64x128xf32>
    %360 = arith.mulf %357, %359 : vector<64x128xf32>
    %c4_i32 = arith.constant 4 : i32
    %361 = tpu.dynamic_rotate %356 by %c4_i32 dim 1 : vector<64x128xf32>, i32 -> vector<64x128xf32>
    %c0_135 = arith.constant 0 : index
    %c55 = arith.constant 55 : index
    %362 = vector.load %arg2[%c0_135, %c55] : memref<64x67xf32, #tpu.memory_space<vmem>>, vector<64x1xf32>
    %363 = vector.broadcast %362 : vector<64x1xf32> to vector<64x128xf32>
    %364 = arith.mulf %361, %363 : vector<64x128xf32>
    %365 = arith.addf %360, %364 : vector<64x128xf32>
    %c3_i32 = arith.constant 3 : i32
    %366 = tpu.dynamic_rotate %356 by %c3_i32 dim 1 : vector<64x128xf32>, i32 -> vector<64x128xf32>
    %c0_136 = arith.constant 0 : index
    %c56 = arith.constant 56 : index
    %367 = vector.load %arg2[%c0_136, %c56] : memref<64x67xf32, #tpu.memory_space<vmem>>, vector<64x1xf32>
    %368 = vector.broadcast %367 : vector<64x1xf32> to vector<64x128xf32>
    %369 = arith.mulf %366, %368 : vector<64x128xf32>
    %370 = arith.addf %365, %369 : vector<64x128xf32>
    %c1_i32_137 = arith.constant 1 : i32
    %371 = tpu.dynamic_rotate %356 by %c1_i32_137 dim 1 : vector<64x128xf32>, i32 -> vector<64x128xf32>
    %c0_138 = arith.constant 0 : index
    %c57 = arith.constant 57 : index
    %372 = vector.load %arg2[%c0_138, %c57] : memref<64x67xf32, #tpu.memory_space<vmem>>, vector<64x1xf32>
    %373 = vector.broadcast %372 : vector<64x1xf32> to vector<64x128xf32>
    %374 = arith.mulf %371, %373 : vector<64x128xf32>
    %375 = arith.addf %370, %374 : vector<64x128xf32>
    %c0_139 = arith.constant 0 : index
    %c58 = arith.constant 58 : index
    %376 = vector.load %arg2[%c0_139, %c58] : memref<64x67xf32, #tpu.memory_space<vmem>>, vector<64x1xf32>
    %377 = vector.broadcast %376 : vector<64x1xf32> to vector<64x128xf32>
    %378 = arith.mulf %356, %377 : vector<64x128xf32>
    %379 = arith.addf %375, %378 : vector<64x128xf32>
    %c127_i32_140 = arith.constant 127 : i32
    %380 = tpu.dynamic_rotate %356 by %c127_i32_140 dim 1 : vector<64x128xf32>, i32 -> vector<64x128xf32>
    %c0_141 = arith.constant 0 : index
    %c59 = arith.constant 59 : index
    %381 = vector.load %arg2[%c0_141, %c59] : memref<64x67xf32, #tpu.memory_space<vmem>>, vector<64x1xf32>
    %382 = vector.broadcast %381 : vector<64x1xf32> to vector<64x128xf32>
    %383 = arith.mulf %380, %382 : vector<64x128xf32>
    %384 = arith.addf %379, %383 : vector<64x128xf32>
    %c125_i32 = arith.constant 125 : i32
    %385 = tpu.dynamic_rotate %356 by %c125_i32 dim 1 : vector<64x128xf32>, i32 -> vector<64x128xf32>
    %c0_142 = arith.constant 0 : index
    %c60 = arith.constant 60 : index
    %386 = vector.load %arg2[%c0_142, %c60] : memref<64x67xf32, #tpu.memory_space<vmem>>, vector<64x1xf32>
    %387 = vector.broadcast %386 : vector<64x1xf32> to vector<64x128xf32>
    %388 = arith.mulf %385, %387 : vector<64x128xf32>
    %389 = arith.addf %384, %388 : vector<64x128xf32>
    %c124_i32 = arith.constant 124 : i32
    %390 = tpu.dynamic_rotate %356 by %c124_i32 dim 1 : vector<64x128xf32>, i32 -> vector<64x128xf32>
    %c0_143 = arith.constant 0 : index
    %c61 = arith.constant 61 : index
    %391 = vector.load %arg2[%c0_143, %c61] : memref<64x67xf32, #tpu.memory_space<vmem>>, vector<64x1xf32>
    %392 = vector.broadcast %391 : vector<64x1xf32> to vector<64x128xf32>
    %393 = arith.mulf %390, %392 : vector<64x128xf32>
    %394 = arith.addf %389, %393 : vector<64x128xf32>
    %c123_i32_144 = arith.constant 123 : i32
    %395 = tpu.dynamic_rotate %356 by %c123_i32_144 dim 1 : vector<64x128xf32>, i32 -> vector<64x128xf32>
    %c0_145 = arith.constant 0 : index
    %c62 = arith.constant 62 : index
    %396 = vector.load %arg2[%c0_145, %c62] : memref<64x67xf32, #tpu.memory_space<vmem>>, vector<64x1xf32>
    %397 = vector.broadcast %396 : vector<64x1xf32> to vector<64x128xf32>
    %398 = arith.mulf %395, %397 : vector<64x128xf32>
    %399 = arith.addf %394, %398 : vector<64x128xf32>
    %c0_146 = arith.constant 0 : index
    %c63 = arith.constant 63 : index
    %400 = vector.load %arg2[%c0_146, %c63] : memref<64x67xf32, #tpu.memory_space<vmem>>, vector<64x1xf32>
    %401 = vector.broadcast %400 : vector<64x1xf32> to vector<64x128xf32>
    %402 = arith.mulf %399, %401 : vector<64x128xf32>
    %c0_147 = arith.constant 0 : index
    %c64 = arith.constant 64 : index
    %403 = vector.load %arg2[%c0_147, %c64] : memref<64x67xf32, #tpu.memory_space<vmem>>, vector<64x1xf32>
    %404 = vector.broadcast %403 : vector<64x1xf32> to vector<64x128xf32>
    %405 = arith.addf %402, %404 : vector<64x128xf32>
    %406 = arith.negf %405 : vector<64x128xf32>
    %407 = math.exp %406 : vector<64x128xf32>
    %cst_148 = arith.constant 1.000000e+00 : f32
    %408 = vector.broadcast %cst_148 : f32 to vector<64x128xf32>
    %409 = arith.addf %408, %407 : vector<64x128xf32>
    %410 = arith.divf %408, %409 : vector<64x128xf32>
    %411 = arith.mulf %405, %410 : vector<64x128xf32>
    %c0_149 = arith.constant 0 : index
    %c640 = arith.constant 640 : index
    %412 = vector.load %arg3[%c0_149, %c640] : memref<64x896xbf16, #tpu.memory_space<vmem>>, vector<64x64xbf16>
    %413 = arith.truncf %411 : vector<64x128xf32> to vector<64x128xbf16>
    %cst_150 = arith.constant dense<0.000000e+00> : vector<64x128xf32>
    %414 = tpu.matmul %412, %413, %cst_150 {dimension_numbers = #tpu.dot_dimension_numbers<[1], [0], [0], [1], [0, 0, 1, 1], [], []>} : vector<64x64xbf16>, vector<64x128xbf16>, vector<64x128xf32> -> vector<64x128xf32>
    %c0_151 = arith.constant 0 : index
    %c65 = arith.constant 65 : index
    %415 = vector.load %arg2[%c0_151, %c65] : memref<64x67xf32, #tpu.memory_space<vmem>>, vector<64x1xf32>
    %416 = vector.broadcast %415 : vector<64x1xf32> to vector<64x128xf32>
    %417 = arith.mulf %414, %416 : vector<64x128xf32>
    %c0_152 = arith.constant 0 : index
    %c66 = arith.constant 66 : index
    %418 = vector.load %arg2[%c0_152, %c66] : memref<64x67xf32, #tpu.memory_space<vmem>>, vector<64x1xf32>
    %419 = vector.broadcast %418 : vector<64x1xf32> to vector<64x128xf32>
    %420 = arith.addf %417, %419 : vector<64x128xf32>
    %421 = arith.negf %420 : vector<64x128xf32>
    %422 = math.exp %421 : vector<64x128xf32>
    %cst_153 = arith.constant 1.000000e+00 : f32
    %423 = vector.broadcast %cst_153 : f32 to vector<64x128xf32>
    %424 = arith.addf %423, %422 : vector<64x128xf32>
    %425 = arith.divf %423, %424 : vector<64x128xf32>
    %426 = arith.mulf %420, %425 : vector<64x128xf32>
    %c0_154 = arith.constant 0 : index
    %c0_155 = arith.constant 0 : index
    %427 = vector.load %arg9[%c0_154, %c0_155] : memref<2x128xf32, #tpu.memory_space<vmem>>, vector<2x128xf32>
    %cst_156 = arith.constant dense<0.000000e+00> : vector<2x64xf32>
    %428 = tpu.matmul %427, %426, %cst_156 {dimension_numbers = #tpu.dot_dimension_numbers<[1], [1], [0], [0], [0, 0, 1, 0], [], []>} : vector<2x128xf32>, vector<64x128xf32>, vector<2x64xf32> -> vector<2x64xf32>
    %c0_157 = arith.constant 0 : index
    %c768_158 = arith.constant 768 : index
    %429 = vector.load %arg3[%c0_157, %c768_158] : memref<64x896xbf16, #tpu.memory_space<vmem>>, vector<64x128xbf16>
    %430 = arith.truncf %428 : vector<2x64xf32> to vector<2x64xbf16>
    %cst_159 = arith.constant dense<0.000000e+00> : vector<2x128xf32>
    %431 = tpu.matmul %430, %429, %cst_159 {dimension_numbers = #tpu.dot_dimension_numbers<[1], [0], [0], [1], [0, 0, 1, 1], [], []>} : vector<2x64xbf16>, vector<64x128xbf16>, vector<2x128xf32> -> vector<2x128xf32>
    %c0_160 = arith.constant 0 : index
    %c0_161 = arith.constant 0 : index
    %432 = vector.load %arg4[%c0_160, %c0_161] : memref<1x128xf32, #tpu.memory_space<vmem>>, vector<1x128xf32>
    %433 = vector.broadcast %432 : vector<1x128xf32> to vector<2x128xf32>
    %434 = arith.addf %431, %433 : vector<2x128xf32>
    %c0_162 = arith.constant 0 : index
    %c0_163 = arith.constant 0 : index
    %c0_164 = arith.constant 0 : index
    %435 = vector.load %arg10[%c0_162, %c0_163, %c0_164] : memref<1x2x128xf32, #tpu.memory_space<vmem>>, vector<1x2x128xf32>
    %436 = vector.shape_cast %435 : vector<1x2x128xf32> to vector<2x128xf32>
    %437 = vector.shape_cast %434 : vector<2x128xf32> to vector<1x2x128xf32>
    tpu.vector_store %arg10[%c0_162, %c0_163, %c0_164], %437 {strides = array<i32>} : memref<1x2x128xf32, #tpu.memory_space<vmem>>, vector<1x2x128xf32>,
    return
  }
  func.func @transform_0(%arg0: i32) -> (i32, i32) {
    %c0_i32 = arith.constant 0 : i32
    %c0_i32_0 = arith.constant 0 : i32
    return %c0_i32, %arg0 : i32, i32
  }
  func.func @transform_1(%arg0: i32) -> (i32, i32) {
    %c0_i32 = arith.constant 0 : i32
    %c0_i32_0 = arith.constant 0 : i32
    %c0_i32_1 = arith.constant 0 : i32
    return %c0_i32, %c0_i32_0 : i32, i32
  }
  func.func @transform_2(%arg0: i32) -> (i32, i32) {
    %c0_i32 = arith.constant 0 : i32
    %c0_i32_0 = arith.constant 0 : i32
    %c0_i32_1 = arith.constant 0 : i32
    return %c0_i32, %c0_i32_0 : i32, i32
  }
  func.func @transform_3(%arg0: i32) -> (i32, i32) {
    %c0_i32 = arith.constant 0 : i32
    %c0_i32_0 = arith.constant 0 : i32
    %c0_i32_1 = arith.constant 0 : i32
    return %c0_i32, %c0_i32_0 : i32, i32
  }
  func.func @transform_4(%arg0: i32) -> (i32, i32) {
    %c0_i32 = arith.constant 0 : i32
    %c0_i32_0 = arith.constant 0 : i32
    %c0_i32_1 = arith.constant 0 : i32
    return %c0_i32, %c0_i32_0 : i32, i32
  }
  func.func @transform_5(%arg0: i32) -> (i32, i32) {
    %c0_i32 = arith.constant 0 : i32
    %c0_i32_0 = arith.constant 0 : i32
    %c0_i32_1 = arith.constant 0 : i32
    return %c0_i32, %c0_i32_0 : i32, i32
  }
  func.func @transform_6(%arg0: i32) -> (i32, i32) {
    %c0_i32 = arith.constant 0 : i32
    %c0_i32_0 = arith.constant 0 : i32
    %c0_i32_1 = arith.constant 0 : i32
    return %c0_i32, %c0_i32_0 : i32, i32
  }
  func.func @transform_7(%arg0: i32) -> (i32, i32) {
    %c0_i32 = arith.constant 0 : i32
    %c0_i32_0 = arith.constant 0 : i32
    %c0_i32_1 = arith.constant 0 : i32
    return %c0_i32, %c0_i32_0 : i32, i32
  }
  func.func @transform_8(%arg0: i32) -> (i32, i32) {
    %c0_i32 = arith.constant 0 : i32
    %c0_i32_0 = arith.constant 0 : i32
    %c0_i32_1 = arith.constant 0 : i32
    return %c0_i32, %c0_i32_0 : i32, i32
  }
  func.func @transform_9(%arg0: i32) -> (i32, i32, i32) {
    %c0_i32 = arith.constant 0 : i32
    %c0_i32_0 = arith.constant 0 : i32
    %c0_i32_1 = arith.constant 0 : i32
    return %arg0, %c0_i32, %c0_i32_0 : i32, i32, i32
  }
}

</mosaic_0001>

<bundles_post_ra>
// kernel: mobilenetv1_forward.1
= control target key start
LH: loop header
LB: loop body
LE: loop exit
PB: predicated region body
PF: predicated region fallthrough
CT: control target
= control target key end

     0   :  { %s13999_s0 = inlined_call_operand.vmem [shape: f32[3,3072], index: 0, kind: input, shape index: {}]   ;;  %s14000_s1 = inlined_call_operand.vmem [shape: f32[64,67], index: 1, kind: input, shape index: {}]   ;;  %s14001_s2 = inlined_call_operand.vmem [shape: bf16[64,896], index: 2, kind: input, shape index: {}]   ;;  %s14002_s3 = inlined_call_operand.vmem [shape: f32[1,128], index: 3, kind: input, shape index: {}]   ;;  %s14003_s4 = inlined_call_operand.vmem [shape: f32[768,256], index: 4, kind: input, shape index: {}]   ;;  %s14004_s5 = inlined_call_operand.vmem [shape: f32[256,128], index: 5, kind: input, shape index: {}]   ;;  %s14005_s6 = inlined_call_operand.hbm [shape: f32[128,128], index: 6, kind: input, shape index: {}]   ;;  %s14006_s7 = inlined_call_operand.vmem [shape: f32[1,1280], index: 7, kind: input, shape index: {}]   ;;  %s14007_s8 = inlined_call_operand.vmem [shape: f32[2,128], index: 8, kind: input, shape index: {}]   ;;  %s14008_s9 = inlined_call_operand.hbm [shape: f32[4,2,128], index: 9, kind: output, shape index: {}]  }
   0x1   :  { %14152 = sst [smem:[#allocation58_spill]] %s13999_s0 }
   0x2   :  { %14153 = sst [smem:[#allocation59_spill]] %s14005_s6 }
   0x3   :  { %14 = vsyncpa [#allocation3], 0 }
   0x4   :  { %15 = vsyncpa [#allocation4], 0 }
   0x5   :  { %17 = vsyncpa [#allocation4 + $0x1], 0  ;;  %s8967_s30 = smov 0   ;;  %s8969_s10 = smov 0  }
   0x6   :  { %s8971_s11 = smov 0   ;;  %s8973_s12 = smov 0  }
   0x7 LB: > { %14154 = sst [smem:[#allocation8_spill]] %s8808_s11  ;;  %s8988_s13 = sadd.s32 4294967295, %s8812_s12   ;;  %s8812_s12 = sphi %s8973_s12, %s14533_s12   ;;  %s8808_s11 = sphi %s8971_s11, %s14530_s11   ;;  %s8804_s10 = sphi %s8969_s10, %s14532_s10   ;;  %s8800_s30 = sphi %s8967_s30, %s14531_s30  }
   0x8   : > { %s7135_s14 = sadd.s32 4294967294, %s8812_s12   ;;  %s8992_s15 = sadd.s32 1, %s8812_s12  }
   0x9   : > { %s224_s16 = sadd.s32 1, %s8808_s11  ;;  %s221_s17 = ssub.s32 %s8812_s12, %s8992_s15 }
   0xa   : > { %p234_p0 = scmp.ne.s32.totalorder %s8808_s11, %s8804_s10  ;;  %p222_p1 = scmp.eq.s32.totalorder %s221_s17, 0 }
   0xb   : > { %p235_p2 = scmp.eq.s32.totalorder %s8988_s13, 3  ;;  %p240_p3 = scmp.ne.s32.totalorder %s8804_s10, %s8800_s30 }
   0xc   : > { %p241_p4 = scmp.eq.s32.totalorder %s7135_s14, 3  ;;  %p7136_p7 = scmp.ge.s32.totalorder %s8812_s12, 1 }
   0xd   : > { %s9003_s18 = scalar_select %p222_p1, %s8808_s11, %s224_s16  }
   0xe   : > { %p9005_p5 = por %p235_p2, %p234_p0  ;;  %p9009_p6 = por %p241_p4, %p240_p3 }
   0xf   : > { %14155 = sst [smem:[#allocation9_spill]] %s9003_s18  ;;  %p248_p8 = scmp.lt.s32.totalorder %s8812_s12, 5 }
  0x10   : > { %s14156_s19 = scalar_select %p9005_p5, 1, 0 }
  0x11   : > { %s14157_s20 = scalar_select %p9009_p6, 1, 0 }
  0x12   : > { %p14009_p9 = scmp.eq.s32.totalorder %s8988_s13, 0  ;;  %p9016_p10 = pnand %p7136_p7, %p248_p8 }
  0x13   : > { %s8814_s22 = smov [#allocation2]   ;;  %s14160_s6 = sld [smem:[#allocation59_spill]] }
  0x14   : > { %s14158_s21 = scalar_select %p9016_p10, 1, 0 }
  0x15   : > { %s275_s23 = sshll.u32 %s8814_s22, 4  ;;  %p7903_p11 = pneg %p9016_p10  ;;  %s276_s23 = int_to_ptr.vmem [resolvable:$true] %s275_s23 }
  0x17   : > { %p9024_p12 = pnand %p14009_p9, %p7903_p11 }
  0x19   : > { %s8718_s27 = scalar_lea.hbm %s14160_s6, 2048  ;;  %p8720_p0 = pneg %p9024_p12 }
  0x1a   : > { %p8719_p13 = scmp.ne.s32.totalorder %s14160_s6, %s8718_s27  ;;  %p8725_p3 = scmp.lt.u32.totalorder %s8718_s27, %s14160_s6 }
  0x1c   : > { %p8721_p1 = pnand %p8720_p0, %p8719_p13 }
  0x1e   : > { %p8722_p2 = pneg %p8721_p1 }
  0x20   : > { %p8727_p4 = pnand %p8725_p3, %p8722_p2 }
  0x22   : > { %8730 = shalt.err (!%p8727_p4)
}
  0x23   : > { %s8731_s17 = scalar_lea.vmem %s276_s23, 2048  ;;  %p8739_p9 = scmp.lt.s32.totalorder %s276_s23, %s276_s23 }
  0x24   : > { %p8732_p7 = scmp.ne.s32.totalorder %s276_s23, %s8731_s17  ;;  %p8740_p6 = scmp.lt.s32.totalorder %s8731_s17, %s8731_s17 }
  0x26   : > { %p8734_p8 = pnand %p8732_p7, %p8720_p0  ;;  %p8741_p5 = por %p8740_p6, %p8739_p9 }
  0x28   : > { %p8735_p11 = pneg %p8734_p8 }
  0x2a   : > { %p8742_p10 = pnand %p8741_p5, %p8735_p11 }
  0x2c   : > { %8745 = shalt.err (!%p8742_p10)
}
  0x2d   : > { %s8815_s22 = smov 128   ;;  %s8816_s25 = smov 8  }
  0x2e   : > { %7906 = dma.hbm_to_vmem [thread:$0]  (!%p9024_p12), %s14160_s6, 2048, %s276_s23, [#allocation3], %s8815_s22, %s8815_s22, %s8816_s25  }
  0x2f   : > { %p14161_p13 = scmp.ne.s32.totalorder %s14158_s21, 0 }
  0x31   : > { %306 = sbr.rel (%p14161_p13) target bundleno = 4483 (0x1183), region = 56 }
  0x38   : > { %p14162_p1 = scmp.eq.s32.totalorder %s8988_s13, 0 }
  0x3a   : > { %8791 = dma.done.wait (%p14162_p1), [#allocation3], 2048   ;;  %p14163_p0 = pmov %p14162_p1 }
  0x3b   : > { %s342_s27 = smul.u32 6, %s8988_s13  ;;  %s14164_s0 = sld [smem:[#allocation58_spill]]  ;;  %v9069_v4 = vld [vmem:[%s14001_s2] sm:$0xf]  ;;  %v14025_v10 = vmov 0   ;;  %v373_v20 = vlaneseq  ;;  %vm423_vm0 = vcmask 1040384  }
  0x3c   : > { %8793 = vsyncadd (%p14163_p0), [#allocation3], 4294965248  ;;  %s14051_s17 = smov 18   ;;  %v7143_v8 = vcombine.low %v9069_v4, %v9069_v4  ;;  %477 = vmatprep.mubr.bf16.mxu0 %v14025_v10  ;;  %662 = vmatprep.mubr.bf16.mxu1 %v14025_v10  ;;  %s14012_s22 = smov 125   ;;  %v8353_v12 = vld [vmem:[%s14001_s2] ss:$0 sps:$4 sm:$0xff]  }
  0x3d   : > { %p343_p5 = scmp.lt.s32.totalorder %s342_s27, 23  ;;  %8128 = vset.pattern.permute.xlu0 %v14025_v10  ;;  %s14049_s25 = smov 19   ;;  %v8354_v13 = vld [vmem:[%s14001_s2] ss:$0 sps:$4 sm:$0xff]   ;;  %v9163_v21 = vand.u32 127, %v373_v20  ;;  %vm424_vm2 = vcmask 1041408  }
  0x3e   : > { %s14047_s26 = smov 17   ;;  %s14045_s14 = smov 1   ;;  %v8355_v16 = vld [vmem:[%s14001_s2] ss:$0 sps:$4 sm:$0xff]   ;;  %v8833_v24 = vmov 65535   ;;  %vm419_vm3 = vcmask 23552  }
  0x3f   : > { %s14535_s27 = smov (!%p343_p5, %s342_s27), 23  ;;  %s14016_s21 = smov 119   ;;  %v8356_v17 = vld [vmem:[%s14001_s2] ss:$0 sps:$4 sm:$0xff]   ;;  %vm401_vm1 = vcmp.lt.s32.totalorder %v9163_v21, 18  ;;  %v425_v25 = vsel %vm423_vm0, 4294967295, %v8833_v24 }
  0x40   : > { %s7142_s29 = sshll.u32 %s14535_s27, 2  ;;  %s14043_s23 = smov 127   ;;  %v8357_v18 = vld [vmem:[%s14001_s2] ss:$0 sps:$4 sm:$0xff]   ;;  %v9166_v30 = vsel %vm424_vm2, %v425_v25, 0  ;;  %vm375_vm4 = vcmp.lt.s32.totalorder %v9163_v21, 19 }
  0x41   : > { %s346_s16 = scalar_lea.vmem %s14164_s0, %s7142_s29  ;;  %s14014_s29 = smov 122   ;;  %v8358_v19 = vld [vmem:[%s14001_s2] ss:$0 sps:$4 sm:$0xff]   ;;  %vm724_vm5 = vcmp.lt.s32.totalorder %v9163_v21, 17  ;;  %vm905_vm6 = vcmp.lt.s32.totalorder %v9163_v21, 1  ;;  %vm1244_vm7 = vcmp.lt.s32.totalorder %v9163_v21, 127 }
  0x42   : > { %v9054_v0 = vld [vmem:[%s346_s16 + $0x8] sm:$0x77]  ;;  %v9056_v1 = vld [vmem:[%s346_s16] sm:$0x77]  ;;  %v9071_v5 = vld [vmem:[%s346_s16 + $0x10] sm:$0x77] }
  0x43   : > { %v9060_v2 = vcombine.high %v9054_v0, %v9054_v0  ;;  %v9064_v3 = vcombine.high %v9056_v1, %v9056_v1  ;;  %v9083_v9 = vcombine.high %v9071_v5, %v9071_v5  ;;  %s8826_s28 = smov 116   ;;  %s8827_s16 = smov 113   ;;  %vm1425_vm8 = vcmp.lt.s32.totalorder %v9163_v21, 111 }
  0x44   : > { %s8832_s27 = smov 104   ;;  %vm1606_vm9 = vcmp.lt.s32.totalorder %v9163_v21, 110  ;;  %vm1787_vm10 = vcmp.lt.s32.totalorder %v9163_v21, 109  ;;  %vm2419_vm11 = vcmask 1043456   ;;  %vm2415_vm12 = vcmask 64512   ;;  %s14181_s0 = smov 110  }
  0x45   : > { %v8053_v6 = vpack.i.bf16 %v9060_v2, %v9054_v0  ;;  %v8048_v7 = vpack.i.bf16 %v9064_v3, %v9056_v1  ;;  %v8063_v11 = vpack.i.bf16 %v9060_v2, %v9071_v5  ;;  %v8088_v14 = vpack.i.bf16 %v9054_v0, %v9064_v3  ;;  %s14182_s6 = smov 17   ;;  %s14183_s18 = smov 18  }
  0x46   : > { %v8093_v15 = vpack.i.bf16 %v9071_v5, %v9083_v9  ;;  %vm3762_vm13 = vcmask 130048   ;;  %s8873_s24 = smov 118   ;;  %vm4019_vm14 = vcmp.lt.s32.totalorder %v9163_v21, 10  ;;  %vm3970_vm15 = vcmp.lt.s32.totalorder %v9163_v21, 11  ;;  %p14527_p9 = scmp.ne.s32.totalorder %s14156_s19, 0 }
  0x47   : > { %8054 = vrot.lane.b32.xlu1 %v8053_v6, %s14051_s17  ;;  %8049 = vrot.lane.b32.xlu0 %v8048_v7, %s14051_s17  ;;  %vm4076_vm0 = vcmp.lt.s32.totalorder %v9163_v21, 9  ;;  %vm4334_vm2 = vcmp.lt.s32.totalorder %v9163_v21, 118 }
  0x4b   : > { %417 = vrot.lane.b32.xlu1 %v7143_v8, %s14012_s22  ;;  %399 = vrot.lane.b32.xlu0 %v9083_v9, %s14051_s17  ;;  %s14018_s22 = smov 111  }
  0x4f   : > { %8059 = vrot.lane.b32.xlu1 %v8048_v7, %s14049_s25  ;;  %397 = vrot.lane.b32.xlu0 %v9071_v5, %s14051_s17 }
  0x53   : > { %8064 = vrot.lane.b32.xlu1 %v8063_v11, %s14049_s25  ;;  %371 = vrot.lane.b32.xlu0 %v9083_v9, %s14049_s25 }
  0x57   : > { %722 = vrot.lane.b32.xlu1 %v9083_v9, %s14047_s26  ;;  %8069 = vrot.lane.b32.xlu0 %v8048_v7, %s14047_s26 }
  0x5b   : > { %741 = vrot.lane.b32.xlu1 %v8353_v12, %s14014_s29  ;;  %8074 = vrot.lane.b32.xlu0 %v8063_v11, %s14047_s26  ;;  %s8830_s29 = smov 107  }
  0x5f   : > { %903 = vrot.lane.b32.xlu1 %v9083_v9, %s14045_s14  ;;  %8079 = vrot.lane.b32.xlu0 %v8048_v7, %s14045_s14 }
  0x63   : > { %922 = vrot.lane.b32.xlu1 %v8354_v13, %s14016_s21  ;;  %8084 = vrot.lane.b32.xlu0 %v8063_v11, %s14045_s14  ;;  %s14053_s21 = smov 110  }
  0x67   : > { %716 = vrot.lane.b32.xlu1 %v9054_v0, %s14047_s26  ;;  %365 = vrot.lane.b32.xlu0 %v9054_v0, %s14049_s25 }
  0x6b   : > { %8089 = vrot.lane.b32.xlu1 %v8088_v14, %s14043_s23  ;;  %1080 = vrot.lane.b32.xlu0 %v8354_v13, %s8826_s28  ;;  %s8872_s28 = smov 9  }
  0x6f   : > { %897 = vrot.lane.b32.xlu1 %v9054_v0, %s14045_s14  ;;  %1232 = vrot.lane.b32.xlu0 %v9056_v1, %s14043_s23 }
  0x73   : > { %8094 = vrot.lane.b32.xlu0 %v8093_v15, %s14043_s23  ;;  %1261 = vrot.lane.b32.xlu1 %v8355_v16, %s8827_s16  ;;  %s14041_s16 = smov 109  }
  0x77   : > { %8099 = vrot.lane.b32.xlu0 %v8088_v14, %s14018_s22  ;;  %1413 = vrot.lane.b32.xlu1 %v9056_v1, %s14018_s22 }
  0x7b   : > { %8104 = vrot.lane.b32.xlu0 %v8093_v15, %s14018_s22  ;;  %1442 = vrot.lane.b32.xlu1 %v8356_v17, %s14053_s21 }
  0x7f   : > { %1238 = vrot.lane.b32.xlu0 %v9060_v2, %s14043_s23  ;;  %8109 = vrot.lane.b32.xlu1 %v8088_v14, %s14053_s21 }
  0x83   : > { %1419 = vrot.lane.b32.xlu1 %v9060_v2, %s14018_s22  ;;  %1594 = vrot.lane.b32.xlu0 %v9056_v1, %s14053_s21  ;;  %s8874_s22 = smov 117  }
  0x87   : > { %8114 = vrot.lane.b32.xlu0 %v8093_v15, %s14053_s21  ;;  %1623 = vrot.lane.b32.xlu1 %v8357_v18, %s8830_s29  ;;  %s8871_s29 = smov 11  }
  0x8b   : > { %8119 = vrot.lane.b32.xlu0 %v8088_v14, %s14041_s16  ;;  %1775 = vrot.lane.b32.xlu1 %v9056_v1, %s14041_s16 }
  0x8f   : > { %1600 = vrot.lane.b32.xlu0 %v9060_v2, %s14053_s21  ;;  %8124 = vrot.lane.b32.xlu1 %v8093_v15, %s14041_s16 }
  0x93   : > { %1781 = vrot.lane.b32.xlu1 %v9060_v2, %s14041_s16  ;;  %1804 = vrot.lane.b32.xlu0 %v8358_v19, %s8832_s27  ;;  %s14168_s27 = smov 111  }
  0xb9   : > { %v8055_v22 = vpop.permute.xlu1 %8054  ;;  %v8050_v23 = vpop.permute.xlu0 %8049 }
  0xba   : > { %v8057_v26 = vunpack.i.h.bf16 %v8055_v22  ;;  %v8056_v27 = vunpack.i.l.bf16 %v8055_v22  ;;  %v8052_v28 = vunpack.i.h.bf16 %v8050_v23  ;;  %v8051_v29 = vunpack.i.l.bf16 %v8050_v23 }
  0xbc   : > { %v406_v31 = vsel %vm401_vm1, %v8051_v29, %v8052_v28  ;;  %v404_v32 = vsel %vm401_vm1, %v8056_v27, %v8057_v26  ;;  %v405_v37 = vsel %vm401_vm1, %v8052_v28, %v8056_v27 }
  0xbd   : > { %v418_v33 = vpop.permute.xlu1 %417  ;;  %v400_v34 = vpop.permute.xlu0 %399  ;;  %v409_v35 = vpack.c.bf16 %v406_v31, %v406_v31  ;;  %v411_v36 = vpack.c.bf16 %v404_v32, %v404_v32  ;;  %v410_v42 = vpack.c.bf16 %v405_v37, %v405_v37 }
  0xbe   : > { %v407_v38 = vsel %vm401_vm1, %v400_v34, %v8051_v29 }
  0xbf   : > { %v431_v39 = vand.u32 %v9166_v30, %v409_v35  ;;  %v408_v40 = vpack.c.bf16 %v407_v38, %v407_v38  ;;  %v437_v41 = vand.u32 %v9166_v30, %v411_v36  ;;  %v434_v52 = vand.u32 %v9166_v30, %v410_v42 }
  0xc1   : > { %v9178_v43 = vpop.permute.xlu1 %8059  ;;  %v398_v44 = vpop.permute.xlu0 %397  ;;  %445 = vmatprep.subr.bf16.mxu0 %v431_v39  ;;  %v428_v45 = vand.u32 %v9166_v30, %v408_v40 }
  0xc2   : > { %v8062_v46 = vunpack.i.h.bf16 %v9178_v43  ;;  %v402_v47 = vsel %vm401_vm1, %v398_v44, %v400_v34  ;;  %v8061_v48 = vunpack.i.l.bf16 %v9178_v43  ;;  %v403_v55 = vsel %vm401_vm1, %v8057_v26, %v398_v44  ;;  %v9227_v26 = vld [vmem:[%s14000_s1] sm:$0xff] }
  0xc3   : > { %v413_v49 = vpack.c.bf16 %v402_v47, %v402_v47  ;;  %446 = vmatpush1.bf16.msra.mxu0 %v428_v45  ;;  %v412_v57 = vpack.c.bf16 %v403_v55, %v403_v55  ;;  %1959 = vperm.xlu0 %8128, %v9227_v26  }
  0xc4   : > { %486 = vmatprep.subr.bf16.mxu0 %v437_v41  ;;  %v380_v54 = vsel %vm375_vm4, %v8061_v48, %v8062_v46 }
  0xc5   : > { %v8065_v50 = vpop.permute.xlu1 %8064  ;;  %v372_v51 = vpop.permute.xlu0 %371  ;;  %v443_v53 = vand.u32 %v9166_v30, %v413_v49  ;;  %v384_v56 = vpack.c.bf16 %v380_v54, %v380_v54  ;;  %v440_v62 = vand.u32 %v9166_v30, %v412_v57 }
  0xc6   : > { %7144 = vmatmul.mubr.msk.bf16.vlgmr.msra.gmra.mrb[0].mxu0 %vm419_vm3, %v418_v33  ;;  %v8066_v60 = vunpack.i.l.bf16 %v8065_v50  ;;  %v381_v7 = vsel %vm375_vm4, %v372_v51, %v8061_v48  ;;  %v8067_v14 = vunpack.i.h.bf16 %v8065_v50 }
  0xc7   : > { %487 = vmatpush1.bf16.msra.mxu0 %v434_v52  ;;  %518 = vmatprep.mubr.bf16.mxu0 %v14025_v10  ;;  %v575_v61 = vand.u32 %v9166_v30, %v384_v56  ;;  %v383_v11 = vpack.c.bf16 %v381_v7, %v381_v7 }
  0xc8   : > { %527 = vmatprep.subr.bf16.mxu0 %v443_v53  ;;  %v376_v8 = vsel %vm375_vm4, %v8066_v60, %v372_v51  ;;  %v377_v23 = vsel %vm375_vm4, %v8067_v14, %v8066_v60 }
  0xc9   : > { %v723_v58 = vpop.permute.xlu1 %722  ;;  %v8070_v59 = vpop.permute.xlu0 %8069  ;;  %v388_v15 = vpack.c.bf16 %v376_v8, %v376_v8  ;;  %v572_v18 = vand.u32 %v9166_v30, %v383_v11  ;;  %v387_v28 = vpack.c.bf16 %v377_v23, %v377_v23 }
  0xca   : > { %v8072_v16 = vunpack.i.h.bf16 %v8070_v59  ;;  %v8071_v17 = vunpack.i.l.bf16 %v8070_v59 }
  0xcb   : > { %v587_v24 = vand.u32 %v9166_v30, %v388_v15  ;;  %v584_v43 = vand.u32 %v9166_v30, %v387_v28 }
  0xcc   : > { %v729_v25 = vsel %vm724_vm5, %v8071_v17, %v8072_v16  ;;  %v730_v47 = vsel %vm724_vm5, %v723_v58, %v8071_v17 }
  0xcd   : > { %v9198_v63 = vpop.permute.xlu1 %741  ;;  %v9200_v6 = vpop.permute.xlu0 %8074  ;;  %v733_v32 = vpack.c.bf16 %v729_v25, %v729_v25  ;;  %v732_v53 = vpack.c.bf16 %v730_v47, %v730_v47 }
  0xce   : > { %7145 = vmatmul.mubr.msk.bf16.vlgmr.msra.gmra.mrb[4].mxu0 %vm419_vm3, %v418_v33  ;;  %v8077_v27 = vunpack.i.h.bf16 %v9200_v6  ;;  %v8076_v34 = vunpack.i.l.bf16 %v9200_v6 }
  0xcf   : > { %528 = vmatpush1.bf16.msra.mxu0 %v440_v62  ;;  %559 = vmatprep.mubr.bf16.mxu0 %v14025_v10  ;;  %v750_v49 = vand.u32 %v733_v32, %v9166_v30  ;;  %v747_v6 = vand.u32 %v732_v53, %v9166_v30 }
  0xd0   : > { %589 = vmatprep.subr.bf16.mxu0 %v575_v61  ;;  %v725_v51 = vsel %vm724_vm5, %v8076_v34, %v723_v58  ;;  %v726_v11 = vsel %vm724_vm5, %v8077_v27, %v8076_v34 }
  0xd1   : > { %v9208_v12 = vpop.permute.xlu1 %903  ;;  %v9210_v13 = vpop.permute.xlu0 %8079  ;;  %v737_v58 = vpack.c.bf16 %v725_v51, %v725_v51 }
  0xd2   : > { %v8082_v59 = vunpack.i.h.bf16 %v9210_v13  ;;  %v8081_v60 = vunpack.i.l.bf16 %v9210_v13 }
  0xd3   : > { %v762_v13 = vand.u32 %v737_v58, %v9166_v30 }
  0xd4   : > { %v910_v15 = vsel %vm905_vm6, %v8081_v60, %v8082_v59 }
  0xd5   : > { %v9214_v19 = vpop.permute.xlu1 %922  ;;  %v9216_v22 = vpop.permute.xlu0 %8084  ;;  %v914_v23 = vpack.c.bf16 %v910_v15, %v910_v15 }
  0xd6   : > { %7146 = vmatmul.mubr.msk.bf16.vlgmr.msra.gmra.mrb[8].mxu0 %vm419_vm3, %v418_v33  ;;  %v8834_v33 = vmov 1   ;;  %v8087_v52 = vunpack.i.h.bf16 %v9216_v22 }
  0xd7   : > { %590 = vmatpush1.bf16.msra.mxu0 %v572_v18  ;;  %621 = vmatprep.mubr.bf16.mxu0 %v14025_v10  ;;  %v1077_v18 = vpack.c.bf16 %v9060_v2, %v9060_v2 }
  0xd8   : > { %671 = vmatprep.subr.bf16.mxu0 %v587_v24  ;;  %8129 = vset.pattern.permute.xlu1 %v8834_v33  ;;  %v8086_v24 = vunpack.i.l.bf16 %v9216_v22  ;;  %v931_v33 = vand.u32 %v914_v23, %v9166_v30  ;;  %v1075_v22 = vpack.c.bf16 %v9064_v3, %v9064_v3 }
  0xd9   : > { %v717_v29 = vpop.permute.xlu1 %716  ;;  %v366_v31 = vpop.permute.xlu0 %365  ;;  %1969 = vperm.xlu1 %8129, %v9227_v26  }
  0xda   : > { %v727_v35 = vsel %vm724_vm5, %v717_v29, %v8077_v27  ;;  %v379_v36 = vsel %vm375_vm4, %v8062_v46, %v366_v31  ;;  %v378_v37 = vsel %vm375_vm4, %v366_v31, %v8067_v14  ;;  %v728_v38 = vsel %vm724_vm5, %v8072_v16, %v717_v29 }
  0xdb   : > { %v735_v39 = vpack.c.bf16 %v727_v35, %v727_v35  ;;  %v386_v40 = vpack.c.bf16 %v378_v37, %v378_v37  ;;  %v385_v41 = vpack.c.bf16 %v379_v36, %v379_v36  ;;  %v734_v48 = vpack.c.bf16 %v728_v38, %v728_v38 }
  0xdc   : > { %v736_v16 = vpack.c.bf16 %v726_v11, %v726_v11  ;;  %v1095_v29 = vand.u32 %v1077_v18, %v9166_v30  ;;  %v911_v31 = vsel %vm905_vm6, %v9208_v12, %v8081_v60  ;;  %v906_v34 = vsel %vm905_vm6, %v8086_v24, %v9208_v12 }
  0xdd   : > { %v9244_v42 = vpop.permute.xlu1 %8089  ;;  %v9246_v44 = vpop.permute.xlu0 %1080  ;;  %v581_v45 = vand.u32 %v9166_v30, %v386_v40  ;;  %v578_v46 = vand.u32 %v9166_v30, %v385_v41  ;;  %v756_v50 = vand.u32 %v735_v39, %v9166_v30  ;;  %v753_v56 = vand.u32 %v734_v48, %v9166_v30 }
  0xde   : > { %7147 = vmatmul.mubr.msk.bf16.vlgmr.msra.gmra.mrb[0].mxu0 %vm419_vm3, %v9069_v4  ;;  %v759_v28 = vand.u32 %v736_v16, %v9166_v30  ;;  %v913_v35 = vpack.c.bf16 %v911_v31, %v911_v31  ;;  %v918_v39 = vpack.c.bf16 %v906_v34, %v906_v34  ;;  %v1076_v12 = vpack.c.bf16 %v9054_v0, %v9054_v0 }
  0xdf   : > { %672 = vmatpush1.bf16.msra.mxu0 %v584_v43  ;;  %630 = vmatprep.subr.bf16.mxu1 %v581_v45  ;;  %v907_v43 = vsel %vm905_vm6, %v8087_v52, %v8086_v24  ;;  %v8092_v51 = vunpack.i.h.bf16 %v9244_v42 }
  0xe0   : > { %764 = vmatprep.subr.bf16.mxu0 %v750_v49  ;;  %631 = vmatpush1.bf16.msra.mxu1 %v578_v46  ;;  %v928_v41 = vand.u32 %v913_v35, %v9166_v30  ;;  %v943_v45 = vand.u32 %v918_v39, %v9166_v30  ;;  %v1092_v0 = vand.u32 %v1076_v12, %v9166_v30 }
  0xe1   : > { %v898_v54 = vpop.permute.xlu1 %897  ;;  %v9261_v55 = vpop.permute.xlu0 %1232  ;;  %805 = vmatprep.subr.bf16.mxu1 %v756_v50  ;;  %703 = vmatprep.mubr.bf16.mxu0 %v14025_v10  ;;  %v917_v48 = vpack.c.bf16 %v907_v43, %v907_v43  ;;  %v1089_v50 = vand.u32 %v1075_v22, %v9166_v30 }
  0xe2   : > { %v908_v57 = vsel %vm905_vm6, %v898_v54, %v8087_v52  ;;  %v909_v14 = vsel %vm905_vm6, %v8082_v59, %v898_v54  ;;  %v1079_v59 = vpack.c.bf16 %v9083_v9, %v9083_v9 }
  0xe3   : > { %v916_v61 = vpack.c.bf16 %v908_v57, %v908_v57  ;;  %7148 = vmatmul.mubr.msk.bf16.vlgmr.msra.gmra.mrb[0].mxu1 %vm419_vm3, %v9069_v4  ;;  %v940_v52 = vand.u32 %v917_v48, %v9166_v30  ;;  %v1074_v57 = vpack.c.bf16 %v9056_v1, %v9056_v1 }
  0xe4   : > { %806 = vmatpush1.bf16.msra.mxu1 %v753_v56  ;;  %837 = vmatprep.mubr.bf16.mxu1 %v14025_v10 }
  0xe5   : > { %v9274_v62 = vpop.permute.xlu0 %8094  ;;  %v937_v7 = vand.u32 %v916_v61, %v9166_v30  ;;  %v9278_v8 = vpop.permute.xlu1 %1261  ;;  %v8091_v61 = vunpack.i.l.bf16 %v9244_v42  ;;  %v1078_v42 = vpack.c.bf16 %v9071_v5, %v9071_v5 }
  0xe6   : > { %7149 = vmatmul.mubr.msk.bf16.vlgmr.msra.gmra.mrb[8].mxu0 %vm419_vm3, %v9069_v4  ;;  %v915_v4 = vpack.c.bf16 %v909_v14, %v909_v14  ;;  %v8097_v2 = vunpack.i.h.bf16 %v9274_v62  ;;  %v1101_v14 = vand.u32 %v1079_v59, %v9166_v30  ;;  %v8096_v23 = vunpack.i.l.bf16 %v9274_v62 }
  0xe7   : > { %765 = vmatpush1.bf16.msra.mxu0 %v747_v6  ;;  %986 = vmatprep.subr.bf16.mxu1 %v937_v7  ;;  %v1086_v6 = vand.u32 %v1074_v57, %v9166_v30  ;;  %v1248_v16 = vsel %vm1244_vm7, %v8091_v61, %v8092_v51  ;;  %v1249_v31 = vsel %vm1244_vm7, %v9261_v55, %v8091_v61 }
  0xe8   : > { %846 = vmatprep.subr.bf16.mxu0 %v762_v13  ;;  %796 = vmatprep.mubr.bf16.mxu0 %v14025_v10  ;;  %v934_v32 = vand.u32 %v915_v4, %v9166_v30  ;;  %v1253_v4 = vpack.c.bf16 %v1248_v16, %v1248_v16  ;;  %v1250_v34 = vsel %vm1244_vm7, %v8096_v23, %v9261_v55 }
  0xe9   : > { %v9290_v17 = vpop.permute.xlu0 %8099  ;;  %v9295_v25 = vpop.permute.xlu1 %1413  ;;  %v1257_v12 = vpack.c.bf16 %v1250_v34, %v1250_v34 }
  0xea   : > { %v8102_v15 = vunpack.i.h.bf16 %v9290_v17 }
  0xed   : > { %v9297_v27 = vpop.permute.xlu0 %8104  ;;  %v9316_v37 = vpop.permute.xlu1 %1442 }
  0xee   : > { %7151 = vmatmul.mubr.msk.bf16.vlgmr.msra.gmra.mrb[0].mxu0 %vm419_vm3, %v9198_v63 }
  0xef   : > { %847 = vmatpush1.bf16.msra.mxu0 %v759_v28  ;;  %7152 = vmatmul.mubr.msk.bf16.vlgmr.msra.gmra.mrb[0].mxu1 %vm419_vm3, %v9198_v63  ;;  %v1098_v28 = vand.u32 %v1078_v42, %v9166_v30 }
  0xf0   : > { %945 = vmatprep.subr.bf16.mxu0 %v931_v33  ;;  %987 = vmatpush1.bf16.msra.mxu1 %v934_v32  ;;  %v1270_v33 = vand.u32 %v1253_v4, %v9166_v30 }
  0xf1   : > { %v1239_v36 = vpop.permute.xlu0 %1238  ;;  %878 = vmatprep.mubr.bf16.mxu0 %v14025_v10  ;;  %1018 = vmatprep.mubr.bf16.mxu1 %v14025_v10  ;;  %v9333_v46 = vpop.permute.xlu1 %8109 }
  0xf2   : > { %v1246_v38 = vsel %vm1244_vm7, %v1239_v36, %v8097_v2  ;;  %1144 = vmatprep.subr.bf16.mxu1 %v1095_v29  ;;  %v1247_v56 = vsel %vm1244_vm7, %v8092_v51, %v1239_v36  ;;  %v1252_v36 = vpack.c.bf16 %v1249_v31, %v1249_v31  ;;  %v8106_v51 = vunpack.i.l.bf16 %v9297_v27 }
  0xf3   : > { %v1255_v40 = vpack.c.bf16 %v1246_v38, %v1246_v38  ;;  %v1254_v60 = vpack.c.bf16 %v1247_v56, %v1247_v56 }
  0xf4   : > { %v1267_v55 = vand.u32 %v1252_v36, %v9166_v30 }
  0xf5   : > { %v9336_v47 = vpop.permute.xlu0 %1594  ;;  %v1276_v49 = vand.u32 %v1255_v40, %v9166_v30  ;;  %v1420_v3 = vpop.permute.xlu1 %1419  ;;  %v1273_v1 = vand.u32 %v1254_v60, %v9166_v30  ;;  %v8101_v40 = vunpack.i.l.bf16 %v9290_v17  ;;  %v1282_v17 = vand.u32 %v1257_v12, %v9166_v30 }
  0xf6   : > { %7153 = vmatmul.mubr.msk.bf16.vlgmr.msra.gmra.mrb[8].mxu0 %vm419_vm3, %v9198_v63  ;;  %v8107_v63 = vunpack.i.h.bf16 %v9297_v27  ;;  %v1428_v24 = vsel %vm1425_vm8, %v8102_v15, %v1420_v3 }
  0xf7   : > { %946 = vmatpush1.bf16.msra.mxu0 %v928_v41  ;;  %977 = vmatprep.mubr.bf16.mxu0 %v14025_v10  ;;  %v1435_v32 = vpack.c.bf16 %v1428_v24, %v1428_v24  ;;  %v8112_v41 = vunpack.i.h.bf16 %v9333_v46 }
  0xf8   : > { %1027 = vmatprep.subr.bf16.mxu0 %v943_v45  ;;  %v1427_v54 = vsel %vm1425_vm8, %v1420_v3, %v8107_v63  ;;  %v1245_v45 = vsel %vm1244_vm7, %v8097_v2, %v8096_v23  ;;  %v1429_v2 = vsel %vm1425_vm8, %v8101_v40, %v8102_v15  ;;  %v1430_v3 = vsel %vm1425_vm8, %v9295_v25, %v8101_v40 }
  0xf9   : > { %v9350_v53 = vpop.permute.xlu0 %8114  ;;  %v1436_v58 = vpack.c.bf16 %v1427_v54, %v1427_v54  ;;  %v9369_v11 = vpop.permute.xlu1 %1623  ;;  %v1454_v39 = vand.u32 %v1435_v32, %v9166_v30  ;;  %v1256_v48 = vpack.c.bf16 %v1245_v45, %v1245_v45  ;;  %v1433_v60 = vpack.c.bf16 %v1430_v3, %v1430_v3 }
  0xfa   : > { %v8117_v9 = vunpack.i.h.bf16 %v9350_v53  ;;  %v1426_v15 = vsel %vm1425_vm8, %v8107_v63, %v8106_v51  ;;  %v8838_v23 = vmov 4  }
  0xfb   : > { %7156 = vmatmul.mubr.msk.bf16.vlgmr.msra.gmra.mrb[0].mxu1 %vm419_vm3, %v9214_v19  ;;  %v1457_v13 = vand.u32 %v1436_v58, %v9166_v30  ;;  %v1431_v58 = vsel %vm1425_vm8, %v8106_v51, %v9295_v25  ;;  %v1437_v27 = vpack.c.bf16 %v1426_v15, %v1426_v15 }
  0xfc   : > { %1145 = vmatpush1.bf16.msra.mxu1 %v1092_v0  ;;  %1176 = vmatprep.mubr.bf16.mxu1 %v14025_v10  ;;  %v1438_v61 = vpack.c.bf16 %v1431_v58, %v1431_v58 }
  0xfd   : > { %1325 = vmatprep.subr.bf16.mxu1 %v1276_v49  ;;  %v9367_v7 = vpop.permute.xlu0 %8119  ;;  %v9391_v5 = vpop.permute.xlu1 %1775  ;;  %v1460_v4 = vand.u32 %v1437_v27, %v9166_v30  ;;  %v9535_v27 = vshrl.u32 %v373_v20, 7 }
  0xfe   : > { %7155 = vmatmul.mubr.msk.bf16.vlgmr.msra.gmra.mrb[0].mxu0 %vm419_vm3, %v9214_v19  ;;  %v8122_v59 = vunpack.i.h.bf16 %v9367_v7  ;;  %v8121_v34 = vunpack.i.l.bf16 %v9367_v7 }
  0xff   : > { %1028 = vmatpush1.bf16.msra.mxu0 %v940_v52  ;;  %1059 = vmatprep.mubr.bf16.mxu0 %v14025_v10  ;;  %v1279_v52 = vand.u32 %v1256_v48, %v9166_v30  ;;  %v8844_v48 = vmov 12   ;;  %14165 = vst [vmem:[#allocation10_spill] sm:$0xff] %v9535_v27 }
 0x100   : > { %1103 = vmatprep.subr.bf16.mxu0 %v1089_v50  ;;  %v1434_v50 = vpack.c.bf16 %v1429_v2, %v1429_v2  ;;  %v1791_v7 = vsel %vm1787_vm10, %v8121_v34, %v8122_v59 }
 0x101   : > { %v9407_v35 = vpop.permute.xlu1 %8124 }
 0x102   : > { %v8127_v43 = vunpack.i.h.bf16 %v9407_v35  ;;  %v1451_v56 = vand.u32 %v1434_v50, %v9166_v30 }
 0x105   : > { %v1782_v0 = vpop.permute.xlu1 %1781 }
 0x106   : > { %7157 = vmatmul.mubr.msk.bf16.vlgmr.msra.gmra.mrb[8].mxu0 %vm419_vm3, %v9214_v19  ;;  %v1601_v19 = vpop.permute.xlu0 %1600  ;;  %v1789_v62 = vsel %vm1787_vm10, %v1782_v0, %v8127_v43  ;;  %v1790_v25 = vsel %vm1787_vm10, %v8122_v59, %v1782_v0 }
 0x107   : > { %7159 = vmatmul.mubr.msk.bf16.vlgmr.msra.gmra.mrb[0].mxu1 %vm419_vm3, %v9246_v44  ;;  %1104 = vmatpush1.bf16.msra.mxu0 %v1086_v6  ;;  %v1608_v18 = vsel %vm1606_vm9, %v1601_v19, %v8117_v9  ;;  %v1609_v22 = vsel %vm1606_vm9, %v8112_v41, %v1601_v19  ;;  %v1798_v49 = vpack.c.bf16 %v1789_v62, %v1789_v62  ;;  %v8111_v6 = vunpack.i.l.bf16 %v9333_v46 }
 0x108   : > { %1326 = vmatpush1.bf16.msra.mxu1 %v1273_v1  ;;  %1135 = vmatprep.mubr.bf16.mxu0 %v14025_v10  ;;  %v1617_v29 = vpack.c.bf16 %v1608_v18, %v1608_v18  ;;  %v8836_v1 = vmov 2   ;;  %v1797_v42 = vpack.c.bf16 %v1790_v25, %v1790_v25  ;;  %v1463_v46 = vand.u32 %v1438_v61, %v9166_v30 }
 0x109   : > { %1506 = vmatprep.subr.bf16.mxu1 %v1457_v13  ;;  %1185 = vmatprep.subr.bf16.mxu0 %v1101_v14  ;;  %v1819_v57 = vand.u32 %v1798_v49, %v9166_v30  ;;  %v1448_v13 = vand.u32 %v1433_v60, %v9166_v30  ;;  %v8835_v14 = vmov 3   ;;  %v1610_v16 = vsel %vm1606_vm9, %v8111_v6, %v8112_v41 }
 0x10a   : > { %1357 = vmatprep.mubr.bf16.mxu1 %v14025_v10  ;;  %v1638_v38 = vand.u32 %v1617_v29, %v9166_v30  ;;  %8131 = vset.pattern.permute.xlu0 %v8835_v14  ;;  %v1816_v63 = vand.u32 %v1797_v42, %v9166_v30  ;;  %v1615_v19 = vpack.c.bf16 %v1610_v16, %v1610_v16  ;;  %v8837_v18 = vmov 6   ;;  %v1805_v36 = vpop.permute.xlu0 %1804 }
 0x10b   : > { %8130 = vset.pattern.permute.xlu1 %v8836_v1  ;;  %2105 = vperm.xlu0 %8131, %v9227_v26   ;;  %v1611_v24 = vsel %vm1606_vm9, %v9336_v47, %v8111_v6 }
 0x10c   : > { %2077 = vperm.xlu1 %8130, %v9227_v26   ;;  %v1614_v31 = vpack.c.bf16 %v1611_v24, %v1611_v24 }
 0x10e   : > { %7158 = vmatmul.mubr.msk.bf16.vlgmr.msra.gmra.mrb[0].mxu0 %vm419_vm3, %v9246_v44 }
 0x10f   : > { %1186 = vmatpush1.bf16.msra.mxu0 %v1098_v28  ;;  %1217 = vmatprep.mubr.bf16.mxu0 %v14025_v10  ;;  %v1632_v28 = vand.u32 %v1615_v19, %v9166_v30 }
 0x110   : > { %1284 = vmatprep.subr.bf16.mxu0 %v1270_v33  ;;  %8134 = vset.pattern.permute.xlu0 %v8837_v18  ;;  %v8839_v33 = vmov 5  }
 0x111   : > { %2189 = vperm.xlu0 %8134, %v9227_v26   ;;  %8132 = vset.pattern.permute.xlu1 %v8838_v23 }
 0x112   : > { %2139 = vperm.xlu1 %8132, %v9227_v26  }
 0x113   : > { %7163 = vmatmul.mubr.msk.bf16.vlgmr.msra.gmra.mrb[0].mxu1 %vm419_vm3, %v9278_v8 }
 0x114   : > { %1507 = vmatpush1.bf16.msra.mxu1 %v1454_v39  ;;  %1538 = vmatprep.mubr.bf16.mxu1 %v14025_v10 }
 0x115   : > { %1687 = vmatprep.subr.bf16.mxu1 %v1638_v38  ;;  %v1629_v38 = vand.u32 %v1614_v31, %v9166_v30 }
 0x116   : > { %7160 = vmatmul.mubr.msk.bf16.vlgmr.msra.gmra.mrb[8].mxu0 %vm419_vm3, %v9246_v44  ;;  %v1616_v44 = vpack.c.bf16 %v1609_v22, %v1609_v22  ;;  %8133 = vset.pattern.permute.xlu1 %v8839_v33 }
 0x117   : > { %1285 = vmatpush1.bf16.msra.mxu0 %v1267_v55  ;;  %1316 = vmatprep.mubr.bf16.mxu0 %v14025_v10 }
 0x118   : > { %1366 = vmatprep.subr.bf16.mxu0 %v1282_v17  ;;  %v1635_v54 = vand.u32 %v1616_v44, %v9166_v30  ;;  %2173 = vperm.xlu1 %8133, %v9227_v26   ;;  %v8845_v44 = vmov 11  }
 0x11e   : > { %7162 = vmatmul.mubr.msk.bf16.vlgmr.msra.gmra.mrb[0].mxu0 %vm419_vm3, %v9278_v8 }
 0x11f   : > { %1367 = vmatpush1.bf16.msra.mxu0 %v1279_v52  ;;  %7167 = vmatmul.mubr.msk.bf16.vlgmr.msra.gmra.mrb[0].mxu1 %vm419_vm3, %v9316_v37 }
 0x120   : > { %1465 = vmatprep.subr.bf16.mxu0 %v1451_v56  ;;  %1688 = vmatpush1.bf16.msra.mxu1 %v1635_v54 }
 0x121   : > { %1398 = vmatprep.mubr.bf16.mxu0 %v14025_v10  ;;  %1719 = vmatprep.mubr.bf16.mxu1 %v14025_v10 }
 0x122   : > { %1868 = vmatprep.subr.bf16.mxu1 %v1819_v57 }
 0x126   : > { %7164 = vmatmul.mubr.msk.bf16.vlgmr.msra.gmra.mrb[8].mxu0 %vm419_vm3, %v9278_v8  ;;  %v8116_v8 = vunpack.i.l.bf16 %v9350_v53  ;;  %v1796_v53 = vpack.c.bf16 %v1791_v7, %v1791_v7 }
 0x127   : > { %1466 = vmatpush1.bf16.msra.mxu0 %v1448_v13  ;;  %1497 = vmatprep.mubr.bf16.mxu0 %v14025_v10 }
 0x128   : > { %1547 = vmatprep.subr.bf16.mxu0 %v1463_v46  ;;  %v1612_v29 = vsel %vm1606_vm9, %v8116_v8, %v9336_v47  ;;  %v1607_v39 = vsel %vm1606_vm9, %v8117_v9, %v8116_v8  ;;  %v8126_v9 = vunpack.i.l.bf16 %v9407_v35  ;;  %v1813_v41 = vand.u32 %v1796_v53, %v9166_v30 }
 0x129   : > { %v1619_v32 = vpack.c.bf16 %v1612_v29, %v1612_v29  ;;  %v1618_v12 = vpack.c.bf16 %v1607_v39, %v1607_v39  ;;  %v8840_v35 = vmov 7   ;;  %v9541_v29 = vld [vmem:[%s14006_s7] sm:$0x3f] }
 0x12a   : > { %v1793_v55 = vsel %vm1787_vm10, %v8126_v9, %v9391_v5  ;;  %v1788_v22 = vsel %vm1787_vm10, %v8127_v43, %v8126_v9  ;;  %8135 = vset.pattern.permute.xlu1 %v8840_v35  ;;  %v8842_v43 = vmov 10  }
 0x12b   : > { %7171 = vmatmul.mubr.msk.bf16.vlgmr.msra.gmra.mrb[0].mxu1 %vm419_vm3, %v9369_v11  ;;  %v1644_v47 = vand.u32 %v1619_v32, %v9166_v30  ;;  %v1641_v40 = vand.u32 %v1618_v12, %v9166_v30  ;;  %v1800_v17 = vpack.c.bf16 %v1793_v55, %v1793_v55  ;;  %2223 = vperm.xlu1 %8135, %v9227_v26  }
 0x12c   : > { %1869 = vmatpush1.bf16.msra.mxu1 %v1816_v63  ;;  %1900 = vmatprep.mubr.bf16.mxu1 %v14025_v10 }
 0x12d   : > { %v1825_v62 = vand.u32 %v1800_v17, %v9166_v30 }
 0x12e   : > { %7166 = vmatmul.mubr.msk.bf16.vlgmr.msra.gmra.mrb[0].mxu0 %vm419_vm3, %v9316_v37 }
 0x12f   : > { %1548 = vmatpush1.bf16.msra.mxu0 %v1460_v4  ;;  %1579 = vmatprep.mubr.bf16.mxu0 %v14025_v10 }
 0x130   : > { %1646 = vmatprep.subr.bf16.mxu0 %v1632_v28  ;;  %v2032_v28 = vsub.s32 2, %v9535_v27 }
 0x132   : > { %v9544_v20 = vrot.slane %v9541_v29, %v2032_v28 }
 0x134   : > { %14166 = vst [vmem:[#allocation11_spill] sm:$0xff] %v9544_v20 }
 0x136   : > { %7168 = vmatmul.mubr.msk.bf16.vlgmr.msra.gmra.mrb[8].mxu0 %vm419_vm3, %v9316_v37  ;;  %v1792_v37 = vsel %vm1787_vm10, %v9391_v5, %v8121_v34  ;;  %v1799_v5 = vpack.c.bf16 %v1788_v22, %v1788_v22 }
 0x137   : > { %1647 = vmatpush1.bf16.msra.mxu0 %v1629_v38  ;;  %7175 = vmatmul.mubr.msk.bf16.vlgmr.msra.gmra.mrb[0].mxu1 %vm419_vm3, %v1805_v36  ;;  %v1795_v45 = vpack.c.bf16 %v1792_v37, %v1792_v37  ;;  %v2036_v37 = vsub.s32 3, %v9535_v27 }
 0x138   : > { %1728 = vmatprep.subr.bf16.mxu0 %v1644_v47  ;;  %1678 = vmatprep.mubr.bf16.mxu0 %v14025_v10  ;;  %v1822_v2 = vand.u32 %v1799_v5, %v9166_v30 }
 0x139   : > { %2470 = vmatprep.mubr.bf16.mxu1 %v14025_v10  ;;  %v1810_v0 = vand.u32 %v1795_v45, %v9166_v30  ;;  %v8843_v30 = vmov 9  }
 0x13a   : > { %8137 = vset.pattern.permute.xlu0 %v8843_v30 }
 0x13b   : > { %2291 = vperm.xlu0 %8137, %v9227_v26  }
 0x13e   : > { %7170 = vmatmul.mubr.msk.bf16.vlgmr.msra.gmra.mrb[0].mxu0 %vm419_vm3, %v9369_v11 }
 0x13f   : > { %1729 = vmatpush1.bf16.msra.mxu0 %v1641_v40  ;;  %1760 = vmatprep.mubr.bf16.mxu0 %v14025_v10 }
 0x140   : > { %1827 = vmatprep.subr.bf16.mxu0 %v1813_v41  ;;  %8139 = vset.pattern.permute.xlu0 %v8845_v44 }
 0x141   : > { %2341 = vperm.xlu0 %8139, %v9227_v26  }
 0x142   : > { %v1960_v54 = vpop.permute.xlu0 %1959 }
 0x146   : > { %7172 = vmatmul.mubr.msk.bf16.vlgmr.msra.gmra.mrb[8].mxu0 %vm419_vm3, %v9369_v11  ;;  %v8841_v11 = vmov 8  }
 0x147   : > { %1828 = vmatpush1.bf16.msra.mxu0 %v1810_v0  ;;  %1859 = vmatprep.mubr.bf16.mxu0 %v14025_v10  ;;  %v9559_v0 = vrot.slane %v9541_v29, %v2036_v37 }
 0x148   : > { %1909 = vmatprep.subr.bf16.mxu0 %v1825_v62  ;;  %8136 = vset.pattern.permute.xlu1 %v8841_v11 }
 0x149   : > { %2257 = vperm.xlu1 %8136, %v9227_v26   ;;  %14167 = vst [vmem:[#allocation12_spill] sm:$0xff] %v9559_v0 }
 0x14d   : > { %8138 = vset.pattern.permute.xlu1 %v8842_v43  ;;  %v14021_v43 = vsub.s32 0, %v9535_v27 }
 0x14e   : > { %7174 = vmatmul.mubr.msk.bf16.vlgmr.msra.gmra.mrb[0].mxu0 %vm419_vm3, %v1805_v36  ;;  %2325 = vperm.xlu1 %8138, %v9227_v26  }
 0x14f   : > { %1910 = vmatpush1.bf16.msra.mxu0 %v1822_v2  ;;  %1941 = vmatprep.mubr.bf16.mxu0 %v14025_v10 }
 0x152   : > { %8140 = vset.pattern.permute.xlu1 %v8844_v48 }
 0x153   : > { %2351 = vperm.xlu1 %8140, %v9227_v26  }
 0x156   : > { %7176 = vmatmul.mubr.msk.bf16.vlgmr.msra.gmra.mrb[8].mxu0 %vm419_vm3, %v1805_v36  ;;  %vm4391_vm3 = vcmp.lt.s32.totalorder %v9163_v21, 117 }
 0x157   : > { %3801 = vmatprep.mubr.bf16.mxu0 %v14025_v10 }
 0x158   : > { %v1970_v60 = vpop.permute.xlu1 %1969 }
 0x1a1   : > { %v520_v49 = vpop.f32.mrb[4].mxu0 }
 0x1a2   : > { %v522_v50 = vpop.f32.mrb[5].mxu0 }
 0x1a3   : > { %v524_v51 = vpop.f32.mrb[6].mxu0 }
 0x1a4   : > { %v525_v52 = vpop.f32.mrb[7].mxu0 }
 0x20a   : > { %v1902_v3 = vpop.f32.mrb[0].mxu1 }
 0x20b   : > { %v7795_v56 = vadd.f32 %v1902_v3, %v520_v49  ;;  %v1904_v57 = vpop.f32.mrb[1].mxu1  ;;  %v9580_v49 = vrot.slane %v9541_v29, %v14021_v43 }
 0x20c   : > { %v7796_v58 = vadd.f32 %v1904_v57, %v522_v50  ;;  %v1906_v59 = vpop.f32.mrb[2].mxu1 }
 0x20d   : > { %v1964_v61 = vmul.f32 %v7795_v56, %v1960_v54  ;;  %v1907_v6 = vpop.f32.mrb[3].mxu1  ;;  %14169 = vst [vmem:[#allocation13_spill] sm:$0xff] %v9580_v49  ;;  %v14020_v56 = vsub.s32 1, %v9535_v27 }
 0x20e   : > { %v1965_v25 = vmul.f32 %v7796_v58, %v1960_v54 }
 0x20f   : > { %v1974_v13 = vadd.f32 %v1970_v60, %v1964_v61  ;;  %v9605_v59 = vrot.slane %v9541_v29, %v14020_v56  ;;  %v2040_v61 = vsub.s32 4, %v9535_v27 }
 0x210   : > { %v1975_v14 = vadd.f32 %v1970_v60, %v1965_v25 }
 0x211   : > { %v7179_v1 = vmul.f32 -1.442695, %v1974_v13  ;;  %14170 = vst [vmem:[#allocation14_spill] sm:$0xff] %v9605_v59 }
 0x212   : > { %v7180_v15 = vmul.f32 -1.442695, %v1975_v14 }
 0x213   : > { %8378 = vpow2.f32 %v7179_v1 }
 0x214   : > { %8380 = vpow2.f32 %v7180_v15 }
 0x21d   : > { %v8379_v42 = vpop.eup %8378 }
 0x21e   : > { %v1998_v46 = vadd.f32 1.0, %v8379_v42  ;;  %v8381_v16 = vpop.eup %8380 }
 0x21f   : > { %v1999_v8 = vadd.f32 1.0, %v8381_v16 }
 0x220   : > { %8382 = vrcp.f32 %v1998_v46 }
 0x221   : > { %v1861_v63 = vpop.f32.mrb[0].mxu0  ;;  %8384 = vrcp.f32 %v1999_v8 }
 0x222   : > { %v1962_v19 = vmul.f32 %v1960_v54, %v1861_v63  ;;  %v1863_v18 = vpop.f32.mrb[1].mxu0  ;;  %v9664_v63 = vpop.permute.xlu1 %2077 }
 0x223   : > { %v1865_v4 = vpop.f32.mrb[2].mxu0  ;;  %v1963_v32 = vmul.f32 %v1960_v54, %v1863_v18 }
 0x224   : > { %v1972_v23 = vadd.f32 %v1970_v60, %v1962_v19  ;;  %v1866_v24 = vpop.f32.mrb[3].mxu0  ;;  %v9688_v4 = vpop.permute.xlu0 %2105 }
 0x225   : > { %v1973_v39 = vadd.f32 %v1970_v60, %v1963_v32 }
 0x226   : > { %v7177_v31 = vmul.f32 -1.442695, %v1972_v23  ;;  %v9670_v19 = vpop.permute.xlu1 %2139 }
 0x227   : > { %v7178_v53 = vmul.f32 -1.442695, %v1973_v39 }
 0x228   : > { %8386 = vpow2.f32 %v7177_v31  ;;  %v9696_v24 = vpop.permute.xlu0 %2189 }
 0x229   : > { %v1943_v33 = vpop.f32.mrb[8].mxu0  ;;  %8388 = vpow2.f32 %v7178_v53 }
 0x22a   : > { %v8383_v34 = vpop.eup %8382  ;;  %v1945_v36 = vpop.f32.mrb[9].mxu0  ;;  %v1966_v9 = vmul.f32 %v1960_v54, %v1943_v33 }
 0x22b   : > { %v2016_v38 = vmul.f32 %v8383_v34, %v1974_v13  ;;  %v1947_v47 = vpop.f32.mrb[10].mxu0  ;;  %v8385_v40 = vpop.eup %8384  ;;  %v1967_v17 = vmul.f32 %v1960_v54, %v1945_v36  ;;  %v9620_v13 = vrot.slane %v9541_v29, %v2040_v61 }
 0x22c   : > { %v1948_v7 = vpop.f32.mrb[11].mxu0  ;;  %v1976_v45 = vadd.f32 %v1970_v60, %v1966_v9  ;;  %v2017_v22 = vmul.f32 %v8385_v40, %v1975_v14  ;;  %v2044_v14 = vsub.s32 5, %v9535_v27  ;;  %v9680_v18 = vpop.permute.xlu1 %2173  ;;  %v8846_v9 = vmov 14  }
 0x22d   : > { %v9547_v12 = vmul.f32 %v9544_v20, %v2016_v38  ;;  %v1977_v5 = vadd.f32 %v1970_v60, %v1967_v17  ;;  %14171 = vst [vmem:[#allocation15_spill] sm:$0xff] %v9620_v13  ;;  %8142 = vset.pattern.permute.xlu1 %v8846_v9  ;;  %v8847_v40 = vmov 13  }
 0x22e   : > { %v7181_v62 = vmul.f32 -1.442695, %v1976_v45  ;;  %v9566_v2 = vmul.f32 %v9559_v0, %v2017_v22  ;;  %v9631_v46 = vrot.slane %v9541_v29, %v2044_v14  ;;  %v9700_v29 = vpop.permute.xlu0 %2291  ;;  %8141 = vset.pattern.permute.xlu0 %v8847_v40 }
 0x22f   : > { %2090 = vrot.lane.b32.xlu0 %v9547_v12, %s14051_s17  ;;  %2062 = vrot.lane.b32.xlu1 %v9547_v12, %s14049_s25  ;;  %v7182_v35 = vmul.f32 -1.442695, %v1977_v5 }
 0x230   : > { %14172 = vst [vmem:[#allocation16_spill] sm:$0xff] %v9631_v46  ;;  %v9686_v8 = vpop.permute.xlu1 %2223 }
 0x232   : > { %v8387_v41 = vpop.eup %8386  ;;  %v9704_v32 = vpop.permute.xlu0 %2341 }
 0x233   : > { %v1996_v55 = vadd.f32 1.0, %v8387_v41  ;;  %2208 = vrot.lane.b32.xlu0 %v9547_v12, %s14043_s23  ;;  %2158 = vrot.lane.b32.xlu1 %v9547_v12, %s14045_s14  ;;  %v8389_v11 = vpop.eup %8388 }
 0x234   : > { %v1997_v48 = vadd.f32 1.0, %v8389_v11 }
 0x235   : > { %8390 = vrcp.f32 %v1996_v55  ;;  %v9731_v55 = vld [vmem:[%s14000_s1 + $0x8] sm:$0xff] }
 0x236   : > { %8392 = vpow2.f32 %v7181_v62 }
 0x237   : > { %2124 = vrot.lane.b32.xlu0 %v9547_v12, %s14047_s26  ;;  %2276 = vrot.lane.b32.xlu1 %v9547_v12, %s14053_s21  ;;  %8394 = vpow2.f32 %v7182_v35  ;;  %v8849_v35 = vmov 15  }
 0x238   : > { %8396 = vrcp.f32 %v1997_v48  ;;  %v14022_v48 = vmov 23  }
 0x23b   : > { %2242 = vrot.lane.b32.xlu0 %v9547_v12, %s14168_s27  ;;  %2064 = vrot.lane.b32.xlu1 %v9566_v2, %s14049_s25 }
 0x23f   : > { %v8391_v30 = vpop.eup %8390  ;;  %2310 = vrot.lane.b32.xlu0 %v9547_v12, %s14041_s16  ;;  %2092 = vrot.lane.b32.xlu1 %v9566_v2, %s14051_s17 }
 0x240   : > { %v2014_v44 = vmul.f32 %v8391_v30, %v1972_v23  ;;  %v8393_v50 = vpop.eup %8392  ;;  %v9694_v23 = vpop.permute.xlu1 %2257 }
 0x241   : > { %v2000_v52 = vadd.f32 1.0, %v8393_v50  ;;  %v8395_v3 = vpop.eup %8394 }
 0x242   : > { %v9587_v51 = vmul.f32 %v9580_v49, %v2014_v44  ;;  %v2001_v54 = vadd.f32 1.0, %v8395_v3  ;;  %v8397_v57 = vpop.eup %8396  ;;  %v14024_v44 = vmov 16   ;;  %v8852_v3 = vmov 18  }
 0x243   : > { %2160 = vrot.lane.b32.xlu0 %v9566_v2, %s14045_s14  ;;  %2126 = vrot.lane.b32.xlu1 %v9566_v2, %s14047_s26  ;;  %8398 = vrcp.f32 %v2000_v52  ;;  %v2015_v58 = vmul.f32 %v8397_v57, %v1973_v39 }
 0x244   : > { %8400 = vrcp.f32 %v2001_v54  ;;  %v9698_v28 = vpop.permute.xlu1 %2325 }
 0x245   : > { %v9612_v60 = vmul.f32 %v9605_v59, %v2015_v58  ;;  %v8853_v58 = vmov 19  }
 0x247   : > { %2086 = vrot.lane.b32.xlu1 %v9587_v51, %s14051_s17  ;;  %2058 = vrot.lane.b32.xlu0 %v9587_v51, %s14049_s25  ;;  %v2193_v10 = vmul.f32 %v9696_v24, %v9612_v60 }
 0x248   : > { %v9702_v31 = vpop.permute.xlu1 %2351 }
 0x24b   : > { %2120 = vrot.lane.b32.xlu1 %v9587_v51, %s14047_s26  ;;  %2154 = vrot.lane.b32.xlu0 %v9587_v51, %s14045_s14 }
 0x24d   : > { %v8399_v6 = vpop.eup %8398 }
 0x24e   : > { %v2018_v25 = vmul.f32 %v8399_v6, %v1976_v45  ;;  %v8401_v1 = vpop.eup %8400 }
 0x24f   : > { %2272 = vrot.lane.b32.xlu1 %v9587_v51, %s14053_s21  ;;  %2204 = vrot.lane.b32.xlu0 %v9587_v51, %s14043_s23  ;;  %v2019_v42 = vmul.f32 %v8401_v1, %v1977_v5  ;;  %v14023_v5 = vmov 17  }
 0x250   : > { %v9628_v15 = vmul.f32 %v9620_v13, %v2018_v25  ;;  %v9768_v25 = vld [vmem:[%s14000_s1] sm:$0xff] }
 0x251   : > { %v9638_v16 = vmul.f32 %v9631_v46, %v2019_v42 }
 0x253   : > { %2306 = vrot.lane.b32.xlu1 %v9587_v51, %s14041_s16  ;;  %2238 = vrot.lane.b32.xlu0 %v9587_v51, %s14168_s27 }
 0x257   : > { %2088 = vrot.lane.b32.xlu0 %v9612_v60, %s14051_s17  ;;  %2060 = vrot.lane.b32.xlu1 %v9612_v60, %s14049_s25 }
 0x25b   : > { %2274 = vrot.lane.b32.xlu0 %v9612_v60, %s14053_s21  ;;  %2122 = vrot.lane.b32.xlu1 %v9612_v60, %s14047_s26 }
 0x25f   : > { %2156 = vrot.lane.b32.xlu1 %v9612_v60, %s14045_s14  ;;  %2066 = vrot.lane.b32.xlu0 %v9628_v15, %s14049_s25 }
 0x263   : > { %2206 = vrot.lane.b32.xlu1 %v9612_v60, %s14043_s23  ;;  %2068 = vrot.lane.b32.xlu0 %v9638_v16, %s14049_s25 }
 0x267   : > { %2240 = vrot.lane.b32.xlu1 %v9612_v60, %s14168_s27  ;;  %2210 = vrot.lane.b32.xlu0 %v9566_v2, %s14043_s23 }
 0x26b   : > { %2308 = vrot.lane.b32.xlu1 %v9612_v60, %s14041_s16  ;;  %2130 = vrot.lane.b32.xlu0 %v9638_v16, %s14047_s26 }
 0x26f   : > { %2096 = vrot.lane.b32.xlu1 %v9638_v16, %s14051_s17  ;;  %2164 = vrot.lane.b32.xlu0 %v9638_v16, %s14045_s14 }
 0x273   : > { %2094 = vrot.lane.b32.xlu1 %v9628_v15, %s14051_s17  ;;  %2128 = vrot.lane.b32.xlu0 %v9628_v15, %s14047_s26 }
 0x277   : > { %2212 = vrot.lane.b32.xlu1 %v9628_v15, %s14043_s23  ;;  %2246 = vrot.lane.b32.xlu0 %v9628_v15, %s14168_s27 }
 0x27b   : > { %2244 = vrot.lane.b32.xlu1 %v9566_v2, %s14168_s27  ;;  %2278 = vrot.lane.b32.xlu0 %v9566_v2, %s14053_s21 }
 0x27f   : > { %2162 = vrot.lane.b32.xlu1 %v9628_v15, %s14045_s14  ;;  %2312 = vrot.lane.b32.xlu0 %v9566_v2, %s14041_s16  ;;  %s14185_s14 = smov 19  }
 0x283   : > { %2280 = vrot.lane.b32.xlu1 %v9628_v15, %s14053_s21  ;;  %2214 = vrot.lane.b32.xlu0 %v9638_v16, %s14043_s23  ;;  %s14178_s23 = smov 1  }
 0x287   : > { %2314 = vrot.lane.b32.xlu1 %v9628_v15, %s14041_s16  ;;  %2282 = vrot.lane.b32.xlu0 %v9638_v16, %s14053_s21 }
 0x28b   : > { %2248 = vrot.lane.b32.xlu1 %v9638_v16, %s14168_s27  ;;  %2571 = vperm.xlu0 %8141, %v9227_v26  }
 0x28f   : > { %2316 = vrot.lane.b32.xlu1 %v9638_v16, %s14041_s16  ;;  %8144 = vset.pattern.permute.xlu0 %v8846_v9  ;;  %s14179_s16 = smov 127  }
 0x290   : > { %2596 = vperm.xlu0 %8144, %v9731_v55  }
 0x293   : > { %2592 = vperm.xlu1 %8142, %v9227_v26  }
 0x294   : > { %8147 = vset.pattern.permute.xlu0 %v14023_v5 }
 0x295   : > { %2868 = vperm.xlu0 %8147, %v9227_v26  }
 0x297   : > { %8143 = vset.pattern.permute.xlu1 %v8847_v40 }
 0x298   : > { %2576 = vperm.xlu1 %8143, %v9731_v55  }
 0x299   : > { %8152 = vset.pattern.permute.xlu0 %v14022_v48 }
 0x29a   : > { %3240 = vperm.xlu0 %8152, %v9227_v26  }
 0x29c   : > { %8145 = vset.pattern.permute.xlu1 %v8849_v35 }
 0x29d   : > { %2744 = vperm.xlu1 %8145, %v9227_v26  }
 0x29e   : > { %8153 = vset.pattern.permute.xlu0 %v8849_v35 }
 0x29f   : > { %2748 = vperm.xlu0 %8153, %v9731_v55  }
 0x2a1   : > { %v9706_v33 = vpop.permute.xlu0 %2090  ;;  %v9708_v34 = vpop.permute.xlu1 %2062  ;;  %8146 = vset.pattern.permute.xlu1 %v14024_v44 }
 0x2a2   : > { %2800 = vperm.xlu1 %8146, %v9227_v26  }
 0x2a3   : > { %8156 = vset.pattern.permute.xlu0 %v8852_v3 }
 0x2a4   : > { %2940 = vperm.xlu0 %8156, %v9731_v55  }
 0x2a5   : > { %v9710_v36 = vpop.permute.xlu0 %2208  ;;  %v9712_v38 = vpop.permute.xlu1 %2158 }
 0x2a6   : > { %8148 = vset.pattern.permute.xlu1 %v8852_v3 }
 0x2a7   : > { %2936 = vperm.xlu1 %8148, %v9227_v26  }
 0x2a8   : > { %8157 = vset.pattern.permute.xlu0 %v8853_v58 }
 0x2a9   : > { %v9714_v39 = vpop.permute.xlu0 %2124  ;;  %v9716_v47 = vpop.permute.xlu1 %2276  ;;  %2972 = vperm.xlu0 %8157, %v9731_v55  }
 0x2ab   : > { %8149 = vset.pattern.permute.xlu1 %v8853_v58 }
 0x2ac   : > { %2968 = vperm.xlu1 %8149, %v9768_v25  }
 0x2ad   : > { %v9718_v7 = vpop.permute.xlu0 %2242  ;;  %v9720_v53 = vpop.permute.xlu1 %2064 }
 0x2b1   : > { %v9724_v37 = vpop.permute.xlu0 %2310  ;;  %v9726_v41 = vpop.permute.xlu1 %2092 }
 0x2b5   : > { %v9733_v45 = vpop.permute.xlu0 %2160  ;;  %v9735_v17 = vpop.permute.xlu1 %2126 }
 0x2b6   : > { %v2134_v46 = vsel %vm724_vm5, %v9714_v39, %v9735_v17 }
 0x2b9   : > { %v9739_v22 = vpop.permute.xlu1 %2086  ;;  %v9741_v62 = vpop.permute.xlu0 %2058 }
 0x2bd   : > { %v9746_v11 = vpop.permute.xlu1 %2120  ;;  %v9748_v30 = vpop.permute.xlu0 %2154 }
 0x2c1   : > { %v9754_v50 = vpop.permute.xlu1 %2272  ;;  %v9756_v52 = vpop.permute.xlu0 %2204 }
 0x2c5   : > { %v9760_v54 = vpop.permute.xlu1 %2306  ;;  %v9762_v57 = vpop.permute.xlu0 %2238 }
 0x2c9   : > { %v2089_v61 = vpop.permute.xlu0 %2088  ;;  %v2061_v6 = vpop.permute.xlu1 %2060 }
 0x2ca   : > { %v2102_v26 = vsel %vm401_vm1, %v9739_v22, %v2089_v61  ;;  %v2074_v14 = vsel %vm375_vm4, %v9741_v62, %v2061_v6 }
 0x2cb   : > { %v2109_v1 = vmul.f32 %v9688_v4, %v2102_v26  ;;  %v2081_v42 = vmul.f32 %v9664_v63, %v2074_v14 }
 0x2cd   : > { %v9779_v9 = vpop.permute.xlu0 %2274  ;;  %v2123_v40 = vpop.permute.xlu1 %2122  ;;  %v2115_v56 = vadd.f32 %v2109_v1, %v2081_v42 }
 0x2ce   : > { %v2136_v35 = vsel %vm724_vm5, %v9746_v11, %v2123_v40  ;;  %v2287_v60 = vsel %vm1606_vm9, %v9779_v9, %v9716_v47 }
 0x2cf   : > { %v2143_v3 = vmul.f32 %v9670_v19, %v2136_v35 }
 0x2d1   : > { %v2157_v43 = vpop.permute.xlu1 %2156  ;;  %v9786_v48 = vpop.permute.xlu0 %2066  ;;  %v2149_v14 = vadd.f32 %v2143_v3, %v2115_v56  ;;  %v2101_v3 = vsel %vm401_vm1, %v2089_v61, %v9706_v33 }
 0x2d2   : > { %v2170_v26 = vsel %vm905_vm6, %v9748_v30, %v2157_v43 }
 0x2d3   : > { %v2177_v5 = vmul.f32 %v9680_v18, %v2170_v26  ;;  %v2073_v26 = vsel %vm375_vm4, %v2061_v6, %v9708_v34 }
 0x2d5   : > { %v2183_v58 = vadd.f32 %v2177_v5, %v2149_v14  ;;  %v9792_v44 = vpop.permute.xlu1 %2206  ;;  %v9796_v27 = vpop.permute.xlu0 %2068  ;;  %v2100_v5 = vsel %vm401_vm1, %v9706_v33, %v9726_v41  ;;  %v2295_v33 = vmul.f32 %v9700_v29, %v2287_v60 }
 0x2d6   : > { %v2219_v1 = vsel %vm1244_vm7, %v9792_v44, %v9710_v36  ;;  %v2111_v0 = vmul.f32 %v9688_v4, %v2100_v5 }
 0x2d7   : > { %v2199_v42 = vadd.f32 %v2193_v10, %v2183_v58  ;;  %v2227_v35 = vmul.f32 %v9686_v8, %v2219_v1  ;;  %v2072_v1 = vsel %vm375_vm4, %v9708_v34, %v9720_v53  ;;  %v2135_v34 = vsel %vm724_vm5, %v2123_v40, %v9714_v39 }
 0x2d8   : > { %v2083_v60 = vmul.f32 %v9664_v63, %v2072_v1  ;;  %v2075_v39 = vsel %vm375_vm4, %v9796_v27, %v9741_v62 }
 0x2d9   : > { %v9803_v13 = vpop.permute.xlu1 %2240  ;;  %v9805_v56 = vpop.permute.xlu0 %2210  ;;  %v2233_v14 = vadd.f32 %v2227_v35, %v2199_v42  ;;  %v2110_v42 = vmul.f32 %v9688_v4, %v2101_v3  ;;  %v2082_v35 = vmul.f32 %v9664_v63, %v2073_v26  ;;  %v2169_v3 = vsel %vm905_vm6, %v2157_v43, %v9712_v38 }
 0x2da   : > { %v2253_v10 = vsel %vm1425_vm8, %v9803_v13, %v9718_v7  ;;  %v2117_v40 = vadd.f32 %v2111_v0, %v2083_v60  ;;  %v2144_v26 = vmul.f32 %v9670_v19, %v2135_v34  ;;  %v2178_v62 = vmul.f32 %v9680_v18, %v2169_v3 }
 0x2db   : > { %v2261_v58 = vmul.f32 %v9694_v23, %v2253_v10 }
 0x2dd   : > { %v2267_v61 = vadd.f32 %v2261_v58, %v2233_v14  ;;  %v9836_v20 = vpop.permute.xlu1 %2308  ;;  %v9838_v6 = vpop.permute.xlu0 %2130  ;;  %v2145_v58 = vmul.f32 %v9670_v19, %v2134_v46  ;;  %v2168_v46 = vsel %vm905_vm6, %v9712_v38, %v9733_v45  ;;  %v2194_v38 = vmul.f32 %v9696_v24, %v9547_v12 }
 0x2de   : > { %v2321_v5 = vsel %vm1787_vm10, %v9836_v20, %v9724_v37  ;;  %v2137_v43 = vsel %vm724_vm5, %v9838_v6, %v9746_v11 }
 0x2df   : > { %v2301_v10 = vadd.f32 %v2295_v33, %v2267_v61  ;;  %v2329_v14 = vmul.f32 %v9698_v28, %v2321_v5  ;;  %v2116_v33 = vadd.f32 %v2110_v42, %v2082_v35  ;;  %v2080_v61 = vmul.f32 %v9664_v63, %v2075_v39 }
 0x2e0   : > { %v2151_v60 = vadd.f32 %v2145_v58, %v2117_v40  ;;  %v2192_v58 = vmul.f32 %v9696_v24, %v9587_v51  ;;  %v2071_v40 = vsel %vm375_vm4, %v9720_v53, %v9786_v48  ;;  %v2220_v51 = vsel %vm1244_vm7, %v9756_v52, %v9792_v44 }
 0x2e1   : > { %v2335_v59 = vadd.f32 %v2329_v14, %v2301_v10  ;;  %v2097_v49 = vpop.permute.xlu1 %2096  ;;  %v9860_v1 = vpop.permute.xlu0 %2164  ;;  %v2150_v42 = vadd.f32 %v2144_v26, %v2116_v33  ;;  %v2070_v53 = vsel %vm375_vm4, %v9786_v48, %v9796_v27  ;;  %v2226_v27 = vmul.f32 %v9686_v8, %v2220_v51 }
 0x2e2   : > { %v2103_v0 = vsel %vm401_vm1, %v2097_v49, %v9739_v22  ;;  %v2171_v11 = vsel %vm905_vm6, %v9860_v1, %v9748_v30  ;;  %v2142_v22 = vmul.f32 %v9670_v19, %v2137_v43  ;;  %v2195_v30 = vmul.f32 %v9696_v24, %v9566_v2 }
 0x2e3   : > { %v2345_v34 = vmul.f32 %v9704_v32, %v2335_v59  ;;  %v2108_v5 = vmul.f32 %v9688_v4, %v2103_v0  ;;  %v2179_v59 = vmul.f32 %v9680_v18, %v2168_v46  ;;  %v2184_v39 = vadd.f32 %v2178_v62, %v2150_v42 }
 0x2e4   : > { %v2176_v33 = vmul.f32 %v9680_v18, %v2171_v11  ;;  %v2085_v11 = vmul.f32 %v9664_v63, %v2070_v53 }
 0x2e5   : > { %v2114_v35 = vadd.f32 %v2108_v5, %v2080_v61  ;;  %v2095_v10 = vpop.permute.xlu1 %2094  ;;  %v2129_v14 = vpop.permute.xlu0 %2128  ;;  %v9885_v3 = vadd.f32 %v9702_v31, %v2345_v34  ;;  %v2185_v43 = vadd.f32 %v2179_v59, %v2151_v60  ;;  %v2084_v34 = vmul.f32 %v9664_v63, %v2071_v40 }
 0x2e6   : > { %v2099_v12 = vsel %vm401_vm1, %v9726_v41, %v2095_v10  ;;  %v2218_v41 = vsel %vm1244_vm7, %v9710_v36, %v9805_v56  ;;  %v2098_v62 = vsel %vm401_vm1, %v2095_v10, %v2097_v49  ;;  %v2288_v36 = vsel %vm1606_vm9, %v9754_v50, %v9779_v9 }
 0x2e7   : > { %v2148_v26 = vadd.f32 %v2142_v22, %v2114_v35  ;;  %v2112_v2 = vmul.f32 %v9688_v4, %v2099_v12  ;;  %v7184_v46 = vmul.f32 -1.442695, %v9885_v3  ;;  %v2254_v5 = vsel %vm1425_vm8, %v9762_v57, %v9803_v13 }
 0x2e8   : > { %v2228_v49 = vmul.f32 %v9686_v8, %v2218_v41  ;;  %v2133_v60 = vsel %vm724_vm5, %v9735_v17, %v2129_v14  ;;  %v2200_v9 = vadd.f32 %v2194_v38, %v2184_v39  ;;  %v2113_v42 = vmul.f32 %v9688_v4, %v2098_v62 }
 0x2e9   : > { %v2182_v0 = vadd.f32 %v2176_v33, %v2148_v26  ;;  %v2213_v44 = vpop.permute.xlu1 %2212  ;;  %v9916_v61 = vpop.permute.xlu0 %2246  ;;  %8402 = vpow2.f32 %v7184_v46  ;;  %v2118_v22 = vadd.f32 %v2112_v2, %v2084_v34  ;;  %v2260_v35 = vmul.f32 %v9694_v23, %v2254_v5 }
 0x2ea   : > { %v2322_v13 = vsel %vm1787_vm10, %v9760_v54, %v9836_v20  ;;  %v2132_v59 = vsel %vm724_vm5, %v2129_v14, %v9838_v6  ;;  %v2146_v63 = vmul.f32 %v9670_v19, %v2133_v60  ;;  %v2217_v4 = vsel %vm1244_vm7, %v9805_v56, %v2213_v44 }
 0x2eb   : > { %v2198_v48 = vadd.f32 %v2192_v58, %v2182_v0  ;;  %v2294_v12 = vmul.f32 %v9700_v29, %v2288_v36  ;;  %v2234_v39 = vadd.f32 %v2228_v49, %v2200_v9  ;;  %v2328_v40 = vmul.f32 %v9698_v28, %v2322_v13 }
 0x2ec   : > { %v2119_v26 = vadd.f32 %v2113_v42, %v2085_v11  ;;  %v2147_v33 = vmul.f32 %v9670_v19, %v2132_v59  ;;  %v2152_v56 = vadd.f32 %v2146_v63, %v2118_v22  ;;  %v2229_v51 = vmul.f32 %v9686_v8, %v2217_v4 }
 0x2ed   : > { %v2232_v10 = vadd.f32 %v2226_v27, %v2198_v48  ;;  %v2245_v58 = vpop.permute.xlu1 %2244  ;;  %v2279_v17 = vpop.permute.xlu0 %2278  ;;  %v2201_v60 = vadd.f32 %v2195_v30, %v2185_v43  ;;  %v2197_v63 = vmul.f32 %v9696_v24, %v9638_v16 }
 0x2ee   : > { %v2252_v38 = vsel %vm1425_vm8, %v9718_v7, %v2245_v58  ;;  %v2286_v20 = vsel %vm1606_vm9, %v9716_v47, %v2279_v17  ;;  %v2251_v53 = vsel %vm1425_vm8, %v2245_v58, %v9916_v61  ;;  %v2153_v48 = vadd.f32 %v2147_v33, %v2119_v26 }
 0x2ef   : > { %v2266_v6 = vadd.f32 %v2260_v35, %v2232_v10  ;;  %v2262_v14 = vmul.f32 %v9694_v23, %v2252_v38  ;;  %v2296_v7 = vmul.f32 %v9700_v29, %v2286_v20  ;;  %v2235_v59 = vadd.f32 %v2229_v51, %v2201_v60 }
 0x2f0   : > { %v2196_v58 = vmul.f32 %v9696_v24, %v9628_v15 }
 0x2f1   : > { %v2268_v41 = vadd.f32 %v2262_v14, %v2234_v39  ;;  %v2163_v2 = vpop.permute.xlu1 %2162  ;;  %v2313_v46 = vpop.permute.xlu0 %2312  ;;  %v2300_v47 = vadd.f32 %v2294_v12, %v2266_v6 }
 0x2f2   : > { %v2166_v0 = vsel %vm905_vm6, %v2163_v2, %v9860_v1  ;;  %v2167_v19 = vsel %vm905_vm6, %v9733_v45, %v2163_v2  ;;  %v2320_v62 = vsel %vm1787_vm10, %v9724_v37, %v2313_v46  ;;  %v2263_v1 = vmul.f32 %v9694_v23, %v2251_v53 }
 0x2f3   : > { %v2302_v36 = vadd.f32 %v2296_v7, %v2268_v41  ;;  %v2180_v34 = vmul.f32 %v9680_v18, %v2167_v19  ;;  %v2181_v5 = vmul.f32 %v9680_v18, %v2166_v0  ;;  %v2330_v27 = vmul.f32 %v9698_v28, %v2320_v62  ;;  %v8403_v49 = vpop.eup %8402 }
 0x2f4   : > { %v2334_v11 = vadd.f32 %v2328_v40, %v2300_v47  ;;  %v2379_v35 = vadd.f32 1.0, %v8403_v49  ;;  %v2269_v4 = vadd.f32 %v2263_v1, %v2235_v59 }
 0x2f5   : > { %v2186_v9 = vadd.f32 %v2180_v34, %v2152_v56  ;;  %v2336_v42 = vadd.f32 %v2330_v27, %v2302_v36  ;;  %v2281_v45 = vpop.permute.xlu1 %2280  ;;  %v2215_v22 = vpop.permute.xlu0 %2214  ;;  %v2187_v13 = vadd.f32 %v2181_v5, %v2153_v48 }
 0x2f6   : > { %v2285_v37 = vsel %vm1606_vm9, %v2279_v17, %v2281_v45  ;;  %v2216_v18 = vsel %vm1244_vm7, %v2213_v44, %v2215_v22  ;;  %v2344_v10 = vmul.f32 %v9704_v32, %v2334_v11  ;;  %v2221_v17 = vsel %vm1244_vm7, %v2215_v22, %v9756_v52 }
 0x2f7   : > { %v2346_v30 = vmul.f32 %v9704_v32, %v2336_v42  ;;  %v2297_v43 = vmul.f32 %v9700_v29, %v2285_v37  ;;  %8404 = vrcp.f32 %v2379_v35  ;;  %v2202_v38 = vadd.f32 %v2196_v58, %v2186_v9 }
 0x2f8   : > { %v9989_v44 = vadd.f32 %v9702_v31, %v2344_v10  ;;  %v2230_v20 = vmul.f32 %v9686_v8, %v2216_v18  ;;  %v2203_v15 = vadd.f32 %v2197_v63, %v2187_v13  ;;  %v2231_v52 = vmul.f32 %v9686_v8, %v2221_v17 }
 0x2f9   : > { %v2315_v12 = vpop.permute.xlu1 %2314  ;;  %v9993_v39 = vadd.f32 %v9702_v31, %v2346_v30  ;;  %v2283_v24 = vpop.permute.xlu0 %2282  ;;  %v2303_v6 = vadd.f32 %v2297_v43, %v2269_v4 }
 0x2fa   : > { %v2319_v16 = vsel %vm1787_vm10, %v2313_v46, %v2315_v12  ;;  %v7183_v40 = vmul.f32 -1.442695, %v9989_v44  ;;  %v2236_v33 = vadd.f32 %v2230_v20, %v2202_v38  ;;  %v2284_v51 = vsel %vm1606_vm9, %v2281_v45, %v2283_v24 }
 0x2fb   : > { %v2331_v14 = vmul.f32 %v9698_v28, %v2319_v16  ;;  %v7185_v26 = vmul.f32 -1.442695, %v9993_v39  ;;  %v2289_v7 = vsel %vm1606_vm9, %v2283_v24, %v9754_v50  ;;  %v2237_v46 = vadd.f32 %v2231_v52, %v2203_v15 }
 0x2fc   : > { %8406 = vpow2.f32 %v7183_v40  ;;  %v2298_v19 = vmul.f32 %v9700_v29, %v2284_v51  ;;  %v2299_v50 = vmul.f32 %v9700_v29, %v2289_v7  ;;  %v8854_v7 = vmov 21  }
 0x2fd   : > { %v2337_v56 = vadd.f32 %v2331_v14, %v2303_v6  ;;  %v2249_v41 = vpop.permute.xlu1 %2248  ;;  %8408 = vpow2.f32 %v7185_v26  ;;  %v14173_v6 = vmov 0   ;;  %8150 = vset.pattern.permute.xlu1 %v8854_v7 }
 0x2fe   : > { %v2250_v8 = vsel %vm1425_vm8, %v9916_v61, %v2249_v41  ;;  %v2255_v2 = vsel %vm1425_vm8, %v2249_v41, %v9762_v57  ;;  %3104 = vperm.xlu1 %8150, %v9768_v25  }
 0x2ff   : > { %v2347_v47 = vmul.f32 %v9704_v32, %v2337_v56  ;;  %v2264_v53 = vmul.f32 %v9694_v23, %v2250_v8  ;;  %v2265_v0 = vmul.f32 %v9694_v23, %v2255_v2  ;;  %v8855_v8 = vmov 22  }
 0x300   : > { %v14174_v2 = vmov 16  }
 0x301   : > { %v2270_v62 = vadd.f32 %v2264_v53, %v2236_v33  ;;  %v2271_v36 = vadd.f32 %v2265_v0, %v2237_v46  ;;  %v2317_v34 = vpop.permute.xlu1 %2316  ;;  %v2357_v61 = vadd.f32 %v9702_v31, %v2347_v47  ;;  %v8405_v5 = vpop.eup %8404  ;;  %v14175_v46 = vmov 17  }
 0x302   : > { %v2318_v57 = vsel %vm1787_vm10, %v2315_v12, %v2317_v34  ;;  %v2323_v27 = vsel %vm1787_vm10, %v2317_v34, %v9760_v54  ;;  %v2397_v29 = vmul.f32 %v8405_v5, %v9885_v3  ;;  %8151 = vset.pattern.permute.xlu1 %v8855_v8  ;;  %v8856_v47 = vmov 20  }
 0x303   : > { %v2304_v49 = vadd.f32 %v2298_v19, %v2270_v62  ;;  %v2305_v48 = vadd.f32 %v2299_v50, %v2271_v36  ;;  %v2332_v23 = vmul.f32 %v9698_v28, %v2318_v57  ;;  %v2333_v60 = vmul.f32 %v9698_v28, %v2323_v27  ;;  %3172 = vperm.xlu1 %8151, %v9768_v25  }
 0x304   : > { %v7186_v11 = vmul.f32 -1.442695, %v2357_v61  ;;  %v2405_v42 = vpack.c.bf16 %v2397_v29, %v2397_v29  ;;  %8158 = vset.pattern.permute.xlu0 %v8856_v47 }
 0x305   : > { %v2338_v1 = vadd.f32 %v2332_v23, %v2304_v49  ;;  %v2339_v9 = vadd.f32 %v2333_v60, %v2305_v48  ;;  %3036 = vperm.xlu0 %8158, %v9768_v25  }
 0x306   : > { %8410 = vpow2.f32 %v7186_v11  ;;  %v8407_v45 = vpop.eup %8406  ;;  %7190 = vmatprep.subr.msk.bf16.mxu1 %vm2419_vm11, %v2405_v42 }
 0x307   : > { %v2348_v22 = vmul.f32 %v9704_v32, %v2338_v1  ;;  %v2349_v35 = vmul.f32 %v9704_v32, %v2339_v9  ;;  %v8409_v54 = vpop.eup %8408  ;;  %v2378_v13 = vadd.f32 1.0, %v8407_v45  ;;  %8154 = vset.pattern.permute.xlu1 %v14174_v2  ;;  %v3277_v2 = vld [vmem:[%s14003_s4 + $0x30] sm:$0xff] }
 0x308   : > { %v2380_v37 = vadd.f32 1.0, %v8409_v54  ;;  %2804 = vperm.xlu1 %8154, %v9731_v55  }
 0x309   : > { %v2359_v28 = vadd.f32 %v9702_v31, %v2349_v35  ;;  %v2358_v3 = vadd.f32 %v9702_v31, %v2348_v22  ;;  %8412 = vrcp.f32 %v2378_v13  ;;  %v8359_v31 = vld [vmem:[%s14001_s2 + $0x4] ss:$28 sps:$4 sm:$0xff]  }
 0x30a   : > { %8414 = vrcp.f32 %v2380_v37  ;;  %v10054_v53 = vpop.permute.xlu0 %2571 }
 0x30b   : > { %v7188_v18 = vmul.f32 -1.442695, %v2359_v28  ;;  %v7187_v10 = vmul.f32 -1.442695, %v2358_v3 }
 0x30c   : > { %8155 = vset.pattern.permute.xlu1 %v14175_v46 }
 0x30d   : > { %8416 = vpow2.f32 %v7188_v18  ;;  %2872 = vperm.xlu1 %8155, %v9731_v55  }
 0x30e   : > { %8418 = vpow2.f32 %v7187_v10 }
 0x30f   : > { %v10069_v11 = vpop.permute.xlu0 %2596 }
 0x310   : > { %v8411_v59 = vpop.eup %8410 }
 0x311   : > { %v2381_v30 = vadd.f32 1.0, %v8411_v59  ;;  %8159 = vset.pattern.permute.xlu1 %v8854_v7  ;;  %v3275_v7 = vld [vmem:[%s14003_s4 + $0x20] sm:$0xff] }
 0x312   : > { %v10057_v62 = vpop.permute.xlu1 %2592  ;;  %v7533_v47 = vpack.c.bf16 %v3277_v2, %v3275_v7 }
 0x313   : > { %8420 = vrcp.f32 %v2381_v30  ;;  %v8413_v43 = vpop.eup %8412 }
 0x314   : > { %v2396_v32 = vmul.f32 %v8413_v43, %v9989_v44  ;;  %v8415_v58 = vpop.eup %8414 }
 0x315   : > { %v2398_v15 = vmul.f32 %v8415_v58, %v9993_v39 }
 0x316   : > { %v2404_v17 = vpack.c.bf16 %v2396_v32, %v2396_v32 }
 0x317   : > { %v8417_v63 = vpop.eup %8416  ;;  %v2406_v24 = vpack.c.bf16 %v2398_v15, %v2398_v15  ;;  %v10064_v23 = vpop.permute.xlu1 %2576  ;;  %v3272_v15 = vld [vmem:[%s14003_s4 + $0x8] sm:$0xff] }
 0x318   : > { %v8419_v4 = vpop.eup %8418  ;;  %v2383_v38 = vadd.f32 1.0, %v8417_v63  ;;  %v2421_v20 = vsel %vm2419_vm11, %v2404_v17, 0  ;;  %v14176_v63 = vld [vmem:[#allocation13_spill] sm:$0xff] }
 0x319   : > { %v2382_v12 = vadd.f32 1.0, %v8419_v4  ;;  %2439 = vmatpush1.bf16.msra.mxu1 %v2421_v20  ;;  %v2427_v14 = vsel %vm2419_vm11, %v2406_v24, 0  ;;  %v3271_v24 = vld [vmem:[%s14003_s4] sm:$0xff] }
 0x31a   : > { %8422 = vrcp.f32 %v2383_v38 }
 0x31b   : > { %8424 = vrcp.f32 %v2382_v12 }
 0x31c   : > { %7191 = vmatmul.mubr.msk.bf16.vlgmr.msra.gmra.mrb[4].mxu1 %vm2415_vm12, %v8359_v31 }
 0x31d   : > { %v8421_v16 = vpop.eup %8420  ;;  %2513 = vmatprep.mubr.bf16.mxu1 %v14173_v6 }
 0x31e   : > { %v2399_v44 = vmul.f32 %v8421_v16, %v2357_v61  ;;  %v3274_v16 = vld [vmem:[%s14003_s4 + $0x18] sm:$0xff] }
 0x320   : > { %v2407_v52 = vpack.c.bf16 %v2399_v44, %v2399_v44  ;;  %v7527_v44 = vpack.c.bf16 %v3274_v16, %v3272_v15  ;;  %v3294_v15 = vld [vmem:[%s14003_s4 + $0xb8] sm:$0xff] }
 0x322   : > { %7192 = vmatprep.subr.msk.bf16.mxu1 %vm2419_vm11, %v2407_v52  ;;  %v3273_v52 = vld [vmem:[%s14003_s4 + $0x10] sm:$0xff] }
 0x323   : > { %2482 = vmatpush1.bf16.msra.mxu1 %v2427_v14 }
 0x324   : > { %v8423_v40 = vpop.eup %8422 }
 0x325   : > { %v8425_v26 = vpop.eup %8424  ;;  %v2401_v33 = vmul.f32 %v8423_v40, %v2359_v28  ;;  %v7529_v40 = vpack.c.bf16 %v3273_v52, %v3271_v24  ;;  %v3293_v24 = vld [vmem:[%s14003_s4 + $0xb0] sm:$0xff] }
 0x326   : > { %7193 = vmatmul.mubr.msk.bf16.vlgmr.msra.gmra.mrb[8].mxu1 %vm2415_vm12, %v8359_v31  ;;  %v2400_v39 = vmul.f32 %v8425_v26, %v2358_v3 }
 0x327   : > { %v2409_v56 = vpack.c.bf16 %v2401_v33, %v2401_v33  ;;  %2556 = vmatprep.mubr.bf16.mxu1 %v14173_v6  ;;  %v14177_v33 = vld [vmem:[#allocation14_spill] sm:$0xff] }
 0x328   : > { %v2408_v51 = vpack.c.bf16 %v2400_v39, %v2400_v39 }
 0x329   : > { %7194 = vmatprep.subr.msk.bf16.mxu1 %vm2419_vm11, %v2409_v56  ;;  %v3276_v56 = vld [vmem:[%s14003_s4 + $0x28] sm:$0xff] }
 0x32a   : > { %v2433_v41 = vsel %vm2419_vm11, %v2408_v51, 0  ;;  %v3278_v51 = vld [vmem:[%s14003_s4 + $0x38] sm:$0xff] }
 0x32b   : > { %2525 = vmatpush1.bf16.msra.mxu1 %v2433_v41  ;;  %v7531_v41 = vpack.c.bf16 %v3278_v51, %v3276_v56  ;;  %v3295_v51 = vld [vmem:[%s14003_s4 + $0xc0] sm:$0xff] }
 0x32c   : > { %7528 = vmatprep.subr.bf16.mxu1 %v7527_v44  ;;  %v3291_v44 = vld [vmem:[%s14003_s4 + $0xa0] sm:$0xff] }
 0x32e   : > { %7195 = vmatmul.mubr.msk.bf16.vlgmr.msra.gmra.mrb[12].mxu1 %vm2415_vm12, %v8359_v31 }
 0x32f   : > { %7530 = vmatpush1.bf16.msra.mxu1 %v7529_v40  ;;  %v3298_v40 = vld [vmem:[%s14003_s4 + $0xd8] sm:$0xff] }
 0x330   : > { %7532 = vmatprep.subr.bf16.mxu1 %v7531_v41 }
 0x333   : > { %7534 = vmatpush1.bf16.msra.mxu1 %v7533_v47  ;;  %v3302_v47 = vld [vmem:[%s14003_s4 + $0xf8] sm:$0xff] }
 0x3ef   : > { %v2472_v0 = vpop.f32.mrb[4].mxu1 }
 0x3f0   : > { %v2579_v19 = vmul.f32 %v10054_v53, %v2472_v0  ;;  %v2474_v50 = vpop.f32.mrb[5].mxu1 }
 0x3f1   : > { %v2580_v36 = vmul.f32 %v10054_v53, %v2474_v50  ;;  %v2476_v34 = vpop.f32.mrb[6].mxu1  ;;  %v3282_v50 = vld [vmem:[%s14003_s4 + $0x58] sm:$0xff] }
 0x3f2   : > { %v2599_v61 = vadd.f32 %v10057_v62, %v2579_v19  ;;  %v2478_v5 = vpop.f32.mrb[7].mxu1  ;;  %v2585_v29 = vmul.f32 %v10064_v23, %v2476_v34  ;;  %v3280_v19 = vld [vmem:[%s14003_s4 + $0x48] sm:$0xff]  ;;  %v3279_v34 = vld [vmem:[%s14003_s4 + $0x40] sm:$0xff] }
 0x3f3   : > { %v2600_v57 = vadd.f32 %v10057_v62, %v2580_v36  ;;  %v2586_v18 = vmul.f32 %v10064_v23, %v2478_v5  ;;  %v7535_v36 = vpack.c.bf16 %v3282_v50, %v3280_v19  ;;  %v3299_v50 = vld [vmem:[%s14003_s4 + $0xe0] sm:$0xff] }
 0x3f4   : > { %v7196_v55 = vmul.f32 -1.442695, %v2599_v61  ;;  %v10074_v35 = vadd.f32 %v10069_v11, %v2585_v29 }
 0x3f5   : > { %v7197_v27 = vmul.f32 -1.442695, %v2600_v57  ;;  %v10087_v43 = vadd.f32 %v10069_v11, %v2586_v18  ;;  %7536 = vmatprep.subr.bf16.mxu1 %v7535_v36  ;;  %v3290_v18 = vld [vmem:[%s14003_s4 + $0x98] sm:$0xff]  ;;  %v3301_v36 = vld [vmem:[%s14003_s4 + $0xf0] sm:$0xff] }
 0x3f6   : > { %8426 = vpow2.f32 %v7196_v55  ;;  %v7202_v28 = vmul.f32 -1.442695, %v10074_v35 }
 0x3f7   : > { %8428 = vpow2.f32 %v7197_v27  ;;  %v7203_v38 = vmul.f32 -1.442695, %v10087_v43 }
 0x3f9   : > { %v2515_v25 = vpop.f32.mrb[8].mxu1 }
 0x3fa   : > { %v2517_v49 = vpop.f32.mrb[9].mxu1  ;;  %v2581_v3 = vmul.f32 %v10054_v53, %v2515_v25  ;;  %v3284_v25 = vld [vmem:[%s14003_s4 + $0x68] sm:$0xff] }
 0x3fb   : > { %v10062_v48 = vpop.f32.mrb[10].mxu1  ;;  %v2582_v46 = vmul.f32 %v10054_v53, %v2517_v49  ;;  %v3286_v49 = vld [vmem:[%s14003_s4 + $0x78] sm:$0xff] }
 0x3fc   : > { %v10066_v60 = vpop.f32.mrb[11].mxu1  ;;  %v10084_v10 = vadd.f32 %v10057_v62, %v2581_v3  ;;  %v7539_v29 = vpack.c.bf16 %v3286_v49, %v3284_v25  ;;  %v3288_v3 = vld [vmem:[%s14003_s4 + $0x88] sm:$0xff]  ;;  %v3306_v25 = vld [vmem:[%s14003_s4 + $0x118] sm:$0xff] }
 0x3fd   : > { %v10152_v5 = vadd.f32 %v10057_v62, %v2582_v46  ;;  %v3300_v46 = vld [vmem:[%s14003_s4 + $0xe8] sm:$0xff] }
 0x3fe   : > { %v7198_v32 = vmul.f32 -1.442695, %v10084_v10  ;;  %v7555_v19 = vpack.c.bf16 %v3302_v47, %v3300_v46  ;;  %v3321_v46 = vld [vmem:[%s14003_s4 + $0x190] sm:$0xff]  ;;  %v10345_v47 = vld [vmem:[%s14000_s1 + $0x8] sm:$0xff] }
 0x400   : > { %v8427_v1 = vpop.eup %8426 }
 0x401   : > { %v10071_v9 = vpop.f32.mrb[12].mxu1  ;;  %v8429_v42 = vpop.eup %8428  ;;  %v2647_v45 = vadd.f32 1.0, %v8427_v1  ;;  %v3283_v1 = vld [vmem:[%s14003_s4 + $0x60] sm:$0xff] }
 0x402   : > { %v2560_v22 = vpop.f32.mrb[13].mxu1  ;;  %v2648_v13 = vadd.f32 1.0, %v8429_v42  ;;  %v3285_v42 = vld [vmem:[%s14003_s4 + $0x70] sm:$0xff] }
 0x403   : > { %v10076_v54 = vpop.f32.mrb[14].mxu1  ;;  %8430 = vrcp.f32 %v2647_v45  ;;  %v2584_v58 = vmul.f32 %v10054_v53, %v2560_v22  ;;  %v7199_v45 = vmul.f32 -1.442695, %v10152_v5  ;;  %v7541_v22 = vpack.c.bf16 %v3285_v42, %v3283_v1  ;;  %v3303_v1 = vld [vmem:[%s14003_s4 + $0x100] sm:$0xff] }
 0x404   : > { %v10078_v37 = vpop.f32.mrb[15].mxu1  ;;  %8432 = vrcp.f32 %v2648_v13  ;;  %v2587_v42 = vmul.f32 %v10064_v23, %v10062_v48  ;;  %v3310_v48 = vld [vmem:[%s14003_s4 + $0x138] sm:$0xff] }
 0x405   : > { %8434 = vpow2.f32 %v7202_v28  ;;  %v10096_v20 = vadd.f32 %v10057_v62, %v2584_v58  ;;  %v3289_v58 = vld [vmem:[%s14003_s4 + $0x90] sm:$0xff] }
 0x406   : > { %8436 = vpow2.f32 %v7198_v32  ;;  %v3287_v32 = vld [vmem:[%s14003_s4 + $0x80] sm:$0xff] }
 0x407   : > { %8438 = vpow2.f32 %v7203_v38  ;;  %v7201_v14 = vmul.f32 -1.442695, %v10096_v20 }
 0x409   : > { %8440 = vpow2.f32 %v7201_v14  ;;  %v3296_v14 = vld [vmem:[%s14003_s4 + $0xc8] sm:$0xff] }
 0x40a   : > { %v7551_v56 = vpack.c.bf16 %v3298_v40, %v3296_v14  ;;  %v3315_v40 = vld [vmem:[%s14003_s4 + $0x160] sm:$0xff] }
 0x40d   : > { %v8431_v59 = vpop.eup %8430 }
 0x40e   : > { %v2683_v30 = vmul.f32 %v8431_v59, %v2599_v61  ;;  %v8433_v4 = vpop.eup %8432  ;;  %v3281_v61 = vld [vmem:[%s14003_s4 + $0x50] sm:$0xff] }
 0x40f   : > { %v8435_v31 = vpop.eup %8434  ;;  %v2684_v12 = vmul.f32 %v8433_v4, %v2600_v57  ;;  %v7537_v57 = vpack.c.bf16 %v3281_v61, %v3279_v34  ;;  %v7545_v4 = vpack.c.bf16 %v3289_v58, %v3287_v32  ;;  %v3312_v58 = vld [vmem:[%s14003_s4 + $0x148] sm:$0xff] }
 0x410   : > { %v10092_v17 = vmul.f32 %v2683_v30, %v14176_v63  ;;  %v2653_v26 = vadd.f32 1.0, %v8435_v31  ;;  %v8437_v0 = vpop.eup %8436  ;;  %v7543_v30 = vpack.c.bf16 %v3290_v18, %v3288_v3  ;;  %v3307_v18 = vld [vmem:[%s14003_s4 + $0x120] sm:$0xff] }
 0x411   : > { %v10120_v39 = vmul.f32 %v2684_v12, %v14177_v33  ;;  %v2649_v55 = vadd.f32 1.0, %v8437_v0  ;;  %v8439_v27 = vpop.eup %8438  ;;  %7538 = vmatpush1.bf16.msra.mxu1 %v7537_v57  ;;  %v3292_v12 = vld [vmem:[%s14003_s4 + $0xa8] sm:$0xff] }
 0x412   : > { %2831 = vrot.lane.b32.xlu0 %v10092_v17, %s14047_s26  ;;  %2707 = vrot.lane.b32.xlu1 %v10092_v17, %s14049_s25  ;;  %8442 = vrcp.f32 %v2653_v26  ;;  %v2654_v13 = vadd.f32 1.0, %v8439_v27  ;;  %s14180_s26 = smov 109   ;;  %v7547_v16 = vpack.c.bf16 %v3294_v15, %v3292_v12  ;;  %v14184_v57 = vld [vmem:[#allocation11_spill] sm:$0xff] }
 0x413   : > { %8444 = vrcp.f32 %v2649_v55  ;;  %7540 = vmatprep.subr.bf16.mxu1 %v7539_v29  ;;  %v8441_v28 = vpop.eup %8440  ;;  %v3304_v27 = vld [vmem:[%s14003_s4 + $0x108] sm:$0xff]  ;;  %v3313_v12 = vld [vmem:[%s14003_s4 + $0x150] sm:$0xff] }
 0x414   : > { %8446 = vpow2.f32 %v7199_v45  ;;  %v2652_v38 = vadd.f32 1.0, %v8441_v28  ;;  %v7559_v29 = vpack.c.bf16 %v3306_v25, %v3304_v27  ;;  %v3308_v28 = vld [vmem:[%s14003_s4 + $0x128] sm:$0xff]  ;;  %v2583_v27 = vmul.f32 %v10054_v53, %v10071_v9  ;;  %v3330_v53 = vld [vmem:[%s14003_s4 + $0x1d8] sm:$0xff] }
 0x415   : > { %7542 = vmatpush1.bf16.msra.mxu1 %v7541_v22  ;;  %8448 = vrcp.f32 %v2654_v13  ;;  %v7563_v3 = vpack.c.bf16 %v3310_v48, %v3308_v28 }
 0x416   : > { %3135 = vrot.lane.b32.xlu0 %v10092_v17, %s14053_s21  ;;  %2763 = vrot.lane.b32.xlu1 %v10092_v17, %s14051_s17  ;;  %8450 = vrcp.f32 %v2652_v38  ;;  %s8870_s21 = smov 10  }
 0x417   : > { %7544 = vmatprep.subr.bf16.mxu1 %v7543_v30  ;;  %v14186_v30 = vld [vmem:[#allocation16_spill] sm:$0xff] }
 0x419   : > { %7546 = vmatpush1.bf16.msra.mxu1 %v7545_v4  ;;  %v3314_v4 = vld [vmem:[%s14003_s4 + $0x158] sm:$0xff] }
 0x41a   : > { %2711 = vrot.lane.b32.xlu0 %v10120_v39, %s14049_s25  ;;  %2899 = vrot.lane.b32.xlu1 %v10092_v17, %s14178_s23  ;;  %v7567_v38 = vpack.c.bf16 %v3314_v4, %v3312_v58  ;;  %v3333_v58 = vld [vmem:[%s14003_s4 + $0x1f0] sm:$0xff] }
 0x41b   : > { %7548 = vmatprep.subr.bf16.mxu1 %v7547_v16 }
 0x41c   : > { %v8443_v59 = vpop.eup %8442 }
 0x41d   : > { %v2689_v31 = vmul.f32 %v8443_v59, %v10074_v35  ;;  %v7549_v35 = vpack.c.bf16 %v3293_v24, %v3291_v44  ;;  %v8445_v26 = vpop.eup %8444  ;;  %v3316_v44 = vld [vmem:[%s14003_s4 + $0x168] sm:$0xff]  ;;  %v3318_v24 = vld [vmem:[%s14003_s4 + $0x178] sm:$0xff] }
 0x41e   : > { %2767 = vrot.lane.b32.xlu0 %v10120_v39, %s14051_s17  ;;  %2999 = vrot.lane.b32.xlu1 %v10092_v17, %s14179_s16  ;;  %v8447_v7 = vpop.eup %8446  ;;  %v2685_v2 = vmul.f32 %v8445_v26, %v10084_v10  ;;  %v7557_v10 = vpack.c.bf16 %v3301_v36, %v3299_v50  ;;  %v7571_v14 = vpack.c.bf16 %v3318_v24, %v3316_v44  ;;  %v3317_v26 = vld [vmem:[%s14003_s4 + $0x170] sm:$0xff]  ;;  %v3326_v36 = vld [vmem:[%s14003_s4 + $0x1b8] sm:$0xff]  ;;  %s14335_s17 = smov 119  }
 0x41f   : > { %v10209_v52 = vmul.f32 %v2689_v31, %v14176_v63  ;;  %7550 = vmatpush1.bf16.msra.mxu1 %v7549_v35  ;;  %v3297_v63 = vld [vmem:[%s14003_s4 + $0xd0] sm:$0xff]  ;;  %v8449_v0 = vpop.eup %8448  ;;  %v2650_v34 = vadd.f32 1.0, %v8447_v7  ;;  %v3311_v31 = vld [vmem:[%s14003_s4 + $0x140] sm:$0xff] }
 0x420   : > { %v7553_v41 = vpack.c.bf16 %v3297_v63, %v3295_v51  ;;  %7552 = vmatprep.subr.bf16.mxu1 %v7551_v56  ;;  %v2690_v61 = vmul.f32 %v8449_v0, %v10087_v43  ;;  %v10246_v55 = vmul.f32 %v2685_v2, %v14184_v57  ;;  %v8451_v49 = vpop.eup %8450  ;;  %v3305_v43 = vld [vmem:[%s14003_s4 + $0x110] sm:$0xff]  ;;  %v7569_v16 = vpack.c.bf16 %v3313_v12, %v3311_v31  ;;  %v3320_v63 = vld [vmem:[%s14003_s4 + $0x188] sm:$0xff]  ;;  %v3319_v2 = vld [vmem:[%s14003_s4 + $0x180] sm:$0xff]  ;;  %v10410_v31 = vpop.permute.xlu1 %2744 }
 0x421   : > { %v7561_v45 = vpack.c.bf16 %v3305_v43, %v3303_v1  ;;  %8452 = vrcp.f32 %v2650_v34  ;;  %v2688_v13 = vmul.f32 %v8451_v49, %v10096_v20  ;;  %v10283_v20 = vadd.f32 %v10069_v11, %v2587_v42  ;;  %v3323_v34 = vld [vmem:[%s14003_s4 + $0x1a0] sm:$0xff]  ;;  %v3328_v43 = vld [vmem:[%s14003_s4 + $0x1c8] sm:$0xff] }
 0x422   : > { %2903 = vrot.lane.b32.xlu0 %v10120_v39, %s14178_s23  ;;  %3067 = vrot.lane.b32.xlu1 %v10092_v17, %s14168_s27  ;;  %v10267_v22 = vmul.f32 %v2690_v61, %v14177_v33  ;;  %v3309_v33 = vld [vmem:[%s14003_s4 + $0x130] sm:$0xff]  ;;  %v7573_v56 = vpack.c.bf16 %v3317_v26, %v3315_v40  ;;  %v7577_v0 = vpack.c.bf16 %v3321_v46, %v3319_v2  ;;  %v3327_v42 = vld [vmem:[%s14003_s4 + $0x1c0] sm:$0xff] }
 0x423   : > { %7554 = vmatpush1.bf16.msra.mxu1 %v7553_v41  ;;  %v7565_v59 = vpack.c.bf16 %v3309_v33, %v3307_v18  ;;  %v10290_v32 = vmul.f32 %v2688_v13, %v14186_v30  ;;  %v7204_v15 = vmul.f32 -1.442695, %v10283_v20  ;;  %v3322_v41 = vld [vmem:[%s14003_s4 + $0x198] sm:$0xff]  ;;  %v3325_v61 = vld [vmem:[%s14003_s4 + $0x1b0] sm:$0xff]  ;;  %v7583_v9 = vpack.c.bf16 %v3330_v53, %v3328_v43  ;;  %v3332_v18 = vld [vmem:[%s14003_s4 + $0x1e8] sm:$0xff] }
 0x424   : > { %7556 = vmatprep.subr.bf16.mxu1 %v7555_v19  ;;  %v7575_v7 = vpack.c.bf16 %v3322_v41, %v3320_v63  ;;  %v14188_v19 = vld [vmem:[#allocation12_spill] sm:$0xff]  ;;  %v7581_v49 = vpack.c.bf16 %v3325_v61, %v3323_v34  ;;  %v10386_v13 = vadd.f32 %v10057_v62, %v2583_v27  ;;  %v3336_v63 = vld [vmem:[%s14003_s4 + $0x208] sm:$0xff]  ;;  %v2588_v61 = vmul.f32 %v10064_v23, %v10066_v60 }
 0x425   : > { %14187 = vst [vmem:[#allocation13_spill] sm:$0xff] %v10290_v32  ;;  %8454 = vpow2.f32 %v7204_v15  ;;  %v3334_v62 = vld [vmem:[%s14003_s4 + $0x1f8] sm:$0xff]  ;;  %v10420_v15 = vpop.permute.xlu1 %2800  ;;  %v14197_v27 = vld [vmem:[#allocation15_spill] sm:$0xff] }
 0x426   : > { %3003 = vrot.lane.b32.xlu0 %v10120_v39, %s14179_s16  ;;  %3203 = vrot.lane.b32.xlu1 %v10092_v17, %s14180_s26  ;;  %v7587_v33 = vpack.c.bf16 %v3334_v62, %v3332_v18  ;;  %v7200_v4 = vmul.f32 -1.442695, %v10386_v13 }
 0x427   : > { %7558 = vmatpush1.bf16.msra.mxu1 %v7557_v10 }
 0x428   : > { %7560 = vmatprep.subr.bf16.mxu1 %v7559_v29  ;;  %v14190_v29 = vmov 23  }
 0x429   : > { %v10429_v40 = vpop.permute.xlu1 %2936 }
 0x42a   : > { %3139 = vrot.lane.b32.xlu0 %v10120_v39, %s14181_s0  ;;  %2835 = vrot.lane.b32.xlu1 %v10120_v39, %s14182_s6  ;;  %14191 = vst [vmem:[#allocation11_spill] sm:$0xff] %v10429_v40 }
 0x42b   : > { %7562 = vmatpush1.bf16.msra.mxu1 %v7561_v45  ;;  %v8453_v35 = vpop.eup %8452  ;;  %v3329_v45 = vld [vmem:[%s14003_s4 + $0x1d0] sm:$0xff] }
 0x42c   : > { %7564 = vmatprep.subr.bf16.mxu1 %v7563_v3  ;;  %v2686_v51 = vmul.f32 %v8453_v35, %v10152_v5  ;;  %v2590_v5 = vmul.f32 %v10064_v23, %v10078_v37  ;;  %v3324_v37 = vld [vmem:[%s14003_s4 + $0x1a8] sm:$0xff]  ;;  %v7585_v48 = vpack.c.bf16 %v3329_v45, %v3327_v42 }
 0x42d   : > { %v7579_v10 = vpack.c.bf16 %v3326_v36, %v3324_v37 }
 0x42e   : > { %3071 = vrot.lane.b32.xlu1 %v10120_v39, %s14168_s27  ;;  %2765 = vrot.lane.b32.xlu0 %v10209_v52, %s14183_s18  ;;  %v10349_v50 = vmul.f32 %v2686_v51, %v14188_v19  ;;  %v10366_v25 = vadd.f32 %v10069_v11, %v2590_v5  ;;  %v10443_v51 = vpop.permute.xlu1 %2968 }
 0x42f   : > { %7566 = vmatpush1.bf16.msra.mxu1 %v7565_v59  ;;  %v8455_v1 = vpop.eup %8454  ;;  %v3331_v59 = vld [vmem:[%s14003_s4 + $0x1e0] sm:$0xff] }
 0x430   : > { %7568 = vmatprep.subr.bf16.mxu1 %v7567_v38  ;;  %14189 = vst [vmem:[#allocation14_spill] sm:$0xff] %v10349_v50  ;;  %v7207_v28 = vmul.f32 -1.442695, %v10366_v25  ;;  %v2655_v3 = vadd.f32 1.0, %v8455_v1  ;;  %v7589_v38 = vpack.c.bf16 %v3333_v58, %v3331_v59 }
 0x432   : > { %3207 = vrot.lane.b32.xlu1 %v10120_v39, %s14180_s26  ;;  %2833 = vrot.lane.b32.xlu0 %v10209_v52, %s14182_s6  ;;  %8456 = vpow2.f32 %v7207_v28 }
 0x433   : > { %7570 = vmatpush1.bf16.msra.mxu1 %v7569_v16  ;;  %8458 = vrcp.f32 %v2655_v3 }
 0x434   : > { %7572 = vmatprep.subr.bf16.mxu1 %v7571_v14  ;;  %8460 = vpow2.f32 %v7200_v4  ;;  %v10427_v14 = vpop.permute.xlu0 %2868 }
 0x436   : > { %3075 = vrot.lane.b32.xlu0 %v10246_v55, %s14168_s27  ;;  %2709 = vrot.lane.b32.xlu1 %v10209_v52, %s14185_s14 }
 0x437   : > { %7574 = vmatpush1.bf16.msra.mxu1 %v7573_v56 }
 0x438   : > { %7576 = vmatprep.subr.bf16.mxu1 %v7575_v7  ;;  %v10454_v7 = vpop.permute.xlu1 %3104 }
 0x439   : > { %14194 = vst [vmem:[#allocation17_spill] sm:$0xff] %v10454_v7 }
 0x43a   : > { %3211 = vrot.lane.b32.xlu0 %v10246_v55, %s14180_s26  ;;  %2713 = vrot.lane.b32.xlu1 %v10267_v22, %s14185_s14 }
 0x43b   : > { %7578 = vmatpush1.bf16.msra.mxu1 %v7577_v0  ;;  %v2589_v0 = vmul.f32 %v10064_v23, %v10076_v54 }
 0x43c   : > { %7580 = vmatprep.subr.bf16.mxu1 %v7579_v10  ;;  %v8457_v12 = vpop.eup %8456  ;;  %v10469_v37 = vpop.permute.xlu1 %3172 }
 0x43d   : > { %v8459_v16 = vpop.eup %8458  ;;  %v2658_v44 = vadd.f32 1.0, %v8457_v12  ;;  %14195 = vst [vmem:[#allocation18_spill] sm:$0xff] %v10469_v37  ;;  %v2609_v54 = vadd.f32 %v10069_v11, %v2589_v0 }
 0x43e   : > { %2769 = vrot.lane.b32.xlu1 %v10267_v22, %s14183_s18  ;;  %2727 = vrot.lane.b32.xlu0 %v10290_v32, %s14185_s14  ;;  %v8461_v24 = vpop.eup %8460  ;;  %v2691_v35 = vmul.f32 %v8459_v16, %v10283_v20  ;;  %v10441_v20 = vpop.permute.xlu0 %3240 }
 0x43f   : > { %7582 = vmatpush1.bf16.msra.mxu1 %v7581_v49  ;;  %v2651_v26 = vadd.f32 1.0, %v8461_v24  ;;  %8462 = vrcp.f32 %v2658_v44  ;;  %14193 = vst [vmem:[#allocation12_spill] sm:$0xff] %v10441_v20 }
 0x440   : > { %7584 = vmatprep.subr.bf16.mxu1 %v7583_v9  ;;  %v10434_v56 = vmul.f32 %v2691_v35, %v14184_v57  ;;  %v3338_v57 = vld [vmem:[%s14003_s4 + $0x218] sm:$0xff]  ;;  %v10487_v49 = vpop.permute.xlu1 %2804 }
 0x441   : > { %8464 = vrcp.f32 %v2651_v26  ;;  %v7591_v41 = vpack.c.bf16 %v3338_v57, %v3336_v63 }
 0x442   : > { %2837 = vrot.lane.b32.xlu1 %v10267_v22, %s14182_s6  ;;  %2919 = vrot.lane.b32.xlu0 %v10290_v32, %s14178_s23  ;;  %14192 = vst [vmem:[#allocation16_spill] sm:$0xff] %v10434_v56  ;;  %v10456_v2 = vpop.permute.xlu0 %2748 }
 0x443   : > { %7586 = vmatpush1.bf16.msra.mxu1 %v7585_v48 }
 0x444   : > { %7588 = vmatprep.subr.bf16.mxu1 %v7587_v33  ;;  %v10500_v60 = vpop.permute.xlu1 %2872 }
 0x446   : > { %3007 = vrot.lane.b32.xlu1 %v10246_v55, %s14179_s16  ;;  %3040 = vperm.xlu0 %8158, %v10345_v47   ;;  %v10475_v34 = vpop.permute.xlu0 %2940 }
 0x447   : > { %7590 = vmatpush1.bf16.msra.mxu1 %v7589_v38 }
 0x448   : > { %7592 = vmatprep.subr.bf16.mxu1 %v7591_v41 }
 0x44a   : > { %3143 = vrot.lane.b32.xlu1 %v10246_v55, %s14181_s0  ;;  %2719 = vrot.lane.b32.xlu0 %v10349_v50, %s14185_s14  ;;  %v10490_v1 = vpop.permute.xlu0 %2972 }
 0x44b   : > { %8161 = vset.pattern.permute.xlu0 %v14190_v29  ;;  %v7206_v29 = vmul.f32 -1.442695, %v2609_v54 }
 0x44d   : > { %8466 = vpow2.f32 %v7206_v29 }
 0x44e   : > { %2783 = vrot.lane.b32.xlu1 %v10290_v32, %s14183_s18  ;;  %2775 = vrot.lane.b32.xlu0 %v10349_v50, %s14183_s18 }
 0x452   : > { %2851 = vrot.lane.b32.xlu1 %v10290_v32, %s14182_s6  ;;  %2905 = vrot.lane.b32.xlu0 %v10267_v22, %s14178_s23 }
 0x456   : > { %2715 = vrot.lane.b32.xlu1 %v10246_v55, %s14185_s14  ;;  %2843 = vrot.lane.b32.xlu0 %v10349_v50, %s14182_s6 }
 0x45a   : > { %2771 = vrot.lane.b32.xlu1 %v10246_v55, %s14183_s18  ;;  %2907 = vrot.lane.b32.xlu0 %v10246_v55, %s14178_s23 }
 0x45e   : > { %2901 = vrot.lane.b32.xlu1 %v10209_v52, %s14178_s23  ;;  %3005 = vrot.lane.b32.xlu0 %v10267_v22, %s14179_s16 }
 0x462   : > { %3108 = vperm.xlu1 %8159, %v10345_v47   ;;  %3244 = vperm.xlu0 %8161, %v10345_v47  }
 0x466   : > { %2839 = vrot.lane.b32.xlu1 %v10246_v55, %s14182_s6  ;;  %3077 = vrot.lane.b32.xlu0 %v10434_v56, %s14168_s27 }
 0x467   : > { %8160 = vset.pattern.permute.xlu1 %v8855_v8  ;;  %v8463_v8 = vpop.eup %8462 }
 0x468   : > { %v2694_v46 = vmul.f32 %v8463_v8, %v10366_v25  ;;  %v8465_v5 = vpop.eup %8464 }
 0x469   : > { %v2687_v36 = vmul.f32 %v8465_v5, %v10386_v13  ;;  %v8467_v9 = vpop.eup %8466 }
 0x46a   : > { %3176 = vperm.xlu1 %8160, %v10345_v47   ;;  %3011 = vrot.lane.b32.xlu0 %v10349_v50, %s14179_s16  ;;  %v10473_v10 = vmul.f32 %v2694_v46, %v14186_v30  ;;  %v2608_v30 = vadd.f32 %v10069_v11, %v2588_v61  ;;  %v10502_v11 = vpop.permute.xlu0 %3036  ;;  %v2657_v13 = vadd.f32 1.0, %v8467_v9 }
 0x46b   : > { %v10485_v25 = vmul.f32 %v2687_v36, %v14197_v27  ;;  %14199 = vst [vmem:[#allocation20_spill] sm:$0xff] %v10502_v11 }
 0x46c   : > { %14196 = vst [vmem:[#allocation19_spill] sm:$0xff] %v10473_v10  ;;  %v7205_v23 = vmul.f32 -1.442695, %v2608_v30 }
 0x46d   : > { %14198 = vst [vmem:[#allocation15_spill] sm:$0xff] %v10485_v25 }
 0x46e   : > { %2911 = vrot.lane.b32.xlu1 %v10349_v50, %s14178_s23  ;;  %3141 = vrot.lane.b32.xlu0 %v10267_v22, %s14181_s0  ;;  %8468 = vpow2.f32 %v7205_v23 }
 0x46f   : > { %8470 = vrcp.f32 %v2657_v13 }
 0x472   : > { %3009 = vrot.lane.b32.xlu1 %v10434_v56, %s14179_s16  ;;  %3137 = vrot.lane.b32.xlu0 %v10209_v52, %s14181_s0 }
 0x476   : > { %3001 = vrot.lane.b32.xlu1 %v10209_v52, %s14179_s16  ;;  %2921 = vrot.lane.b32.xlu0 %v10473_v10, %s14178_s23 }
 0x478   : > { %v8469_v28 = vpop.eup %8468 }
 0x479   : > { %v2656_v18 = vadd.f32 1.0, %v8469_v28  ;;  %v8471_v12 = vpop.eup %8470 }
 0x47a   : > { %3073 = vrot.lane.b32.xlu1 %v10267_v22, %s14168_s27  ;;  %3083 = vrot.lane.b32.xlu0 %v10485_v25, %s14168_s27  ;;  %v2693_v16 = vmul.f32 %v8471_v12, %v2609_v54 }
 0x47b   : > { %8472 = vrcp.f32 %v2656_v18 }
 0x47c   : > { %v10565_v63 = vmul.f32 %v2693_v16, %v14197_v27 }
 0x47e   : > { %3069 = vrot.lane.b32.xlu1 %v10209_v52, %s14168_s27  ;;  %3213 = vrot.lane.b32.xlu0 %v10434_v56, %s14180_s26  ;;  %14204 = vst [vmem:[#allocation25_spill] sm:$0xff] %v10565_v63 }
 0x482   : > { %3015 = vrot.lane.b32.xlu1 %v10485_v25, %s14179_s16  ;;  %3147 = vrot.lane.b32.xlu0 %v10349_v50, %s14181_s0 }
 0x484   : > { %v10508_v43 = vpop.permute.xlu1 %2707  ;;  %v10510_v53 = vpop.permute.xlu0 %2831 }
 0x485   : > { %v8473_v24 = vpop.eup %8472 }
 0x486   : > { %3145 = vrot.lane.b32.xlu1 %v10434_v56, %s14181_s0  ;;  %3215 = vrot.lane.b32.xlu0 %v10349_v50, %s14180_s26  ;;  %v2692_v26 = vmul.f32 %v8473_v24, %v2608_v30 }
 0x488   : > { %v10516_v42 = vpop.permute.xlu1 %2763  ;;  %v10518_v45 = vpop.permute.xlu0 %3135  ;;  %v10576_v8 = vmul.f32 %v2692_v26, %v14188_v19 }
 0x489   : > { %14200 = vst [vmem:[#allocation21_spill] sm:$0xff] %v10518_v45 }
 0x48a   : > { %3079 = vrot.lane.b32.xlu1 %v10349_v50, %s14168_s27  ;;  %2717 = vrot.lane.b32.xlu0 %v10434_v56, %s14185_s14  ;;  %14205 = vst [vmem:[#allocation26_spill] sm:$0xff] %v10576_v8 }
 0x48c   : > { %v10524_v48 = vpop.permute.xlu1 %2899  ;;  %v10526_v3 = vpop.permute.xlu0 %2711 }
 0x48d   : > { %v2739_v19 = vsel %vm375_vm4, %v10508_v43, %v10526_v3 }
 0x48e   : > { %2773 = vrot.lane.b32.xlu0 %v10434_v56, %s14183_s18  ;;  %2729 = vrot.lane.b32.xlu1 %v10473_v10, %s14185_s14  ;;  %v2752_v30 = vmul.f32 %v10410_v31, %v2739_v19 }
 0x490   : > { %v10532_v62 = vpop.permute.xlu1 %2999  ;;  %v10534_v33 = vpop.permute.xlu0 %2767 }
 0x491   : > { %14201 = vst [vmem:[#allocation22_spill] sm:$0xff] %v10532_v62  ;;  %v2795_v0 = vsel %vm401_vm1, %v10516_v42, %v10534_v33 }
 0x492   : > { %2841 = vrot.lane.b32.xlu0 %v10434_v56, %s14182_s6  ;;  %2785 = vrot.lane.b32.xlu1 %v10473_v10, %s14183_s18  ;;  %v2808_v54 = vmul.f32 %v10420_v15, %v2795_v0  ;;  %v2976_v0 = vmul.f32 %v10443_v51, %v10120_v39 }
 0x494   : > { %v10540_v59 = vpop.permute.xlu1 %3067  ;;  %v10542_v58 = vpop.permute.xlu0 %2903  ;;  %v2820_v9 = vadd.f32 %v2808_v54, %v2752_v30 }
 0x495   : > { %14202 = vst [vmem:[#allocation23_spill] sm:$0xff] %v10540_v59  ;;  %v2931_v28 = vsel %vm905_vm6, %v10524_v48, %v10542_v58 }
 0x496   : > { %2723 = vrot.lane.b32.xlu0 %v10485_v25, %s14185_s14  ;;  %2853 = vrot.lane.b32.xlu1 %v10473_v10, %s14182_s6  ;;  %v2944_v12 = vmul.f32 %v10429_v40, %v2931_v28 }
 0x498   : > { %v10548_v4 = vpop.permute.xlu1 %3203  ;;  %v10550_v38 = vpop.permute.xlu0 %3003 }
 0x499   : > { %14203 = vst [vmem:[#allocation24_spill] sm:$0xff] %v10548_v4 }
 0x49a   : > { %2909 = vrot.lane.b32.xlu0 %v10434_v56, %s14178_s23  ;;  %3209 = vrot.lane.b32.xlu1 %v10267_v22, %s14180_s26 }
 0x49c   : > { %v10556_v44 = vpop.permute.xlu1 %2835  ;;  %v10558_v35 = vpop.permute.xlu0 %3139 }
 0x49d   : > { %v2863_v61 = vsel %vm724_vm5, %v10510_v53, %v10556_v44 }
 0x49e   : > { %2847 = vrot.lane.b32.xlu0 %v10485_v25, %s14182_s6  ;;  %3205 = vrot.lane.b32.xlu1 %v10209_v52, %s14180_s26  ;;  %v2876_v29 = vmul.f32 %v10427_v14, %v2863_v61 }
 0x4a0   : > { %v10567_v57 = vpop.permute.xlu1 %3071  ;;  %v10573_v41 = vpop.permute.xlu0 %2765  ;;  %v2888_v18 = vadd.f32 %v2876_v29, %v2820_v9 }
 0x4a2   : > { %2781 = vrot.lane.b32.xlu0 %v10565_v63, %s14183_s18  ;;  %3151 = vrot.lane.b32.xlu1 %v10485_v25, %s14181_s0  ;;  %v2956_v26 = vadd.f32 %v2944_v12, %v2888_v18 }
 0x4a4   : > { %v10578_v46 = vpop.permute.xlu1 %3207  ;;  %v10590_v36 = vpop.permute.xlu0 %2833  ;;  %v2988_v30 = vadd.f32 %v2976_v0, %v2956_v26 }
 0x4a6   : > { %3013 = vrot.lane.b32.xlu0 %v10576_v8, %s14179_s16  ;;  %3219 = vrot.lane.b32.xlu1 %v10485_v25, %s14180_s26 }
 0x4a8   : > { %v10584_v5 = vpop.permute.xlu1 %2709  ;;  %v10613_v23 = vpop.permute.xlu0 %3075 }
 0x4a9   : > { %v3097_v61 = vsel %vm1425_vm8, %v10567_v57, %v10613_v23 }
 0x4aa   : > { %2849 = vrot.lane.b32.xlu0 %v10565_v63, %s14182_s6  ;;  %2721 = vrot.lane.b32.xlu1 %v10576_v8, %s14185_s14  ;;  %v3112_v9 = vmul.f32 %v10454_v7, %v3097_v61 }
 0x4ac   : > { %v10605_v27 = vpop.permute.xlu1 %2713  ;;  %v10628_v24 = vpop.permute.xlu0 %3211 }
 0x4ad   : > { %14206 = vst [vmem:[#allocation27_spill] sm:$0xff] %v10605_v27  ;;  %14209 = vst [vmem:[#allocation30_spill] sm:$0xff] %v10628_v24  ;;  %v3233_v12 = vsel %vm1787_vm10, %v10578_v46, %v10628_v24 }
 0x4ae   : > { %3085 = vrot.lane.b32.xlu0 %v10565_v63, %s14168_s27  ;;  %2777 = vrot.lane.b32.xlu1 %v10576_v8, %s14183_s18 }
 0x4b0   : > { %v10615_v13 = vpop.permute.xlu1 %2769  ;;  %v10651_v39 = vpop.permute.xlu0 %2727 }
 0x4b1   : > { %14207 = vst [vmem:[#allocation28_spill] sm:$0xff] %v10615_v13  ;;  %14210 = vst [vmem:[#allocation31_spill] sm:$0xff] %v10651_v39  ;;  %v2741_v6 = vsel %vm375_vm4, %v10651_v39, %v10508_v43 }
 0x4b2   : > { %3019 = vrot.lane.b32.xlu0 %v10290_v32, %s14179_s16  ;;  %2845 = vrot.lane.b32.xlu1 %v10576_v8, %s14182_s6 }
 0x4b4   : > { %v10626_v16 = vpop.permute.xlu1 %2837  ;;  %v10676_v56 = vpop.permute.xlu0 %2919 }
 0x4b5   : > { %14208 = vst [vmem:[#allocation29_spill] sm:$0xff] %v10626_v16  ;;  %14213 = vst [vmem:[#allocation34_spill] sm:$0xff] %v10676_v56 }
 0x4b6   : > { %3153 = vrot.lane.b32.xlu0 %v10565_v63, %s14181_s0  ;;  %2779 = vrot.lane.b32.xlu1 %v10485_v25, %s14183_s18 }
 0x4b8   : > { %v10636_v19 = vpop.permute.xlu1 %3007 }
 0x4b9   : > { %v3029_v54 = vsel %vm1244_vm7, %v10550_v38, %v10636_v19 }
 0x4ba   : > { %v3044_v29 = vmul.f32 %v10502_v11, %v3029_v54  ;;  %3217 = vrot.lane.b32.xlu0 %v10576_v8, %s14180_s26  ;;  %2913 = vrot.lane.b32.xlu1 %v10576_v8, %s14178_s23  ;;  %v3248_v54 = vmul.f32 %v10441_v20, %v3233_v12  ;;  %v2933_v12 = vsel %vm905_vm6, %v10676_v56, %v10524_v48  ;;  %v3356_v56 = vld [vmem:[%s14003_s4 + $0x2a8] sm:$0xff] }
 0x4bb   : > { %v3031_v48 = vsel %vm1244_vm7, %v10532_v62, %v10550_v38  ;;  %v3167_v38 = vsel %vm1606_vm9, %v10518_v45, %v10558_v35 }
 0x4bc   : > { %v3056_v28 = vadd.f32 %v3044_v29, %v2988_v30  ;;  %v10654_v18 = vpop.permute.xlu1 %3143 }
 0x4bd   : > { %14211 = vst [vmem:[#allocation32_spill] sm:$0xff] %v10654_v18  ;;  %v3165_v26 = vsel %vm1606_vm9, %v10558_v35, %v10654_v18  ;;  %v3335_v35 = vld [vmem:[%s14003_s4 + $0x200] sm:$0xff]  ;;  %v3376_v18 = vld [vmem:[%s14003_s4 + $0x348] sm:$0xff] }
 0x4be   : > { %v3180_v0 = vmul.f32 %v10469_v37, %v3165_v26  ;;  %3021 = vrot.lane.b32.xlu0 %v10473_v10, %s14179_s16  ;;  %2725 = vrot.lane.b32.xlu1 %v10565_v63, %s14185_s14  ;;  %v3124_v61 = vadd.f32 %v3112_v9, %v3056_v28  ;;  %v2751_v28 = vmul.f32 %v10410_v31, %v2741_v6  ;;  %s8908_s14 = smov 3  }
 0x4bf   : > { %v2943_v6 = vmul.f32 %v10429_v40, %v2933_v12 }
 0x4c0   : > { %v10670_v30 = vpop.permute.xlu1 %2783  ;;  %v3192_v29 = vadd.f32 %v3180_v0, %v3124_v61 }
 0x4c1   : > { %14212 = vst [vmem:[#allocation33_spill] sm:$0xff] %v10670_v30  ;;  %v2797_v26 = vsel %vm401_vm1, %v10670_v30, %v10516_v42  ;;  %v3360_v30 = vld [vmem:[%s14003_s4 + $0x2c8] sm:$0xff] }
 0x4c2   : > { %v2807_v24 = vmul.f32 %v10420_v15, %v2797_v26  ;;  %3089 = vrot.lane.b32.xlu0 %v10473_v10, %s14168_s27  ;;  %2915 = vrot.lane.b32.xlu1 %v10485_v25, %s14178_s23  ;;  %v3260_v9 = vadd.f32 %v3248_v54, %v3192_v29 }
 0x4c4   : > { %3527 = vmatprep.mubr.f32.mxu1 %v3260_v9  ;;  %v10688_v43 = vpop.permute.xlu1 %2851  ;;  %v2819_v61 = vadd.f32 %v2807_v24, %v2751_v28  ;;  %v2975_v24 = vmul.f32 %v10443_v51, %v10092_v17  ;;  %v3099_v9 = vsel %vm1425_vm8, %v10540_v59, %v10567_v57  ;;  %v3043_v28 = vmul.f32 %v10502_v11, %v3031_v48  ;;  %v3352_v59 = vld [vmem:[%s14003_s4 + $0x288] sm:$0xff] }
 0x4c5   : > { %14214 = vst [vmem:[#allocation35_spill] sm:$0xff] %v10688_v43  ;;  %v2865_v42 = vsel %vm724_vm5, %v10688_v43, %v10510_v53  ;;  %v10698_v0 = vpop.permute.xlu0 %3040  ;;  %v3111_v17 = vmul.f32 %v10454_v7, %v3099_v9  ;;  %v3235_v57 = vsel %vm1787_vm10, %v10548_v4, %v10578_v46  ;;  %v3342_v46 = vld [vmem:[%s14003_s4 + $0x238] sm:$0xff]  ;;  %v3341_v4 = vld [vmem:[%s14003_s4 + $0x230] sm:$0xff]  ;;  %v3392_v11 = vld [vmem:[%s14003_s4 + $0x3c8] sm:$0xff] }
 0x4c6   : > { %14215 = vst [vmem:[#allocation36_spill] sm:$0xff] %v10698_v0  ;;  %v2875_v54 = vmul.f32 %v10427_v14, %v2865_v42  ;;  %3157 = vrot.lane.b32.xlu0 %v10473_v10, %s14181_s0  ;;  %3017 = vrot.lane.b32.xlu1 %v10565_v63, %s14179_s16  ;;  %v3247_v9 = vmul.f32 %v10441_v20, %v3235_v57  ;;  %v3344_v57 = vld [vmem:[%s14003_s4 + $0x248] sm:$0xff]  ;;  %v3373_v20 = vld [vmem:[%s14003_s4 + $0x330] sm:$0xff] }
 0x4c8   : > { %v2887_v29 = vadd.f32 %v2875_v54, %v2819_v61  ;;  %v3179_v54 = vmul.f32 %v10469_v37, %v3167_v38  ;;  %v10741_v48 = vpop.permute.xlu1 %2715 }
 0x4c9   : > { %v10710_v53 = vpop.permute.xlu0 %2719 }
 0x4ca   : > { %v2955_v26 = vadd.f32 %v2943_v6, %v2887_v29  ;;  %3081 = vrot.lane.b32.xlu1 %v10576_v8, %s14168_s27  ;;  %v3337_v29 = vld [vmem:[%s14003_s4 + $0x210] sm:$0xff] }
 0x4cc   : > { %v2987_v12 = vadd.f32 %v2975_v24, %v2955_v26  ;;  %v3340_v26 = vld [vmem:[%s14003_s4 + $0x228] sm:$0xff] }
 0x4cd   : > { %v10725_v42 = vpop.permute.xlu0 %2775 }
 0x4ce   : > { %v3055_v61 = vadd.f32 %v3043_v28, %v2987_v12  ;;  %2917 = vrot.lane.b32.xlu1 %v10565_v63, %s14178_s23  ;;  %v7593_v12 = vpack.c.bf16 %v3337_v29, %v3335_v35 }
 0x4d0   : > { %v3123_v6 = vadd.f32 %v3111_v17, %v3055_v61  ;;  %v7595_v17 = vpack.c.bf16 %v3342_v46, %v3340_v26  ;;  %v3339_v61 = vld [vmem:[%s14003_s4 + $0x220] sm:$0xff]  ;;  %v3345_v46 = vld [vmem:[%s14003_s4 + $0x250] sm:$0xff] }
 0x4d1   : > { %v10743_v24 = vpop.permute.xlu0 %2905  ;;  %v7597_v35 = vpack.c.bf16 %v3341_v4, %v3339_v61  ;;  %v3343_v26 = vld [vmem:[%s14003_s4 + $0x240] sm:$0xff]  ;;  %v3350_v4 = vld [vmem:[%s14003_s4 + $0x278] sm:$0xff]  ;;  %v3349_v61 = vld [vmem:[%s14003_s4 + $0x270] sm:$0xff] }
 0x4d2   : > { %14216 = vst [vmem:[#allocation37_spill] sm:$0xff] %v10743_v24  ;;  %3149 = vrot.lane.b32.xlu1 %v10576_v8, %s14181_s0  ;;  %v3191_v28 = vadd.f32 %v3179_v54, %v3123_v6  ;;  %v3346_v54 = vld [vmem:[%s14003_s4 + $0x258] sm:$0xff]  ;;  %v10770_v6 = vpop.permute.xlu1 %2771  ;;  %v3372_v8 = vld [vmem:[%s14003_s4 + $0x328] sm:$0xff] }
 0x4d3   : > { %v7599_v29 = vpack.c.bf16 %v3346_v54, %v3344_v57 }
 0x4d4   : > { %v3259_v38 = vadd.f32 %v3247_v9, %v3191_v28  ;;  %v3348_v28 = vld [vmem:[%s14003_s4 + $0x268] sm:$0xff] }
 0x4d5   : > { %v10760_v45 = vpop.permute.xlu0 %2843 }
 0x4d6   : > { %3528 = vmatmul.mubr.f32.vlgmr.msra.gmra.mrb[16].mxu1 %v3259_v38  ;;  %3087 = vrot.lane.b32.xlu1 %v10290_v32, %s14168_s27  ;;  %v7603_v38 = vpack.c.bf16 %v3350_v4, %v3348_v28  ;;  %v10794_v57 = vpop.permute.xlu1 %2901  ;;  %v3353_v28 = vld [vmem:[%s14003_s4 + $0x290] sm:$0xff]  ;;  %s8916_s27 = smov [#allocation5]  }
 0x4d7   : > { %7594 = vmatpush1.bf16.msra.mxu1 %v7593_v12  ;;  %v7601_v12 = vpack.c.bf16 %v3345_v46, %v3343_v26  ;;  %v3351_v46 = vld [vmem:[%s14003_s4 + $0x280] sm:$0xff]  ;;  %s8750_s6 = sshll.u32 %s8916_s27, 4  ;;  %s8751_s6 = int_to_ptr.vmem [resolvable:$false] %s8750_s6 }
 0x4d8   : > { %7596 = vmatprep.subr.bf16.mxu1 %v7595_v17  ;;  %v3347_v17 = vld [vmem:[%s14003_s4 + $0x260] sm:$0xff]  ;;  %s8752_s18 = scalar_lea.vmem %s8751_s6, 64 }
 0x4d9   : > { %v10778_v9 = vpop.permute.xlu0 %2907 }
 0x4da   : > { %3221 = vrot.lane.b32.xlu1 %v10565_v63, %s14180_s26 }
 0x4db   : > { %7598 = vmatpush1.bf16.msra.mxu1 %v7597_v35  ;;  %v3354_v35 = vld [vmem:[%s14003_s4 + $0x298] sm:$0xff] }
 0x4dc   : > { %7600 = vmatprep.subr.bf16.mxu1 %v7599_v29  ;;  %v7605_v29 = vpack.c.bf16 %v3349_v61, %v3347_v17  ;;  %v7607_v26 = vpack.c.bf16 %v3354_v35, %v3352_v59  ;;  %v3358_v59 = vld [vmem:[%s14003_s4 + $0x2b8] sm:$0xff]  ;;  %v3355_v17 = vld [vmem:[%s14003_s4 + $0x2a0] sm:$0xff]  ;;  %v3357_v61 = vld [vmem:[%s14003_s4 + $0x2b0] sm:$0xff] }
 0x4dd   : > { %v10796_v54 = vpop.permute.xlu0 %3005 }
 0x4de   : > { %3155 = vrot.lane.b32.xlu1 %v10290_v32, %s14181_s0  ;;  %s8909_s0 = smov 4  }
 0x4df   : > { %7602 = vmatpush1.bf16.msra.mxu1 %v7601_v12  ;;  %v7609_v12 = vpack.c.bf16 %v3353_v28, %v3351_v46  ;;  %v3359_v46 = vld [vmem:[%s14003_s4 + $0x2c0] sm:$0xff]  ;;  %v3361_v28 = vld [vmem:[%s14003_s4 + $0x2d0] sm:$0xff] }
 0x4e0   : > { %7604 = vmatprep.subr.bf16.mxu1 %v7603_v38  ;;  %v7611_v38 = vpack.c.bf16 %v3358_v59, %v3356_v56  ;;  %v3362_v56 = vld [vmem:[%s14003_s4 + $0x2d8] sm:$0xff] }
 0x4e1   : > { %v10812_v4 = vpop.permute.xlu1 %3108  ;;  %v10814_v62 = vpop.permute.xlu0 %3244 }
 0x4e2   : > { %14217 = vst [vmem:[#allocation38_spill] sm:$0xff] %v10812_v4  ;;  %14218 = vst [vmem:[#allocation39_spill] sm:$0xff] %v10814_v62  ;;  %3223 = vrot.lane.b32.xlu1 %v10290_v32, %s14180_s26  ;;  %v3368_v32 = vld [vmem:[%s14003_s4 + $0x308] sm:$0xff] }
 0x4e3   : > { %7606 = vmatpush1.bf16.msra.mxu1 %v7605_v29  ;;  %v7613_v29 = vpack.c.bf16 %v3357_v61, %v3355_v17  ;;  %v3363_v17 = vld [vmem:[%s14003_s4 + $0x2e0] sm:$0xff]  ;;  %v3365_v61 = vld [vmem:[%s14003_s4 + $0x2f0] sm:$0xff] }
 0x4e4   : > { %7608 = vmatprep.subr.bf16.mxu1 %v7607_v26  ;;  %v7615_v26 = vpack.c.bf16 %v3362_v56, %v3360_v30  ;;  %v3366_v30 = vld [vmem:[%s14003_s4 + $0x2f8] sm:$0xff] }
 0x4e5   : > { %v10830_v35 = vpop.permute.xlu1 %2839  ;;  %v10832_v43 = vpop.permute.xlu0 %3077 }
 0x4e6   : > { %14219 = vst [vmem:[#allocation40_spill] sm:$0xff] %v10832_v43  ;;  %3225 = vrot.lane.b32.xlu1 %v10473_v10, %s14180_s26  ;;  %v3364_v10 = vld [vmem:[%s14003_s4 + $0x2e8] sm:$0xff] }
 0x4e7   : > { %7610 = vmatpush1.bf16.msra.mxu1 %v7609_v12  ;;  %v7617_v12 = vpack.c.bf16 %v3361_v28, %v3359_v46  ;;  %v3367_v46 = vld [vmem:[%s14003_s4 + $0x300] sm:$0xff]  ;;  %v3369_v28 = vld [vmem:[%s14003_s4 + $0x310] sm:$0xff] }
 0x4e8   : > { %7612 = vmatprep.subr.bf16.mxu1 %v7611_v38  ;;  %v7619_v38 = vpack.c.bf16 %v3366_v30, %v3364_v10  ;;  %v3370_v10 = vld [vmem:[%s14003_s4 + $0x318] sm:$0xff] }
 0x4e9   : > { %v10848_v59 = vpop.permute.xlu1 %3176  ;;  %v10850_v39 = vpop.permute.xlu0 %3011 }
 0x4ea   : > { %14220 = vst [vmem:[#allocation41_spill] sm:$0xff] %v10848_v59 }
 0x4eb   : > { %7614 = vmatpush1.bf16.msra.mxu1 %v7613_v29  ;;  %v7621_v29 = vpack.c.bf16 %v3365_v61, %v3363_v17  ;;  %v7625_v17 = vpack.c.bf16 %v3369_v28, %v3367_v46  ;;  %v3375_v28 = vld [vmem:[%s14003_s4 + $0x340] sm:$0xff] }
 0x4ec   : > { %7616 = vmatprep.subr.bf16.mxu1 %v7615_v26  ;;  %v7623_v26 = vpack.c.bf16 %v3370_v10, %v3368_v32  ;;  %v3374_v32 = vld [vmem:[%s14003_s4 + $0x338] sm:$0xff]  ;;  %v3371_v10 = vld [vmem:[%s14003_s4 + $0x320] sm:$0xff] }
 0x4ed   : > { %v10864_v56 = vpop.permute.xlu1 %2911  ;;  %v10866_v63 = vpop.permute.xlu0 %3141  ;;  %v7627_v61 = vpack.c.bf16 %v3374_v32, %v3372_v8  ;;  %v3378_v8 = vld [vmem:[%s14003_s4 + $0x358] sm:$0xff]  ;;  %v3377_v32 = vld [vmem:[%s14003_s4 + $0x350] sm:$0xff] }
 0x4ee   : > { %14221 = vst [vmem:[#allocation42_spill] sm:$0xff] %v10864_v56  ;;  %v7631_v46 = vpack.c.bf16 %v3378_v8, %v3376_v18  ;;  %v3382_v18 = vld [vmem:[%s14003_s4 + $0x378] sm:$0xff] }
 0x4ef   : > { %7618 = vmatpush1.bf16.msra.mxu1 %v7617_v12  ;;  %v8857_v12 = vmov 24  }
 0x4f0   : > { %7620 = vmatprep.subr.bf16.mxu1 %v7619_v38  ;;  %8163 = vset.pattern.permute.xlu1 %v8857_v12  ;;  %v8700_v38 = vld [vmem:[%s14000_s1] sm:$0xff] }
 0x4f1   : > { %v10880_v30 = vpop.permute.xlu1 %3009  ;;  %v10882_v25 = vpop.permute.xlu0 %3137  ;;  %8162 = vset.pattern.permute.xlu0 %v8857_v12  ;;  %3699 = vperm.xlu1 %8163, %v10345_v47  }
 0x4f2   : > { %14222 = vst [vmem:[#allocation43_spill] sm:$0xff] %v10882_v25  ;;  %3695 = vperm.xlu0 %8162, %v8700_v38  }
 0x4f3   : > { %7622 = vmatpush1.bf16.msra.mxu1 %v7621_v29  ;;  %v8858_v29 = vmov 25  }
 0x4f4   : > { %7624 = vmatprep.subr.bf16.mxu1 %v7623_v26  ;;  %v7629_v26 = vpack.c.bf16 %v3373_v20, %v3371_v10  ;;  %v3380_v20 = vld [vmem:[%s14003_s4 + $0x368] sm:$0xff] }
 0x4f5   : > { %v10900_v12 = vpop.permute.xlu1 %3001  ;;  %v10902_v37 = vpop.permute.xlu0 %2921  ;;  %8164 = vset.pattern.permute.xlu1 %v8858_v29 }
 0x4f6   : > { %14223 = vst [vmem:[#allocation44_spill] sm:$0xff] %v10900_v12  ;;  %14224 = vst [vmem:[#allocation45_spill] sm:$0xff] %v10902_v37  ;;  %8165 = vset.pattern.permute.xlu0 %v8858_v29  ;;  %3707 = vperm.xlu1 %8164, %v8700_v38   ;;  %v7633_v38 = vpack.c.bf16 %v3377_v32, %v3375_v28  ;;  %v3384_v29 = vld [vmem:[%s14003_s4 + $0x388] sm:$0xff]  ;;  %v3383_v32 = vld [vmem:[%s14003_s4 + $0x380] sm:$0xff] }
 0x4f7   : > { %7626 = vmatpush1.bf16.msra.mxu1 %v7625_v17  ;;  %3711 = vperm.xlu0 %8165, %v10345_v47   ;;  %v7635_v17 = vpack.c.bf16 %v3382_v18, %v3380_v20  ;;  %v3379_v47 = vld [vmem:[%s14003_s4 + $0x360] sm:$0xff]  ;;  %v3385_v20 = vld [vmem:[%s14003_s4 + $0x390] sm:$0xff] }
 0x4f8   : > { %7628 = vmatprep.subr.bf16.mxu1 %v7627_v61  ;;  %v3381_v61 = vld [vmem:[%s14003_s4 + $0x370] sm:$0xff] }
 0x4f9   : > { %v10917_v50 = vpop.permute.xlu1 %3073  ;;  %v10919_v25 = vpop.permute.xlu0 %3083 }
 0x4fa   : > { %14225 = vst [vmem:[#allocation46_spill] sm:$0xff] %v10919_v25  ;;  %v3388_v25 = vld [vmem:[%s14003_s4 + $0x3a8] sm:$0xff] }
 0x4fb   : > { %7630 = vmatpush1.bf16.msra.mxu1 %v7629_v26  ;;  %v3386_v26 = vld [vmem:[%s14003_s4 + $0x398] sm:$0xff] }
 0x4fc   : > { %7632 = vmatprep.subr.bf16.mxu1 %v7631_v46  ;;  %v7637_v46 = vpack.c.bf16 %v3381_v61, %v3379_v47  ;;  %v7639_v28 = vpack.c.bf16 %v3386_v26, %v3384_v29  ;;  %v3387_v61 = vld [vmem:[%s14003_s4 + $0x3a0] sm:$0xff]  ;;  %v3389_v29 = vld [vmem:[%s14003_s4 + $0x3b0] sm:$0xff] }
 0x4fd   : > { %v10933_v10 = vpop.permute.xlu1 %3069  ;;  %v10935_v8 = vpop.permute.xlu0 %3213 }
 0x4fe   : > { %14226 = vst [vmem:[#allocation47_spill] sm:$0xff] %v10933_v10  ;;  %14227 = vst [vmem:[#allocation48_spill] sm:$0xff] %v10935_v8  ;;  %v2737_v10 = vsel %vm375_vm4, %v10526_v3, %v10741_v48  ;;  %v2861_v3 = vsel %vm724_vm5, %v10556_v44, %v10830_v35  ;;  %v3030_v44 = vsel %vm1244_vm7, %v10796_v54, %v10880_v30 }
 0x4ff   : > { %7634 = vmatpush1.bf16.msra.mxu1 %v7633_v38  ;;  %v3390_v38 = vld [vmem:[%s14003_s4 + $0x3b8] sm:$0xff] }
 0x500   : > { %7636 = vmatprep.subr.bf16.mxu1 %v7635_v17  ;;  %v7641_v17 = vpack.c.bf16 %v3385_v20, %v3383_v32  ;;  %v7643_v47 = vpack.c.bf16 %v3390_v38, %v3388_v25  ;;  %v3394_v25 = vld [vmem:[%s14003_s4 + $0x3d8] sm:$0xff]  ;;  %v2740_v32 = vsel %vm375_vm4, %v10584_v5, %v10605_v27  ;;  %v2864_v20 = vsel %vm724_vm5, %v10590_v36, %v10626_v16  ;;  %v3396_v16 = vld [vmem:[%s14003_s4 + $0x3e8] sm:$0xff] }
 0x501   : > { %v10949_v18 = vpop.permute.xlu1 %3015  ;;  %v10951_v7 = vpop.permute.xlu0 %3147  ;;  %v7647_v38 = vpack.c.bf16 %v3394_v25, %v3392_v11  ;;  %v3398_v11 = vld [vmem:[%s14003_s4 + $0x3f8] sm:$0xff]  ;;  %v2932_v25 = vsel %vm905_vm6, %v10794_v57, %v10743_v24  ;;  %v3397_v24 = vld [vmem:[%s14003_s4 + $0x3f0] sm:$0xff] }
 0x502   : > { %14228 = vst [vmem:[#allocation49_spill] sm:$0xff] %v10949_v18  ;;  %14229 = vst [vmem:[#allocation50_spill] sm:$0xff] %v10951_v7  ;;  %v7651_v18 = vpack.c.bf16 %v3398_v11, %v3396_v16  ;;  %v2753_v11 = vmul.f32 %v10410_v31, %v2737_v10 }
 0x503   : > { %7638 = vmatpush1.bf16.msra.mxu1 %v7637_v46  ;;  %v2796_v46 = vsel %vm401_vm1, %v10573_v41, %v10615_v13 }
 0x504   : > { %7640 = vmatprep.subr.bf16.mxu1 %v7639_v28  ;;  %v7645_v28 = vpack.c.bf16 %v3389_v29, %v3387_v61  ;;  %v2814_v61 = vmul.f32 %v10487_v49, %v2796_v46  ;;  %v2758_v46 = vmul.f32 %v10456_v2, %v2740_v32 }
 0x505   : > { %v10965_v26 = vpop.permute.xlu1 %3145  ;;  %v10967_v7 = vpop.permute.xlu0 %3215 }
 0x506   : > { %14230 = vst [vmem:[#allocation51_spill] sm:$0xff] %v10965_v26  ;;  %14231 = vst [vmem:[#allocation52_spill] sm:$0xff] %v10967_v7  ;;  %v3391_v7 = vld [vmem:[%s14003_s4 + $0x3c0] sm:$0xff]  ;;  %v2826_v32 = vadd.f32 %v2814_v61, %v2758_v46 }
 0x507   : > { %7642 = vmatpush1.bf16.msra.mxu1 %v7641_v17  ;;  %v3393_v17 = vld [vmem:[%s14003_s4 + $0x3d0] sm:$0xff] }
 0x508   : > { %7644 = vmatprep.subr.bf16.mxu1 %v7643_v47  ;;  %v2793_v47 = vsel %vm401_vm1, %v10534_v33, %v10770_v6  ;;  %v7649_v13 = vpack.c.bf16 %v3393_v17, %v3391_v7  ;;  %v3395_v33 = vld [vmem:[%s14003_s4 + $0x3e0] sm:$0xff]  ;;  %v2950_v7 = vmul.f32 %v10475_v34, %v2932_v25  ;;  %v3402_v17 = vld [vmem:[%s14003_s4 + $0x418] sm:$0xff]  ;;  %v2877_v25 = vmul.f32 %v10427_v14, %v2861_v3 }
 0x509   : > { %v10994_v29 = vpop.permute.xlu1 %3079  ;;  %v10996_v27 = vpop.permute.xlu0 %2717 }
 0x50a   : > { %14232 = vst [vmem:[#allocation53_spill] sm:$0xff] %v10996_v27  ;;  %v2882_v27 = vmul.f32 %v10500_v60, %v2864_v20  ;;  %v2809_v20 = vmul.f32 %v10420_v15, %v2793_v47  ;;  %v7653_v47 = vpack.c.bf16 %v3397_v24, %v3395_v33 }
 0x50b   : > { %7646 = vmatpush1.bf16.msra.mxu1 %v7645_v28 }
 0x50c   : > { %7648 = vmatprep.subr.bf16.mxu1 %v7647_v38  ;;  %v3400_v38 = vld [vmem:[%s14003_s4 + $0x408] sm:$0xff]  ;;  %v2894_v61 = vadd.f32 %v2882_v27, %v2826_v32  ;;  %v2821_v62 = vadd.f32 %v2809_v20, %v2753_v11  ;;  %v2791_v27 = vsel %vm401_vm1, %v10770_v6, %v10725_v42  ;;  %v2982_v32 = vmul.f32 %v10490_v1, %v10267_v22 }
 0x50d   : > { %v11030_v28 = vpop.permute.xlu0 %2773  ;;  %v11032_v16 = vpop.permute.xlu1 %2729  ;;  %v7655_v46 = vpack.c.bf16 %v3402_v17, %v3400_v38  ;;  %v3050_v20 = vmul.f32 %v10698_v0, %v3030_v44  ;;  %v2810_v3 = vmul.f32 %v10420_v15, %v2791_v27 }
 0x50e   : > { %14233 = vst [vmem:[#allocation54_spill] sm:$0xff] %v11030_v28  ;;  %v2735_v28 = vsel %vm375_vm4, %v10741_v48, %v10710_v53  ;;  %v3098_v48 = vsel %vm1425_vm8, %v10917_v50, %v10832_v43  ;;  %v2742_v6 = vsel %vm375_vm4, %v11032_v16, %v10584_v5  ;;  %v2889_v38 = vadd.f32 %v2877_v25, %v2821_v62 }
 0x50f   : > { %7650 = vmatpush1.bf16.msra.mxu1 %v7649_v13  ;;  %v2962_v13 = vadd.f32 %v2950_v7, %v2894_v61  ;;  %v2754_v5 = vmul.f32 %v10410_v31, %v2735_v28  ;;  %v3118_v22 = vmul.f32 %v10812_v4, %v3098_v48  ;;  %v2757_v61 = vmul.f32 %v10456_v2, %v2742_v6 }
 0x510   : > { %7652 = vmatprep.subr.bf16.mxu1 %v7651_v18  ;;  %v2929_v18 = vsel %vm905_vm6, %v10542_v58, %v10778_v9  ;;  %v2859_v58 = vsel %vm724_vm5, %v10830_v35, %v10760_v45  ;;  %v2927_v62 = vsel %vm905_vm6, %v10778_v9, %v10864_v56  ;;  %v2977_v6 = vmul.f32 %v10443_v51, %v10246_v55 }
 0x511   : > { %v11054_v24 = vpop.permute.xlu0 %2841  ;;  %v11056_v10 = vpop.permute.xlu1 %2785  ;;  %v2945_v35 = vmul.f32 %v10429_v40, %v2929_v18  ;;  %v2994_v17 = vadd.f32 %v2982_v32, %v2962_v13  ;;  %v2878_v28 = vmul.f32 %v10427_v14, %v2859_v58  ;;  %v2822_v48 = vadd.f32 %v2810_v3, %v2754_v5 }
 0x512   : > { %v2798_v33 = vsel %vm401_vm1, %v11056_v10, %v10573_v41  ;;  %v3166_v41 = vsel %vm1606_vm9, %v10866_v63, %v10965_v26  ;;  %v3027_v5 = vsel %vm1244_vm7, %v10636_v19, %v10850_v39  ;;  %v3032_v55 = vsel %vm1244_vm7, %v10900_v12, %v10796_v54  ;;  %v14236_v19 = vld [vmem:[#allocation49_spill] sm:$0xff]  ;;  %v11383_v12 = vld [vmem:[%s14003_s4 + $0x550] sm:$0xff] }
 0x513   : > { %v2813_v7 = vmul.f32 %v10487_v49, %v2798_v33  ;;  %7654 = vmatpush1.bf16.msra.mxu1 %v7653_v47  ;;  %v2934_v47 = vsel %vm905_vm6, %v10902_v37, %v10794_v57  ;;  %v3062_v44 = vadd.f32 %v3050_v20, %v2994_v17  ;;  %v2957_v9 = vadd.f32 %v2945_v35, %v2889_v38  ;;  %v14263_v26 = vld [vmem:[#allocation15_spill] sm:$0xff] }
 0x514   : > { %7656 = vmatprep.subr.bf16.mxu1 %v7655_v46  ;;  %v3186_v46 = vmul.f32 %v10848_v59, %v3166_v41  ;;  %v2981_v57 = vmul.f32 %v10490_v1, %v10209_v52  ;;  %v2946_v33 = vmul.f32 %v10429_v40, %v2927_v62  ;;  %v3095_v3 = vsel %vm1425_vm8, %v10613_v23, %v10994_v29  ;;  %v14235_v41 = vld [vmem:[#allocation39_spill] sm:$0xff] }
 0x515   : > { %v11091_v11 = vpop.permute.xlu1 %2853  ;;  %v2825_v27 = vadd.f32 %v2813_v7, %v2757_v61  ;;  %v11107_v13 = vpop.permute.xlu0 %2723  ;;  %v3130_v58 = vadd.f32 %v3118_v22, %v3062_v44  ;;  %v2890_v7 = vadd.f32 %v2878_v28, %v2822_v48  ;;  %v2989_v22 = vadd.f32 %v2977_v6, %v2957_v9  ;;  %v14237_v28 = vld [vmem:[#allocation47_spill] sm:$0xff]  ;;  %v14240_v48 = vld [vmem:[#allocation46_spill] sm:$0xff]  ;;  %v14241_v9 = vld [vmem:[#allocation17_spill] sm:$0xff] }
 0x516   : > { %14234 = vst [vmem:[#allocation55_spill] sm:$0xff] %v11091_v11  ;;  %v2866_v25 = vsel %vm724_vm5, %v11091_v11, %v10590_v36  ;;  %v2949_v36 = vmul.f32 %v10475_v34, %v2934_v47  ;;  %v3025_v61 = vsel %vm1244_vm7, %v10850_v39, %v14236_v19  ;;  %v3100_v62 = vsel %vm1425_vm8, %v14237_v28, %v10917_v50  ;;  %v11340_v28 = vld [vmem:[%s14003_s4 + $0x528] sm:$0xff]  ;;  %v11363_v19 = vld [vmem:[%s14003_s4 + $0x530] sm:$0xff] }
 0x517   : > { %v2881_v18 = vmul.f32 %v10500_v60, %v2866_v25  ;;  %v3198_v17 = vadd.f32 %v3186_v46, %v3130_v58  ;;  %v2958_v54 = vadd.f32 %v2946_v33, %v2890_v7  ;;  %v3093_v39 = vsel %vm1425_vm8, %v10994_v29, %v14240_v48  ;;  %v14242_v33 = vld [vmem:[#allocation43_spill] sm:$0xff]  ;;  %v14245_v29 = vld [vmem:[#allocation32_spill] sm:$0xff] }
 0x518   : > { %v3113_v6 = vmul.f32 %v14241_v9, %v3095_v3  ;;  %v3168_v50 = vsel %vm1606_vm9, %v14242_v33, %v10866_v63  ;;  %v3117_v7 = vmul.f32 %v10812_v4, %v3100_v62  ;;  %v11335_v48 = vld [vmem:[%s14003_s4 + $0x510] sm:$0xff]  ;;  %v14262_v4 = vld [vmem:[#allocation29_spill] sm:$0xff]  ;;  %v11395_v40 = vmul.f32 %v10443_v51, %v14263_v26  ;;  %v11404_v37 = vld [vmem:[%s14003_s4 + $0x568] sm:$0xff] }
 0x519   : > { %v2893_v32 = vadd.f32 %v2881_v18, %v2825_v27  ;;  %v3210_v20 = vpop.permute.xlu1 %3209  ;;  %v11140_v25 = vpop.permute.xlu0 %2909  ;;  %v14239_v27 = vld [vmem:[#allocation20_spill] sm:$0xff]  ;;  %v3049_v18 = vmul.f32 %v10698_v0, %v3032_v55 }
 0x51a   : > { %v3234_v52 = vsel %vm1787_vm10, %v3210_v20, %v10935_v8  ;;  %v3045_v46 = vmul.f32 %v14239_v27, %v3027_v5  ;;  %v3046_v58 = vmul.f32 %v14239_v27, %v3025_v61  ;;  %v11358_v27 = vld [vmem:[%s14003_s4 + $0x520] sm:$0xff] }
 0x51b   : > { %v2961_v38 = vadd.f32 %v2949_v36, %v2893_v32  ;;  %v3254_v35 = vmul.f32 %v14235_v41, %v3234_v52  ;;  %v14244_v52 = vld [vmem:[#allocation50_spill] sm:$0xff]  ;;  %v14260_v8 = vld [vmem:[#allocation53_spill] sm:$0xff] }
 0x51c   : > { %v3057_v32 = vadd.f32 %v3045_v46, %v2989_v22  ;;  %v3163_v3 = vsel %vm1606_vm9, %v14245_v29, %v14244_v52  ;;  %v14251_v29 = vld [vmem:[#allocation12_spill] sm:$0xff] }
 0x51d   : > { %v2993_v47 = vadd.f32 %v2981_v57, %v2961_v38  ;;  %v11142_v23 = vpop.permute.xlu1 %3205  ;;  %v3266_v44 = vadd.f32 %v3254_v35, %v3198_v17  ;;  %v14243_v57 = vld [vmem:[#allocation14_spill] sm:$0xff]  ;;  %v3114_v38 = vmul.f32 %v14241_v9, %v3093_v39  ;;  %v3185_v17 = vmul.f32 %v10848_v59, %v3168_v50  ;;  %v14261_v59 = vld [vmem:[#allocation27_spill] sm:$0xff] }
 0x51e   : > { %14238 = vst [vmem:[#allocation56_spill] sm:$0xff] %v11142_v23  ;;  %v2978_v36 = vmul.f32 %v10443_v51, %v14243_v57  ;;  %v3236_v63 = vsel %vm1787_vm10, %v11142_v23, %v3210_v20  ;;  %v3125_v22 = vadd.f32 %v3113_v6, %v3057_v32  ;;  %v14248_v57 = vld [vmem:[#allocation52_spill] sm:$0xff]  ;;  %v11306_v23 = vld [vmem:[%s14003_s4 + $0x4e0] sm:$0xff]  ;;  %v2738_v56 = vsel %vm375_vm4, %v14261_v59, %v14260_v8 }
 0x51f   : > { %3533 = vmatprep.mubr.f32.mxu1 %v3266_v44  ;;  %v3061_v5 = vadd.f32 %v3049_v18, %v2993_v47  ;;  %v11174_v47 = vpop.permute.xlu0 %2847  ;;  %v14247_v44 = vld [vmem:[#allocation18_spill] sm:$0xff]  ;;  %v3253_v20 = vmul.f32 %v14235_v41, %v3236_v63  ;;  %v11409_v59 = vld [vmem:[%s14003_s4 + $0x578] sm:$0xff] }
 0x520   : > { %v2990_v55 = vadd.f32 %v2978_v36, %v2958_v54  ;;  %v3181_v18 = vmul.f32 %v14247_v44, %v3163_v3  ;;  %v14249_v36 = vld [vmem:[#allocation30_spill] sm:$0xff] }
 0x521   : > { %v11167_v35 = vpop.permute.xlu1 %3151  ;;  %v3129_v54 = vadd.f32 %v3117_v7, %v3061_v5  ;;  %v3231_v6 = vsel %vm1787_vm10, %v14249_v36, %v14248_v57  ;;  %v3399_v5 = vld [vmem:[%s14003_s4 + $0x400] sm:$0xff]  ;;  %v3404_v63 = vld [vmem:[%s14003_s4 + $0x428] sm:$0xff] }
 0x522   : > { %14246 = vst [vmem:[#allocation14_spill] sm:$0xff] %v11167_v35  ;;  %v3161_v61 = vsel %vm1606_vm9, %v14244_v52, %v11167_v35  ;;  %v3058_v62 = vadd.f32 %v3046_v58, %v2990_v55  ;;  %v3193_v52 = vadd.f32 %v3181_v18, %v3125_v22  ;;  %v3401_v55 = vld [vmem:[%s14003_s4 + $0x410] sm:$0xff]  ;;  %v3249_v22 = vmul.f32 %v14251_v29, %v3231_v6  ;;  %v3408_v36 = vld [vmem:[%s14003_s4 + $0x448] sm:$0xff]  ;;  %v3410_v6 = vld [vmem:[%s14003_s4 + $0x458] sm:$0xff] }
 0x523   : > { %v3182_v46 = vmul.f32 %v14247_v44, %v3161_v61  ;;  %v3197_v39 = vadd.f32 %v3185_v17, %v3129_v54  ;;  %v3406_v17 = vld [vmem:[%s14003_s4 + $0x438] sm:$0xff]  ;;  %v11203_v61 = vpop.permute.xlu0 %2781  ;;  %v7657_v18 = vpack.c.bf16 %v3401_v55, %v3399_v5  ;;  %v3409_v5 = vld [vmem:[%s14003_s4 + $0x450] sm:$0xff]  ;;  %v11330_v44 = vld [vmem:[%s14003_s4 + $0x500] sm:$0xff] }
 0x524   : > { %v3126_v50 = vadd.f32 %v3114_v38, %v3058_v62  ;;  %v11368_v41 = vld [vmem:[%s14003_s4 + $0x548] sm:$0xff] }
 0x525   : > { %v11183_v32 = vpop.permute.xlu1 %3219  ;;  %v3265_v7 = vadd.f32 %v3253_v20, %v3197_v39  ;;  %v3261_v20 = vadd.f32 %v3249_v22, %v3193_v52  ;;  %v7659_v39 = vpack.c.bf16 %v3406_v17, %v3404_v63 }
 0x526   : > { %14250 = vst [vmem:[#allocation50_spill] sm:$0xff] %v11183_v32  ;;  %v3229_v58 = vsel %vm1787_vm10, %v14248_v57, %v11183_v32  ;;  %v3194_v38 = vadd.f32 %v3182_v46, %v3126_v50  ;;  %v3403_v46 = vld [vmem:[%s14003_s4 + $0x420] sm:$0xff]  ;;  %v3405_v57 = vld [vmem:[%s14003_s4 + $0x430] sm:$0xff] }
 0x527   : > { %v3250_v3 = vmul.f32 %v14251_v29, %v3229_v58  ;;  %3534 = vmatmul.mubr.f32.gmra.mrb[18].mxu1 %v3265_v7  ;;  %v7661_v52 = vpack.c.bf16 %v3405_v57, %v3403_v46  ;;  %v7663_v58 = vpack.c.bf16 %v3410_v6, %v3408_v36  ;;  %v3407_v7 = vld [vmem:[%s14003_s4 + $0x440] sm:$0xff]  ;;  %v11227_v55 = vpop.permute.xlu0 %3013  ;;  %v14255_v32 = vld [vmem:[#allocation28_spill] sm:$0xff] }
 0x528   : > { %v7665_v17 = vpack.c.bf16 %v3409_v5, %v3407_v7  ;;  %v3420_v7 = vld [vmem:[%s14003_s4 + $0x4a8] sm:$0xff]  ;;  %v3422_v5 = vld [vmem:[%s14003_s4 + $0x4b8] sm:$0xff]  ;;  %14264 = vst [vmem:[#allocation28_spill] sm:$0xff] %v11395_v40 }
 0x529   : > { %v11205_v54 = vpop.permute.xlu1 %2721  ;;  %v3262_v62 = vadd.f32 %v3250_v3, %v3194_v38  ;;  %v3412_v3 = vld [vmem:[%s14003_s4 + $0x468] sm:$0xff]  ;;  %v3414_v38 = vld [vmem:[%s14003_s4 + $0x478] sm:$0xff] }
 0x52a   : > { %v7667_v22 = vpack.c.bf16 %v3414_v38, %v3412_v3  ;;  %v14254_v29 = vld [vmem:[#allocation54_spill] sm:$0xff] }
 0x52b   : > { %3604 = vmatprep.mubr.f32.mxu1 %v3262_v62  ;;  %v3411_v62 = vld [vmem:[%s14003_s4 + $0x460] sm:$0xff]  ;;  %v11249_v46 = vpop.permute.xlu0 %2849  ;;  %v2794_v33 = vsel %vm401_vm1, %v14255_v32, %v14254_v29  ;;  %v11345_v32 = vld [vmem:[%s14003_s4 + $0x538] sm:$0xff]  ;;  %14259 = vst [vmem:[#allocation54_spill] sm:$0xff] %v11358_v27 }
 0x52c   : > { %3605 = vmatmul.mubr.f32.vlgmr.msra.gmra.mrb[16].mxu1 %v3261_v20  ;;  %v3416_v20 = vld [vmem:[%s14003_s4 + $0x488] sm:$0xff]  ;;  %14252 = vst [vmem:[#allocation32_spill] sm:$0xff] %v11249_v46  ;;  %v2815_v26 = vmul.f32 %v10487_v49, %v2794_v33  ;;  %v11434_v33 = vld [vmem:[%s14003_s4 + $0x570] sm:$0xff] }
 0x52d   : > { %7658 = vmatpush1.bf16.msra.mxu1 %v7657_v18  ;;  %v11219_v50 = vpop.permute.xlu1 %2777  ;;  %v3413_v18 = vld [vmem:[%s14003_s4 + $0x470] sm:$0xff] }
 0x52e   : > { %7660 = vmatprep.subr.bf16.mxu1 %v7659_v39  ;;  %v3418_v39 = vld [vmem:[%s14003_s4 + $0x498] sm:$0xff]  ;;  %v7669_v36 = vpack.c.bf16 %v3413_v18, %v3411_v62  ;;  %v3421_v62 = vld [vmem:[%s14003_s4 + $0x4b0] sm:$0xff] }
 0x52f   : > { %v7671_v6 = vpack.c.bf16 %v3418_v39, %v3416_v20  ;;  %v11273_v18 = vpop.permute.xlu0 %3085  ;;  %v3424_v20 = vld [vmem:[%s14003_s4 + $0x4c8] sm:$0xff]  ;;  %v3426_v39 = vld [vmem:[%s14003_s4 + $0x4d8] sm:$0xff] }
 0x530   : > { %14253 = vst [vmem:[#allocation52_spill] sm:$0xff] %v11273_v18  ;;  %v7679_v35 = vpack.c.bf16 %v3426_v39, %v3424_v20  ;;  %v14257_v39 = vld [vmem:[#allocation26_spill] sm:$0xff]  ;;  %v14265_v18 = vld [vmem:[#allocation13_spill] sm:$0xff]  ;;  %v14271_v46 = vld [vmem:[#allocation19_spill] sm:$0xff] }
 0x531   : > { %7662 = vmatpush1.bf16.msra.mxu1 %v7661_v52  ;;  %v11235_v63 = vpop.permute.xlu1 %2845  ;;  %v3415_v52 = vld [vmem:[%s14003_s4 + $0x480] sm:$0xff]  ;;  %v11353_v9 = vmul.f32 %v10490_v1, %v14257_v39  ;;  %v11399_v43 = vmul.f32 %v10443_v51, %v14265_v18  ;;  %14267 = vst [vmem:[#allocation26_spill] sm:$0xff] %v11404_v37  ;;  %v11429_v11 = vmul.f32 %v10490_v1, %v14271_v46 }
 0x532   : > { %7664 = vmatprep.subr.bf16.mxu1 %v7663_v58  ;;  %v3417_v58 = vld [vmem:[%s14003_s4 + $0x490] sm:$0xff]  ;;  %v11378_v39 = vld [vmem:[%s14003_s4 + $0x540] sm:$0xff] }
 0x533   : > { %v7673_v38 = vpack.c.bf16 %v3417_v58, %v3415_v52  ;;  %14258 = vst [vmem:[#allocation30_spill] sm:$0xff] %v11353_v9  ;;  %v2862_v9 = vsel %vm724_vm5, %v14262_v4, %v11054_v24  ;;  %v11414_v4 = vld [vmem:[%s14003_s4 + $0x560] sm:$0xff]  ;;  %v11417_v40 = vpop.permute.xlu0 %3019  ;;  %14272 = vst [vmem:[#allocation29_spill] sm:$0xff] %v11429_v11 }
 0x534   : > { %14268 = vst [vmem:[#allocation53_spill] sm:$0xff] %v11417_v40  ;;  %v11459_v11 = vld [vmem:[%s14003_s4 + $0x580] sm:$0xff]  ;;  %v11464_v40 = vld [vmem:[%s14003_s4 + $0x590] sm:$0xff] }
 0x535   : > { %7666 = vmatpush1.bf16.msra.mxu1 %v7665_v17  ;;  %v11251_v57 = vpop.permute.xlu1 %2779  ;;  %v7675_v17 = vpack.c.bf16 %v3422_v5, %v3420_v7  ;;  %v11296_v7 = vld [vmem:[%s14003_s4 + $0x4e8] sm:$0xff]  ;;  %v11301_v5 = vld [vmem:[%s14003_s4 + $0x4f8] sm:$0xff] }
 0x536   : > { %7668 = vmatprep.subr.bf16.mxu1 %v7667_v22  ;;  %v3419_v22 = vld [vmem:[%s14003_s4 + $0x4a0] sm:$0xff]  ;;  %v7683_v46 = vpack.c.bf16 %v11301_v5, %v11296_v7  ;;  %v2883_v7 = vmul.f32 %v10500_v60, %v2862_v9  ;;  %v7689_v5 = vpack.c.bf16 %v11335_v48, %v11330_v44  ;;  %v2792_v9 = vsel %vm401_vm1, %v14254_v29, %v11219_v50 }
 0x537   : > { %v7677_v58 = vpack.c.bf16 %v3421_v62, %v3419_v22  ;;  %v11316_v22 = vld [vmem:[%s14003_s4 + $0x508] sm:$0xff]  ;;  %v11321_v62 = vld [vmem:[%s14003_s4 + $0x518] sm:$0xff]  ;;  %v11530_v29 = vld [vmem:[%s14003_s4 + $0x5c0] sm:$0xff] }
 0x539   : > { %7670 = vmatpush1.bf16.msra.mxu1 %v7669_v36  ;;  %v11265_v3 = vpop.permute.xlu1 %2913  ;;  %v11284_v36 = vld [vmem:[%s14003_s4 + $0x4c0] sm:$0xff] }
 0x53a   : > { %7672 = vmatprep.subr.bf16.mxu1 %v7671_v6  ;;  %v11289_v6 = vld [vmem:[%s14003_s4 + $0x4d0] sm:$0xff] }
 0x53b   : > { %v7681_v18 = vpack.c.bf16 %v11289_v6, %v11284_v36  ;;  %v11444_v36 = vld [vmem:[%s14003_s4 + $0x598] sm:$0xff] }
 0x53d   : > { %7674 = vmatpush1.bf16.msra.mxu1 %v7673_v38  ;;  %v11291_v52 = vpop.permute.xlu1 %2725  ;;  %v11311_v38 = vld [vmem:[%s14003_s4 + $0x4f0] sm:$0xff] }
 0x53e   : > { %7676 = vmatprep.subr.bf16.mxu1 %v7675_v17  ;;  %v14256_v17 = vld [vmem:[#allocation16_spill] sm:$0xff]  ;;  %v7685_v6 = vpack.c.bf16 %v11311_v38, %v11306_v23  ;;  %v2759_v23 = vmul.f32 %v10456_v2, %v2738_v56  ;;  %v7691_v38 = vpack.c.bf16 %v11345_v32, %v11340_v28  ;;  %v11503_v32 = vld [vmem:[%s14003_s4 + $0x5c8] sm:$0xff] }
 0x53f   : > { %v11349_v20 = vmul.f32 %v10490_v1, %v14256_v17  ;;  %v11373_v17 = vld [vmem:[%s14003_s4 + $0x558] sm:$0xff]  ;;  %14266 = vst [vmem:[#allocation16_spill] sm:$0xff] %v11399_v43  ;;  %v11490_v56 = vld [vmem:[%s14003_s4 + $0x5b0] sm:$0xff] }
 0x540   : > { %v14269_v43 = vld [vmem:[#allocation25_spill] sm:$0xff]  ;;  %v2827_v48 = vadd.f32 %v2815_v26, %v2759_v23  ;;  %v2736_v26 = vsel %vm375_vm4, %v14260_v8, %v11205_v54  ;;  %v2860_v23 = vsel %vm724_vm5, %v11054_v24, %v11235_v63  ;;  %v14277_v28 = vld [vmem:[#allocation31_spill] sm:$0xff]  ;;  %v2733_v8 = vsel %vm375_vm4, %v10710_v53, %v11107_v13 }
 0x541   : > { %7678 = vmatpush1.bf16.msra.mxu1 %v7677_v58  ;;  %v11419_v51 = vpop.permute.xlu1 %2915  ;;  %v11425_v0 = vmul.f32 %v10490_v1, %v14269_v43  ;;  %v11439_v58 = vld [vmem:[%s14003_s4 + $0x588] sm:$0xff]  ;;  %v14273_v43 = vld [vmem:[#allocation37_spill] sm:$0xff]  ;;  %14276 = vst [vmem:[#allocation25_spill] sm:$0xff] %v11490_v56 }
 0x542   : > { %v2930_v1 = vsel %vm905_vm6, %v14273_v43, %v11140_v25  ;;  %7680 = vmatprep.subr.bf16.mxu1 %v7679_v35  ;;  %v11469_v35 = vld [vmem:[%s14003_s4 + $0x5a8] sm:$0xff]  ;;  %v11508_v43 = vld [vmem:[%s14003_s4 + $0x5d8] sm:$0xff] }
 0x543   : > { %14270 = vst [vmem:[#allocation27_spill] sm:$0xff] %v11425_v0  ;;  %v7687_v0 = vpack.c.bf16 %v11321_v62, %v11316_v22  ;;  %14274 = vst [vmem:[#allocation15_spill] sm:$0xff] %v11469_v35  ;;  %v11480_v22 = vld [vmem:[%s14003_s4 + $0x5b8] sm:$0xff]  ;;  %v11485_v62 = vld [vmem:[%s14003_s4 + $0x5a0] sm:$0xff]  ;;  %v2951_v27 = vmul.f32 %v10475_v34, %v2930_v1  ;;  %v11545_v1 = vpop.permute.xlu0 %3153 }
 0x544   : > { %14275 = vst [vmem:[#allocation13_spill] sm:$0xff] %v11485_v62  ;;  %v14278_v62 = vld [vmem:[#allocation33_spill] sm:$0xff]  ;;  %v14279_v35 = vld [vmem:[#allocation35_spill] sm:$0xff] }
 0x545   : > { %7682 = vmatpush1.bf16.msra.mxu1 %v7681_v18  ;;  %v11515_v44 = vpop.permute.xlu1 %3017  ;;  %v11535_v18 = vld [vmem:[%s14003_s4 + $0x5d0] sm:$0xff]  ;;  %v2787_v24 = vsel %vm401_vm1, %v11251_v57, %v14278_v62  ;;  %v2855_v37 = vsel %vm724_vm5, %v11174_v47, %v14279_v35  ;;  %v2760_v62 = vmul.f32 %v10456_v2, %v2736_v26  ;;  %v2732_v35 = vsel %vm375_vm4, %v11291_v52, %v11032_v16 }
 0x546   : > { %7684 = vmatprep.subr.bf16.mxu1 %v7683_v46  ;;  %v2895_v46 = vadd.f32 %v2883_v7, %v2827_v48  ;;  %v2731_v7 = vsel %vm375_vm4, %v11107_v13, %v14277_v28  ;;  %v2816_v48 = vmul.f32 %v10487_v49, %v2792_v9  ;;  %v2928_v28 = vsel %vm905_vm6, %v11140_v25, %v11265_v3 }
 0x547   : > { %v7713_v13 = vpack.c.bf16 %v11535_v18, %v11530_v29  ;;  %v2884_v9 = vmul.f32 %v10500_v60, %v2860_v23  ;;  %v2755_v25 = vmul.f32 %v10410_v31, %v2733_v8  ;;  %v2880_v23 = vmul.f32 %v10427_v14, %v2855_v37  ;;  %v14280_v8 = vld [vmem:[#allocation55_spill] sm:$0xff] }
 0x548   : > { %v2963_v56 = vadd.f32 %v2951_v27, %v2895_v46  ;;  %v2857_v27 = vsel %vm724_vm5, %v10760_v45, %v11174_v47  ;;  %v2789_v46 = vsel %vm401_vm1, %v10725_v42, %v11251_v57  ;;  %v2812_v45 = vmul.f32 %v10420_v15, %v2787_v24  ;;  %v11601_v57 = vpop.permute.xlu0 %3217  ;;  %v14281_v24 = vld [vmem:[#allocation32_spill] sm:$0xff] }
 0x549   : > { %7686 = vmatpush1.bf16.msra.mxu1 %v7685_v6  ;;  %v3082_v53 = vpop.permute.xlu1 %3081  ;;  %v2756_v6 = vmul.f32 %v10410_v31, %v2731_v7  ;;  %v2788_v47 = vsel %vm401_vm1, %v11203_v61, %v11056_v10  ;;  %v2828_v16 = vadd.f32 %v2816_v48, %v2760_v62  ;;  %v2952_v31 = vmul.f32 %v10475_v34, %v2928_v28 }
 0x54a   : > { %7688 = vmatprep.subr.bf16.mxu1 %v7687_v0  ;;  %v3028_v0 = vsel %vm1244_vm7, %v10880_v30, %v11227_v55  ;;  %v2879_v26 = vmul.f32 %v10427_v14, %v2857_v27  ;;  %v2995_v42 = vadd.f32 %v11349_v20, %v2963_v56  ;;  %v2762_v7 = vmul.f32 %v10456_v2, %v2732_v35  ;;  %v14282_v20 = vld [vmem:[#allocation36_spill] sm:$0xff]  ;;  %v14283_v35 = vld [vmem:[#allocation34_spill] sm:$0xff] }
 0x54b   : > { %v2856_v30 = vsel %vm724_vm5, %v14281_v24, %v14280_v8  ;;  %v2790_v48 = vsel %vm401_vm1, %v11219_v50, %v11203_v61  ;;  %v2896_v28 = vadd.f32 %v2884_v9, %v2828_v16  ;;  %v2811_v14 = vmul.f32 %v10420_v15, %v2789_v46  ;;  %v14284_v50 = vld [vmem:[#allocation45_spill] sm:$0xff]  ;;  %v14288_v8 = vld [vmem:[#allocation52_spill] sm:$0xff] }
 0x54c   : > { %v2818_v37 = vmul.f32 %v10487_v49, %v2788_v47  ;;  %v3051_v56 = vmul.f32 %v14282_v20, %v3028_v0  ;;  %v2734_v27 = vsel %vm375_vm4, %v11205_v54, %v11291_v52  ;;  %v2923_v61 = vsel %vm905_vm6, %v11419_v51, %v14283_v35  ;;  %v14285_v52 = vld [vmem:[#allocation40_spill] sm:$0xff]  ;;  %v14291_v35 = vld [vmem:[#allocation51_spill] sm:$0xff] }
 0x54d   : > { %7690 = vmatpush1.bf16.msra.mxu1 %v7689_v5  ;;  %v2918_v10 = vpop.permute.xlu1 %2917  ;;  %v2824_v5 = vadd.f32 %v2812_v45, %v2756_v6  ;;  %v2964_v62 = vadd.f32 %v2952_v31, %v2896_v28  ;;  %v3026_v15 = vsel %vm1244_vm7, %v11227_v55, %v11515_v44  ;;  %v2886_v9 = vmul.f32 %v10500_v60, %v2856_v30  ;;  %v14286_v45 = vld [vmem:[#allocation54_spill] sm:$0xff]  ;;  %v3022_v30 = vpop.permute.xlu0 %3021 }
 0x54e   : > { %7692 = vmatprep.subr.bf16.mxu1 %v7691_v38  ;;  %v2924_v38 = vsel %vm905_vm6, %v2918_v10, %v14284_v50  ;;  %v2817_v6 = vmul.f32 %v10487_v49, %v2790_v48  ;;  %v2830_v54 = vadd.f32 %v2818_v37, %v2762_v7  ;;  %v3096_v46 = vsel %vm1425_vm8, %v14285_v52, %v3082_v53  ;;  %v14297_v52 = vld [vmem:[#allocation53_spill] sm:$0xff] }
 0x54f   : > { %v14287_v47 = vpack.c.bf16 %v11363_v19, %v14286_v45  ;;  %v2858_v55 = vsel %vm724_vm5, %v11235_v63, %v14281_v24  ;;  %v2823_v16 = vadd.f32 %v2811_v14, %v2755_v25  ;;  %v2761_v31 = vmul.f32 %v10456_v2, %v2734_v27  ;;  %v14290_v19 = vld [vmem:[#allocation11_spill] sm:$0xff]  ;;  %v14292_v25 = vld [vmem:[#allocation30_spill] sm:$0xff] }
 0x550   : > { %v3094_v49 = vsel %vm1425_vm8, %v3082_v53, %v14288_v8  ;;  %v14289_v7 = vpack.c.bf16 %v11373_v17, %v11368_v41  ;;  %v2948_v48 = vmul.f32 %v14290_v19, %v2923_v61  ;;  %v3052_v28 = vmul.f32 %v14282_v20, %v3026_v15  ;;  %v14293_v14 = vld [vmem:[#allocation38_spill] sm:$0xff] }
 0x551   : > { %7694 = vmatpush1.bf16.msra.mxu1 %v14287_v47  ;;  %v3150_v0 = vpop.permute.xlu1 %3149  ;;  %v2954_v37 = vmul.f32 %v10475_v34, %v2924_v38  ;;  %v2892_v2 = vadd.f32 %v2880_v23, %v2824_v5  ;;  %v2996_v24 = vadd.f32 %v14292_v25, %v2964_v62  ;;  %v3119_v53 = vmul.f32 %v14293_v14, %v3096_v46  ;;  %v14294_v17 = vld [vmem:[#allocation42_spill] sm:$0xff] }
 0x552   : > { %7696 = vmatprep.subr.bf16.mxu1 %v14289_v7  ;;  %v3164_v63 = vsel %vm1606_vm9, %v14291_v35, %v3150_v0  ;;  %v3162_v41 = vsel %vm1606_vm9, %v3150_v0, %v11545_v1  ;;  %v2925_v27 = vsel %vm905_vm6, %v14294_v17, %v11419_v51  ;;  %v3120_v61 = vmul.f32 %v14293_v14, %v3094_v49  ;;  %v14296_v38 = vld [vmem:[#allocation22_spill] sm:$0xff]  ;;  %v14298_v51 = vld [vmem:[#allocation41_spill] sm:$0xff]  ;;  %v14302_v7 = vld [vmem:[#allocation44_spill] sm:$0xff] }
 0x553   : > { %v2898_v15 = vadd.f32 %v2886_v9, %v2830_v54  ;;  %v2926_v23 = vsel %vm905_vm6, %v11265_v3, %v2918_v10  ;;  %v14295_v5 = vpack.c.bf16 %v11383_v12, %v11378_v39  ;;  %v3063_v50 = vadd.f32 %v3051_v56, %v2995_v42  ;;  %v14299_v9 = vld [vmem:[#allocation26_spill] sm:$0xff]  ;;  %v14309_v17 = vld [vmem:[#allocation49_spill] sm:$0xff] }
 0x554   : > { %v3033_v46 = vsel %vm1244_vm7, %v14297_v52, %v14296_v38  ;;  %v2829_v45 = vadd.f32 %v2817_v6, %v2761_v31  ;;  %v3187_v47 = vmul.f32 %v14298_v51, %v3164_v63  ;;  %v14300_v54 = vpack.c.bf16 %v11409_v59, %v14299_v9  ;;  %v14301_v6 = vld [vmem:[#allocation48_spill] sm:$0xff] }
 0x555   : > { %7698 = vmatpush1.bf16.msra.mxu1 %v14295_v5  ;;  %v3088_v62 = vpop.permute.xlu1 %3087  ;;  %v2960_v0 = vadd.f32 %v2948_v48, %v2892_v2  ;;  %v3064_v3 = vadd.f32 %v3052_v28, %v2996_v24  ;;  %v2966_v10 = vadd.f32 %v2954_v37, %v2898_v15  ;;  %v3188_v12 = vmul.f32 %v14298_v51, %v3162_v41  ;;  %v3090_v48 = vpop.permute.xlu0 %3089  ;;  %v14306_v2 = vld [vmem:[#allocation16_spill] sm:$0xff]  ;;  %v14308_v24 = vld [vmem:[#allocation39_spill] sm:$0xff]  ;;  %v14311_v5 = vld [vmem:[#allocation17_spill] sm:$0xff] }
 0x556   : > { %7700 = vmatprep.subr.bf16.mxu1 %v14300_v54  ;;  %v2885_v39 = vmul.f32 %v10500_v60, %v2858_v55  ;;  %v2947_v42 = vmul.f32 %v14290_v19, %v2925_v27  ;;  %v3131_v56 = vadd.f32 %v3119_v53, %v3063_v50  ;;  %v2953_v49 = vmul.f32 %v10475_v34, %v2926_v23  ;;  %v14304_v34 = vld [vmem:[#allocation23_spill] sm:$0xff]  ;;  %v14310_v23 = vld [vmem:[#allocation20_spill] sm:$0xff] }
 0x557   : > { %v3232_v31 = vsel %vm1787_vm10, %v14301_v6, %v11601_v57  ;;  %v3034_v59 = vsel %vm1244_vm7, %v3022_v30, %v14302_v7  ;;  %v2891_v28 = vadd.f32 %v2879_v26, %v2823_v16  ;;  %v3132_v37 = vadd.f32 %v3120_v61, %v3064_v3  ;;  %v3462_v9 = vld [vmem:[%s14003_s4 + $0x5f8] sm:$0xff]  ;;  %v14313_v54 = vld [vmem:[#allocation47_spill] sm:$0xff]  ;;  %v14318_v6 = vld [vmem:[#allocation18_spill] sm:$0xff] }
 0x558   : > { %v14303_v60 = vpack.c.bf16 %v11434_v33, %v11414_v4  ;;  %v2897_v19 = vadd.f32 %v2885_v39, %v2829_v45  ;;  %v3101_v35 = vsel %vm1425_vm8, %v3088_v62, %v14304_v34  ;;  %v14305_v26 = vpack.c.bf16 %v11444_v36, %v11439_v58  ;;  %v14307_v33 = vld [vmem:[#allocation29_spill] sm:$0xff]  ;;  %v14315_v3 = vld [vmem:[#allocation15_spill] sm:$0xff] }
 0x559   : > { %v11693_v55 = vpop.permute.xlu1 %3221  ;;  %v3199_v16 = vadd.f32 %v3187_v47, %v3131_v56  ;;  %v2992_v4 = vadd.f32 %v14306_v2, %v2960_v0  ;;  %v2998_v25 = vadd.f32 %v14307_v33, %v2966_v10  ;;  %v3200_v41 = vadd.f32 %v3188_v12, %v3132_v37  ;;  %v3158_v39 = vpop.permute.xlu0 %3157  ;;  %v14317_v56 = vld [vmem:[#allocation46_spill] sm:$0xff] }
 0x55a   : > { %7702 = vmatpush1.bf16.msra.mxu1 %v14303_v60  ;;  %v3230_v63 = vsel %vm1787_vm10, %v11601_v57, %v11693_v55  ;;  %v3023_v27 = vsel %vm1244_vm7, %v14309_v17, %v14297_v52  ;;  %v3255_v61 = vmul.f32 %v14308_v24, %v3232_v31  ;;  %v2959_v57 = vadd.f32 %v2947_v42, %v2891_v28  ;;  %v3460_v52 = vld [vmem:[%s14003_s4 + $0x5e8] sm:$0xff]  ;;  %v3459_v17 = vld [vmem:[%s14003_s4 + $0x5e0] sm:$0xff] }
 0x55b   : > { %7704 = vmatprep.subr.bf16.mxu1 %v14305_v26  ;;  %v3256_v53 = vmul.f32 %v14308_v24, %v3230_v63  ;;  %v2965_v15 = vadd.f32 %v2953_v49, %v2897_v19  ;;  %v3048_v58 = vmul.f32 %v14310_v23, %v3033_v46  ;;  %v3054_v36 = vmul.f32 %v14282_v20, %v3034_v59  ;;  %v14320_v28 = vld [vmem:[#allocation27_spill] sm:$0xff]  ;;  %v14322_v63 = vld [vmem:[#allocation25_spill] sm:$0xff] }
 0x55c   : > { %v3116_v50 = vmul.f32 %v14311_v5, %v3101_v35  ;;  %v14312_v38 = vpack.c.bf16 %v11464_v40, %v11459_v11  ;;  %v3102_v46 = vsel %vm1425_vm8, %v3090_v48, %v14313_v54  ;;  %v3024_v0 = vsel %vm1244_vm7, %v11515_v44, %v3022_v30  ;;  %v14314_v40 = vld [vmem:[#allocation21_spill] sm:$0xff]  ;;  %v14319_v30 = vld [vmem:[#allocation28_spill] sm:$0xff] }
 0x55d   : > { %v3156_v45 = vpop.permute.xlu1 %3155  ;;  %v3268_v47 = vadd.f32 %v3256_v53, %v3200_v41  ;;  %v14316_v10 = vpack.c.bf16 %v11480_v22, %v14315_v3  ;;  %v3267_v12 = vadd.f32 %v3255_v61, %v3199_v16  ;;  %v3060_v42 = vadd.f32 %v3048_v58, %v2992_v4  ;;  %v14323_v26 = vld [vmem:[#allocation13_spill] sm:$0xff]  ;;  %v14325_v4 = vld [vmem:[#allocation43_spill] sm:$0xff]  ;;  %v14328_v61 = vld [vmem:[#allocation50_spill] sm:$0xff] }
 0x55e   : > { %7706 = vmatpush1.bf16.msra.mxu1 %v14312_v38  ;;  %v3169_v11 = vsel %vm1606_vm9, %v3156_v45, %v14314_v40  ;;  %v3091_v49 = vsel %vm1425_vm8, %v14317_v56, %v3088_v62  ;;  %v3066_v7 = vadd.f32 %v3054_v36, %v2998_v25  ;;  %v3047_v44 = vmul.f32 %v14310_v23, %v3023_v27  ;;  %v14321_v62 = vld [vmem:[#allocation14_spill] sm:$0xff]  ;;  %v3461_v27 = vld [vmem:[%s14003_s4 + $0x5f0] sm:$0xff] }
 0x55f   : > { %7708 = vmatprep.subr.bf16.mxu1 %v14316_v10  ;;  %v3184_v31 = vmul.f32 %v14318_v6, %v3169_v11  ;;  %3610 = vmatprep.mubr.f32.mxu1 %v3268_v47  ;;  %v2991_v59 = vadd.f32 %v14319_v30, %v2959_v57  ;;  %v2997_v37 = vadd.f32 %v14320_v28, %v2965_v15  ;;  %v14329_v57 = vld [vmem:[#allocation12_spill] sm:$0xff]  ;;  %v8859_v56 = vmov 26  }
 0x560   : > { %3611 = vmatmul.mubr.f32.gmra.mrb[18].mxu1 %v3267_v12  ;;  %v7715_v22 = vpack.c.bf16 %v3462_v9, %v3460_v52  ;;  %v3092_v60 = vsel %vm1425_vm8, %v14288_v8, %v3090_v48  ;;  %v3122_v19 = vmul.f32 %v14293_v14, %v3102_v46  ;;  %v3128_v34 = vadd.f32 %v3116_v50, %v3060_v42  ;;  %v14326_v48 = vld [vmem:[#allocation24_spill] sm:$0xff] }
 0x561   : > { %v3159_v35 = vsel %vm1606_vm9, %v14321_v62, %v3156_v45  ;;  %v14324_v16 = vpack.c.bf16 %v14322_v63, %v14323_v26  ;;  %v3224_v2 = vpop.permute.xlu1 %3223  ;;  %v3170_v33 = vsel %vm1606_vm9, %v3158_v39, %v14325_v4  ;;  %v3053_v25 = vmul.f32 %v14282_v20, %v3024_v0  ;;  %v14330_v54 = vld [vmem:[#allocation56_spill] sm:$0xff]  ;;  %8168 = vset.pattern.permute.xlu0 %v8859_v56 }
 0x562   : > { %v3115_v8 = vmul.f32 %v14311_v5, %v3091_v49  ;;  %v3237_v53 = vsel %vm1787_vm10, %v3224_v2, %v14326_v48  ;;  %v14327_v41 = vpack.c.bf16 %v11508_v43, %v11503_v32  ;;  %v3227_v20 = vsel %vm1787_vm10, %v14328_v61, %v3224_v2  ;;  %8166 = vset.pattern.permute.xlu1 %v8859_v56 }
 0x563   : > { %7710 = vmatpush1.bf16.msra.mxu1 %v14324_v16  ;;  %v3252_v15 = vmul.f32 %v14329_v57, %v3237_v53  ;;  %v3196_v23 = vadd.f32 %v3184_v31, %v3128_v34  ;;  %v3134_v58 = vadd.f32 %v3122_v19, %v3066_v7  ;;  %v3059_v36 = vadd.f32 %v3047_v44, %v2991_v59 }
 0x564   : > { %7712 = vmatprep.subr.bf16.mxu1 %v14327_v41  ;;  %v3183_v32 = vmul.f32 %v14318_v6, %v3159_v35  ;;  %v3065_v43 = vadd.f32 %v3053_v25, %v2997_v37  ;;  %v3190_v5 = vmul.f32 %v14298_v51, %v3170_v33  ;;  %v7717_v45 = vpack.c.bf16 %v3461_v27, %v3459_v17  ;;  %v11820_v6 = vld [vmem:[%s14000_s1 + $0x18] sm:$0xff] }
 0x565   : > { %v3226_v50 = vpop.permute.xlu1 %3225  ;;  %v3264_v38 = vadd.f32 %v3252_v15, %v3196_v23  ;;  %v3121_v47 = vmul.f32 %v14293_v14, %v3092_v60  ;;  %v3127_v52 = vadd.f32 %v3115_v8, %v3059_v36  ;;  %v3251_v9 = vmul.f32 %v14329_v57, %v3227_v20 }
 0x566   : > { %v3238_v46 = vsel %vm1787_vm10, %v3226_v50, %v14330_v54  ;;  %v3160_v0 = vsel %vm1606_vm9, %v11545_v1, %v3158_v39  ;;  %v3228_v29 = vsel %vm1787_vm10, %v11693_v55, %v3226_v50  ;;  %v11797_v55 = vld [vmem:[%s14000_s1 + $0x8] sm:$0xff]  ;;  %v11802_v39 = vld [vmem:[%s14000_s1] sm:$0xff]  ;;  %v8861_v49 = vmov 28  }
 0x567   : > { %7714 = vmatpush1.bf16.msra.mxu1 %v7713_v13  ;;  %v3258_v18 = vmul.f32 %v14308_v24, %v3238_v46  ;;  %3681 = vmatprep.mubr.f32.mxu1 %v3264_v38  ;;  %v3202_v13 = vadd.f32 %v3190_v5, %v3134_v58  ;;  %v3195_v14 = vadd.f32 %v3183_v32, %v3127_v52  ;;  %v8862_v31 = vmov 29  }
 0x568   : > { %7716 = vmatprep.subr.bf16.mxu1 %v7715_v22  ;;  %v3133_v40 = vadd.f32 %v3121_v47, %v3065_v43  ;;  %v3189_v3 = vmul.f32 %v14298_v51, %v3160_v0  ;;  %v3257_v12 = vmul.f32 %v14308_v24, %v3228_v29  ;;  %3833 = vperm.xlu0 %8168, %v11797_v55   ;;  %v11809_v51 = vld [vmem:[%s14000_s1 + $0x10] sm:$0xff]  ;;  %v8860_v24 = vmov 27   ;;  %v8360_v29 = vld [vmem:[%s14001_s2 + $0x8] ss:$28 sps:$4 sm:$0xff]  }
 0x569   : > { %v3270_v11 = vadd.f32 %v3258_v18, %v3202_v13  ;;  %v3263_v10 = vadd.f32 %v3251_v9, %v3195_v14  ;;  %3828 = vperm.xlu1 %8166, %v11802_v39   ;;  %v8863_v7 = vmov 31   ;;  %v8864_v44 = vmov 30   ;;  %v8361_v13 = vld [vmem:[%s14001_s2 + $0x40] ss:$28 sps:$4 sm:$0xff]  }
 0x56a   : > { %v3201_v42 = vadd.f32 %v3189_v3, %v3133_v40  ;;  %v8865_v30 = vmov 32   ;;  %v8866_v59 = vmov 33   ;;  %v8867_v28 = vmov 34  }
 0x56b   : > { %7718 = vmatpush1.bf16.msra.mxu1 %v7717_v45  ;;  %v8868_v26 = vmov 35   ;;  %v14331_v18 = vmov 0   ;;  %v8869_v14 = vmov 36   ;;  %vm4277_vm1 = vcmp.lt.s32.totalorder %v9163_v21, 119 }
 0x56c   : > { %v3269_v1 = vadd.f32 %v3257_v12, %v3201_v42  ;;  %8170 = vset.pattern.permute.xlu0 %v8860_v24  ;;  %v8878_v21 = vmov 40   ;;  %vm4647_vm4 = vcmask 261120   ;;  %vm5733_vm5 = vcmask 523264  }
 0x56d   : > { %8167 = vset.pattern.permute.xlu1 %v8860_v24  ;;  %3863 = vperm.xlu0 %8170, %v11809_v51  }
 0x56e   : > { %3682 = vmatmul.mubr.f32.vlgmr.msra.gmra.mrb[16].mxu1 %v3263_v10  ;;  %3855 = vperm.xlu1 %8167, %v11802_v39  }
 0x56f   : > { %3687 = vmatprep.mubr.f32.mxu1 %v3270_v11 }
 0x570   : > { %v3700_v37 = vpop.permute.xlu1 %3699 }
 0x571   : > { %8172 = vset.pattern.permute.xlu0 %v8861_v49  ;;  %v3696_v22 = vpop.permute.xlu0 %3695 }
 0x572   : > { %3688 = vmatmul.mubr.f32.gmra.mrb[18].mxu1 %v3269_v1  ;;  %3859 = vperm.xlu1 %8167, %v11797_v55  }
 0x573   : > { %3980 = vperm.xlu0 %8172, %v11802_v39  }
 0x575   : > { %v3708_v19 = vpop.permute.xlu1 %3707 }
 0x576   : > { %8169 = vset.pattern.permute.xlu1 %v8859_v56  ;;  %v3712_v4 = vpop.permute.xlu0 %3711 }
 0x577   : > { %3984 = vperm.xlu0 %8172, %v11797_v55   ;;  %3838 = vperm.xlu1 %8169, %v11809_v51  }
 0x57b   : > { %8178 = vset.pattern.permute.xlu0 %v8862_v31  ;;  %3843 = vperm.xlu1 %8169, %v11820_v6  }
 0x57c   : > { %4037 = vperm.xlu0 %8178, %v11809_v51  }
 0x57f   : > { %8171 = vset.pattern.permute.xlu1 %v8860_v24 }
 0x580   : > { %4041 = vperm.xlu0 %8178, %v11820_v6   ;;  %3867 = vperm.xlu1 %8171, %v11820_v6  }
 0x584   : > { %8183 = vset.pattern.permute.xlu0 %v8863_v7  ;;  %8173 = vset.pattern.permute.xlu1 %v8862_v31 }
 0x585   : > { %4142 = vperm.xlu0 %8183, %v11802_v39   ;;  %4029 = vperm.xlu1 %8173, %v11802_v39  }
 0x589   : > { %4146 = vperm.xlu0 %8183, %v11797_v55   ;;  %8174 = vset.pattern.permute.xlu1 %v8864_v44 }
 0x58a   : > { %4086 = vperm.xlu1 %8174, %v11802_v39  }
 0x58d   : > { %4150 = vperm.xlu0 %8183, %v11809_v51  }
 0x58e   : > { %8175 = vset.pattern.permute.xlu1 %v8862_v31 }
 0x58f   : > { %4033 = vperm.xlu1 %8175, %v11797_v55  }
 0x591   : > { %8184 = vset.pattern.permute.xlu0 %v8864_v44 }
 0x592   : > { %4090 = vperm.xlu0 %8184, %v11797_v55  }
 0x593   : > { %8176 = vset.pattern.permute.xlu1 %v8865_v30 }
 0x594   : > { %4174 = vperm.xlu1 %8176, %v11802_v39  }
 0x596   : > { %4098 = vperm.xlu0 %8184, %v11820_v6  }
 0x598   : > { %8177 = vset.pattern.permute.xlu1 %v8861_v49 }
 0x599   : > { %3988 = vperm.xlu1 %8177, %v11809_v51  }
 0x59a   : > { %8187 = vset.pattern.permute.xlu0 %v8865_v30 }
 0x59b   : > { %4178 = vperm.xlu0 %8187, %v11797_v55  }
 0x59d   : > { %8179 = vset.pattern.permute.xlu1 %v8866_v59 }
 0x59e   : > { %4230 = vperm.xlu1 %8179, %v11802_v39  }
 0x59f   : > { %4182 = vperm.xlu0 %8187, %v11809_v51  }
 0x5a2   : > { %8180 = vset.pattern.permute.xlu1 %v8864_v44 }
 0x5a3   : > { %4186 = vperm.xlu0 %8187, %v11820_v6   ;;  %4094 = vperm.xlu1 %8180, %v11809_v51  }
 0x5a7   : > { %8190 = vset.pattern.permute.xlu0 %v8866_v59  ;;  %8181 = vset.pattern.permute.xlu1 %v8867_v28 }
 0x5a8   : > { %4238 = vperm.xlu0 %8190, %v11809_v51   ;;  %4287 = vperm.xlu1 %8181, %v11802_v39  }
 0x5ac   : > { %4242 = vperm.xlu0 %8190, %v11820_v6   ;;  %8182 = vset.pattern.permute.xlu1 %v8861_v49 }
 0x5ad   : > { %3992 = vperm.xlu1 %8182, %v11820_v6  }
 0x5b0   : > { %8191 = vset.pattern.permute.xlu0 %v8867_v28 }
 0x5b1   : > { %4291 = vperm.xlu0 %8191, %v11797_v55   ;;  %8185 = vset.pattern.permute.xlu1 %v8866_v59 }
 0x5b2   : > { %4234 = vperm.xlu1 %8185, %v11797_v55  }
 0x5b5   : > { %4295 = vperm.xlu0 %8191, %v11809_v51  }
 0x5b6   : > { %8186 = vset.pattern.permute.xlu1 %v8868_v26 }
 0x5b7   : > { %4344 = vperm.xlu1 %8186, %v11802_v39  }
 0x5b9   : > { %4299 = vperm.xlu0 %8191, %v11820_v6  }
 0x5bb   : > { %8188 = vset.pattern.permute.xlu1 %v8869_v14 }
 0x5bc   : > { %4401 = vperm.xlu1 %8188, %v11802_v39  }
 0x5bd   : > { %8192 = vset.pattern.permute.xlu0 %v8868_v26 }
 0x5be   : > { %4348 = vperm.xlu0 %8192, %v11797_v55  }
 0x5c0   : > { %8189 = vset.pattern.permute.xlu1 %v8863_v7 }
 0x5c1   : > { %4154 = vperm.xlu1 %8189, %v11820_v6  }
 0x5c2   : > { %4352 = vperm.xlu0 %8192, %v11809_v51  }
 0x5c6   : > { %4356 = vperm.xlu0 %8192, %v11820_v6  }
 0x5ca   : > { %8193 = vset.pattern.permute.xlu0 %v8869_v14 }
 0x5cb   : > { %4405 = vperm.xlu0 %8193, %v11797_v55  }
 0x5cf   : > { %4409 = vperm.xlu0 %8193, %v11809_v51  }
 0x5d3   : > { %4413 = vperm.xlu0 %8193, %v11820_v6  }
 0x5e7   : > { %v11871_v24 = vpop.permute.xlu0 %3833 }
 0x5e8   : > { %v3829_v40 = vpop.permute.xlu1 %3828 }
 0x5ed   : > { %v3856_v11 = vpop.permute.xlu1 %3855 }
 0x5f1   : > { %v11867_v3 = vpop.permute.xlu1 %3859 }
 0x5f6   : > { %v3839_v1 = vpop.permute.xlu1 %3838 }
 0x5fa   : > { %v3844_v59 = vpop.permute.xlu1 %3843 }
 0x641   : > { %v3683_v60 = vpop.f32.mrb[16].mxu1 }
 0x642   : > { %v3702_v34 = vmul.f32 %v3696_v22, %v3683_v60  ;;  %v3685_v62 = vpop.f32.mrb[17].mxu1 }
 0x643   : > { %v3703_v35 = vmul.f32 %v3696_v22, %v3685_v62 }
 0x644   : > { %v3714_v63 = vadd.f32 %v3708_v19, %v3702_v34 }
 0x645   : > { %v3715_v16 = vadd.f32 %v3708_v19, %v3703_v35  ;;  %v3689_v2 = vpop.f32.mrb[18].mxu1  ;;  %v3864_v19 = vpop.permute.xlu0 %3863 }
 0x646   : > { %v7208_v33 = vmul.f32 -1.442695, %v3714_v63  ;;  %v3704_v25 = vmul.f32 %v3700_v37, %v3689_v2  ;;  %v3691_v8 = vpop.f32.mrb[19].mxu1  ;;  %v3868_v2 = vpop.permute.xlu1 %3867 }
 0x647   : > { %v7209_v48 = vmul.f32 -1.442695, %v3715_v16  ;;  %v3705_v53 = vmul.f32 %v3700_v37, %v3691_v8 }
 0x648   : > { %8474 = vpow2.f32 %v7208_v33  ;;  %v3716_v41 = vadd.f32 %v3712_v4, %v3704_v25 }
 0x649   : > { %8476 = vpow2.f32 %v7209_v48  ;;  %v3717_v17 = vadd.f32 %v3712_v4, %v3705_v53 }
 0x64a   : > { %v7210_v27 = vmul.f32 -1.442695, %v3716_v41 }
 0x64b   : > { %v7211_v61 = vmul.f32 -1.442695, %v3717_v17 }
 0x64c   : > { %8478 = vpow2.f32 %v7210_v27 }
 0x64d   : > { %8480 = vpow2.f32 %v7211_v61 }
 0x652   : > { %v8475_v20 = vpop.eup %8474 }
 0x653   : > { %v8477_v57 = vpop.eup %8476  ;;  %v3730_v15 = vadd.f32 1.0, %v8475_v20  ;;  %v3934_v20 = vld [vmem:[%s14006_s7 + $0x6] sm:$0x3] }
 0x654   : > { %v3731_v23 = vadd.f32 1.0, %v8477_v57 }
 0x655   : > { %8482 = vrcp.f32 %v3730_v15 }
 0x656   : > { %v8479_v58 = vpop.eup %8478  ;;  %8484 = vrcp.f32 %v3731_v23  ;;  %v14332_v23 = vld [vmem:[#allocation10_spill] sm:$0xff] }
 0x657   : > { %v8481_v36 = vpop.eup %8480  ;;  %v3732_v32 = vadd.f32 1.0, %v8479_v58  ;;  %v14333_v58 = vsub.s32 0, %v14332_v23 }
 0x658   : > { %v3733_v43 = vadd.f32 1.0, %v8481_v36 }
 0x659   : > { %8486 = vrcp.f32 %v3732_v32  ;;  %v11883_v36 = vrot.slane %v3934_v20, %v14333_v58  ;;  %v4439_v58 = vld [vmem:[%s14004_s5 + $0x38] sm:$0xff] }
 0x65a   : > { %8488 = vrcp.f32 %v3733_v43 }
 0x65f   : > { %v8483_v5 = vpop.eup %8482 }
 0x660   : > { %v8485_v50 = vpop.eup %8484  ;;  %v3742_v47 = vmul.f32 %v8483_v5, %v3714_v63 }
 0x661   : > { %v3743_v9 = vmul.f32 %v8485_v50, %v3715_v16 }
 0x663   : > { %v8487_v38 = vpop.eup %8486 }
 0x664   : > { %v8489_v45 = vpop.eup %8488  ;;  %v3744_v52 = vmul.f32 %v8487_v38, %v3716_v41 }
 0x665   : > { %v3745_v54 = vmul.f32 %v8489_v45, %v3717_v17 }
 0x666   : > { %v3750_v46 = vpack.c.bf16 %v3744_v52, %v3742_v47 }
 0x667   : > { %v3751_v0 = vpack.c.bf16 %v3745_v54, %v3743_v9 }
 0x669   : > { %3769 = vmatprep.subr.bf16.mxu0 %v3751_v0 }
 0x66a   : > { %3770 = vmatpush1.bf16.msra.mxu0 %v3750_v46 }
 0x66d   : > { %7214 = vmatmul.mubr.msk.bf16.vlgmr.msra.gmra.mrb[12].mxu0 %vm3762_vm13, %v8360_v29 }
 0x66e   : > { %3811 = vmatprep.mubr.bf16.mxu0 %v14331_v18  ;;  %v14334_v18 = vsub.s32 1, %v14332_v23  ;;  %v4438_v23 = vld [vmem:[%s14004_s5 + $0x30] sm:$0xff] }
 0x675   : > { %7215 = vmatmul.mubr.msk.bf16.gmra.mrb[16].mxu0 %vm3762_vm13, %v8361_v13  ;;  %v11900_v13 = vrot.slane %v3934_v20, %v14334_v18  ;;  %v4454_v20 = vld [vmem:[%s14004_s5 + $0xb0] sm:$0xff] }
 0x676   : > { %v4458_v18 = vld [vmem:[%s14004_s5 + $0xd0] sm:$0xff] }
 0x740   : > { %v3803_v10 = vpop.f32.mrb[12].mxu0 }
 0x741   : > { %v3846_v12 = vmul.f32 %v3829_v40, %v3803_v10  ;;  %v3805_v42 = vpop.f32.mrb[13].mxu0 }
 0x742   : > { %v11869_v56 = vpop.f32.mrb[14].mxu0  ;;  %v3847_v62 = vmul.f32 %v3829_v40, %v3805_v42 }
 0x743   : > { %v3870_v49 = vadd.f32 %v3856_v11, %v3846_v12  ;;  %v3809_v31 = vpop.f32.mrb[15].mxu0  ;;  %v3848_v12 = vmul.f32 %v11871_v24, %v11869_v56  ;;  %v4449_v56 = vld [vmem:[%s14004_s5 + $0x88] sm:$0xff] }
 0x744   : > { %v3849_v7 = vmul.f32 %v11871_v24, %v3809_v31  ;;  %v11875_v33 = vadd.f32 %v3856_v11, %v3847_v62  ;;  %v4448_v31 = vld [vmem:[%s14004_s5 + $0x80] sm:$0xff]  ;;  %v4434_v62 = vld [vmem:[%s14004_s5 + $0x10] sm:$0xff] }
 0x745   : > { %v7216_v44 = vmul.f32 -1.442695, %v3870_v49  ;;  %v7719_v24 = vpack.c.bf16 %v4449_v56, %v4448_v31 }
 0x746   : > { %v3873_v30 = vadd.f32 %v11867_v3, %v3849_v7  ;;  %v7217_v53 = vmul.f32 -1.442695, %v11875_v33  ;;  %v4432_v7 = vld [vmem:[%s14004_s5] sm:$0xff] }
 0x747   : > { %8490 = vpow2.f32 %v7216_v44  ;;  %v4433_v44 = vld [vmem:[%s14004_s5 + $0x8] sm:$0xff]  ;;  %7720 = vmatprep.subr.bf16.mxu0 %v7719_v24 }
 0x748   : > { %v7219_v28 = vmul.f32 -1.442695, %v3873_v30  ;;  %v3813_v37 = vpop.f32.mrb[16].mxu0 }
 0x749   : > { %v3850_v22 = vmul.f32 %v3839_v1, %v3813_v37  ;;  %v3815_v60 = vpop.f32.mrb[17].mxu0  ;;  %v7721_v37 = vpack.c.bf16 %v4433_v44, %v4432_v7  ;;  %v4460_v44 = vld [vmem:[%s14004_s5 + $0xe0] sm:$0xff] }
 0x74a   : > { %8492 = vpow2.f32 %v7219_v28  ;;  %v3817_v34 = vpop.f32.mrb[18].mxu0  ;;  %v3851_v61 = vmul.f32 %v3839_v1, %v3815_v60 }
 0x74b   : > { %v3874_v35 = vadd.f32 %v3864_v19, %v3850_v22  ;;  %v3819_v63 = vpop.f32.mrb[19].mxu0  ;;  %v3852_v43 = vmul.f32 %v3844_v59, %v3817_v34  ;;  %7722 = vmatpush3.bf16.msra.mxu0 %v7721_v37  ;;  %v4450_v22 = vld [vmem:[%s14004_s5 + $0x90] sm:$0xff]  ;;  %v4444_v37 = vld [vmem:[%s14004_s5 + $0x60] sm:$0xff] }
 0x74c   : > { %v3853_v26 = vmul.f32 %v3844_v59, %v3819_v63  ;;  %v11885_v32 = vadd.f32 %v3864_v19, %v3851_v61  ;;  %v11933_v59 = vadd.f32 %v11867_v3, %v3848_v12  ;;  %v4451_v3 = vld [vmem:[%s14004_s5 + $0x98] sm:$0xff] }
 0x74d   : > { %v7220_v16 = vmul.f32 -1.442695, %v3874_v35  ;;  %v11891_v9 = vadd.f32 %v3868_v2, %v3852_v43  ;;  %v7723_v34 = vpack.c.bf16 %v4451_v3, %v4450_v22  ;;  %v7733_v43 = vpack.c.bf16 %v4439_v58, %v4438_v23  ;;  %v4443_v12 = vld [vmem:[%s14004_s5 + $0x58] sm:$0xff]  ;;  %v4445_v22 = vld [vmem:[%s14004_s5 + $0x68] sm:$0xff] }
 0x74e   : > { %v3877_v4 = vadd.f32 %v3868_v2, %v3853_v26  ;;  %v7221_v52 = vmul.f32 -1.442695, %v11885_v32  ;;  %v7218_v26 = vmul.f32 -1.442695, %v11933_v59 }
 0x74f   : > { %8494 = vpow2.f32 %v7220_v16  ;;  %v7222_v29 = vmul.f32 -1.442695, %v11891_v9  ;;  %7724 = vmatprep.subr.bf16.mxu0 %v7723_v34  ;;  %v12056_v34 = vpop.permute.xlu1 %4029 }
 0x750   : > { %v7223_v25 = vmul.f32 -1.442695, %v3877_v4 }
 0x751   : > { %v8491_v8 = vpop.eup %8490 }
 0x752   : > { %v3902_v48 = vadd.f32 1.0, %v8491_v8  ;;  %8496 = vpow2.f32 %v7223_v25  ;;  %v4452_v25 = vld [vmem:[%s14004_s5 + $0xa0] sm:$0xff]  ;;  %v4453_v8 = vld [vmem:[%s14004_s5 + $0xa8] sm:$0xff] }
 0x754   : > { %v8493_v41 = vpop.eup %8492  ;;  %8498 = vrcp.f32 %v3902_v48 }
 0x755   : > { %v3905_v17 = vadd.f32 1.0, %v8493_v41  ;;  %8500 = vpow2.f32 %v7217_v53  ;;  %v7727_v53 = vpack.c.bf16 %v4453_v8, %v4452_v25  ;;  %v4436_v41 = vld [vmem:[%s14004_s5 + $0x20] sm:$0xff]  ;;  %v12079_v25 = vpop.permute.xlu1 %4086 }
 0x757   : > { %8502 = vrcp.f32 %v3905_v17 }
 0x759   : > { %v8495_v27 = vpop.eup %8494 }
 0x75a   : > { %v3906_v57 = vadd.f32 1.0, %v8495_v27 }
 0x75c   : > { %v8497_v15 = vpop.eup %8496  ;;  %8504 = vrcp.f32 %v3906_v57  ;;  %v4455_v57 = vld [vmem:[%s14004_s5 + $0xb8] sm:$0xff] }
 0x75d   : > { %v3909_v5 = vadd.f32 1.0, %v8497_v15  ;;  %v7731_v15 = vpack.c.bf16 %v4455_v57, %v4454_v20 }
 0x75e   : > { %v8499_v50 = vpop.eup %8498 }
 0x75f   : > { %v3926_v38 = vmul.f32 %v8499_v50, %v3870_v49  ;;  %8506 = vrcp.f32 %v3909_v5  ;;  %v8501_v45 = vpop.eup %8500  ;;  %v11918_v49 = vpop.permute.xlu0 %3980  ;;  %v4456_v5 = vld [vmem:[%s14004_s5 + $0xc0] sm:$0xff]  ;;  %v4457_v50 = vld [vmem:[%s14004_s5 + $0xc8] sm:$0xff] }
 0x760   : > { %v3903_v46 = vadd.f32 1.0, %v8501_v45  ;;  %8508 = vpow2.f32 %v7221_v52  ;;  %v4440_v45 = vld [vmem:[%s14004_s5 + $0x40] sm:$0xff]  ;;  %v4441_v52 = vld [vmem:[%s14004_s5 + $0x48] sm:$0xff] }
 0x761   : > { %v11888_v47 = vmul.f32 %v11883_v36, %v3926_v38  ;;  %v8503_v54 = vpop.eup %8502  ;;  %v7735_v38 = vpack.c.bf16 %v4457_v50, %v4456_v5 }
 0x762   : > { %v3929_v0 = vmul.f32 %v8503_v54, %v3873_v30  ;;  %8510 = vrcp.f32 %v3903_v46  ;;  %v7737_v46 = vpack.c.bf16 %v4441_v52, %v4440_v45 }
 0x763   : > { %4003 = vrot.lane.b32.xlu0 %v11888_v47, %s8870_s21  ;;  %3954 = vrot.lane.b32.xlu1 %v11888_v47, %s8871_s29  ;;  %8512 = vpow2.f32 %v7222_v29  ;;  %v11955_v16 = vpop.permute.xlu0 %3984 }
 0x764   : > { %v11907_v11 = vmul.f32 %v11900_v13, %v3929_v0 }
 0x766   : > { %v8505_v14 = vpop.eup %8504 }
 0x767   : > { %4117 = vrot.lane.b32.xlu0 %v11888_v47, %s14178_s23  ;;  %4060 = vrot.lane.b32.xlu1 %v11888_v47, %s8872_s28  ;;  %v3930_v42 = vmul.f32 %v8505_v14, %v3874_v35  ;;  %v4435_v35 = vld [vmem:[%s14004_s5 + $0x18] sm:$0xff]  ;;  %v11981_v61 = vpop.permute.xlu0 %4037 }
 0x768   : > { %v7725_v2 = vpack.c.bf16 %v4435_v35, %v4434_v62  ;;  %v4459_v14 = vld [vmem:[%s14004_s5 + $0xd8] sm:$0xff]  ;;  %v4462_v62 = vld [vmem:[%s14004_s5 + $0xf0] sm:$0xff] }
 0x769   : > { %v8507_v40 = vpop.eup %8506  ;;  %v11936_v28 = vmul.f32 %v11883_v36, %v3930_v42  ;;  %v4446_v35 = vld [vmem:[%s14004_s5 + $0x70] sm:$0xff] }
 0x76a   : > { %v3933_v10 = vmul.f32 %v8507_v40, %v3877_v4  ;;  %v8509_v30 = vpop.eup %8508  ;;  %7726 = vmatpush3.bf16.msra.mxu0 %v7725_v2  ;;  %v7739_v40 = vpack.c.bf16 %v4459_v14, %v4458_v18 }
 0x76b   : > { %4205 = vrot.lane.b32.xlu1 %v11888_v47, %s14179_s16  ;;  %3964 = vrot.lane.b32.xlu0 %v11907_v11, %s8871_s29  ;;  %v3907_v19 = vadd.f32 1.0, %v8509_v30  ;;  %v12011_v54 = vpop.permute.xlu0 %4041 }
 0x76c   : > { %v11916_v1 = vmul.f32 %v11900_v13, %v3933_v10  ;;  %v8511_v60 = vpop.eup %8510  ;;  %7728 = vmatprep.subr.bf16.mxu0 %v7727_v53  ;;  %v4442_v10 = vld [vmem:[%s14004_s5 + $0x50] sm:$0xff] }
 0x76d   : > { %v8513_v63 = vpop.eup %8512  ;;  %v3927_v4 = vmul.f32 %v8511_v60, %v11875_v33  ;;  %8514 = vrcp.f32 %v3907_v19  ;;  %v4437_v33 = vld [vmem:[%s14004_s5 + $0x28] sm:$0xff]  ;;  %v7741_v31 = vpack.c.bf16 %v4443_v12, %v4442_v10  ;;  %v7745_v19 = vpack.c.bf16 %v4445_v22, %v4444_v37 }
 0x76e   : > { %v3908_v48 = vadd.f32 1.0, %v8513_v63  ;;  %8516 = vpow2.f32 %v7218_v26  ;;  %v7729_v17 = vpack.c.bf16 %v4437_v33, %v4436_v41  ;;  %v4447_v63 = vld [vmem:[%s14004_s5 + $0x78] sm:$0xff]  ;;  %v12092_v41 = vpop.permute.xlu1 %4033 }
 0x76f   : > { %4261 = vrot.lane.b32.xlu1 %v11888_v47, %s14335_s17  ;;  %4013 = vrot.lane.b32.xlu0 %v11907_v11, %s8870_s21  ;;  %v11979_v27 = vmul.f32 %v11900_v13, %v3927_v4  ;;  %v12034_v7 = vpop.permute.xlu0 %4142  ;;  %v7749_v4 = vpack.c.bf16 %v4447_v63, %v4446_v35 }
 0x770   : > { %7730 = vmatpush3.bf16.msra.mxu0 %v7729_v17  ;;  %8518 = vrcp.f32 %v3908_v48 }
 0x771   : > { %7732 = vmatprep.subr.bf16.mxu0 %v7731_v15 }
 0x772   : > { %v12103_v20 = vpop.permute.xlu1 %4174 }
 0x773   : > { %4318 = vrot.lane.b32.xlu1 %v11888_v47, %s8873_s24  ;;  %3958 = vrot.lane.b32.xlu0 %v11936_v28, %s8871_s29  ;;  %v12070_v26 = vpop.permute.xlu0 %4146 }
 0x774   : > { %7734 = vmatpush3.bf16.msra.mxu0 %v7733_v43 }
 0x775   : > { %7736 = vmatprep.subr.bf16.mxu0 %v7735_v38 }
 0x776   : > { %v12115_v57 = vpop.permute.xlu1 %3988 }
 0x777   : > { %4375 = vrot.lane.b32.xlu1 %v11888_v47, %s8874_s22  ;;  %4007 = vrot.lane.b32.xlu0 %v11936_v28, %s8870_s21  ;;  %v8515_v0 = vpop.eup %8514  ;;  %v12085_v8 = vpop.permute.xlu0 %4150 }
 0x778   : > { %v8517_v29 = vpop.eup %8516  ;;  %7738 = vmatpush3.bf16.msra.mxu0 %v7737_v46  ;;  %v3931_v42 = vmul.f32 %v8515_v0, %v11885_v32  ;;  %v4461_v32 = vld [vmem:[%s14004_s5 + $0xe8] sm:$0xff] }
 0x779   : > { %v3904_v24 = vadd.f32 1.0, %v8517_v29  ;;  %7740 = vmatprep.subr.bf16.mxu0 %v7739_v40  ;;  %v7743_v30 = vpack.c.bf16 %v4461_v32, %v4460_v44 }
 0x77a   : > { %v8519_v56 = vpop.eup %8518  ;;  %v12049_v3 = vmul.f32 %v11900_v13, %v3931_v42  ;;  %v12121_v15 = vpop.permute.xlu1 %4230 }
 0x77b   : > { %3962 = vrot.lane.b32.xlu1 %v11979_v27, %s8871_s29  ;;  %4121 = vrot.lane.b32.xlu0 %v11936_v28, %s14178_s23  ;;  %v3932_v60 = vmul.f32 %v8519_v56, %v11891_v9  ;;  %8520 = vrcp.f32 %v3904_v24  ;;  %v4463_v9 = vld [vmem:[%s14004_s5 + $0xf8] sm:$0xff]  ;;  %v12094_v33 = vpop.permute.xlu0 %4090 }
 0x77c   : > { %7742 = vmatpush3.bf16.msra.mxu0 %v7741_v31  ;;  %v7747_v13 = vpack.c.bf16 %v4463_v9, %v4462_v62 }
 0x77d   : > { %7744 = vmatprep.subr.bf16.mxu0 %v7743_v30  ;;  %v12073_v2 = vmul.f32 %v11883_v36, %v3932_v60  ;;  %v14126_v30 = vmov 37   ;;  %v14127_v60 = vmov 38  }
 0x77e   : > { %v12129_v58 = vpop.permute.xlu1 %4094  ;;  %8194 = vset.pattern.permute.xlu0 %v14126_v30  ;;  %8195 = vset.pattern.permute.xlu1 %v14126_v30 }
 0x77f   : > { %4011 = vrot.lane.b32.xlu1 %v11979_v27, %s8870_s21  ;;  %4209 = vrot.lane.b32.xlu0 %v11936_v28, %s14179_s16 }
 0x780   : > { %7746 = vmatpush3.bf16.msra.mxu0 %v7745_v19 }
 0x781   : > { %7748 = vmatprep.subr.bf16.mxu0 %v7747_v13 }
 0x782   : > { %v12137_v50 = vpop.permute.xlu1 %4287 }
 0x783   : > { %4068 = vrot.lane.b32.xlu1 %v11979_v27, %s8872_s28  ;;  %4322 = vrot.lane.b32.xlu0 %v11936_v28, %s8873_s24 }
 0x784   : > { %7750 = vmatpush3.bf16.msra.mxu0 %v7749_v4 }
 0x785   : > { %v8521_v48 = vpop.eup %8520 }
 0x786   : > { %v3928_v53 = vmul.f32 %v8521_v48, %v11933_v59  ;;  %v12109_v59 = vpop.permute.xlu0 %4098  ;;  %v12145_v45 = vpop.permute.xlu1 %3992 }
 0x787   : > { %4125 = vrot.lane.b32.xlu1 %v11979_v27, %s14178_s23  ;;  %4379 = vrot.lane.b32.xlu0 %v11936_v28, %s8874_s22 }
 0x788   : > { %v12101_v17 = vmul.f32 %v11883_v36, %v3928_v53 }
 0x78a   : > { %v12117_v36 = vpop.permute.xlu0 %4178  ;;  %v12151_v46 = vpop.permute.xlu1 %4234 }
 0x78b   : > { %4213 = vrot.lane.b32.xlu1 %v11979_v27, %s14179_s16  ;;  %4072 = vrot.lane.b32.xlu0 %v12049_v3, %s8872_s28 }
 0x78e   : > { %v12123_v23 = vpop.permute.xlu0 %4182  ;;  %v12159_v29 = vpop.permute.xlu1 %4344 }
 0x78f   : > { %4269 = vrot.lane.b32.xlu1 %v11979_v27, %s14335_s17  ;;  %4009 = vrot.lane.b32.xlu0 %v12073_v2, %s8870_s21 }
 0x792   : > { %v12131_v43 = vpop.permute.xlu0 %4186  ;;  %v12165_v14 = vpop.permute.xlu1 %4401 }
 0x793   : > { %4326 = vrot.lane.b32.xlu1 %v11979_v27, %s8873_s24  ;;  %4123 = vrot.lane.b32.xlu0 %v12073_v2, %s14178_s23  ;;  %14336 = vst [vmem:[#allocation19_spill] sm:$0xff] %v12131_v43 }
 0x796   : > { %v12135_v5 = vpop.permute.xlu0 %4238  ;;  %v12173_v10 = vpop.permute.xlu1 %4154 }
 0x797   : > { %4383 = vrot.lane.b32.xlu1 %v11979_v27, %s8874_s22  ;;  %4211 = vrot.lane.b32.xlu0 %v12073_v2, %s14179_s16  ;;  %14339 = vst [vmem:[#allocation33_spill] sm:$0xff] %v12173_v10 }
 0x79a   : > { %v12141_v38 = vpop.permute.xlu0 %4242 }
 0x79b   : > { %3956 = vrot.lane.b32.xlu1 %v12101_v17, %s8871_s29  ;;  %4324 = vrot.lane.b32.xlu0 %v12073_v2, %s8873_s24  ;;  %14337 = vst [vmem:[#allocation37_spill] sm:$0xff] %v12141_v38 }
 0x79e   : > { %v12149_v52 = vpop.permute.xlu0 %4291 }
 0x79f   : > { %4005 = vrot.lane.b32.xlu1 %v12101_v17, %s8870_s21  ;;  %4381 = vrot.lane.b32.xlu0 %v12073_v2, %s8874_s22 }
 0x7a2   : > { %v12155_v0 = vpop.permute.xlu0 %4295 }
 0x7a3   : > { %4062 = vrot.lane.b32.xlu1 %v12101_v17, %s8872_s28  ;;  %4550 = vperm.xlu0 %8194, %v11802_v39  }
 0x7a6   : > { %v12163_v18 = vpop.permute.xlu0 %4299 }
 0x7a7   : > { %4119 = vrot.lane.b32.xlu1 %v12101_v17, %s14178_s23  ;;  %14338 = vst [vmem:[#allocation31_spill] sm:$0xff] %v12163_v18  ;;  %8197 = vset.pattern.permute.xlu0 %v14127_v60 }
 0x7a8   : > { %4574 = vperm.xlu0 %8197, %v11797_v55  }
 0x7aa   : > { %v12169_v40 = vpop.permute.xlu0 %4348 }
 0x7ab   : > { %4207 = vrot.lane.b32.xlu1 %v12101_v17, %s14179_s16 }
 0x7ac   : > { %4578 = vperm.xlu0 %8197, %v11809_v51  }
 0x7ae   : > { %v12177_v12 = vpop.permute.xlu0 %4352 }
 0x7af   : > { %4263 = vrot.lane.b32.xlu1 %v12101_v17, %s14335_s17 }
 0x7b2   : > { %v12181_v56 = vpop.permute.xlu0 %4356 }
 0x7b3   : > { %4320 = vrot.lane.b32.xlu1 %v12101_v17, %s8873_s24  ;;  %14340 = vst [vmem:[#allocation35_spill] sm:$0xff] %v12181_v56 }
 0x7b6   : > { %v12187_v44 = vpop.permute.xlu0 %4405 }
 0x7b7   : > { %4377 = vrot.lane.b32.xlu1 %v12101_v17, %s8874_s22 }
 0x7ba   : > { %v12196_v22 = vpop.permute.xlu0 %4409 }
 0x7bb   : > { %4070 = vrot.lane.b32.xlu1 %v11907_v11, %s8872_s28 }
 0x7be   : > { %v12206_v62 = vpop.permute.xlu0 %4413 }
 0x7bf   : > { %4127 = vrot.lane.b32.xlu1 %v11907_v11, %s14178_s23  ;;  %14341 = vst [vmem:[#allocation55_spill] sm:$0xff] %v12206_v62 }
 0x7c3   : > { %4215 = vrot.lane.b32.xlu1 %v11907_v11, %s14179_s16 }
 0x7c7   : > { %4271 = vrot.lane.b32.xlu1 %v11907_v11, %s14335_s17 }
 0x7cb   : > { %4328 = vrot.lane.b32.xlu1 %v11907_v11, %s8873_s24 }
 0x7cf   : > { %4385 = vrot.lane.b32.xlu1 %v11907_v11, %s8874_s22 }
 0x7d3   : > { %4064 = vrot.lane.b32.xlu1 %v11936_v28, %s8872_s28 }
 0x7d5   : > { %v3955_v42 = vpop.permute.xlu1 %3954  ;;  %v4004_v35 = vpop.permute.xlu0 %4003 }
 0x7d7   : > { %4265 = vrot.lane.b32.xlu1 %v11936_v28, %s14335_s17 }
 0x7d9   : > { %v4061_v31 = vpop.permute.xlu1 %4060 }
 0x7db   : > { %3966 = vrot.lane.b32.xlu1 %v12049_v3, %s8871_s29 }
 0x7dd   : > { %v4206_v24 = vpop.permute.xlu1 %4205 }
 0x7df   : > { %4015 = vrot.lane.b32.xlu1 %v12049_v3, %s8870_s21 }
 0x7e1   : > { %v4262_v32 = vpop.permute.xlu1 %4261 }
 0x7e3   : > { %4129 = vrot.lane.b32.xlu1 %v12049_v3, %s14178_s23 }
 0x7e5   : > { %v12194_v37 = vpop.permute.xlu1 %4318 }
 0x7e7   : > { %4217 = vrot.lane.b32.xlu1 %v12049_v3, %s14179_s16 }
 0x7e9   : > { %v12201_v19 = vpop.permute.xlu1 %4375 }
 0x7eb   : > { %4273 = vrot.lane.b32.xlu1 %v12049_v3, %s14335_s17 }
 0x7ed   : > { %v3963_v9 = vpop.permute.xlu1 %3962 }
 0x7ee   : > { %v3971_v53 = vsel %vm3970_vm15, %v3955_v42, %v3963_v9  ;;  %v3975_v30 = vsel %vm3970_vm15, %v3963_v9, %v3955_v42 }
 0x7ef   : > { %4330 = vrot.lane.b32.xlu1 %v12049_v3, %s8873_s24  ;;  %v3996_v38 = vmul.f32 %v11918_v49, %v3971_v53 }
 0x7f1   : > { %v4012_v13 = vpop.permute.xlu1 %4011 }
 0x7f2   : > { %v4020_v63 = vsel %vm4019_vm14, %v4004_v35, %v4012_v13  ;;  %v4024_v4 = vsel %vm4019_vm14, %v4012_v13, %v4004_v35  ;;  %v4118_v13 = vpop.permute.xlu0 %4117  ;;  %v3995_v35 = vmul.f32 %v11918_v49, %v3975_v30 }
 0x7f3   : > { %4387 = vrot.lane.b32.xlu1 %v12049_v3, %s8874_s22  ;;  %v4044_v56 = vmul.f32 %v12056_v34, %v4024_v4  ;;  %v4045_v18 = vmul.f32 %v12056_v34, %v4020_v63 }
 0x7f5   : > { %v4069_v48 = vpop.permute.xlu1 %4068  ;;  %v4052_v34 = vadd.f32 %v4044_v56, %v3995_v35  ;;  %v4053_v63 = vadd.f32 %v4045_v18, %v3996_v38  ;;  %v4190_v18 = vmul.f32 %v12103_v20, %v11979_v27 }
 0x7f6   : > { %v4077_v60 = vsel %vm4076_vm0, %v4061_v31, %v4069_v48  ;;  %v4081_v62 = vsel %vm4076_vm0, %v4069_v48, %v4061_v31 }
 0x7f7   : > { %3960 = vrot.lane.b32.xlu1 %v12073_v2, %s8871_s29  ;;  %v4101_v42 = vmul.f32 %v12079_v25, %v4081_v62  ;;  %v4102_v9 = vmul.f32 %v12079_v25, %v4077_v60 }
 0x7f9   : > { %v4126_v43 = vpop.permute.xlu1 %4125  ;;  %v4109_v49 = vadd.f32 %v4101_v42, %v4052_v34  ;;  %v4110_v30 = vadd.f32 %v4102_v9, %v4053_v63 }
 0x7fa   : > { %v4133_v31 = vsel %vm905_vm6, %v4118_v13, %v4126_v43  ;;  %v4137_v4 = vsel %vm905_vm6, %v4126_v43, %v4118_v13 }
 0x7fb   : > { %v4157_v48 = vmul.f32 %v12034_v7, %v4137_v4  ;;  %v4158_v10 = vmul.f32 %v12034_v7, %v4133_v31  ;;  %4066 = vrot.lane.b32.xlu1 %v12073_v2, %s8872_s28  ;;  %v4189_v7 = vmul.f32 %v12103_v20, %v11888_v47 }
 0x7fd   : > { %v4214_v62 = vpop.permute.xlu1 %4213  ;;  %v4165_v25 = vadd.f32 %v4157_v48, %v4109_v49  ;;  %v4166_v60 = vadd.f32 %v4158_v10, %v4110_v30 }
 0x7fe   : > { %v4221_v43 = vsel %vm1244_vm7, %v4206_v24, %v4214_v62  ;;  %v4225_v38 = vsel %vm1244_vm7, %v4214_v62, %v4206_v24 }
 0x7ff   : > { %4267 = vrot.lane.b32.xlu1 %v12073_v2, %s14335_s17  ;;  %v4197_v13 = vadd.f32 %v4189_v7, %v4165_v25  ;;  %v4198_v35 = vadd.f32 %v4190_v18, %v4166_v60  ;;  %v4245_v42 = vmul.f32 %v12121_v15, %v4221_v43  ;;  %v4246_v24 = vmul.f32 %v12121_v15, %v4225_v38 }
 0x801   : > { %v4270_v56 = vpop.permute.xlu1 %4269  ;;  %v4253_v31 = vadd.f32 %v4245_v42, %v4197_v13  ;;  %v4254_v15 = vadd.f32 %v4246_v24, %v4198_v35  ;;  %v14342_v35 = vmov 38  }
 0x802   : > { %v4278_v10 = vsel %vm4277_vm1, %v4262_v32, %v4270_v56  ;;  %v4282_v53 = vsel %vm4277_vm1, %v4270_v56, %v4262_v32  ;;  %v3965_v56 = vpop.permute.xlu0 %3964 }
 0x803   : > { %3968 = vrot.lane.b32.xlu1 %v11916_v1, %s8871_s29  ;;  %v4302_v47 = vmul.f32 %v12137_v50, %v4278_v10  ;;  %v4303_v27 = vmul.f32 %v12137_v50, %v4282_v53  ;;  %s8889_s29 = smov 7  }
 0x805   : > { %v4327_v20 = vpop.permute.xlu1 %4326  ;;  %v4310_v50 = vadd.f32 %v4302_v47, %v4253_v31  ;;  %v4311_v63 = vadd.f32 %v4303_v27, %v4254_v15  ;;  %v14343_v27 = vmov 37  }
 0x806   : > { %v4335_v32 = vsel %vm4334_vm2, %v12194_v37, %v4327_v20  ;;  %v4339_v9 = vsel %vm4334_vm2, %v4327_v20, %v12194_v37  ;;  %v4014_v13 = vpop.permute.xlu0 %4013 }
 0x807   : > { %v4359_v4 = vmul.f32 %v12159_v29, %v4335_v32  ;;  %v4360_v34 = vmul.f32 %v12159_v29, %v4339_v9  ;;  %4017 = vrot.lane.b32.xlu1 %v11916_v1, %s8870_s21  ;;  %s8888_s21 = smov 6  }
 0x809   : > { %v4384_v48 = vpop.permute.xlu1 %4383  ;;  %v4367_v30 = vadd.f32 %v4359_v4, %v4310_v50  ;;  %v4368_v29 = vadd.f32 %v4360_v34, %v4311_v63 }
 0x80a   : > { %v4392_v49 = vsel %vm4391_vm3, %v12201_v19, %v4384_v48  ;;  %v4396_v37 = vsel %vm4391_vm3, %v4384_v48, %v12201_v19  ;;  %v12305_v20 = vpop.permute.xlu0 %3958 }
 0x80b   : > { %v4416_v62 = vmul.f32 %v12165_v14, %v4392_v49  ;;  %v4417_v25 = vmul.f32 %v12165_v14, %v4396_v37  ;;  %4074 = vrot.lane.b32.xlu1 %v11916_v1, %s8872_s28  ;;  %s8890_s28 = smov 5  }
 0x80d   : > { %v4424_v60 = vadd.f32 %v4416_v62, %v4367_v30  ;;  %v3957_v43 = vpop.permute.xlu1 %3956  ;;  %v4425_v38 = vadd.f32 %v4417_v25, %v4368_v29 }
 0x80e   : > { %v4008_v30 = vpop.permute.xlu0 %4007 }
 0x80f   : > { %4528 = vmatprep.mubr.f32.mxu0 %v4425_v38  ;;  %4131 = vrot.lane.b32.xlu1 %v11916_v1, %s14178_s23 }
 0x810   : > { %4529 = vmatmul.mubr.f32.vlgmr.msra.gmra.mrb[20].mxu0 %v4424_v60 }
 0x811   : > { %v4006_v7 = vpop.permute.xlu1 %4005 }
 0x812   : > { %v4021_v24 = vsel %vm4019_vm14, %v4006_v7, %v4014_v13  ;;  %v4025_v47 = vsel %vm4019_vm14, %v4014_v13, %v4006_v7 }
 0x813   : > { %4219 = vrot.lane.b32.xlu1 %v11916_v1, %s14179_s16  ;;  %v4046_v15 = vmul.f32 %v12092_v41, %v4025_v47  ;;  %v4047_v4 = vmul.f32 %v12092_v41, %v4021_v24 }
 0x815   : > { %v4063_v19 = vpop.permute.xlu1 %4062 }
 0x817   : > { %4275 = vrot.lane.b32.xlu1 %v11916_v1, %s14335_s17  ;;  %s8891_s17 = smov 123  }
 0x819   : > { %v4120_v14 = vpop.permute.xlu1 %4119 }
 0x81b   : > { %4332 = vrot.lane.b32.xlu1 %v11916_v1, %s8873_s24  ;;  %s8892_s24 = smov 121  }
 0x81d   : > { %v4208_v18 = vpop.permute.xlu1 %4207 }
 0x81f   : > { %4389 = vrot.lane.b32.xlu1 %v11916_v1, %s8874_s22  ;;  %s14363_s22 = smov 122  }
 0x821   : > { %v4264_v10 = vpop.permute.xlu1 %4263 }
 0x823   : > { %4554 = vperm.xlu1 %8195, %v11797_v55   ;;  %v3972_v55 = vsel %vm3970_vm15, %v3957_v43, %v3965_v56 }
 0x825   : > { %v4321_v53 = vpop.permute.xlu1 %4320 }
 0x827   : > { %8196 = vset.pattern.permute.xlu1 %v14342_v35 }
 0x828   : > { %4570 = vperm.xlu1 %8196, %v11802_v39   ;;  %v3976_v39 = vsel %vm3970_vm15, %v3965_v56, %v3957_v43  ;;  %v4122_v56 = vpop.permute.xlu0 %4121 }
 0x829   : > { %v4378_v42 = vpop.permute.xlu1 %4377  ;;  %v3997_v34 = vmul.f32 %v11955_v16, %v3976_v39 }
 0x82b   : > { %v4054_v62 = vadd.f32 %v4046_v15, %v3997_v34 }
 0x82c   : > { %8198 = vset.pattern.permute.xlu1 %v14343_v27 }
 0x82d   : > { %v4071_v32 = vpop.permute.xlu1 %4070  ;;  %4558 = vperm.xlu1 %8198, %v11809_v51   ;;  %v3998_v51 = vmul.f32 %v11955_v16, %v3972_v55 }
 0x82e   : > { %v4078_v9 = vsel %vm4076_vm0, %v4063_v19, %v4071_v32  ;;  %v4082_v31 = vsel %vm4076_vm0, %v4071_v32, %v4063_v19 }
 0x82f   : > { %v4103_v50 = vmul.f32 %v12094_v33, %v4082_v31  ;;  %v4104_v63 = vmul.f32 %v12094_v33, %v4078_v9  ;;  %v4055_v41 = vadd.f32 %v4047_v4, %v3998_v51  ;;  %v4210_v9 = vpop.permute.xlu0 %4209 }
 0x831   : > { %v4128_v48 = vpop.permute.xlu1 %4127  ;;  %4562 = vperm.xlu1 %8198, %v11820_v6   ;;  %v4111_v29 = vadd.f32 %v4103_v50, %v4054_v62  ;;  %v4112_v60 = vadd.f32 %v4104_v63, %v4055_v41  ;;  %v8701_v6 = vld [vmem:[%s14000_s1 + $0x18] sm:$0xff] }
 0x832   : > { %v4134_v49 = vsel %vm905_vm6, %v4120_v14, %v4128_v48  ;;  %v4138_v37 = vsel %vm905_vm6, %v4128_v48, %v4120_v14  ;;  %v4192_v14 = vmul.f32 %v12117_v36, %v11907_v11 }
 0x833   : > { %v4159_v25 = vmul.f32 %v12070_v26, %v4138_v37  ;;  %v4160_v16 = vmul.f32 %v12070_v26, %v4134_v49  ;;  %v4191_v26 = vmul.f32 %v12117_v36, %v12101_v17  ;;  %v4323_v37 = vpop.permute.xlu0 %4322 }
 0x835   : > { %v4216_v43 = vpop.permute.xlu1 %4215  ;;  %8199 = vset.pattern.permute.xlu1 %v14342_v35  ;;  %v4167_v33 = vadd.f32 %v4159_v25, %v4111_v29  ;;  %v4168_v38 = vadd.f32 %v4160_v16, %v4112_v60 }
 0x836   : > { %4582 = vperm.xlu1 %8199, %v8701_v6   ;;  %v4222_v7 = vsel %vm1244_vm7, %v4208_v18, %v4216_v43  ;;  %v4226_v19 = vsel %vm1244_vm7, %v4216_v43, %v4208_v18 }
 0x837   : > { %v4199_v47 = vadd.f32 %v4191_v26, %v4167_v33  ;;  %v4200_v27 = vadd.f32 %v4192_v14, %v4168_v38  ;;  %v4247_v32 = vmul.f32 %v12151_v46, %v4222_v7  ;;  %v4248_v18 = vmul.f32 %v12151_v46, %v4226_v19  ;;  %v4380_v16 = vpop.permute.xlu0 %4379 }
 0x839   : > { %v4272_v13 = vpop.permute.xlu1 %4271  ;;  %v4255_v31 = vadd.f32 %v4247_v32, %v4199_v47 }
 0x83a   : > { %v4279_v35 = vsel %vm4277_vm1, %v4264_v10, %v4272_v13  ;;  %v4283_v24 = vsel %vm4277_vm1, %v4272_v13, %v4264_v10  ;;  %v4256_v10 = vadd.f32 %v4248_v18, %v4200_v27 }
 0x83b   : > { %v4304_v55 = vmul.f32 %v12149_v52, %v4279_v35  ;;  %v4305_v17 = vmul.f32 %v12149_v52, %v4283_v24 }
 0x83d   : > { %v4329_v39 = vpop.permute.xlu1 %4328  ;;  %v4312_v34 = vadd.f32 %v4304_v55, %v4255_v31  ;;  %v4313_v46 = vadd.f32 %v4305_v17, %v4256_v10  ;;  %v4193_v31 = vmul.f32 %v12123_v23, %v11936_v28 }
 0x83e   : > { %v4336_v11 = vsel %vm4334_vm2, %v4321_v53, %v4329_v39  ;;  %v4340_v36 = vsel %vm4334_vm2, %v4329_v39, %v4321_v53 }
 0x83f   : > { %v4361_v15 = vmul.f32 %v12169_v40, %v4336_v11  ;;  %v4362_v4 = vmul.f32 %v12169_v40, %v4340_v36 }
 0x841   : > { %v4386_v51 = vpop.permute.xlu1 %4385  ;;  %v4370_v48 = vadd.f32 %v4362_v4, %v4313_v46  ;;  %v4369_v49 = vadd.f32 %v4361_v15, %v4312_v34 }
 0x842   : > { %v4393_v52 = vsel %vm4391_vm3, %v4378_v42, %v4386_v51  ;;  %v4397_v50 = vsel %vm4391_vm3, %v4386_v51, %v4378_v42 }
 0x843   : > { %v4418_v63 = vmul.f32 %v12187_v44, %v4393_v52  ;;  %v4419_v53 = vmul.f32 %v12187_v44, %v4397_v50  ;;  %v4073_v44 = vpop.permute.xlu0 %4072 }
 0x845   : > { %v4065_v62 = vpop.permute.xlu1 %4064  ;;  %v4427_v41 = vadd.f32 %v4419_v53, %v4370_v48  ;;  %v4426_v25 = vadd.f32 %v4418_v63, %v4369_v49 }
 0x846   : > { %v4079_v6 = vsel %vm4076_vm0, %v4065_v62, %v4073_v44  ;;  %v4083_v33 = vsel %vm4076_vm0, %v4073_v44, %v4065_v62 }
 0x847   : > { %4533 = vmatprep.mubr.f32.mxu0 %v4427_v41  ;;  %v4105_v13 = vmul.f32 %v12129_v58, %v4083_v33  ;;  %v4106_v35 = vmul.f32 %v12129_v58, %v4079_v6  ;;  %v4010_v33 = vpop.permute.xlu0 %4009 }
 0x848   : > { %4534 = vmatmul.mubr.f32.gmra.mrb[22].mxu0 %v4426_v25 }
 0x849   : > { %v4266_v40 = vpop.permute.xlu1 %4265 }
 0x84d   : > { %v3967_v29 = vpop.permute.xlu1 %3966 }
 0x84e   : > { %v3973_v60 = vsel %vm3970_vm15, %v12305_v20, %v3967_v29  ;;  %v3977_v42 = vsel %vm3970_vm15, %v3967_v29, %v12305_v20 }
 0x84f   : > { %v3999_v19 = vmul.f32 %v12115_v57, %v3977_v42  ;;  %v4000_v26 = vmul.f32 %v12115_v57, %v3973_v60 }
 0x851   : > { %v4016_v43 = vpop.permute.xlu1 %4015 }
 0x852   : > { %v4022_v38 = vsel %vm4019_vm14, %v4008_v30, %v4016_v43  ;;  %v4026_v7 = vsel %vm4019_vm14, %v4016_v43, %v4008_v30 }
 0x853   : > { %v4048_v20 = vmul.f32 %v11981_v61, %v4026_v7  ;;  %v4049_v14 = vmul.f32 %v11981_v61, %v4022_v38 }
 0x855   : > { %v4056_v24 = vadd.f32 %v4048_v20, %v3999_v19  ;;  %v4057_v47 = vadd.f32 %v4049_v14, %v4000_v26  ;;  %v4130_v27 = vpop.permute.xlu1 %4129 }
 0x856   : > { %v4135_v32 = vsel %vm905_vm6, %v4122_v56, %v4130_v27  ;;  %v4139_v30 = vsel %vm905_vm6, %v4130_v27, %v4122_v56  ;;  %v4194_v56 = vmul.f32 %v12123_v23, %v12049_v3 }
 0x857   : > { %v4113_v18 = vadd.f32 %v4105_v13, %v4056_v24  ;;  %v4114_v55 = vadd.f32 %v4106_v35, %v4057_v47  ;;  %v4161_v57 = vmul.f32 %v12085_v8, %v4139_v30  ;;  %v4162_v17 = vmul.f32 %v12085_v8, %v4135_v32  ;;  %v4124_v13 = vpop.permute.xlu0 %4123 }
 0x859   : > { %v4218_v61 = vpop.permute.xlu1 %4217  ;;  %v4169_v39 = vadd.f32 %v4161_v57, %v4113_v18  ;;  %v4170_v11 = vadd.f32 %v4162_v17, %v4114_v55 }
 0x85a   : > { %v4223_v58 = vsel %vm1244_vm7, %v4210_v9, %v4218_v61  ;;  %v4227_v36 = vsel %vm1244_vm7, %v4218_v61, %v4210_v9 }
 0x85b   : > { %v4201_v4 = vadd.f32 %v4193_v31, %v4169_v39  ;;  %v4202_v34 = vadd.f32 %v4194_v56, %v4170_v11  ;;  %v4249_v46 = vmul.f32 %v12135_v5, %v4223_v58  ;;  %v4250_v51 = vmul.f32 %v12135_v5, %v4227_v36  ;;  %v14344_v39 = vld [vmem:[#allocation33_spill] sm:$0xff]  ;;  %v4212_v58 = vpop.permute.xlu0 %4211 }
 0x85d   : > { %v4274_v10 = vpop.permute.xlu1 %4273  ;;  %v4257_v50 = vadd.f32 %v4249_v46, %v4201_v4  ;;  %v4258_v63 = vadd.f32 %v4250_v51, %v4202_v34 }
 0x85e   : > { %v4280_v15 = vsel %vm4277_vm1, %v4266_v40, %v4274_v10  ;;  %v4284_v8 = vsel %vm4277_vm1, %v4274_v10, %v4266_v40 }
 0x85f   : > { %v4306_v9 = vmul.f32 %v12155_v0, %v4280_v15  ;;  %v4307_v28 = vmul.f32 %v12155_v0, %v4284_v8  ;;  %v14345_v8 = vld [vmem:[#allocation19_spill] sm:$0xff] }
 0x860   : > { %v4195_v4 = vmul.f32 %v14345_v8, %v12073_v2  ;;  %v4196_v34 = vmul.f32 %v14345_v8, %v11916_v1 }
 0x861   : > { %v4331_v52 = vpop.permute.xlu1 %4330  ;;  %v4314_v49 = vadd.f32 %v4306_v9, %v4257_v50  ;;  %v4315_v62 = vadd.f32 %v4307_v28, %v4258_v63  ;;  %v4325_v28 = vpop.permute.xlu0 %4324 }
 0x862   : > { %v4337_v3 = vsel %vm4334_vm2, %v4323_v37, %v4331_v52  ;;  %v4341_v23 = vsel %vm4334_vm2, %v4331_v52, %v4323_v37 }
 0x863   : > { %v4363_v53 = vmul.f32 %v12177_v12, %v4337_v3  ;;  %v4364_v48 = vmul.f32 %v12177_v12, %v4341_v23  ;;  %v14346_v23 = vld [vmem:[#allocation37_spill] sm:$0xff] }
 0x865   : > { %v4388_v5 = vpop.permute.xlu1 %4387  ;;  %v4372_v37 = vadd.f32 %v4364_v48, %v4315_v62  ;;  %v4371_v29 = vadd.f32 %v4363_v53, %v4314_v49  ;;  %v14347_v53 = vld [vmem:[#allocation31_spill] sm:$0xff] }
 0x866   : > { %v4394_v41 = vsel %vm4391_vm3, %v4380_v16, %v4388_v5  ;;  %v4398_v0 = vsel %vm4391_vm3, %v4388_v5, %v4380_v16 }
 0x867   : > { %v4420_v25 = vmul.f32 %v12196_v22, %v4394_v41  ;;  %v4421_v40 = vmul.f32 %v12196_v22, %v4398_v0  ;;  %v14348_v0 = vld [vmem:[#allocation35_spill] sm:$0xff] }
 0x869   : > { %v3961_v60 = vpop.permute.xlu1 %3960  ;;  %v4429_v42 = vadd.f32 %v4421_v40, %v4372_v37  ;;  %v4428_v44 = vadd.f32 %v4420_v25, %v4371_v29  ;;  %v4382_v37 = vpop.permute.xlu0 %4381 }
 0x86b   : > { %4538 = vmatprep.mubr.f32.mxu0 %v4429_v42 }
 0x86c   : > { %4539 = vmatmul.mubr.f32.gmra.mrb[24].mxu0 %v4428_v44 }
 0x86d   : > { %v4067_v12 = vpop.permute.xlu1 %4066 }
 0x871   : > { %v4268_v43 = vpop.permute.xlu1 %4267 }
 0x875   : > { %v3969_v6 = vpop.permute.xlu1 %3968 }
 0x876   : > { %v3974_v22 = vsel %vm3970_vm15, %v3961_v60, %v3969_v6  ;;  %v3978_v26 = vsel %vm3970_vm15, %v3969_v6, %v3961_v60 }
 0x877   : > { %v4001_v47 = vmul.f32 %v12145_v45, %v3978_v26  ;;  %v4002_v27 = vmul.f32 %v12145_v45, %v3974_v22  ;;  %v8877_v22 = vmov 39   ;;  %v12470_v26 = vld [vmem:[%s14000_s1 + $0x8] sm:$0xff] }
 0x878   : > { %8201 = vset.pattern.permute.xlu1 %v8877_v22  ;;  %8200 = vset.pattern.permute.xlu0 %v8877_v22 }
 0x879   : > { %v4018_v38 = vpop.permute.xlu1 %4017  ;;  %4740 = vperm.xlu1 %8201, %v12470_v26  }
 0x87a   : > { %v4023_v7 = vsel %vm4019_vm14, %v4010_v33, %v4018_v38  ;;  %v4027_v16 = vsel %vm4019_vm14, %v4018_v38, %v4010_v33 }
 0x87b   : > { %v4050_v35 = vmul.f32 %v12011_v54, %v4027_v16  ;;  %v4051_v24 = vmul.f32 %v12011_v54, %v4023_v7 }
 0x87d   : > { %v4075_v19 = vpop.permute.xlu1 %4074  ;;  %v4058_v17 = vadd.f32 %v4050_v35, %v4001_v47  ;;  %v4059_v61 = vadd.f32 %v4051_v24, %v4002_v27  ;;  %8202 = vset.pattern.permute.xlu1 %v8878_v21  ;;  %v12496_v35 = vld [vmem:[%s14000_s1 + $0x28] sm:$0xff]  ;;  %v12502_v24 = vld [vmem:[%s14000_s1 + $0x20] sm:$0xff]  ;;  %v12509_v47 = vld [vmem:[%s14000_s1 + $0x30] sm:$0xff] }
 0x87e   : > { %v4080_v20 = vsel %vm4076_vm0, %v4067_v12, %v4075_v19  ;;  %v4084_v14 = vsel %vm4076_vm0, %v4075_v19, %v4067_v12  ;;  %v12516_v27 = vld [vmem:[%s14000_s1 + $0x38] sm:$0xff] }
 0x87f   : > { %v4107_v32 = vmul.f32 %v12109_v59, %v4084_v14  ;;  %v4108_v30 = vmul.f32 %v12109_v59, %v4080_v20  ;;  %v12476_v20 = vld [vmem:[%s14000_s1] sm:$0xff]  ;;  %v12483_v14 = vld [vmem:[%s14000_s1 + $0x10] sm:$0xff] }
 0x880   : > { %4782 = vperm.xlu1 %8202, %v12476_v20   ;;  %4735 = vperm.xlu0 %8200, %v12476_v20  }
 0x881   : > { %v4132_v18 = vpop.permute.xlu1 %4131  ;;  %v4115_v36 = vadd.f32 %v4107_v32, %v4058_v17  ;;  %v4116_v45 = vadd.f32 %v4108_v30, %v4059_v61  ;;  %v8881_v17 = vmov 43   ;;  %v8882_v61 = vmov 44  }
 0x882   : > { %v4136_v55 = vsel %vm905_vm6, %v4124_v13, %v4132_v18  ;;  %v4140_v57 = vsel %vm905_vm6, %v4132_v18, %v4124_v13  ;;  %v12489_v13 = vld [vmem:[%s14000_s1 + $0x18] sm:$0xff]  ;;  %vm8914_vm6 = vmmov 0  }
 0x883   : > { %v4163_v11 = vmul.f32 %v14344_v39, %v4140_v57  ;;  %v4164_v54 = vmul.f32 %v14344_v39, %v4136_v55  ;;  %v8879_v55 = vmov 42   ;;  %v8880_v57 = vmov 41  }
 0x884   : > { %8203 = vset.pattern.permute.xlu1 %v8877_v22  ;;  %4755 = vperm.xlu0 %8200, %v12502_v24  }
 0x885   : > { %v4220_v31 = vpop.permute.xlu1 %4219  ;;  %v4171_v56 = vadd.f32 %v4163_v11, %v4115_v36  ;;  %v4172_v10 = vadd.f32 %v4164_v54, %v4116_v45  ;;  %4745 = vperm.xlu1 %8203, %v12483_v14   ;;  %v8883_v11 = vmov 45   ;;  %v4551_v54 = vpop.permute.xlu0 %4550 }
 0x886   : > { %v4224_v59 = vsel %vm1244_vm7, %v4212_v58, %v4220_v31  ;;  %v4228_v15 = vsel %vm1244_vm7, %v4220_v31, %v4212_v58  ;;  %v8362_v58 = vld [vmem:[%s14001_s2 + $0xc] ss:$28 sps:$4 sm:$0xff]  }
 0x887   : > { %v4203_v52 = vadd.f32 %v4195_v4, %v4171_v56  ;;  %v4204_v3 = vadd.f32 %v4196_v34, %v4172_v10  ;;  %v4251_v50 = vmul.f32 %v14346_v23, %v4224_v59  ;;  %v4252_v63 = vmul.f32 %v14346_v23, %v4228_v15 }
 0x888   : > { %8205 = vset.pattern.permute.xlu0 %v8878_v21  ;;  %v8884_v15 = vmov 46  }
 0x889   : > { %v4276_v46 = vpop.permute.xlu1 %4275  ;;  %v4259_v5 = vadd.f32 %v4251_v50, %v4203_v52  ;;  %v4260_v41 = vadd.f32 %v4252_v63, %v4204_v3  ;;  %4750 = vperm.xlu1 %8203, %v12489_v13   ;;  %4786 = vperm.xlu0 %8205, %v12470_v26   ;;  %v4575_v4 = vpop.permute.xlu0 %4574  ;;  %v8885_v52 = vmov 48   ;;  %v8886_v50 = vmov 47  }
 0x88a   : > { %v4281_v51 = vsel %vm4277_vm1, %v4268_v43, %v4276_v46  ;;  %v4285_v9 = vsel %vm4277_vm1, %v4276_v46, %v4268_v43  ;;  %v14349_v43 = vld [vmem:[#allocation55_spill] sm:$0xff] }
 0x88b   : > { %v4308_v48 = vmul.f32 %v14347_v53, %v4281_v51  ;;  %v4309_v2 = vmul.f32 %v14347_v53, %v4285_v9 }
 0x88d   : > { %v4333_v49 = vpop.permute.xlu1 %4332  ;;  %v4316_v29 = vadd.f32 %v4308_v48, %v4259_v5  ;;  %v4317_v60 = vadd.f32 %v4309_v2, %v4260_v41  ;;  %8204 = vset.pattern.permute.xlu1 %v8878_v21  ;;  %4790 = vperm.xlu0 %8205, %v12483_v14   ;;  %v8887_v41 = vmov 49  }
 0x88e   : > { %v4338_v1 = vsel %vm4334_vm2, %v4325_v28, %v4333_v49  ;;  %v4342_v62 = vsel %vm4334_vm2, %v4333_v49, %v4325_v28  ;;  %4794 = vperm.xlu1 %8204, %v12489_v13  }
 0x88f   : > { %v4365_v25 = vmul.f32 %v14348_v0, %v4338_v1  ;;  %v4366_v40 = vmul.f32 %v14348_v0, %v4342_v62 }
 0x891   : > { %v4390_v42 = vpop.permute.xlu1 %4389  ;;  %v4374_v38 = vadd.f32 %v4366_v40, %v4317_v60  ;;  %v4373_v7 = vadd.f32 %v4365_v25, %v4316_v29  ;;  %4802 = vperm.xlu0 %8205, %v12496_v35   ;;  %v4579_v40 = vpop.permute.xlu0 %4578 }
 0x892   : > { %v4395_v44 = vsel %vm4391_vm3, %v4382_v37, %v4390_v42  ;;  %v4399_v12 = vsel %vm4391_vm3, %v4390_v42, %v4382_v37  ;;  %8206 = vset.pattern.permute.xlu1 %v8877_v22 }
 0x893   : > { %v4422_v6 = vmul.f32 %v14349_v43, %v4395_v44  ;;  %v4423_v33 = vmul.f32 %v14349_v43, %v4399_v12  ;;  %4760 = vperm.xlu1 %8206, %v12496_v35  }
 0x895   : > { %v4431_v16 = vadd.f32 %v4423_v33, %v4374_v38  ;;  %v4430_v19 = vadd.f32 %v4422_v6, %v4373_v7  ;;  %4806 = vperm.xlu0 %8205, %v12509_v47  }
 0x897   : > { %4543 = vmatprep.mubr.f32.mxu0 %v4431_v16  ;;  %8207 = vset.pattern.permute.xlu1 %v8878_v21 }
 0x898   : > { %4544 = vmatmul.mubr.f32.gmra.mrb[26].mxu0 %v4430_v19  ;;  %4798 = vperm.xlu1 %8207, %v12502_v24  }
 0x899   : > { %8210 = vset.pattern.permute.xlu0 %v8880_v57  ;;  %7412 = vmatprep.mubr.msk.bf16.mxu0 %vm4647_vm4, %v8362_v58 }
 0x89a   : > { %4909 = vperm.xlu0 %8210, %v12476_v20  }
 0x89c   : > { %8208 = vset.pattern.permute.xlu1 %v8877_v22 }
 0x89d   : > { %4765 = vperm.xlu1 %8208, %v12509_v47  }
 0x89e   : > { %4917 = vperm.xlu0 %8210, %v12483_v14  }
 0x8a1   : > { %4770 = vperm.xlu1 %8208, %v12516_v27  }
 0x8a2   : > { %4921 = vperm.xlu0 %8210, %v12489_v13   ;;  %v4555_v39 = vpop.permute.xlu1 %4554 }
 0x8a5   : > { %8209 = vset.pattern.permute.xlu1 %v8878_v21 }
 0x8a6   : > { %4810 = vperm.xlu1 %8209, %v12516_v27   ;;  %4925 = vperm.xlu0 %8210, %v12502_v24  }
 0x8a7   : > { %v4571_v45 = vpop.permute.xlu1 %4570 }
 0x8aa   : > { %8211 = vset.pattern.permute.xlu1 %v8879_v55  ;;  %8219 = vset.pattern.permute.xlu0 %v8882_v61 }
 0x8ab   : > { %4965 = vperm.xlu1 %8211, %v12476_v20   ;;  %5097 = vperm.xlu0 %8219, %v12470_v26  }
 0x8ac   : > { %v4559_v0 = vpop.permute.xlu1 %4558 }
 0x8af   : > { %8212 = vset.pattern.permute.xlu1 %v8880_v57  ;;  %5101 = vperm.xlu0 %8219, %v12483_v14  }
 0x8b0   : > { %4913 = vperm.xlu1 %8212, %v12470_v26   ;;  %v4563_v29 = vpop.permute.xlu1 %4562 }
 0x8b3   : > { %8225 = vset.pattern.permute.xlu0 %v8883_v11 }
 0x8b4   : > { %8213 = vset.pattern.permute.xlu1 %v8881_v17  ;;  %5149 = vperm.xlu0 %8225, %v12483_v14  }
 0x8b5   : > { %5029 = vperm.xlu1 %8213, %v12476_v20   ;;  %v4583_v43 = vpop.permute.xlu1 %4582 }
 0x8b8   : > { %8226 = vset.pattern.permute.xlu0 %v8879_v55 }
 0x8b9   : > { %5033 = vperm.xlu1 %8213, %v12470_v26   ;;  %4969 = vperm.xlu0 %8226, %v12470_v26  }
 0x8bd   : > { %8214 = vset.pattern.permute.xlu1 %v8879_v55  ;;  %4985 = vperm.xlu0 %8226, %v12496_v35  }
 0x8be   : > { %4973 = vperm.xlu1 %8214, %v12483_v14  }
 0x8c1   : > { %4993 = vperm.xlu0 %8226, %v12516_v27  }
 0x8c2   : > { %8215 = vset.pattern.permute.xlu1 %v8882_v61 }
 0x8c3   : > { %5093 = vperm.xlu1 %8215, %v12476_v20  }
 0x8c5   : > { %8235 = vset.pattern.permute.xlu0 %v8881_v17 }
 0x8c6   : > { %5041 = vperm.xlu0 %8235, %v12489_v13  }
 0x8c7   : > { %8216 = vset.pattern.permute.xlu1 %v8879_v55 }
 0x8c8   : > { %4977 = vperm.xlu1 %8216, %v12489_v13  }
 0x8ca   : > { %5053 = vperm.xlu0 %8235, %v12509_v47  }
 0x8cc   : > { %8217 = vset.pattern.permute.xlu1 %v8881_v17 }
 0x8cd   : > { %5037 = vperm.xlu1 %8217, %v12483_v14  }
 0x8ce   : > { %5057 = vperm.xlu0 %8235, %v12516_v27  }
 0x8d1   : > { %8218 = vset.pattern.permute.xlu1 %v8883_v11 }
 0x8d2   : > { %5141 = vperm.xlu1 %8218, %v12476_v20   ;;  %8244 = vset.pattern.permute.xlu0 %v8885_v52 }
 0x8d3   : > { %5341 = vperm.xlu0 %8244, %v12483_v14  }
 0x8d6   : > { %5145 = vperm.xlu1 %8218, %v12470_v26  }
 0x8d7   : > { %8245 = vset.pattern.permute.xlu0 %v8884_v15 }
 0x8d8   : > { %5209 = vperm.xlu0 %8245, %v12470_v26  }
 0x8da   : > { %8220 = vset.pattern.permute.xlu1 %v8879_v55 }
 0x8db   : > { %4981 = vperm.xlu1 %8220, %v12502_v24  }
 0x8dc   : > { %5213 = vperm.xlu0 %8245, %v12483_v14  }
 0x8df   : > { %8221 = vset.pattern.permute.xlu1 %v8884_v15 }
 0x8e0   : > { %5205 = vperm.xlu1 %8221, %v12476_v20   ;;  %5217 = vperm.xlu0 %8245, %v12489_v13  }
 0x8e3   : > { %v7336_v32 = vpop.f32.mrb[20].mxu0 }
 0x8e4   : > { %v7337_v30 = vpop.f32.mrb[21].mxu0  ;;  %8222 = vset.pattern.permute.xlu1 %v8880_v57  ;;  %5225 = vperm.xlu0 %8245, %v12496_v35  }
 0x8e5   : > { %v7338_v18 = vadd.f32 %v7337_v30, %v7336_v32  ;;  %4929 = vperm.xlu1 %8222, %v12496_v35   ;;  %v8363_v30 = vld [vmem:[%s14001_s2 + $0x44] ss:$28 sps:$4 sm:$0xff]  }
 0x8e7   : > { %v4565_v36 = vmul.f32 %v7338_v18, %v4551_v54  ;;  %v8364_v18 = vld [vmem:[%s14001_s2 + $0x7c] ss:$28 sps:$4 sm:$0xff]  }
 0x8e8   : > { %5229 = vperm.xlu0 %8245, %v12509_v47  }
 0x8e9   : > { %v4585_v31 = vadd.f32 %v4571_v45, %v4565_v36  ;;  %8223 = vset.pattern.permute.xlu1 %v8882_v61 }
 0x8ea   : > { %5105 = vperm.xlu1 %8223, %v12489_v13  }
 0x8eb   : > { %v7224_v56 = vmul.f32 -1.442695, %v4585_v31 }
 0x8ec   : > { %8253 = vset.pattern.permute.xlu0 %v8886_v50 }
 0x8ed   : > { %8522 = vpow2.f32 %v7224_v56  ;;  %5273 = vperm.xlu0 %8253, %v12470_v26  }
 0x8ee   : > { %8224 = vset.pattern.permute.xlu1 %v8881_v17 }
 0x8ef   : > { %5045 = vperm.xlu1 %8224, %v12502_v24  }
 0x8f1   : > { %5297 = vperm.xlu0 %8253, %v12516_v27  }
 0x8f3   : > { %8227 = vset.pattern.permute.xlu1 %v8886_v50 }
 0x8f4   : > { %5269 = vperm.xlu1 %8227, %v12476_v20  }
 0x8f5   : > { %8259 = vset.pattern.permute.xlu0 %v8887_v41 }
 0x8f6   : > { %5397 = vperm.xlu0 %8259, %v12476_v20  }
 0x8f7   : > { %v8523_v9 = vpop.eup %8522 }
 0x8f8   : > { %v4601_v28 = vadd.f32 1.0, %v8523_v9  ;;  %8228 = vset.pattern.permute.xlu1 %v8881_v17 }
 0x8f9   : > { %5049 = vperm.xlu1 %8228, %v12496_v35  }
 0x8fa   : > { %5401 = vperm.xlu0 %8259, %v12470_v26  }
 0x8fd   : > { %8229 = vset.pattern.permute.xlu1 %v8883_v11 }
 0x8fe   : > { %5153 = vperm.xlu1 %8229, %v12489_v13   ;;  %5405 = vperm.xlu0 %8259, %v12483_v14  }
 0x902   : > { %8230 = vset.pattern.permute.xlu1 %v8880_v57  ;;  %5425 = vperm.xlu0 %8259, %v12516_v27  }
 0x903   : > { %4933 = vperm.xlu1 %8230, %v12509_v47  }
 0x907   : > { %8231 = vset.pattern.permute.xlu1 %v8879_v55  ;;  %v8365_v55 = vld [vmem:[%s14001_s2 + $0xb4] ss:$28 sps:$4 sm:$0xff]  }
 0x908   : > { %4989 = vperm.xlu1 %8231, %v12509_v47  }
 0x90c   : > { %8232 = vset.pattern.permute.xlu1 %v8882_v61 }
 0x90d   : > { %5109 = vperm.xlu1 %8232, %v12502_v24  }
 0x911   : > { %8233 = vset.pattern.permute.xlu1 %v8885_v52 }
 0x912   : > { %5333 = vperm.xlu1 %8233, %v12476_v20  }
 0x916   : > { %8234 = vset.pattern.permute.xlu1 %v8880_v57  ;;  %v12647_v57 = vpop.permute.xlu1 %4740 }
 0x917   : > { %4937 = vperm.xlu1 %8234, %v12516_v27  }
 0x91a   : > { %v4783_v17 = vpop.permute.xlu1 %4782 }
 0x91b   : > { %v7339_v10 = vpop.f32.mrb[22].mxu0  ;;  %8236 = vset.pattern.permute.xlu1 %v8882_v61 }
 0x91c   : > { %v7340_v59 = vpop.f32.mrb[23].mxu0  ;;  %5113 = vperm.xlu1 %8236, %v12496_v35  }
 0x91d   : > { %v7341_v8 = vadd.f32 %v7340_v59, %v7339_v10 }
 0x91f   : > { %v4566_v34 = vmul.f32 %v7341_v8, %v4555_v39 }
 0x920   : > { %8237 = vset.pattern.permute.xlu1 %v8885_v52 }
 0x921   : > { %v4586_v46 = vadd.f32 %v4575_v4, %v4566_v34  ;;  %5337 = vperm.xlu1 %8237, %v12470_v26  }
 0x923   : > { %v7225_v51 = vmul.f32 -1.442695, %v4586_v46 }
 0x925   : > { %8524 = vpow2.f32 %v7225_v51  ;;  %8238 = vset.pattern.permute.xlu1 %v8883_v11 }
 0x926   : > { %8526 = vrcp.f32 %v4601_v28  ;;  %5157 = vperm.xlu1 %8238, %v12502_v24  }
 0x92a   : > { %8239 = vset.pattern.permute.xlu1 %v8886_v50 }
 0x92b   : > { %5277 = vperm.xlu1 %8239, %v12483_v14  }
 0x92f   : > { %v8525_v3 = vpop.eup %8524  ;;  %8240 = vset.pattern.permute.xlu1 %v8883_v11 }
 0x930   : > { %v4602_v23 = vadd.f32 1.0, %v8525_v3  ;;  %v8527_v63 = vpop.eup %8526  ;;  %5161 = vperm.xlu1 %8240, %v12496_v35   ;;  %v4736_v3 = vpop.permute.xlu0 %4735 }
 0x931   : > { %v4613_v48 = vmul.f32 %v8527_v63, %v4585_v31 }
 0x932   : > { %8528 = vrcp.f32 %v4602_v23 }
 0x934   : > { %8241 = vset.pattern.permute.xlu1 %v8886_v50 }
 0x935   : > { %5281 = vperm.xlu1 %8241, %v12489_v13  }
 0x939   : > { %8242 = vset.pattern.permute.xlu1 %v8882_v61 }
 0x93a   : > { %5117 = vperm.xlu1 %8242, %v12509_v47  }
 0x93c   : > { %v8529_v53 = vpop.eup %8528 }
 0x93d   : > { %v4614_v2 = vmul.f32 %v8529_v53, %v4586_v46 }
 0x93e   : > { %8243 = vset.pattern.permute.xlu1 %v8884_v15 }
 0x93f   : > { %v7342_v49 = vpop.f32.mrb[24].mxu0  ;;  %v4625_v1 = vpack.c.bf16 %v4614_v2, %v4613_v48  ;;  %5221 = vperm.xlu1 %8243, %v12502_v24  }
 0x940   : > { %v7343_v62 = vpop.f32.mrb[25].mxu0 }
 0x941   : > { %v7344_v5 = vadd.f32 %v7343_v62, %v7342_v49  ;;  %7408 = vmatprep.subr.bf16.mxu0 %v4625_v1 }
 0x942   : > { %7409 = vmatpush3.bf16.msra.mxu0 %v4625_v1 }
 0x943   : > { %v4567_v25 = vmul.f32 %v7344_v5, %v4559_v0  ;;  %8246 = vset.pattern.permute.xlu1 %v8882_v61  ;;  %v4746_v61 = vpop.permute.xlu1 %4745 }
 0x944   : > { %5121 = vperm.xlu1 %8246, %v12516_v27  }
 0x945   : > { %v4587_v37 = vadd.f32 %v4579_v40, %v4567_v25 }
 0x947   : > { %v7226_v60 = vmul.f32 -1.442695, %v4587_v37  ;;  %v12655_v39 = vpop.permute.xlu1 %4750 }
 0x948   : > { %8247 = vset.pattern.permute.xlu1 %v8885_v52 }
 0x949   : > { %8530 = vpow2.f32 %v7226_v60  ;;  %5345 = vperm.xlu1 %8247, %v12489_v13  }
 0x94d   : > { %8248 = vset.pattern.permute.xlu1 %v8883_v11 }
 0x94e   : > { %5165 = vperm.xlu1 %8248, %v12509_v47  }
 0x952   : > { %8249 = vset.pattern.permute.xlu1 %v8886_v50 }
 0x953   : > { %v8531_v7 = vpop.eup %8530  ;;  %5285 = vperm.xlu1 %8249, %v12502_v24  }
 0x954   : > { %v4603_v16 = vadd.f32 1.0, %v8531_v7 }
 0x957   : > { %8250 = vset.pattern.permute.xlu1 %v8883_v11 }
 0x958   : > { %5169 = vperm.xlu1 %8250, %v12516_v27  }
 0x95c   : > { %8251 = vset.pattern.permute.xlu1 %v8886_v50 }
 0x95d   : > { %5289 = vperm.xlu1 %8251, %v12496_v35  }
 0x961   : > { %8252 = vset.pattern.permute.xlu1 %v8887_v41 }
 0x962   : > { %5409 = vperm.xlu1 %8252, %v12489_v13   ;;  %v12660_v13 = vpop.permute.xlu1 %4794 }
 0x966   : > { %8254 = vset.pattern.permute.xlu1 %v8885_v52  ;;  %v4761_v11 = vpop.permute.xlu1 %4760 }
 0x967   : > { %5349 = vperm.xlu1 %8254, %v12502_v24  }
 0x96a   : > { %v4799_v54 = vpop.permute.xlu1 %4798 }
 0x96b   : > { %v7345_v42 = vpop.f32.mrb[26].mxu0  ;;  %8255 = vset.pattern.permute.xlu1 %v8884_v15 }
 0x96c   : > { %v7346_v44 = vpop.f32.mrb[27].mxu0  ;;  %5233 = vperm.xlu1 %8255, %v12516_v27  }
 0x96d   : > { %v7347_v12 = vadd.f32 %v7346_v44, %v7345_v42 }
 0x96e   : > { %v12668_v58 = vpop.permute.xlu1 %4765 }
 0x96f   : > { %v4568_v6 = vmul.f32 %v7347_v12, %v4563_v29 }
 0x970   : > { %8256 = vset.pattern.permute.xlu1 %v8885_v52 }
 0x971   : > { %v4588_v33 = vadd.f32 %v4583_v43, %v4568_v6  ;;  %5353 = vperm.xlu1 %8256, %v12496_v35  }
 0x972   : > { %v4771_v36 = vpop.permute.xlu1 %4770 }
 0x973   : > { %v7227_v38 = vmul.f32 -1.442695, %v4588_v33 }
 0x975   : > { %8532 = vpow2.f32 %v7227_v38  ;;  %8257 = vset.pattern.permute.xlu1 %v8886_v50  ;;  %v4756_v50 = vpop.permute.xlu0 %4755 }
 0x976   : > { %8534 = vrcp.f32 %v4603_v16  ;;  %5293 = vperm.xlu1 %8257, %v12509_v47   ;;  %v4811_v45 = vpop.permute.xlu1 %4810 }
 0x979   : > { %v12709_v53 = vpop.permute.xlu0 %4786 }
 0x97a   : > { %8258 = vset.pattern.permute.xlu1 %v8887_v41  ;;  %v12671_v31 = vpop.permute.xlu1 %4965 }
 0x97b   : > { %5413 = vperm.xlu1 %8258, %v12502_v24  }
 0x97d   : > { %v4791_v2 = vpop.permute.xlu0 %4790 }
 0x97e   : > { %v12673_v24 = vpop.permute.xlu1 %4913 }
 0x97f   : > { %v8533_v19 = vpop.eup %8532  ;;  %5417 = vperm.xlu1 %8258, %v12496_v35  }
 0x980   : > { %v4604_v22 = vadd.f32 1.0, %v8533_v19  ;;  %v8535_v26 = vpop.eup %8534 }
 0x981   : > { %v4615_v20 = vmul.f32 %v8535_v26, %v4587_v37  ;;  %v4803_v1 = vpop.permute.xlu0 %4802 }
 0x982   : > { %8536 = vrcp.f32 %v4604_v22  ;;  %v12675_v35 = vpop.permute.xlu1 %5029 }
 0x983   : > { %8260 = vset.pattern.permute.xlu1 %v8885_v52 }
 0x984   : > { %5357 = vperm.xlu1 %8260, %v12509_v47  }
 0x985   : > { %v12717_v25 = vpop.permute.xlu0 %4806 }
 0x986   : > { %v12677_v56 = vpop.permute.xlu1 %5033 }
 0x988   : > { %5361 = vperm.xlu1 %8260, %v12516_v27  }
 0x989   : > { %v12721_v12 = vpop.permute.xlu0 %4909 }
 0x98a   : > { %v12679_v10 = vpop.permute.xlu1 %4973 }
 0x98c   : > { %v8537_v21 = vpop.eup %8536  ;;  %8261 = vset.pattern.permute.xlu1 %v8887_v41 }
 0x98d   : > { %v4616_v14 = vmul.f32 %v8537_v21, %v4588_v33  ;;  %5421 = vperm.xlu1 %8261, %v12509_v47   ;;  %v12730_v21 = vpop.permute.xlu0 %4917 }
 0x98e   : > { %v12681_v59 = vpop.permute.xlu1 %5093 }
 0x98f   : > { %v4626_v32 = vpack.c.bf16 %v4616_v14, %v4615_v20 }
 0x991   : > { %7410 = vmatprep.subr.bf16.mxu0 %v4626_v32 }
 0x992   : > { %7411 = vmatpush3.bf16.msra.mxu0 %v4626_v32  ;;  %v12683_v27 = vpop.permute.xlu1 %4977 }
 0x995   : > { %7413 = vmatmul.mubr.msk.bf16.vlgmr.msra.gmra.mrb[28].mxu0 %vm4647_vm4, %v8363_v30 }
 0x996   : > { %7416 = vmatprep.mubr.msk.bf16.mxu0 %vm4647_vm4, %v8364_v18  ;;  %v12685_v15 = vpop.permute.xlu1 %5037 }
 0x99a   : > { %v12687_v8 = vpop.permute.xlu1 %5141 }
 0x99d   : > { %7417 = vmatmul.mubr.msk.bf16.gmra.mrb[32].mxu0 %vm4647_vm4, %v8365_v55 }
 0x99e   : > { %v12689_v47 = vpop.permute.xlu1 %5145 }
 0x9a2   : > { %v12691_v4 = vpop.permute.xlu1 %4981 }
 0x9a6   : > { %v12693_v34 = vpop.permute.xlu1 %5205 }
 0x9aa   : > { %v12695_v46 = vpop.permute.xlu1 %4929 }
 0x9ab   : > { %14350 = vst [vmem:[#allocation32_spill] sm:$0xff] %v12695_v46 }
 0x9ae   : > { %v12697_v51 = vpop.permute.xlu1 %5105 }
 0x9b2   : > { %v12699_v9 = vpop.permute.xlu1 %5045 }
 0x9b6   : > { %v12701_v28 = vpop.permute.xlu1 %5269 }
 0x9ba   : > { %v12703_v52 = vpop.permute.xlu1 %5049 }
 0x9bb   : > { %14351 = vst [vmem:[#allocation36_spill] sm:$0xff] %v12703_v52 }
 0x9be   : > { %v12705_v23 = vpop.permute.xlu1 %5153 }
 0x9c2   : > { %v12707_v63 = vpop.permute.xlu1 %4933 }
 0x9c3   : > { %14352 = vst [vmem:[#allocation34_spill] sm:$0xff] %v12707_v63 }
 0x9c6   : > { %v12711_v48 = vpop.permute.xlu1 %4989 }
 0x9c7   : > { %14353 = vst [vmem:[#allocation45_spill] sm:$0xff] %v12711_v48 }
 0x9ca   : > { %v12713_v49 = vpop.permute.xlu1 %5109 }
 0x9cb   : > { %14354 = vst [vmem:[#allocation40_spill] sm:$0xff] %v12713_v49 }
 0x9ce   : > { %v12715_v62 = vpop.permute.xlu1 %5333 }
 0x9d2   : > { %v12719_v37 = vpop.permute.xlu1 %4937 }
 0x9d3   : > { %14355 = vst [vmem:[#allocation54_spill] sm:$0xff] %v12719_v37 }
 0x9d6   : > { %v12727_v33 = vpop.permute.xlu1 %5113 }
 0x9d7   : > { %14356 = vst [vmem:[#allocation52_spill] sm:$0xff] %v12727_v33 }
 0x9da   : > { %v12732_v55 = vpop.permute.xlu1 %5337 }
 0xa68   : > { %v7414_v5 = vpop.f32.mrb[28].mxu0 }
 0xa69   : > { %v4775_v41 = vmul.f32 %v7414_v5, %v4746_v61  ;;  %v4694_v0 = vpop.f32.mrb[29].mxu0 }
 0xa6a   : > { %v7415_v40 = vpop.f32.mrb[30].mxu0  ;;  %v4773_v60 = vmul.f32 %v4736_v3, %v4694_v0 }
 0xa6b   : > { %v4815_v29 = vadd.f32 %v4791_v2, %v4775_v41  ;;  %v4697_v42 = vpop.f32.mrb[31].mxu0  ;;  %v12735_v2 = vpop.permute.xlu0 %4921 }
 0xa6c   : > { %v12723_v43 = vadd.f32 %v4783_v17, %v4773_v60  ;;  %v4776_v17 = vmul.f32 %v7415_v40, %v12655_v39  ;;  %v4774_v0 = vmul.f32 %v12647_v57, %v4697_v42 }
 0xa6d   : > { %v7238_v44 = vmul.f32 -1.442695, %v4815_v29 }
 0xa6e   : > { %v7236_v19 = vmul.f32 -1.442695, %v12723_v43  ;;  %v12756_v57 = vadd.f32 %v12709_v53, %v4774_v0 }
 0xa6f   : > { %8538 = vpow2.f32 %v7238_v44 }
 0xa70   : > { %v12725_v6 = vpop.f32.mrb[32].mxu0  ;;  %8540 = vpow2.f32 %v7236_v19 }
 0xa71   : > { %v4710_v38 = vpop.f32.mrb[33].mxu0 }
 0xa72   : > { %v4777_v7 = vmul.f32 %v4756_v50, %v4710_v38  ;;  %v7419_v16 = vpop.f32.mrb[34].mxu0 }
 0xa73   : > { %v4780_v22 = vmul.f32 %v7419_v16, %v4771_v36  ;;  %v4713_v26 = vpop.f32.mrb[35].mxu0 }
 0xa74   : > { %v4817_v20 = vadd.f32 %v4799_v54, %v4777_v7  ;;  %v4778_v14 = vmul.f32 %v4761_v11, %v4713_v26  ;;  %v12738_v54 = vadd.f32 %v12660_v13, %v4776_v17  ;;  %v12740_v11 = vpop.permute.xlu1 %5157 }
 0xa75   : > { %v4820_v32 = vadd.f32 %v4811_v45, %v4780_v22  ;;  %14357 = vst [vmem:[#allocation11_spill] sm:$0xff] %v12740_v11  ;;  %v12753_v22 = vld [vmem:[%s14006_s7 + $0x8] ss:$0 sm:$0xff] }
 0xa76   : > { %v7240_v30 = vmul.f32 -1.442695, %v4817_v20  ;;  %v4818_v18 = vadd.f32 %v4803_v1, %v4778_v14  ;;  %v7239_v45 = vmul.f32 -1.442695, %v12738_v54  ;;  %v12743_v1 = vpop.permute.xlu0 %4925 }
 0xa77   : > { %v7243_v61 = vmul.f32 -1.442695, %v4820_v32 }
 0xa78   : > { %8542 = vpow2.f32 %v7240_v30  ;;  %v7241_v3 = vmul.f32 -1.442695, %v4818_v18  ;;  %v12746_v40 = vpop.permute.xlu1 %5277  ;;  %v7237_v30 = vmul.f32 -1.442695, %v12756_v57 }
 0xa79   : > { %v8539_v50 = vpop.eup %8538  ;;  %8544 = vpow2.f32 %v7243_v61 }
 0xa7a   : > { %v4847_v36 = vadd.f32 1.0, %v8539_v50  ;;  %8546 = vpow2.f32 %v7241_v3  ;;  %v8541_v39 = vpop.eup %8540  ;;  %v12748_v16 = vpop.permute.xlu0 %5097 }
 0xa7b   : > { %v4845_v38 = vadd.f32 1.0, %v8541_v39 }
 0xa7c   : > { %8548 = vrcp.f32 %v4847_v36  ;;  %v12761_v14 = vpop.permute.xlu1 %5161 }
 0xa7d   : > { %8550 = vpow2.f32 %v7239_v45  ;;  %14358 = vst [vmem:[#allocation51_spill] sm:$0xff] %v12761_v14 }
 0xa7e   : > { %v12764_v17 = vpop.permute.xlu0 %5101 }
 0xa80   : > { %v12770_v61 = vpop.permute.xlu1 %5281 }
 0xa82   : > { %v8543_v5 = vpop.eup %8542 }
 0xa83   : > { %v8545_v41 = vpop.eup %8544  ;;  %v4849_v60 = vadd.f32 1.0, %v8543_v5  ;;  %v12776_v5 = vpop.permute.xlu0 %5149 }
 0xa84   : > { %v8547_v44 = vpop.eup %8546  ;;  %v4852_v13 = vadd.f32 1.0, %v8545_v41 }
 0xa85   : > { %8552 = vrcp.f32 %v4849_v60  ;;  %v4850_v7 = vadd.f32 1.0, %v8547_v44  ;;  %v4779_v44 = vmul.f32 %v12725_v6, %v12668_v58 }
 0xa86   : > { %v8549_v19 = vpop.eup %8548  ;;  %8554 = vrcp.f32 %v4852_v13 }
 0xa87   : > { %v4871_v26 = vmul.f32 %v8549_v19, %v4815_v29  ;;  %8556 = vrcp.f32 %v4850_v7  ;;  %v8551_v53 = vpop.eup %8550  ;;  %v12796_v13 = vpop.permute.xlu0 %4969  ;;  %v12799_v58 = vadd.f32 %v12717_v25, %v4779_v44  ;;  %v5447_v44 = vld [vmem:[#allocation2 + $0x18] sm:$0xff] }
 0xa88   : > { %8558 = vrcp.f32 %v4845_v38  ;;  %v4848_v50 = vadd.f32 1.0, %v8551_v53 }
 0xa89   : > { %v12759_v42 = vmul.f32 %v12753_v22, %v4871_v26  ;;  %8560 = vpow2.f32 %v7237_v30 }
 0xa8a   : > { %8562 = vrcp.f32 %v4848_v50  ;;  %v5444_v50 = vld [vmem:[#allocation2] sm:$0xff] }
 0xa8b   : > { %4952 = vrot.lane.b32.xlu0 %v12759_v42, %s8888_s21  ;;  %4896 = vrot.lane.b32.xlu1 %v12759_v42, %s8889_s29  ;;  %v12815_v25 = vpop.permute.xlu0 %4985 }
 0xa8c   : > { %14365 = vst [vmem:[#allocation41_spill] sm:$0xff] %v12815_v25 }
 0xa8f   : > { %v8553_v29 = vpop.eup %8552  ;;  %5192 = vrot.lane.b32.xlu0 %v12759_v42, %s14179_s16  ;;  %5016 = vrot.lane.b32.xlu1 %v12759_v42, %s8890_s28 }
 0xa90   : > { %v8555_v3 = vpop.eup %8554  ;;  %v4873_v36 = vmul.f32 %v8553_v29, %v4817_v20 }
 0xa91   : > { %v8557_v45 = vpop.eup %8556  ;;  %v4876_v39 = vmul.f32 %v8555_v3, %v4820_v32  ;;  %v12824_v3 = vpop.permute.xlu0 %4993 }
 0xa92   : > { %v8559_v41 = vpop.eup %8558  ;;  %v12779_v0 = vmul.f32 %v12753_v22, %v4873_v36  ;;  %v4874_v60 = vmul.f32 %v8557_v45, %v4818_v18  ;;  %v12794_v18 = vpop.permute.xlu1 %5117  ;;  %14367 = vst [vmem:[#allocation48_spill] sm:$0xff] %v12824_v3  ;;  %v5445_v36 = vld [vmem:[#allocation2 + $0x8] sm:$0xff] }
 0xa93   : > { %v12784_v38 = vmul.f32 %v12753_v22, %v4876_v39  ;;  %5256 = vrot.lane.b32.xlu0 %v12759_v42, %s8891_s17  ;;  %5080 = vrot.lane.b32.xlu1 %v12759_v42, %s14178_s23  ;;  %v4869_v32 = vmul.f32 %v8559_v41, %v12723_v43  ;;  %14362 = vst [vmem:[#allocation22_spill] sm:$0xff] %v12794_v18  ;;  %v8561_v6 = vpop.eup %8560  ;;  %v7242_v43 = vmul.f32 -1.442695, %v12799_v58 }
 0xa94   : > { %14359 = vst [vmem:[#allocation30_spill] sm:$0xff] %v12779_v0  ;;  %v12791_v20 = vmul.f32 %v12753_v22, %v4874_v60  ;;  %v4846_v26 = vadd.f32 1.0, %v8561_v6  ;;  %v8563_v30 = vpop.eup %8562  ;;  %v7751_v45 = vpack.c.bf16 %v5445_v36, %v5444_v50  ;;  %v5446_v60 = vld [vmem:[#allocation2 + $0x10] sm:$0xff] }
 0xa95   : > { %14360 = vst [vmem:[#allocation38_spill] sm:$0xff] %v12784_v38  ;;  %v12806_v7 = vmul.f32 %v12753_v22, %v4869_v32  ;;  %8564 = vpow2.f32 %v7242_v43  ;;  %v4872_v53 = vmul.f32 %v8563_v30, %v12738_v54  ;;  %v12839_v54 = vpop.permute.xlu0 %5041  ;;  %v7755_v32 = vpack.c.bf16 %v5447_v44, %v5446_v60  ;;  %v5449_v30 = vld [vmem:[#allocation2 + $0x28] sm:$0xff]  ;;  %v5450_v60 = vld [vmem:[#allocation2 + $0x30] sm:$0xff]  ;;  %v5451_v44 = vld [vmem:[#allocation2 + $0x38] sm:$0xff] }
 0xa96   : > { %14361 = vst [vmem:[#allocation42_spill] sm:$0xff] %v12791_v20  ;;  %v12809_v19 = vpop.permute.xlu1 %5221  ;;  %8566 = vrcp.f32 %v4846_v26  ;;  %7752 = vmatprep.subr.bf16.mxu0 %v7751_v45  ;;  %v5448_v26 = vld [vmem:[#allocation2 + $0x20] sm:$0xff] }
 0xa97   : > { %5384 = vrot.lane.b32.xlu0 %v12759_v42, %s8892_s24  ;;  %5320 = vrot.lane.b32.xlu1 %v12759_v42, %s14363_s22  ;;  %14364 = vst [vmem:[#allocation53_spill] sm:$0xff] %v12809_v19  ;;  %v12831_v39 = vmul.f32 %v12753_v22, %v4872_v53  ;;  %v7759_v50 = vpack.c.bf16 %v5449_v30, %v5448_v26  ;;  %v5452_v26 = vld [vmem:[#allocation2 + $0x40] sm:$0xff]  ;;  %v5453_v30 = vld [vmem:[#allocation2 + $0x48] sm:$0xff] }
 0xa98   : > { %7754 = vmatpush3.bf16.msra.mxu0 %v7751_v45 }
 0xa99   : > { %7756 = vmatprep.subr.bf16.mxu0 %v7755_v32  ;;  %v12848_v45 = vpop.permute.xlu0 %5053 }
 0xa9a   : > { %v12822_v29 = vpop.permute.xlu1 %5121  ;;  %14369 = vst [vmem:[#allocation23_spill] sm:$0xff] %v12848_v45 }
 0xa9b   : > { %4948 = vrot.lane.b32.xlu1 %v12806_v7, %s8888_s21  ;;  %4892 = vrot.lane.b32.xlu0 %v12806_v7, %s8889_s29  ;;  %14366 = vst [vmem:[#allocation26_spill] sm:$0xff] %v12822_v29 }
 0xa9c   : > { %7758 = vmatpush3.bf16.msra.mxu0 %v7755_v32 }
 0xa9d   : > { %7760 = vmatprep.subr.bf16.mxu0 %v7759_v50 }
 0xa9e   : > { %v12833_v41 = vpop.permute.xlu1 %5345 }
 0xa9f   : > { %5012 = vrot.lane.b32.xlu1 %v12806_v7, %s8890_s28  ;;  %5076 = vrot.lane.b32.xlu0 %v12806_v7, %s14178_s23  ;;  %v8565_v6 = vpop.eup %8564 }
 0xaa0   : > { %v8567_v43 = vpop.eup %8566  ;;  %v4851_v53 = vadd.f32 1.0, %v8565_v6  ;;  %7762 = vmatpush3.bf16.msra.mxu0 %v7759_v50  ;;  %v7763_v6 = vpack.c.bf16 %v5451_v44, %v5450_v60  ;;  %v5454_v50 = vld [vmem:[#allocation2 + $0x50] sm:$0xff] }
 0xaa1   : > { %v4870_v36 = vmul.f32 %v8567_v43, %v12756_v57  ;;  %v12863_v43 = vpop.permute.xlu0 %5057 }
 0xaa2   : > { %v12846_v14 = vpop.permute.xlu1 %5165  ;;  %8568 = vrcp.f32 %v4851_v53  ;;  %7764 = vmatprep.subr.bf16.mxu0 %v7763_v6  ;;  %14371 = vst [vmem:[#allocation29_spill] sm:$0xff] %v12863_v43  ;;  %v7767_v53 = vpack.c.bf16 %v5453_v30, %v5452_v26  ;;  %v5457_v26 = vld [vmem:[#allocation2 + $0x68] sm:$0xff] }
 0xaa3   : > { %5252 = vrot.lane.b32.xlu1 %v12806_v7, %s8891_s17  ;;  %5188 = vrot.lane.b32.xlu0 %v12806_v7, %s14179_s16  ;;  %14368 = vst [vmem:[#allocation44_spill] sm:$0xff] %v12846_v14  ;;  %v12855_v32 = vmul.f32 %v12753_v22, %v4870_v36  ;;  %v5455_v36 = vld [vmem:[#allocation2 + $0x58] sm:$0xff] }
 0xaa4   : > { %7766 = vmatpush3.bf16.msra.mxu0 %v7763_v6  ;;  %v7771_v60 = vpack.c.bf16 %v5455_v36, %v5454_v50  ;;  %v5456_v6 = vld [vmem:[#allocation2 + $0x60] sm:$0xff]  ;;  %v5458_v36 = vld [vmem:[#allocation2 + $0x70] sm:$0xff] }
 0xaa5   : > { %7768 = vmatprep.subr.bf16.mxu0 %v7767_v53  ;;  %v12871_v14 = vpop.permute.xlu0 %5341  ;;  %v7775_v30 = vpack.c.bf16 %v5457_v26, %v5456_v6 }
 0xaa6   : > { %v12857_v57 = vpop.permute.xlu1 %5285 }
 0xaa7   : > { %5316 = vrot.lane.b32.xlu0 %v12806_v7, %s14363_s22  ;;  %4898 = vrot.lane.b32.xlu1 %v12831_v39, %s8889_s29  ;;  %14370 = vst [vmem:[#allocation16_spill] sm:$0xff] %v12857_v57 }
 0xaa8   : > { %7770 = vmatpush3.bf16.msra.mxu0 %v7767_v53 }
 0xaa9   : > { %7772 = vmatprep.subr.bf16.mxu0 %v7771_v60  ;;  %v12884_v50 = vpop.permute.xlu0 %5209 }
 0xaaa   : > { %v12869_v44 = vpop.permute.xlu1 %5169 }
 0xaab   : > { %5380 = vrot.lane.b32.xlu0 %v12806_v7, %s8892_s24  ;;  %5018 = vrot.lane.b32.xlu1 %v12831_v39, %s8890_s28  ;;  %14372 = vst [vmem:[#allocation39_spill] sm:$0xff] %v12869_v44  ;;  %v5459_v44 = vld [vmem:[#allocation2 + $0x78] sm:$0xff] }
 0xaac   : > { %v8569_v33 = vpop.eup %8568  ;;  %7774 = vmatpush3.bf16.msra.mxu0 %v7771_v60  ;;  %v7779_v18 = vpack.c.bf16 %v5459_v44, %v5458_v36 }
 0xaad   : > { %v4875_v29 = vmul.f32 %v8569_v33, %v12799_v58  ;;  %7776 = vmatprep.subr.bf16.mxu0 %v7775_v30  ;;  %v12895_v58 = vpop.permute.xlu0 %5213 }
 0xaae   : > { %v12878_v53 = vpop.permute.xlu1 %5289 }
 0xaaf   : > { %4954 = vrot.lane.b32.xlu0 %v12831_v39, %s8888_s21  ;;  %5194 = vrot.lane.b32.xlu1 %v12831_v39, %s14179_s16  ;;  %14373 = vst [vmem:[#allocation49_spill] sm:$0xff] %v12878_v53  ;;  %v12887_v60 = vmul.f32 %v12753_v22, %v4875_v29 }
 0xab0   : > { %7778 = vmatpush3.bf16.msra.mxu0 %v7775_v30 }
 0xab1   : > { %14374 = vst [vmem:[#allocation20_spill] sm:$0xff] %v12887_v60  ;;  %7780 = vmatprep.subr.bf16.mxu0 %v7779_v18  ;;  %v12907_v29 = vpop.permute.xlu0 %5217 }
 0xab2   : > { %v12893_v33 = vpop.permute.xlu1 %5409 }
 0xab3   : > { %5082 = vrot.lane.b32.xlu0 %v12831_v39, %s14178_s23  ;;  %4894 = vrot.lane.b32.xlu1 %v12855_v32, %s8889_s29 }
 0xab4   : > { %7782 = vmatpush3.bf16.msra.mxu0 %v7779_v18 }
 0xab5   : > { %v12915_v44 = vpop.permute.xlu0 %5225 }
 0xab6   : > { %v12901_v22 = vpop.permute.xlu1 %5349  ;;  %14377 = vst [vmem:[#allocation21_spill] sm:$0xff] %v12915_v44 }
 0xab7   : > { %5258 = vrot.lane.b32.xlu0 %v12831_v39, %s8891_s17  ;;  %4950 = vrot.lane.b32.xlu1 %v12855_v32, %s8888_s21  ;;  %14375 = vst [vmem:[#allocation17_spill] sm:$0xff] %v12901_v22  ;;  %v13036_v22 = vld [vmem:[%s14000_s1 + $0x8] sm:$0xff] }
 0xab8   : > { %14388 = vst [vmem:[#allocation50_spill] sm:$0xff] %v13036_v22 }
 0xab9   : > { %v12927_v26 = vpop.permute.xlu0 %5229 }
 0xaba   : > { %v12913_v18 = vpop.permute.xlu1 %5233  ;;  %14379 = vst [vmem:[#allocation46_spill] sm:$0xff] %v12927_v26 }
 0xabb   : > { %5322 = vrot.lane.b32.xlu0 %v12831_v39, %s14363_s22  ;;  %5014 = vrot.lane.b32.xlu1 %v12855_v32, %s8890_s28  ;;  %14376 = vst [vmem:[#allocation47_spill] sm:$0xff] %v12913_v18 }
 0xabd   : > { %v12935_v36 = vpop.permute.xlu0 %5273 }
 0xabe   : > { %v12921_v6 = vpop.permute.xlu1 %5353 }
 0xabf   : > { %5386 = vrot.lane.b32.xlu0 %v12831_v39, %s8892_s24  ;;  %5318 = vrot.lane.b32.xlu1 %v12855_v32, %s14363_s22  ;;  %14378 = vst [vmem:[#allocation15_spill] sm:$0xff] %v12921_v6 }
 0xac1   : > { %v12943_v18 = vpop.permute.xlu0 %5297 }
 0xac2   : > { %v12933_v30 = vpop.permute.xlu1 %5293  ;;  %14382 = vst [vmem:[#allocation27_spill] sm:$0xff] %v12943_v18 }
 0xac3   : > { %5078 = vrot.lane.b32.xlu0 %v12855_v32, %s14178_s23  ;;  %4904 = vrot.lane.b32.xlu1 %v12887_v60, %s8889_s29  ;;  %14380 = vst [vmem:[#allocation18_spill] sm:$0xff] %v12933_v30 }
 0xac5   : > { %v12955_v53 = vpop.permute.xlu0 %5397 }
 0xac6   : > { %v12941_v6 = vpop.permute.xlu1 %5413 }
 0xac7   : > { %5190 = vrot.lane.b32.xlu0 %v12855_v32, %s14179_s16  ;;  %4960 = vrot.lane.b32.xlu1 %v12887_v60, %s8888_s21  ;;  %14381 = vst [vmem:[#allocation28_spill] sm:$0xff] %v12941_v6  ;;  %v13016_v6 = vld [vmem:[%s14000_s1] sm:$0xff] }
 0xac9   : > { %v12961_v18 = vpop.permute.xlu0 %5401 }
 0xaca   : > { %v12953_v30 = vpop.permute.xlu1 %5417 }
 0xacb   : > { %5254 = vrot.lane.b32.xlu0 %v12855_v32, %s8891_s17  ;;  %4900 = vrot.lane.b32.xlu1 %v12779_v0, %s8889_s29  ;;  %14383 = vst [vmem:[#allocation14_spill] sm:$0xff] %v12953_v30 }
 0xacd   : > { %v12973_v30 = vpop.permute.xlu0 %5405 }
 0xace   : > { %v12963_v26 = vpop.permute.xlu1 %5357 }
 0xacf   : > { %5382 = vrot.lane.b32.xlu0 %v12855_v32, %s8892_s24  ;;  %4956 = vrot.lane.b32.xlu1 %v12779_v0, %s8888_s21  ;;  %14384 = vst [vmem:[#allocation25_spill] sm:$0xff] %v12963_v26 }
 0xad1   : > { %v12983_v52 = vpop.permute.xlu0 %5425 }
 0xad2   : > { %v12975_v44 = vpop.permute.xlu1 %5361  ;;  %14387 = vst [vmem:[#allocation24_spill] sm:$0xff] %v12983_v52  ;;  %v14136_v52 = vmov 50  }
 0xad3   : > { %5024 = vrot.lane.b32.xlu0 %v12887_v60, %s8890_s28  ;;  %5020 = vrot.lane.b32.xlu1 %v12779_v0, %s8890_s28  ;;  %14385 = vst [vmem:[#allocation13_spill] sm:$0xff] %v12975_v44 }
 0xad4   : > { %8263 = vset.pattern.permute.xlu1 %v14136_v52  ;;  %8262 = vset.pattern.permute.xlu0 %v14136_v52  ;;  %v13028_v52 = vld [vmem:[%s14000_s1 + $0x20] sm:$0xff] }
 0xad6   : > { %v12981_v26 = vpop.permute.xlu1 %5421 }
 0xad7   : > { %5088 = vrot.lane.b32.xlu0 %v12887_v60, %s14178_s23  ;;  %5196 = vrot.lane.b32.xlu1 %v12779_v0, %s14179_s16  ;;  %14386 = vst [vmem:[#allocation43_spill] sm:$0xff] %v12981_v26 }
 0xadb   : > { %5200 = vrot.lane.b32.xlu0 %v12887_v60, %s14179_s16  ;;  %5324 = vrot.lane.b32.xlu1 %v12779_v0, %s14363_s22 }
 0xadf   : > { %5084 = vrot.lane.b32.xlu0 %v12779_v0, %s14178_s23  ;;  %4962 = vrot.lane.b32.xlu1 %v12784_v38, %s8888_s21 }
 0xae3   : > { %5260 = vrot.lane.b32.xlu0 %v12779_v0, %s8891_s17  ;;  %5026 = vrot.lane.b32.xlu1 %v12784_v38, %s8890_s28 }
 0xae7   : > { %5202 = vrot.lane.b32.xlu1 %v12784_v38, %s14179_s16  ;;  %4906 = vrot.lane.b32.xlu0 %v12784_v38, %s8889_s29 }
 0xaeb   : > { %5090 = vrot.lane.b32.xlu0 %v12784_v38, %s14178_s23  ;;  %4902 = vrot.lane.b32.xlu1 %v12791_v20, %s8889_s29  ;;  %s8910_s29 = smov 124  }
 0xaef   : > { %5022 = vrot.lane.b32.xlu0 %v12791_v20, %s8890_s28  ;;  %4958 = vrot.lane.b32.xlu1 %v12791_v20, %s8888_s21  ;;  %s14454_s21 = smov 125  }
 0xaf3   : > { %5086 = vrot.lane.b32.xlu0 %v12791_v20, %s14178_s23  ;;  %5388 = vrot.lane.b32.xlu1 %v12779_v0, %s8892_s24 }
 0xaf7   : > { %5264 = vrot.lane.b32.xlu0 %v12887_v60, %s8891_s17  ;;  %5330 = vrot.lane.b32.xlu1 %v12784_v38, %s14363_s22 }
 0xafb   : > { %5266 = vrot.lane.b32.xlu0 %v12784_v38, %s8891_s17  ;;  %5198 = vrot.lane.b32.xlu1 %v12791_v20, %s14179_s16 }
 0xafd   : > { %v12989_v43 = vpop.permute.xlu0 %4952  ;;  %v12991_v45 = vpop.permute.xlu1 %4896 }
 0xaff   : > { %5328 = vrot.lane.b32.xlu0 %v12887_v60, %s14363_s22  ;;  %5262 = vrot.lane.b32.xlu1 %v12791_v20, %s8891_s17 }
 0xb01   : > { %v12997_v44 = vpop.permute.xlu0 %5192  ;;  %v12999_v26 = vpop.permute.xlu1 %5016 }
 0xb03   : > { %5392 = vrot.lane.b32.xlu0 %v12887_v60, %s8892_s24  ;;  %5326 = vrot.lane.b32.xlu1 %v12791_v20, %s14363_s22 }
 0xb05   : > { %v13007_v63 = vpop.permute.xlu0 %5256  ;;  %v13009_v48 = vpop.permute.xlu1 %5080 }
 0xb07   : > { %5390 = vrot.lane.b32.xlu1 %v12791_v20, %s8892_s24  ;;  %5566 = vperm.xlu0 %8262, %v13016_v6  }
 0xb09   : > { %v13019_v60 = vpop.permute.xlu0 %5384  ;;  %v13021_v46 = vpop.permute.xlu1 %5320 }
 0xb0b   : > { %5394 = vrot.lane.b32.xlu1 %v12784_v38, %s8892_s24  ;;  %5582 = vperm.xlu0 %8262, %v13028_v52   ;;  %v8894_v38 = vmov 51  }
 0xb0d   : > { %v4949_v20 = vpop.permute.xlu1 %4948  ;;  %v4893_v3 = vpop.permute.xlu0 %4892 }
 0xb0e   : > { %v4996_v25 = vmul.f32 %v12671_v31, %v4949_v20  ;;  %v4940_v37 = vmul.f32 %v12721_v12, %v4893_v3  ;;  %v13048_v20 = vld [vmem:[%s14000_s1 + $0x10] sm:$0xff] }
 0xb0f   : > { %5570 = vperm.xlu1 %8263, %v13036_v22   ;;  %8267 = vset.pattern.permute.xlu0 %v8894_v38 }
 0xb10   : > { %5610 = vperm.xlu0 %8267, %v13036_v22   ;;  %v5004_v11 = vadd.f32 %v4996_v25, %v4940_v37 }
 0xb11   : > { %v5013_v57 = vpop.permute.xlu1 %5012  ;;  %v5077_v19 = vpop.permute.xlu0 %5076 }
 0xb12   : > { %v5060_v0 = vmul.f32 %v12675_v35, %v5013_v57  ;;  %v5124_v12 = vmul.f32 %v12681_v59, %v5077_v19  ;;  %v5172_v35 = vmul.f32 %v12687_v8, %v12806_v7  ;;  %v13058_v59 = vld [vmem:[%s14000_s1 + $0x28] sm:$0xff] }
 0xb13   : > { %8264 = vset.pattern.permute.xlu1 %v8894_v38  ;;  %14390 = vst [vmem:[#allocation12_spill] sm:$0xff] %v13058_v59 }
 0xb14   : > { %v5068_v31 = vadd.f32 %v5060_v0, %v5004_v11  ;;  %5606 = vperm.xlu1 %8264, %v13016_v6   ;;  %5614 = vperm.xlu0 %8267, %v13048_v20   ;;  %v14389_v0 = vmov 50  }
 0xb15   : > { %v5253_v3 = vpop.permute.xlu1 %5252  ;;  %v5189_v22 = vpop.permute.xlu0 %5188 }
 0xb16   : > { %v5132_v49 = vadd.f32 %v5124_v12, %v5068_v31  ;;  %v5236_v11 = vmul.f32 %v12693_v34, %v5189_v22  ;;  %v5300_v57 = vmul.f32 %v12701_v28, %v5253_v3  ;;  %v13067_v34 = vld [vmem:[%s14000_s1 + $0x30] sm:$0xff]  ;;  %v13073_v12 = vld [vmem:[%s14000_s1 + $0x18] sm:$0xff] }
 0xb18   : > { %v5180_v37 = vadd.f32 %v5172_v35, %v5132_v49  ;;  %8265 = vset.pattern.permute.xlu1 %v14389_v0  ;;  %5626 = vperm.xlu0 %8267, %v13058_v59  }
 0xb19   : > { %v5317_v19 = vpop.permute.xlu0 %5316  ;;  %v4899_v25 = vpop.permute.xlu1 %4898  ;;  %5574 = vperm.xlu1 %8265, %v13048_v20  }
 0xb1a   : > { %v5244_v31 = vadd.f32 %v5236_v11, %v5180_v37  ;;  %v5364_v49 = vmul.f32 %v12715_v62, %v5317_v19 }
 0xb1c   : > { %v5308_v8 = vadd.f32 %v5300_v57, %v5244_v31  ;;  %5630 = vperm.xlu0 %8267, %v13067_v34   ;;  %v4998_v57 = vmul.f32 %v12679_v10, %v12989_v43  ;;  %v5126_v10 = vmul.f32 %v12764_v17, %v13009_v48 }
 0xb1d   : > { %v5381_v7 = vpop.permute.xlu0 %5380  ;;  %v5019_v22 = vpop.permute.xlu1 %5018  ;;  %5578 = vperm.xlu1 %8265, %v13073_v12  }
 0xb1e   : > { %v5372_v28 = vadd.f32 %v5364_v49, %v5308_v8  ;;  %v5428_v3 = vmul.f32 %v12955_v53, %v5381_v7  ;;  %v4942_v53 = vmul.f32 %v12730_v21, %v12991_v45  ;;  %v5062_v7 = vmul.f32 %v12685_v15, %v12999_v26 }
 0xb20   : > { %v5436_v62 = vadd.f32 %v5428_v3, %v5372_v28  ;;  %v4943_v28 = vmul.f32 %v12735_v2, %v4899_v25  ;;  %v5006_v3 = vadd.f32 %v4998_v57, %v4942_v53  ;;  %v5174_v57 = vmul.f32 %v12776_v5, %v12759_v42 }
 0xb21   : > { %v4955_v35 = vpop.permute.xlu0 %4954  ;;  %v5195_v37 = vpop.permute.xlu1 %5194  ;;  %8266 = vset.pattern.permute.xlu1 %v8894_v38  ;;  %v5175_v42 = vmul.f32 %v12705_v23, %v12831_v39 }
 0xb22   : > { %7452 = vmatprep.mubr.f32.mxu0 %v5436_v62  ;;  %5618 = vperm.xlu1 %8266, %v13073_v12   ;;  %v4999_v49 = vmul.f32 %v12683_v27, %v4955_v35  ;;  %v5070_v45 = vadd.f32 %v5062_v7, %v5006_v3  ;;  %v5239_v23 = vmul.f32 %v12907_v29, %v5195_v37 }
 0xb24   : > { %v5007_v21 = vadd.f32 %v4999_v49, %v4943_v28  ;;  %v5134_v15 = vadd.f32 %v5126_v10, %v5070_v45 }
 0xb25   : > { %v5083_v11 = vpop.permute.xlu0 %5082  ;;  %v4895_v19 = vpop.permute.xlu1 %4894 }
 0xb26   : > { %8268 = vset.pattern.permute.xlu1 %v14389_v0  ;;  %v5127_v25 = vmul.f32 %v12697_v51, %v5083_v11  ;;  %v4941_v48 = vmul.f32 %v12673_v24, %v4895_v19  ;;  %v5173_v11 = vmul.f32 %v12689_v47, %v12855_v32 }
 0xb27   : > { %5586 = vperm.xlu1 %8268, %v13058_v59   ;;  %v5063_v59 = vmul.f32 %v12839_v54, %v5019_v22  ;;  %v5182_v22 = vadd.f32 %v5174_v57, %v5134_v15  ;;  %v14391_v57 = vld [vmem:[#allocation40_spill] sm:$0xff] }
 0xb29   : > { %v5259_v31 = vpop.permute.xlu0 %5258  ;;  %v4951_v8 = vpop.permute.xlu1 %4950  ;;  %v5071_v2 = vadd.f32 %v5063_v59, %v5007_v21 }
 0xb2a   : > { %v4997_v27 = vmul.f32 %v12796_v13, %v4951_v8 }
 0xb2b   : > { %8269 = vset.pattern.permute.xlu1 %v8894_v38  ;;  %v5135_v51 = vadd.f32 %v5127_v25, %v5071_v2 }
 0xb2c   : > { %5622 = vperm.xlu1 %8269, %v13028_v52   ;;  %v5005_v54 = vadd.f32 %v4997_v27, %v4941_v48 }
 0xb2d   : > { %v5323_v43 = vpop.permute.xlu0 %5322  ;;  %v5015_v62 = vpop.permute.xlu1 %5014  ;;  %v5183_v7 = vadd.f32 %v5175_v42, %v5135_v51 }
 0xb2e   : > { %v5061_v17 = vmul.f32 %v12677_v56, %v5015_v62  ;;  %v5238_v56 = vmul.f32 %v12895_v58, %v12997_v44  ;;  %v5302_v58 = vmul.f32 %v12746_v40, %v13007_v63  ;;  %v5303_v62 = vmul.f32 %v12770_v61, %v5259_v31 }
 0xb2f   : > { %v5247_v32 = vadd.f32 %v5239_v23, %v5183_v7  ;;  %v5367_v29 = vmul.f32 %v12833_v41, %v5323_v43 }
 0xb30   : > { %8270 = vset.pattern.permute.xlu1 %v14389_v0  ;;  %v13107_v0 = vld [vmem:[%s14000_s1 + $0x38] sm:$0xff]  ;;  %v5069_v59 = vadd.f32 %v5061_v17, %v5005_v54  ;;  %v5246_v19 = vadd.f32 %v5238_v56, %v5182_v22  ;;  %v14393_v56 = vld [vmem:[#allocation11_spill] sm:$0xff] }
 0xb31   : > { %v5387_v26 = vpop.permute.xlu0 %5386  ;;  %v5319_v35 = vpop.permute.xlu1 %5318  ;;  %5590 = vperm.xlu1 %8270, %v13067_v34   ;;  %v5311_v40 = vadd.f32 %v5303_v62, %v5247_v32  ;;  %v14397_v32 = vld [vmem:[#allocation54_spill] sm:$0xff] }
 0xb32   : > { %v5310_v39 = vadd.f32 %v5302_v58, %v5246_v19  ;;  %v5431_v2 = vmul.f32 %v12893_v33, %v5387_v26 }
 0xb35   : > { %v5079_v13 = vpop.permute.xlu0 %5078  ;;  %v13102_v53 = vpop.permute.xlu1 %4904  ;;  %5594 = vperm.xlu1 %8270, %v13107_v0  }
 0xb36   : > { %v5125_v24 = vmul.f32 %v12748_v16, %v5079_v13 }
 0xb38   : > { %v5133_v5 = vadd.f32 %v5125_v24, %v5069_v59  ;;  %v14392_v24 = vld [vmem:[#allocation30_spill] sm:$0xff] }
 0xb39   : > { %v5191_v8 = vpop.permute.xlu0 %5190  ;;  %v13117_v49 = vpop.permute.xlu1 %4960  ;;  %8271 = vset.pattern.permute.xlu1 %v8894_v38  ;;  %v5366_v38 = vmul.f32 %v12871_v14, %v13021_v46  ;;  %v5176_v42 = vmul.f32 %v14393_v56, %v14392_v24  ;;  %v14409_v24 = vld [vmem:[#allocation52_spill] sm:$0xff] }
 0xb3a   : > { %v5181_v28 = vadd.f32 %v5173_v11, %v5133_v5  ;;  %v5237_v16 = vmul.f32 %v12884_v50, %v5191_v8  ;;  %5634 = vperm.xlu1 %8271, %v13107_v0   ;;  %v5365_v50 = vmul.f32 %v12732_v55, %v5319_v35  ;;  %v5375_v55 = vadd.f32 %v5367_v29, %v5311_v40  ;;  %v14401_v29 = vld [vmem:[#allocation28_spill] sm:$0xff] }
 0xb3b   : > { %v5374_v45 = vadd.f32 %v5366_v38, %v5310_v39 }
 0xb3c   : > { %v5245_v3 = vadd.f32 %v5237_v16, %v5181_v28  ;;  %v5439_v35 = vadd.f32 %v5431_v2, %v5375_v55  ;;  %v14395_v28 = vld [vmem:[#allocation16_spill] sm:$0xff] }
 0xb3d   : > { %v5255_v44 = vpop.permute.xlu0 %5254  ;;  %v4901_v47 = vpop.permute.xlu1 %4900 }
 0xb3e   : > { %v5301_v10 = vmul.f32 %v12935_v36, %v5255_v44  ;;  %v5430_v36 = vmul.f32 %v12973_v30, %v13019_v60  ;;  %v4944_v60 = vmul.f32 %v12743_v1, %v4901_v47  ;;  %v14396_v44 = vld [vmem:[#allocation17_spill] sm:$0xff] }
 0xb40   : > { %v5309_v21 = vadd.f32 %v5301_v10, %v5245_v3  ;;  %v5438_v31 = vadd.f32 %v5430_v36, %v5374_v45  ;;  %v14398_v10 = vld [vmem:[#allocation41_spill] sm:$0xff] }
 0xb41   : > { %v5383_v27 = vpop.permute.xlu0 %5382  ;;  %v4957_v63 = vpop.permute.xlu1 %4956 }
 0xb42   : > { %v5373_v37 = vadd.f32 %v5365_v50, %v5309_v21  ;;  %v5429_v15 = vmul.f32 %v12961_v18, %v5383_v27  ;;  %v5000_v18 = vmul.f32 %v12691_v4, %v4957_v63  ;;  %v14394_v4 = vld [vmem:[#allocation53_spill] sm:$0xff]  ;;  %v14399_v21 = vld [vmem:[#allocation48_spill] sm:$0xff] }
 0xb43   : > { %v14400_v27 = vld [vmem:[#allocation32_spill] sm:$0xff] }
 0xb44   : > { %v5437_v46 = vadd.f32 %v5429_v15, %v5373_v37  ;;  %v5008_v17 = vadd.f32 %v5000_v18, %v4944_v60  ;;  %v14402_v15 = vld [vmem:[#allocation45_spill] sm:$0xff] }
 0xb45   : > { %v5025_v14 = vpop.permute.xlu0 %5024  ;;  %v5021_v61 = vpop.permute.xlu1 %5020  ;;  %v5002_v36 = vmul.f32 %v14402_v15, %v13117_v49  ;;  %v14405_v60 = vld [vmem:[#allocation29_spill] sm:$0xff]  ;;  %v14408_v49 = vld [vmem:[#allocation26_spill] sm:$0xff] }
 0xb46   : > { %7453 = vmatmul.mubr.f32.vlgmr.msra.gmra.mrb[36].mxu0 %v5437_v46  ;;  %v5064_v33 = vmul.f32 %v12699_v9, %v5021_v61 }
 0xb47   : > { %7455 = vmatprep.mubr.f32.mxu0 %v5438_v31  ;;  %v14403_v31 = vld [vmem:[#allocation34_spill] sm:$0xff] }
 0xb48   : > { %v5072_v22 = vadd.f32 %v5064_v33, %v5008_v17  ;;  %v4946_v55 = vmul.f32 %v14403_v31, %v13102_v53 }
 0xb49   : > { %v5089_v25 = vpop.permute.xlu0 %5088  ;;  %v5197_v48 = vpop.permute.xlu1 %5196 }
 0xb4a   : > { %7456 = vmatmul.mubr.f32.gmra.mrb[38].mxu0 %v5439_v35  ;;  %v5240_v8 = vmul.f32 %v14394_v4, %v5197_v48  ;;  %v14404_v35 = vld [vmem:[#allocation23_spill] sm:$0xff]  ;;  %v5010_v17 = vadd.f32 %v5002_v36, %v4946_v55  ;;  %v14423_v55 = vld [vmem:[#allocation25_spill] sm:$0xff] }
 0xb4b   : > { %v5066_v48 = vmul.f32 %v14404_v35, %v5025_v14 }
 0xb4d   : > { %v13135_v41 = vpop.permute.xlu0 %5200  ;;  %v5325_v43 = vpop.permute.xlu1 %5324 }
 0xb4e   : > { %v5368_v47 = vmul.f32 %v14396_v44, %v5325_v43  ;;  %v14416_v44 = vld [vmem:[#allocation21_spill] sm:$0xff] }
 0xb51   : > { %v5085_v30 = vpop.permute.xlu0 %5084  ;;  %v4963_v26 = vpop.permute.xlu1 %4962 }
 0xb52   : > { %v5128_v54 = vmul.f32 %v14391_v57, %v5085_v30  ;;  %v5003_v45 = vmul.f32 %v14399_v21, %v4963_v26  ;;  %v14406_v30 = vld [vmem:[#allocation36_spill] sm:$0xff]  ;;  %v14407_v57 = vld [vmem:[#allocation22_spill] sm:$0xff] }
 0xb54   : > { %v5136_v59 = vadd.f32 %v5128_v54, %v5072_v22  ;;  %v5130_v54 = vmul.f32 %v14407_v57, %v5089_v25  ;;  %v14425_v57 = vld [vmem:[#allocation14_spill] sm:$0xff] }
 0xb55   : > { %v5261_v13 = vpop.permute.xlu0 %5260  ;;  %v5027_v51 = vpop.permute.xlu1 %5026 }
 0xb56   : > { %v5184_v19 = vadd.f32 %v5176_v42, %v5136_v59  ;;  %v5304_v16 = vmul.f32 %v14395_v28, %v5261_v13  ;;  %v5067_v33 = vmul.f32 %v14405_v60, %v5027_v51  ;;  %v5074_v42 = vadd.f32 %v5066_v48, %v5010_v17  ;;  %v14411_v51 = vld [vmem:[#allocation44_spill] sm:$0xff] }
 0xb58   : > { %v5248_v9 = vadd.f32 %v5240_v8, %v5184_v19  ;;  %v5138_v14 = vadd.f32 %v5130_v54, %v5074_v42  ;;  %v14410_v8 = vld [vmem:[#allocation20_spill] sm:$0xff] }
 0xb59   : > { %v5203_v5 = vpop.permute.xlu1 %5202  ;;  %v4907_v11 = vpop.permute.xlu0 %4906  ;;  %v14427_v42 = vld [vmem:[#allocation24_spill] sm:$0xff] }
 0xb5a   : > { %v5312_v39 = vadd.f32 %v5304_v16, %v5248_v9  ;;  %v4947_v3 = vmul.f32 %v14397_v32, %v4907_v11  ;;  %v14412_v16 = vld [vmem:[#allocation42_spill] sm:$0xff] }
 0xb5c   : > { %v5376_v40 = vadd.f32 %v5368_v47, %v5312_v39  ;;  %v5011_v2 = vadd.f32 %v5003_v45, %v4947_v3  ;;  %v14415_v39 = vld [vmem:[#allocation39_spill] sm:$0xff]  ;;  %v14417_v3 = vld [vmem:[#allocation46_spill] sm:$0xff] }
 0xb5d   : > { %v5091_v1 = vpop.permute.xlu0 %5090  ;;  %v4903_v7 = vpop.permute.xlu1 %4902  ;;  %v14419_v45 = vld [vmem:[#allocation18_spill] sm:$0xff] }
 0xb5e   : > { %v4945_v63 = vmul.f32 %v14400_v27, %v4903_v7  ;;  %v5075_v22 = vadd.f32 %v5067_v33, %v5011_v2  ;;  %v5131_v13 = vmul.f32 %v14408_v49, %v5091_v1  ;;  %v5178_v7 = vmul.f32 %v14411_v51, %v14410_v8  ;;  %v14424_v33 = vld [vmem:[#allocation43_spill] sm:$0xff] }
 0xb5f   : > { %v8897_v8 = vmov 54   ;;  %v8898_v51 = vmov 55  }
 0xb60   : > { %v5139_v19 = vadd.f32 %v5131_v13, %v5075_v22  ;;  %v5186_v32 = vadd.f32 %v5178_v7, %v5138_v14  ;;  %v14426_v22 = vld [vmem:[#allocation13_spill] sm:$0xff]  ;;  %v8895_v14 = vmov 52   ;;  %v8899_v7 = vmov 56  }
 0xb61   : > { %v5023_v58 = vpop.permute.xlu0 %5022  ;;  %v4959_v23 = vpop.permute.xlu1 %4958  ;;  %8273 = vset.pattern.permute.xlu1 %v8895_v14  ;;  %8272 = vset.pattern.permute.xlu0 %v8895_v14 }
 0xb62   : > { %v5001_v38 = vmul.f32 %v14398_v10, %v4959_v23  ;;  %v5065_v26 = vmul.f32 %v14406_v30, %v5023_v58  ;;  %v14413_v58 = vld [vmem:[#allocation51_spill] sm:$0xff]  ;;  %v14414_v23 = vld [vmem:[#allocation38_spill] sm:$0xff]  ;;  %v5242_v10 = vmul.f32 %v14417_v3, %v13135_v41  ;;  %5812 = vperm.xlu0 %8272, %v13016_v6  }
 0xb63   : > { %v5177_v25 = vmul.f32 %v14413_v58, %v14412_v16  ;;  %v5179_v1 = vmul.f32 %v14415_v39, %v14414_v23  ;;  %v8901_v16 = vmov 58  }
 0xb64   : > { %v5009_v46 = vadd.f32 %v5001_v38, %v4945_v63  ;;  %v5250_v31 = vadd.f32 %v5242_v10, %v5186_v32 }
 0xb65   : > { %v5087_v62 = vpop.permute.xlu0 %5086  ;;  %v5389_v50 = vpop.permute.xlu1 %5388  ;;  %v5187_v38 = vadd.f32 %v5179_v1, %v5139_v19  ;;  %v14428_v19 = vld [vmem:[#allocation50_spill] sm:$0xff] }
 0xb66   : > { %v5432_v37 = vmul.f32 %v14401_v29, %v5389_v50  ;;  %v5073_v59 = vadd.f32 %v5065_v26, %v5009_v46  ;;  %v5129_v56 = vmul.f32 %v14409_v24, %v5087_v62  ;;  %v14418_v50 = vld [vmem:[#allocation49_spill] sm:$0xff]  ;;  %v14422_v46 = vld [vmem:[#allocation15_spill] sm:$0xff]  ;;  %5816 = vperm.xlu1 %8273, %v14428_v19   ;;  %5828 = vperm.xlu0 %8272, %v13028_v52  }
 0xb68   : > { %v5440_v61 = vadd.f32 %v5432_v37, %v5376_v40  ;;  %v5137_v4 = vadd.f32 %v5129_v56, %v5073_v59  ;;  %v14420_v40 = vld [vmem:[#allocation47_spill] sm:$0xff] }
 0xb69   : > { %v5265_v43 = vpop.permute.xlu0 %5264  ;;  %v5331_v18 = vpop.permute.xlu1 %5330  ;;  %v5243_v29 = vmul.f32 %v14420_v40, %v5203_v5  ;;  %v14421_v37 = vld [vmem:[#allocation27_spill] sm:$0xff] }
 0xb6a   : > { %7458 = vmatprep.mubr.f32.mxu0 %v5440_v61  ;;  %v5185_v62 = vadd.f32 %v5177_v25, %v5137_v4  ;;  %v5306_v27 = vmul.f32 %v14419_v45, %v5265_v43  ;;  %v5371_v49 = vmul.f32 %v14426_v22, %v5331_v18  ;;  %v8896_v4 = vmov 53   ;;  %v14429_v18 = vld [vmem:[#allocation12_spill] sm:$0xff] }
 0xb6b   : > { %v5251_v48 = vadd.f32 %v5243_v29, %v5187_v38  ;;  %8274 = vset.pattern.permute.xlu1 %v8896_v4  ;;  %8277 = vset.pattern.permute.xlu0 %v8896_v4 }
 0xb6c   : > { %v5314_v60 = vadd.f32 %v5306_v27, %v5250_v31  ;;  %5852 = vperm.xlu1 %8274, %v13016_v6   ;;  %5856 = vperm.xlu0 %8277, %v14428_v19  }
 0xb6d   : > { %v5267_v53 = vpop.permute.xlu0 %5266  ;;  %v5199_v11 = vpop.permute.xlu1 %5198 }
 0xb6e   : > { %v5241_v47 = vmul.f32 %v14416_v44, %v5199_v11  ;;  %v5307_v15 = vmul.f32 %v14421_v37, %v5267_v53  ;;  %v8902_v44 = vmov 59  }
 0xb70   : > { %v5249_v36 = vadd.f32 %v5241_v47, %v5185_v62  ;;  %v5315_v17 = vadd.f32 %v5307_v15, %v5251_v48  ;;  %8275 = vset.pattern.permute.xlu1 %v8895_v14  ;;  %5860 = vperm.xlu0 %8277, %v13048_v20  }
 0xb71   : > { %v5329_v9 = vpop.permute.xlu0 %5328  ;;  %v5263_v28 = vpop.permute.xlu1 %5262  ;;  %5820 = vperm.xlu1 %8275, %v13048_v20  }
 0xb72   : > { %v5305_v21 = vmul.f32 %v14418_v50, %v5263_v28  ;;  %v5370_v35 = vmul.f32 %v14423_v55, %v5329_v9  ;;  %v5379_v56 = vadd.f32 %v5371_v49, %v5315_v17  ;;  %v8900_v9 = vmov 57   ;;  %v8366_v28 = vld [vmem:[%s14001_s2 + $0x10] ss:$28 sps:$4 sm:$0xff]  }
 0xb73   : > { %v8903_v55 = vmov 60   ;;  %v8904_v17 = vmov 61  }
 0xb74   : > { %v5313_v41 = vadd.f32 %v5305_v21, %v5249_v36  ;;  %v5378_v5 = vadd.f32 %v5370_v35, %v5314_v60  ;;  %5872 = vperm.xlu0 %8277, %v14429_v18  }
 0xb75   : > { %v5327_v63 = vpop.permute.xlu1 %5326  ;;  %v5393_v2 = vpop.permute.xlu0 %5392  ;;  %5824 = vperm.xlu1 %8275, %v13073_v12  }
 0xb76   : > { %v5369_v61 = vmul.f32 %v14422_v46, %v5327_v63  ;;  %v5434_v30 = vmul.f32 %v14424_v33, %v5393_v2 }
 0xb78   : > { %v5377_v43 = vadd.f32 %v5369_v61, %v5313_v41  ;;  %v5442_v59 = vadd.f32 %v5434_v30, %v5378_v5  ;;  %5876 = vperm.xlu0 %8277, %v13067_v34  }
 0xb79   : > { %v5391_v26 = vpop.permute.xlu1 %5390  ;;  %8276 = vset.pattern.permute.xlu1 %v8896_v4 }
 0xb7a   : > { %v5433_v54 = vmul.f32 %v14425_v57, %v5391_v26  ;;  %5864 = vperm.xlu1 %8276, %v13073_v12  }
 0xb7c   : > { %v5441_v13 = vadd.f32 %v5433_v54, %v5377_v43  ;;  %8284 = vset.pattern.permute.xlu0 %v8898_v51 }
 0xb7d   : > { %v5395_v24 = vpop.permute.xlu1 %5394  ;;  %6039 = vperm.xlu0 %8284, %v14428_v19  }
 0xb7e   : > { %v5435_v53 = vmul.f32 %v14427_v42, %v5395_v24  ;;  %7459 = vmatmul.mubr.f32.gmra.mrb[40].mxu0 %v5441_v13  ;;  %8278 = vset.pattern.permute.xlu1 %v8895_v14 }
 0xb7f   : > { %7461 = vmatprep.mubr.f32.mxu0 %v5442_v59  ;;  %5832 = vperm.xlu1 %8278, %v14429_v18  }
 0xb80   : > { %v5443_v11 = vadd.f32 %v5435_v53, %v5379_v56  ;;  %v8905_v56 = vmov 62  }
 0xb81   : > { %6047 = vperm.xlu0 %8284, %v13073_v12  }
 0xb82   : > { %7462 = vmatmul.mubr.f32.gmra.mrb[42].mxu0 %v5443_v11 }
 0xb83   : > { %8279 = vset.pattern.permute.xlu1 %v8896_v4  ;;  %7472 = vmatprep.mubr.msk.bf16.mxu0 %vm5733_vm5, %v8366_v28 }
 0xb84   : > { %5868 = vperm.xlu1 %8279, %v13028_v52  }
 0xb85   : > { %6055 = vperm.xlu0 %8284, %v14429_v18  }
 0xb86   : > { %v5567_v23 = vpop.permute.xlu0 %5566 }
 0xb88   : > { %8280 = vset.pattern.permute.xlu1 %v8895_v14 }
 0xb89   : > { %5836 = vperm.xlu1 %8280, %v13067_v34   ;;  %8293 = vset.pattern.permute.xlu0 %v8897_v8 }
 0xb8a   : > { %5979 = vperm.xlu0 %8293, %v13016_v6   ;;  %v13243_v1 = vpop.permute.xlu0 %5582 }
 0xb8d   : > { %5840 = vperm.xlu1 %8280, %v13107_v0  }
 0xb8e   : > { %5987 = vperm.xlu0 %8293, %v13048_v20   ;;  %v5571_v58 = vpop.permute.xlu1 %5570 }
 0xb8f   : > { %v5611_v32 = vpop.permute.xlu0 %5610 }
 0xb91   : > { %8281 = vset.pattern.permute.xlu1 %v8896_v4 }
 0xb92   : > { %5880 = vperm.xlu1 %8281, %v13107_v0   ;;  %5995 = vperm.xlu0 %8293, %v13028_v52  }
 0xb93   : > { %v5607_v25 = vpop.permute.xlu1 %5606  ;;  %v5615_v37 = vpop.permute.xlu0 %5614 }
 0xb96   : > { %8282 = vset.pattern.permute.xlu1 %v8897_v8  ;;  %6007 = vperm.xlu0 %8293, %v13107_v0  }
 0xb97   : > { %5983 = vperm.xlu1 %8282, %v14428_v19  }
 0xb98   : > { %v5575_v39 = vpop.permute.xlu1 %5574 }
 0xb9a   : > { %8300 = vset.pattern.permute.xlu0 %v8899_v7 }
 0xb9b   : > { %8283 = vset.pattern.permute.xlu1 %v8898_v51  ;;  %6107 = vperm.xlu0 %8300, %v13048_v20  }
 0xb9c   : > { %6035 = vperm.xlu1 %8283, %v13016_v6   ;;  %v5579_v47 = vpop.permute.xlu1 %5578 }
 0xb9f   : > { %6119 = vperm.xlu0 %8300, %v14429_v18  }
 0xba0   : > { %8285 = vset.pattern.permute.xlu1 %v8899_v7 }
 0xba1   : > { %6099 = vperm.xlu1 %8285, %v13016_v6   ;;  %v5619_v27 = vpop.permute.xlu1 %5618 }
 0xba3   : > { %6123 = vperm.xlu0 %8300, %v13067_v34  }
 0xba5   : > { %6103 = vperm.xlu1 %8285, %v14428_v19  }
 0xba6   : > { %v5587_v11 = vpop.permute.xlu1 %5586 }
 0xba7   : > { %8305 = vset.pattern.permute.xlu0 %v8900_v9 }
 0xba8   : > { %6179 = vperm.xlu0 %8305, %v13028_v52  }
 0xba9   : > { %8286 = vset.pattern.permute.xlu1 %v8897_v8 }
 0xbaa   : > { %5991 = vperm.xlu1 %8286, %v13073_v12  }
 0xbab   : > { %v5623_v14 = vpop.permute.xlu1 %5622 }
 0xbac   : > { %6191 = vperm.xlu0 %8305, %v13107_v0  }
 0xbae   : > { %8287 = vset.pattern.permute.xlu1 %v8898_v51 }
 0xbaf   : > { %6043 = vperm.xlu1 %8287, %v13048_v20  }
 0xbb0   : > { %8311 = vset.pattern.permute.xlu0 %v8901_v16  ;;  %v5591_v4 = vpop.permute.xlu1 %5590 }
 0xbb1   : > { %6215 = vperm.xlu0 %8311, %v14428_v19  }
 0xbb3   : > { %8288 = vset.pattern.permute.xlu1 %v8900_v9 }
 0xbb4   : > { %6163 = vperm.xlu1 %8288, %v13016_v6   ;;  %v5595_v28 = vpop.permute.xlu1 %5594 }
 0xbb5   : > { %6231 = vperm.xlu0 %8311, %v14429_v18  }
 0xbb8   : > { %6167 = vperm.xlu1 %8288, %v14428_v19  }
 0xbb9   : > { %6239 = vperm.xlu0 %8311, %v13107_v0  }
 0xbbc   : > { %8289 = vset.pattern.permute.xlu1 %v8899_v7 }
 0xbbd   : > { %6111 = vperm.xlu1 %8289, %v13073_v12   ;;  %8315 = vset.pattern.permute.xlu0 %v8902_v44 }
 0xbbe   : > { %6275 = vperm.xlu0 %8315, %v13016_v6  }
 0xbc1   : > { %8290 = vset.pattern.permute.xlu1 %v8901_v16 }
 0xbc2   : > { %6211 = vperm.xlu1 %8290, %v13016_v6   ;;  %6287 = vperm.xlu0 %8315, %v13073_v12  }
 0xbc6   : > { %8291 = vset.pattern.permute.xlu1 %v8897_v8  ;;  %6299 = vperm.xlu0 %8315, %v13067_v34  }
 0xbc7   : > { %5999 = vperm.xlu1 %8291, %v14429_v18  }
 0xbca   : > { %8319 = vset.pattern.permute.xlu0 %v8903_v55 }
 0xbcb   : > { %8292 = vset.pattern.permute.xlu1 %v8898_v51  ;;  %6339 = vperm.xlu0 %8319, %v13016_v6  }
 0xbcc   : > { %6051 = vperm.xlu1 %8292, %v13028_v52  }
 0xbcf   : > { %6363 = vperm.xlu0 %8319, %v13067_v34  }
 0xbd0   : > { %8294 = vset.pattern.permute.xlu1 %v8900_v9 }
 0xbd1   : > { %6171 = vperm.xlu1 %8294, %v13048_v20  }
 0xbd3   : > { %8323 = vset.pattern.permute.xlu0 %v8904_v17 }
 0xbd4   : > { %6411 = vperm.xlu0 %8323, %v13048_v20  }
 0xbd5   : > { %6175 = vperm.xlu1 %8294, %v13073_v12  }
 0xbd8   : > { %6423 = vperm.xlu0 %8323, %v14429_v18  }
 0xbd9   : > { %8295 = vset.pattern.permute.xlu1 %v8902_v44 }
 0xbda   : > { %6279 = vperm.xlu1 %8295, %v14428_v19  }
 0xbdc   : > { %6427 = vperm.xlu0 %8323, %v13067_v34  }
 0xbde   : > { %8296 = vset.pattern.permute.xlu1 %v8899_v7 }
 0xbdf   : > { %6115 = vperm.xlu1 %8296, %v13028_v52  }
 0xbe0   : > { %8327 = vset.pattern.permute.xlu0 %v8905_v56 }
 0xbe1   : > { %6467 = vperm.xlu0 %8327, %v13016_v6  }
 0xbe3   : > { %8297 = vset.pattern.permute.xlu1 %v8901_v16 }
 0xbe4   : > { %6219 = vperm.xlu1 %8297, %v13048_v20  }
 0xbe5   : > { %6475 = vperm.xlu0 %8327, %v13048_v20  }
 0xbe8   : > { %6223 = vperm.xlu1 %8297, %v13073_v12  }
 0xbe9   : > { %6487 = vperm.xlu0 %8327, %v14429_v18  }
 0xbec   : > { %8298 = vset.pattern.permute.xlu1 %v8903_v55 }
 0xbed   : > { %6343 = vperm.xlu1 %8298, %v14428_v19   ;;  %6491 = vperm.xlu0 %8327, %v13067_v34  }
 0xbf1   : > { %8299 = vset.pattern.permute.xlu1 %v8897_v8  ;;  %v8906_v8 = vmov 63  }
 0xbf2   : > { %6003 = vperm.xlu1 %8299, %v13067_v34   ;;  %8330 = vset.pattern.permute.xlu0 %v8906_v8 }
 0xbf3   : > { %6519 = vperm.xlu0 %8330, %v14428_v19  }
 0xbf6   : > { %8301 = vset.pattern.permute.xlu1 %v8898_v51 }
 0xbf7   : > { %6059 = vperm.xlu1 %8301, %v13067_v34   ;;  %6535 = vperm.xlu0 %8330, %v14429_v18  }
 0xbfb   : > { %6063 = vperm.xlu1 %8301, %v13107_v0   ;;  %6543 = vperm.xlu0 %8330, %v13107_v0  }
 0xbff   : > { %8302 = vset.pattern.permute.xlu1 %v8900_v9 }
 0xc00   : > { %6183 = vperm.xlu1 %8302, %v14429_v18  }
 0xc04   : > { %8303 = vset.pattern.permute.xlu1 %v8902_v44 }
 0xc05   : > { %6283 = vperm.xlu1 %8303, %v13048_v20  }
 0xc09   : > { %8304 = vset.pattern.permute.xlu1 %v8904_v17 }
 0xc0a   : > { %6403 = vperm.xlu1 %8304, %v13016_v6  }
 0xc0e   : > { %6407 = vperm.xlu1 %8304, %v14428_v19  }
 0xc12   : > { %8306 = vset.pattern.permute.xlu1 %v8899_v7 }
 0xc13   : > { %6127 = vperm.xlu1 %8306, %v13107_v0  }
 0xc17   : > { %8307 = vset.pattern.permute.xlu1 %v8901_v16 }
 0xc18   : > { %6227 = vperm.xlu1 %8307, %v13028_v52  }
 0xc19   : > { %v7454_v3 = vpop.f32.mrb[36].mxu0 }
 0xc1a   : > { %v5598_v10 = vmul.f32 %v7454_v3, %v5571_v58  ;;  %v5526_v38 = vpop.f32.mrb[37].mxu0  ;;  %v5627_v58 = vpop.permute.xlu0 %5626 }
 0xc1b   : > { %v5597_v62 = vmul.f32 %v5567_v23, %v5526_v38  ;;  %v5635_v3 = vpop.permute.xlu1 %5634 }
 0xc1c   : > { %v5638_v50 = vadd.f32 %v5611_v32, %v5598_v10  ;;  %8308 = vset.pattern.permute.xlu1 %v8903_v55 }
 0xc1d   : > { %v5637_v21 = vadd.f32 %v5607_v25, %v5597_v62  ;;  %v7457_v45 = vpop.f32.mrb[38].mxu0  ;;  %6347 = vperm.xlu1 %8308, %v13048_v20  }
 0xc1e   : > { %v7246_v63 = vmul.f32 -1.442695, %v5638_v50  ;;  %v5600_v40 = vmul.f32 %v7457_v45, %v5579_v47  ;;  %v5536_v29 = vpop.f32.mrb[39].mxu0  ;;  %v5631_v45 = vpop.permute.xlu0 %5630 }
 0xc1f   : > { %v7245_v15 = vmul.f32 -1.442695, %v5637_v21  ;;  %v5599_v36 = vmul.f32 %v5575_v39, %v5536_v29  ;;  %v8907_v29 = vmov 64  }
 0xc20   : > { %8570 = vpow2.f32 %v7246_v63  ;;  %v5640_v2 = vadd.f32 %v5619_v27, %v5600_v40  ;;  %8335 = vset.pattern.permute.xlu0 %v8907_v29 }
 0xc21   : > { %8572 = vpow2.f32 %v7245_v15  ;;  %v5639_v46 = vadd.f32 %v5615_v37, %v5599_v36  ;;  %6567 = vperm.xlu0 %8335, %v13073_v12   ;;  %6351 = vperm.xlu1 %8308, %v13073_v12  }
 0xc22   : > { %v7248_v61 = vmul.f32 -1.442695, %v5640_v2 }
 0xc23   : > { %v7247_v31 = vmul.f32 -1.442695, %v5639_v46 }
 0xc24   : > { %8574 = vpow2.f32 %v7248_v61 }
 0xc25   : > { %8576 = vpow2.f32 %v7247_v31  ;;  %6571 = vperm.xlu0 %8335, %v13028_v52   ;;  %8309 = vset.pattern.permute.xlu1 %v8905_v56 }
 0xc26   : > { %6471 = vperm.xlu1 %8309, %v14428_v19  }
 0xc2a   : > { %v8571_v35 = vpop.eup %8570  ;;  %8310 = vset.pattern.permute.xlu1 %v8900_v9 }
 0xc2b   : > { %v8573_v48 = vpop.eup %8572  ;;  %v5670_v41 = vadd.f32 1.0, %v8571_v35  ;;  %6187 = vperm.xlu1 %8310, %v13067_v34  }
 0xc2c   : > { %v5669_v60 = vadd.f32 1.0, %v8573_v48  ;;  %v13304_v48 = vpop.permute.xlu1 %5816 }
 0xc2d   : > { %8578 = vrcp.f32 %v5670_v41 }
 0xc2e   : > { %v8575_v33 = vpop.eup %8574  ;;  %8580 = vrcp.f32 %v5669_v60 }
 0xc2f   : > { %v8577_v30 = vpop.eup %8576  ;;  %v5672_v26 = vadd.f32 1.0, %v8575_v33  ;;  %8312 = vset.pattern.permute.xlu1 %v8902_v44 }
 0xc30   : > { %v5671_v43 = vadd.f32 1.0, %v8577_v30  ;;  %6291 = vperm.xlu1 %8312, %v13028_v52   ;;  %v13308_v9 = vpop.permute.xlu1 %5852 }
 0xc31   : > { %8582 = vrcp.f32 %v5672_v26 }
 0xc32   : > { %8584 = vrcp.f32 %v5671_v43 }
 0xc34   : > { %6295 = vperm.xlu1 %8312, %v14429_v18  }
 0xc37   : > { %v8579_v57 = vpop.eup %8578 }
 0xc38   : > { %v8581_v54 = vpop.eup %8580  ;;  %v5694_v5 = vmul.f32 %v8579_v57, %v5638_v50  ;;  %8313 = vset.pattern.permute.xlu1 %v8904_v17 }
 0xc39   : > { %v5693_v22 = vmul.f32 %v8581_v54, %v5637_v21  ;;  %6415 = vperm.xlu1 %8313, %v13073_v12  }
 0xc3b   : > { %v8583_v49 = vpop.eup %8582  ;;  %v5709_v13 = vpack.c.bf16 %v5694_v5, %v5693_v22 }
 0xc3c   : > { %v8585_v59 = vpop.eup %8584  ;;  %v5696_v24 = vmul.f32 %v8583_v49, %v5640_v2  ;;  %v8367_v49 = vld [vmem:[%s14001_s2 + $0x48] ss:$28 sps:$4 sm:$0xff]  }
 0xc3d   : > { %v5695_v42 = vmul.f32 %v8585_v59, %v5639_v46  ;;  %7464 = vmatprep.subr.bf16.mxu0 %v5709_v13  ;;  %v8368_v59 = vld [vmem:[%s14001_s2 + $0x80] ss:$28 sps:$4 sm:$0xff]   ;;  %8314 = vset.pattern.permute.xlu1 %v8901_v16 }
 0xc3e   : > { %7465 = vmatpush3.bf16.msra.mxu0 %v5709_v13  ;;  %v13315_v13 = vpop.permute.xlu1 %5820  ;;  %6235 = vperm.xlu1 %8314, %v13067_v34  }
 0xc3f   : > { %v5710_v53 = vpack.c.bf16 %v5696_v24, %v5695_v42  ;;  %v8369_v42 = vld [vmem:[%s14001_s2 + $0xb8] ss:$28 sps:$4 sm:$0xff]  }
 0xc41   : > { %7466 = vmatprep.subr.bf16.mxu0 %v5710_v53 }
 0xc42   : > { %7467 = vmatpush3.bf16.msra.mxu0 %v5710_v53  ;;  %v13324_v24 = vpop.permute.xlu1 %5824  ;;  %8316 = vset.pattern.permute.xlu1 %v8903_v55 }
 0xc43   : > { %6355 = vperm.xlu1 %8316, %v13028_v52  }
 0xc46   : > { %v13331_v53 = vpop.permute.xlu1 %5864 }
 0xc47   : > { %6359 = vperm.xlu1 %8316, %v14429_v18  }
 0xc4a   : > { %v13336_v16 = vpop.permute.xlu1 %5832 }
 0xc4b   : > { %8317 = vset.pattern.permute.xlu1 %v8905_v56 }
 0xc4c   : > { %6479 = vperm.xlu1 %8317, %v13073_v12  }
 0xc50   : > { %8318 = vset.pattern.permute.xlu1 %v8906_v8 }
 0xc51   : > { %v7460_v51 = vpop.f32.mrb[40].mxu0  ;;  %6515 = vperm.xlu1 %8318, %v13016_v6   ;;  %v13355_v6 = vld [vmem:[%s14000_s1] sm:$0xff] }
 0xc52   : > { %v5602_v25 = vmul.f32 %v7460_v51, %v5587_v11  ;;  %v5546_v23 = vpop.f32.mrb[41].mxu0  ;;  %v13341_v11 = vpop.permute.xlu1 %5868  ;;  %14430 = vst [vmem:[#allocation56_spill] sm:$0xff] %v13355_v6 }
 0xc53   : > { %v5601_v39 = vmul.f32 %v13243_v1, %v5546_v23 }
 0xc54   : > { %v5642_v47 = vadd.f32 %v5627_v58, %v5602_v25 }
 0xc55   : > { %v5641_v7 = vadd.f32 %v5623_v14, %v5601_v39  ;;  %v7463_v32 = vpop.f32.mrb[42].mxu0  ;;  %8320 = vset.pattern.permute.xlu1 %v8902_v44 }
 0xc56   : > { %v7250_v10 = vmul.f32 -1.442695, %v5642_v47  ;;  %v5604_v38 = vmul.f32 %v7463_v32, %v5595_v28  ;;  %v5556_v62 = vpop.f32.mrb[43].mxu0  ;;  %6303 = vperm.xlu1 %8320, %v13107_v0   ;;  %v13345_v14 = vpop.permute.xlu1 %5836  ;;  %v13371_v28 = vld [vmem:[%s14000_s1 + $0x20] sm:$0xff] }
 0xc57   : > { %v7249_v50 = vmul.f32 -1.442695, %v5641_v7  ;;  %v5603_v21 = vmul.f32 %v5591_v4, %v5556_v62  ;;  %14431 = vst [vmem:[#allocation10_spill] sm:$0xff] %v13371_v28 }
 0xc58   : > { %8586 = vpow2.f32 %v7250_v10  ;;  %v5644_v27 = vadd.f32 %v5635_v3, %v5604_v38 }
 0xc59   : > { %8588 = vpow2.f32 %v7249_v50  ;;  %v5643_v1 = vadd.f32 %v5631_v45, %v5603_v21 }
 0xc5a   : > { %v7252_v63 = vmul.f32 -1.442695, %v5644_v27  ;;  %8321 = vset.pattern.permute.xlu1 %v8904_v17  ;;  %v13349_v4 = vpop.permute.xlu1 %5840 }
 0xc5b   : > { %v7251_v40 = vmul.f32 -1.442695, %v5643_v1  ;;  %6419 = vperm.xlu1 %8321, %v13028_v52  }
 0xc5c   : > { %8590 = vpow2.f32 %v7252_v63 }
 0xc5d   : > { %8592 = vpow2.f32 %v7251_v40 }
 0xc5e   : > { %v13358_v44 = vpop.permute.xlu1 %5880 }
 0xc5f   : > { %8322 = vset.pattern.permute.xlu1 %v8907_v29 }
 0xc60   : > { %6555 = vperm.xlu1 %8322, %v13355_v6  }
 0xc62   : > { %v8587_v37 = vpop.eup %8586  ;;  %v13361_v51 = vpop.permute.xlu1 %5983 }
 0xc63   : > { %v8589_v15 = vpop.eup %8588  ;;  %v5674_v36 = vadd.f32 1.0, %v8587_v37 }
 0xc64   : > { %v5673_v2 = vadd.f32 1.0, %v8589_v15  ;;  %6559 = vperm.xlu1 %8322, %v14428_v19  }
 0xc65   : > { %8594 = vrcp.f32 %v5674_v36 }
 0xc66   : > { %v8591_v46 = vpop.eup %8590  ;;  %8596 = vrcp.f32 %v5673_v2  ;;  %v13366_v52 = vpop.permute.xlu1 %6035 }
 0xc67   : > { %v8593_v61 = vpop.eup %8592  ;;  %v5676_v31 = vadd.f32 1.0, %v8591_v46 }
 0xc68   : > { %v5675_v35 = vadd.f32 1.0, %v8593_v61  ;;  %8324 = vset.pattern.permute.xlu1 %v8903_v55 }
 0xc69   : > { %8598 = vrcp.f32 %v5676_v31  ;;  %6367 = vperm.xlu1 %8324, %v13107_v0  }
 0xc6a   : > { %8600 = vrcp.f32 %v5675_v35  ;;  %v13376_v19 = vpop.permute.xlu1 %6099 }
 0xc6d   : > { %8325 = vset.pattern.permute.xlu1 %v8905_v56 }
 0xc6e   : > { %6483 = vperm.xlu1 %8325, %v13371_v28   ;;  %v13379_v55 = vpop.permute.xlu1 %6103 }
 0xc6f   : > { %v8595_v41 = vpop.eup %8594 }
 0xc70   : > { %v8597_v60 = vpop.eup %8596  ;;  %v5698_v33 = vmul.f32 %v8595_v41, %v5642_v47 }
 0xc71   : > { %v5697_v30 = vmul.f32 %v8597_v60, %v5641_v7 }
 0xc72   : > { %8326 = vset.pattern.permute.xlu1 %v8906_v8  ;;  %v13383_v58 = vpop.permute.xlu1 %5991 }
 0xc73   : > { %v8599_v26 = vpop.eup %8598  ;;  %v5711_v43 = vpack.c.bf16 %v5698_v33, %v5697_v30  ;;  %6523 = vperm.xlu1 %8326, %v13048_v20  }
 0xc74   : > { %v8601_v57 = vpop.eup %8600  ;;  %v5700_v54 = vmul.f32 %v8599_v26, %v5644_v27 }
 0xc75   : > { %v5699_v5 = vmul.f32 %v8601_v57, %v5643_v1  ;;  %7468 = vmatprep.subr.bf16.mxu0 %v5711_v43 }
 0xc76   : > { %7469 = vmatpush3.bf16.msra.mxu0 %v5711_v43  ;;  %v13388_v25 = vpop.permute.xlu1 %6043 }
 0xc77   : > { %v5712_v22 = vpack.c.bf16 %v5700_v54, %v5699_v5  ;;  %6527 = vperm.xlu1 %8326, %v13073_v12  }
 0xc79   : > { %7470 = vmatprep.subr.bf16.mxu0 %v5712_v22 }
 0xc7a   : > { %7471 = vmatpush3.bf16.msra.mxu0 %v5712_v22  ;;  %v13393_v12 = vpop.permute.xlu1 %6163 }
 0xc7b   : > { %8328 = vset.pattern.permute.xlu1 %v8904_v17 }
 0xc7c   : > { %6431 = vperm.xlu1 %8328, %v13107_v0  }
 0xc7d   : > { %7473 = vmatmul.mubr.msk.bf16.vlgmr.msra.gmra.mrb[44].mxu0 %vm5733_vm5, %v8367_v49 }
 0xc7e   : > { %7476 = vmatprep.mubr.msk.bf16.mxu0 %vm5733_vm5, %v8368_v59  ;;  %v13397_v17 = vpop.permute.xlu1 %6167 }
 0xc80   : > { %8329 = vset.pattern.permute.xlu1 %v8907_v29 }
 0xc81   : > { %6563 = vperm.xlu1 %8329, %v13048_v20  }
 0xc82   : > { %v13401_v20 = vpop.permute.xlu1 %6111 }
 0xc85   : > { %7477 = vmatmul.mubr.msk.bf16.gmra.mrb[48].mxu0 %vm5733_vm5, %v8369_v42  ;;  %8331 = vset.pattern.permute.xlu1 %v8905_v56 }
 0xc86   : > { %6495 = vperm.xlu1 %8331, %v13107_v0   ;;  %v13404_v0 = vpop.permute.xlu1 %6211 }
 0xc8a   : > { %8332 = vset.pattern.permute.xlu1 %v8906_v8  ;;  %v13406_v56 = vpop.permute.xlu1 %5999 }
 0xc8b   : > { %6531 = vperm.xlu1 %8332, %v13371_v28   ;;  %14432 = vst [vmem:[#allocation33_spill] sm:$0xff] %v13406_v56 }
 0xc8e   : > { %v13408_v23 = vpop.permute.xlu1 %6051 }
 0xc8f   : > { %8333 = vset.pattern.permute.xlu1 %v8907_v29  ;;  %14433 = vst [vmem:[#allocation19_spill] sm:$0xff] %v13408_v23 }
 0xc90   : > { %6575 = vperm.xlu1 %8333, %v14429_v18  }
 0xc92   : > { %v13410_v39 = vpop.permute.xlu1 %6171 }
 0xc94   : > { %8334 = vset.pattern.permute.xlu1 %v8906_v8  ;;  %v5813_v8 = vpop.permute.xlu0 %5812 }
 0xc95   : > { %6539 = vperm.xlu1 %8334, %v13067_v34  }
 0xc96   : > { %v13412_v47 = vpop.permute.xlu1 %6175 }
 0xc98   : > { %v5829_v32 = vpop.permute.xlu0 %5828 }
 0xc99   : > { %8336 = vset.pattern.permute.xlu1 %v8907_v29 }
 0xc9a   : > { %v13414_v18 = vpop.permute.xlu1 %6279 }
 0xc9c   : > { %v13422_v10 = vpop.permute.xlu0 %5856 }
 0xc9e   : > { %v13416_v7 = vpop.permute.xlu1 %6115 }
 0xc9f   : > { %14434 = vst [vmem:[#allocation37_spill] sm:$0xff] %v13416_v7 }
 0xca0   : > { %v5861_v62 = vpop.permute.xlu0 %5860 }
 0xca2   : > { %v13418_v34 = vpop.permute.xlu1 %6219 }
 0xca4   : > { %v5873_v21 = vpop.permute.xlu0 %5872 }
 0xca6   : > { %v13420_v3 = vpop.permute.xlu1 %6223 }
 0xca8   : > { %v13430_v27 = vpop.permute.xlu0 %5876 }
 0xcaa   : > { %v13424_v38 = vpop.permute.xlu1 %6343 }
 0xcac   : > { %v13434_v63 = vpop.permute.xlu0 %6039 }
 0xcae   : > { %v13426_v50 = vpop.permute.xlu1 %6003 }
 0xcaf   : > { %14435 = vst [vmem:[#allocation31_spill] sm:$0xff] %v13426_v50 }
 0xcb0   : > { %v13438_v29 = vpop.permute.xlu0 %6047 }
 0xcb2   : > { %v13428_v45 = vpop.permute.xlu1 %6059 }
 0xcb4   : > { %v13442_v15 = vpop.permute.xlu0 %6055 }
 0xcb5   : > { %14438 = vst [vmem:[#allocation40_spill] sm:$0xff] %v13442_v15 }
 0xcb6   : > { %v13432_v1 = vpop.permute.xlu1 %6063 }
 0xcb7   : > { %14436 = vst [vmem:[#allocation35_spill] sm:$0xff] %v13432_v1 }
 0xcb8   : > { %v13446_v2 = vpop.permute.xlu0 %5979 }
 0xcba   : > { %v13436_v40 = vpop.permute.xlu1 %6183 }
 0xcbb   : > { %14437 = vst [vmem:[#allocation55_spill] sm:$0xff] %v13436_v40 }
 0xcbc   : > { %v13450_v61 = vpop.permute.xlu0 %5987 }
 0xcbe   : > { %v13440_v37 = vpop.permute.xlu1 %6283 }
 0xcc0   : > { %v13454_v35 = vpop.permute.xlu0 %5995 }
 0xcc1   : > { %14440 = vst [vmem:[#allocation11_spill] sm:$0xff] %v13454_v35 }
 0xcc2   : > { %v13444_v36 = vpop.permute.xlu1 %6403 }
 0xcc4   : > { %v13458_v60 = vpop.permute.xlu0 %6007 }
 0xcc5   : > { %14442 = vst [vmem:[#allocation16_spill] sm:$0xff] %v13458_v60 }
 0xcc6   : > { %v13448_v46 = vpop.permute.xlu1 %6407 }
 0xcc8   : > { %v13463_v57 = vpop.permute.xlu0 %6107 }
 0xcca   : > { %v13452_v31 = vpop.permute.xlu1 %6127 }
 0xccb   : > { %14439 = vst [vmem:[#allocation30_spill] sm:$0xff] %v13452_v31 }
 0xccc   : > { %v13471_v60 = vpop.permute.xlu0 %6119 }
 0xccd   : > { %14443 = vst [vmem:[#allocation17_spill] sm:$0xff] %v13471_v60 }
 0xcce   : > { %v13456_v41 = vpop.permute.xlu1 %6227 }
 0xccf   : > { %14441 = vst [vmem:[#allocation53_spill] sm:$0xff] %v13456_v41 }
 0xcd0   : > { %v13481_v1 = vpop.permute.xlu0 %6123 }
 0xcd1   : > { %14445 = vst [vmem:[#allocation41_spill] sm:$0xff] %v13481_v1 }
 0xcd2   : > { %v13460_v33 = vpop.permute.xlu1 %6347 }
 0xcd6   : > { %v13465_v59 = vpop.permute.xlu1 %6351 }
 0xd50   : > { %v7474_v30 = vpop.f32.mrb[44].mxu0 }
 0xd51   : > { %v5845_v26 = vmul.f32 %v7474_v30, %v13315_v13  ;;  %v5780_v43 = vpop.f32.mrb[45].mxu0  ;;  %v13475_v30 = vpop.permute.xlu1 %6471 }
 0xd52   : > { %v5843_v54 = vmul.f32 %v5813_v8, %v5780_v43  ;;  %v7475_v5 = vpop.f32.mrb[46].mxu0  ;;  %14444 = vst [vmem:[#allocation54_spill] sm:$0xff] %v13475_v30 }
 0xd53   : > { %v5885_v22 = vadd.f32 %v5861_v62, %v5845_v26  ;;  %v5783_v49 = vpop.f32.mrb[47].mxu0  ;;  %v5846_v41 = vmul.f32 %v7475_v5, %v13324_v24 }
 0xd54   : > { %v13468_v42 = vadd.f32 %v13308_v9, %v5843_v54 }
 0xd55   : > { %v7263_v40 = vmul.f32 -1.442695, %v5885_v22  ;;  %v13484_v7 = vpop.permute.xlu1 %6187 }
 0xd56   : > { %v7261_v31 = vmul.f32 -1.442695, %v13468_v42  ;;  %14446 = vst [vmem:[#allocation48_spill] sm:$0xff] %v13484_v7 }
 0xd57   : > { %8602 = vpow2.f32 %v7263_v40 }
 0xd58   : > { %v13473_v56 = vpop.f32.mrb[48].mxu0  ;;  %8604 = vpow2.f32 %v7261_v31 }
 0xd59   : > { %v5796_v13 = vpop.f32.mrb[49].mxu0 }
 0xd5a   : > { %v5847_v8 = vmul.f32 %v5829_v32, %v5796_v13  ;;  %v7479_v43 = vpop.f32.mrb[50].mxu0  ;;  %v13491_v13 = vpop.permute.xlu1 %6291 }
 0xd5b   : > { %v5850_v62 = vmul.f32 %v7479_v43, %v13349_v4  ;;  %v5799_v26 = vpop.f32.mrb[51].mxu0  ;;  %14448 = vst [vmem:[#allocation28_spill] sm:$0xff] %v13491_v13 }
 0xd5c   : > { %v5887_v9 = vadd.f32 %v13341_v11, %v5847_v8  ;;  %v5848_v54 = vmul.f32 %v13336_v16, %v5799_v26  ;;  %v13487_v11 = vadd.f32 %v13331_v53, %v5846_v41  ;;  %v13489_v16 = vpop.permute.xlu0 %6179 }
 0xd5d   : > { %v5890_v40 = vadd.f32 %v13358_v44, %v5850_v62  ;;  %14447 = vst [vmem:[#allocation32_spill] sm:$0xff] %v13489_v16 }
 0xd5e   : > { %v7265_v60 = vmul.f32 -1.442695, %v5887_v9  ;;  %v5888_v15 = vadd.f32 %v5873_v21, %v5848_v54  ;;  %v7264_v24 = vmul.f32 -1.442695, %v13487_v11  ;;  %v13496_v43 = vpop.permute.xlu1 %6295  ;;  %v13501_v54 = vld [vmem:[%s14006_s7 + $0x9] ss:$0 sm:$0xff] }
 0xd5f   : > { %v7268_v28 = vmul.f32 -1.442695, %v5890_v40  ;;  %14450 = vst [vmem:[#allocation34_spill] sm:$0xff] %v13496_v43 }
 0xd60   : > { %8606 = vpow2.f32 %v7265_v60  ;;  %v7266_v32 = vmul.f32 -1.442695, %v5888_v15  ;;  %v13494_v5 = vpop.permute.xlu0 %6191 }
 0xd61   : > { %v8603_v31 = vpop.eup %8602  ;;  %8608 = vpow2.f32 %v7268_v28  ;;  %14449 = vst [vmem:[#allocation45_spill] sm:$0xff] %v13494_v5 }
 0xd62   : > { %v5917_v4 = vadd.f32 1.0, %v8603_v31  ;;  %8610 = vpow2.f32 %v7266_v32  ;;  %v8605_v44 = vpop.eup %8604  ;;  %v5844_v31 = vmul.f32 %v13304_v48, %v5783_v49 }
 0xd63   : > { %v5915_v21 = vadd.f32 1.0, %v8605_v44 }
 0xd64   : > { %8612 = vrcp.f32 %v5917_v4  ;;  %v13504_v4 = vpop.permute.xlu0 %6215 }
 0xd65   : > { %8614 = vpow2.f32 %v7264_v24  ;;  %v13509_v24 = vpop.permute.xlu1 %6415 }
 0xd66   : > { %8616 = vrcp.f32 %v5915_v21  ;;  %v13512_v21 = vadd.f32 %v13422_v10, %v5844_v31 }
 0xd68   : > { %v13518_v48 = vpop.permute.xlu0 %6231 }
 0xd69   : > { %14451 = vst [vmem:[#allocation23_spill] sm:$0xff] %v13518_v48  ;;  %v13525_v10 = vpop.permute.xlu1 %6235 }
 0xd6a   : > { %v8607_v60 = vpop.eup %8606  ;;  %14452 = vst [vmem:[#allocation29_spill] sm:$0xff] %v13525_v10 }
 0xd6b   : > { %v8609_v8 = vpop.eup %8608  ;;  %v5919_v28 = vadd.f32 1.0, %v8607_v60 }
 0xd6c   : > { %v8611_v62 = vpop.eup %8610  ;;  %v5922_v53 = vadd.f32 1.0, %v8609_v8  ;;  %v7262_v8 = vmul.f32 -1.442695, %v13512_v21  ;;  %v13538_v48 = vpop.permute.xlu0 %6239 }
 0xd6d   : > { %8618 = vrcp.f32 %v5919_v28  ;;  %v5920_v41 = vadd.f32 1.0, %v8611_v62  ;;  %14455 = vst [vmem:[#allocation22_spill] sm:$0xff] %v13538_v48 }
 0xd6e   : > { %v8613_v26 = vpop.eup %8612  ;;  %8620 = vrcp.f32 %v5922_v53 }
 0xd6f   : > { %v5941_v32 = vmul.f32 %v8613_v26, %v5885_v22  ;;  %8622 = vrcp.f32 %v5920_v41  ;;  %v8615_v22 = vpop.eup %8614 }
 0xd70   : > { %v8617_v49 = vpop.eup %8616  ;;  %8624 = vpow2.f32 %v7262_v8 }
 0xd71   : > { %v13507_v44 = vmul.f32 %v13501_v54, %v5941_v32  ;;  %v5939_v41 = vmul.f32 %v8617_v49, %v13468_v42  ;;  %v5918_v42 = vadd.f32 1.0, %v8615_v22  ;;  %v5849_v49 = vmul.f32 %v13473_v56, %v13345_v14 }
 0xd73   : > { %6086 = vrot.lane.b32.xlu0 %v13507_v44, %s8908_s14  ;;  %5966 = vrot.lane.b32.xlu1 %v13507_v44, %s8890_s28  ;;  %8626 = vrcp.f32 %v5918_v42  ;;  %v5889_v8 = vadd.f32 %v13430_v27, %v5849_v49 }
 0xd77   : > { %v8619_v60 = vpop.eup %8618  ;;  %6262 = vrot.lane.b32.xlu0 %v13507_v44, %s14179_s16  ;;  %6022 = vrot.lane.b32.xlu1 %v13507_v44, %s8909_s0 }
 0xd78   : > { %v8621_v28 = vpop.eup %8620  ;;  %v5943_v62 = vmul.f32 %v8619_v60, %v5887_v9  ;;  %v13540_v9 = vpop.permute.xlu1 %6355 }
 0xd79   : > { %v8623_v53 = vpop.eup %8622  ;;  %v5946_v26 = vmul.f32 %v8621_v28, %v5890_v40  ;;  %14456 = vst [vmem:[#allocation26_spill] sm:$0xff] %v13540_v9  ;;  %v13554_v60 = vpop.permute.xlu0 %6275 }
 0xd7a   : > { %v13529_v32 = vmul.f32 %v13501_v54, %v5943_v62  ;;  %v5944_v31 = vmul.f32 %v8623_v53, %v5888_v15  ;;  %v13546_v15 = vmul.f32 %v13501_v54, %v5939_v41  ;;  %v8625_v14 = vpop.eup %8624  ;;  %v7267_v62 = vmul.f32 -1.442695, %v5889_v8 }
 0xd7b   : > { %v13532_v43 = vmul.f32 %v13501_v54, %v5946_v26  ;;  %6326 = vrot.lane.b32.xlu0 %v13507_v44, %s14454_s21  ;;  %6150 = vrot.lane.b32.xlu1 %v13507_v44, %s14178_s23  ;;  %v5916_v53 = vadd.f32 1.0, %v8625_v14 }
 0xd7c   : > { %14453 = vst [vmem:[#allocation36_spill] sm:$0xff] %v13529_v32  ;;  %v13543_v40 = vmul.f32 %v13501_v54, %v5944_v31  ;;  %v13556_v22 = vpop.permute.xlu1 %6359  ;;  %8628 = vpow2.f32 %v7267_v62 }
 0xd7d   : > { %14457 = vst [vmem:[#allocation52_spill] sm:$0xff] %v13556_v22  ;;  %v13563_v56 = vpop.permute.xlu0 %6287  ;;  %v8627_v27 = vpop.eup %8626  ;;  %8630 = vrcp.f32 %v5916_v53 }
 0xd7e   : > { %v5942_v31 = vmul.f32 %v8627_v27, %v13487_v11 }
 0xd7f   : > { %6390 = vrot.lane.b32.xlu0 %v13507_v44, %s8910_s29  ;;  %5962 = vrot.lane.b32.xlu1 %v13546_v15, %s8890_s28 }
 0xd80   : > { %v13565_v28 = vpop.permute.xlu1 %6479  ;;  %v13585_v42 = vmul.f32 %v13501_v54, %v5942_v31 }
 0xd81   : > { %v13575_v41 = vpop.permute.xlu0 %6299 }
 0xd82   : > { %14458 = vst [vmem:[#allocation20_spill] sm:$0xff] %v13575_v41 }
 0xd83   : > { %6454 = vrot.lane.b32.xlu0 %v13507_v44, %s8891_s17  ;;  %6082 = vrot.lane.b32.xlu1 %v13546_v15, %s8908_s14 }
 0xd84   : > { %v13577_v26 = vpop.permute.xlu1 %6515 }
 0xd85   : > { %v13587_v49 = vpop.permute.xlu0 %6339 }
 0xd86   : > { %v8629_v11 = vpop.eup %8628 }
 0xd87   : > { %6018 = vrot.lane.b32.xlu0 %v13546_v15, %s8909_s0  ;;  %6146 = vrot.lane.b32.xlu1 %v13546_v15, %s14178_s23  ;;  %v8631_v62 = vpop.eup %8630  ;;  %v5921_v31 = vadd.f32 1.0, %v8629_v11 }
 0xd88   : > { %v13589_v14 = vpop.permute.xlu1 %6303  ;;  %v5940_v22 = vmul.f32 %v8631_v62, %v13512_v21 }
 0xd89   : > { %14459 = vst [vmem:[#allocation44_spill] sm:$0xff] %v13589_v14  ;;  %v13599_v53 = vpop.permute.xlu0 %6363  ;;  %8632 = vrcp.f32 %v5921_v31 }
 0xd8a   : > { %14460 = vst [vmem:[#allocation42_spill] sm:$0xff] %v13599_v53  ;;  %v13609_v14 = vmul.f32 %v13501_v54, %v5940_v22 }
 0xd8b   : > { %6386 = vrot.lane.b32.xlu0 %v13546_v15, %s8910_s29  ;;  %6258 = vrot.lane.b32.xlu1 %v13546_v15, %s14179_s16 }
 0xd8c   : > { %v13601_v27 = vpop.permute.xlu1 %6419 }
 0xd8d   : > { %14461 = vst [vmem:[#allocation51_spill] sm:$0xff] %v13601_v27  ;;  %v13611_v48 = vpop.permute.xlu0 %6411 }
 0xd8f   : > { %6450 = vrot.lane.b32.xlu0 %v13546_v15, %s8891_s17  ;;  %6322 = vrot.lane.b32.xlu1 %v13546_v15, %s14454_s21 }
 0xd90   : > { %v13613_v5 = vpop.permute.xlu1 %6555 }
 0xd91   : > { %v13623_v21 = vpop.permute.xlu0 %6423 }
 0xd92   : > { %14462 = vst [vmem:[#allocation38_spill] sm:$0xff] %v13623_v21 }
 0xd93   : > { %6088 = vrot.lane.b32.xlu1 %v13585_v42, %s8908_s14  ;;  %5968 = vrot.lane.b32.xlu0 %v13585_v42, %s8890_s28  ;;  %v8633_v11 = vpop.eup %8632 }
 0xd94   : > { %v13625_v22 = vpop.permute.xlu1 %6559  ;;  %v5945_v62 = vmul.f32 %v8633_v11, %v5889_v8 }
 0xd95   : > { %14463 = vst [vmem:[#allocation39_spill] sm:$0xff] %v13625_v22  ;;  %v13631_v31 = vpop.permute.xlu0 %6427 }
 0xd96   : > { %14464 = vst [vmem:[#allocation21_spill] sm:$0xff] %v13631_v31  ;;  %v13640_v21 = vmul.f32 %v13501_v54, %v5945_v62 }
 0xd97   : > { %6264 = vrot.lane.b32.xlu1 %v13585_v42, %s14179_s16  ;;  %6024 = vrot.lane.b32.xlu0 %v13585_v42, %s8909_s0 }
 0xd98   : > { %v13633_v27 = vpop.permute.xlu1 %6367 }
 0xd99   : > { %14465 = vst [vmem:[#allocation46_spill] sm:$0xff] %v13633_v27  ;;  %v13646_v8 = vpop.permute.xlu0 %6467 }
 0xd9b   : > { %6328 = vrot.lane.b32.xlu1 %v13585_v42, %s14454_s21  ;;  %6152 = vrot.lane.b32.xlu0 %v13585_v42, %s14178_s23 }
 0xd9c   : > { %v13648_v11 = vpop.permute.xlu1 %6483 }
 0xd9d   : > { %14466 = vst [vmem:[#allocation49_spill] sm:$0xff] %v13648_v11  ;;  %v13654_v27 = vpop.permute.xlu0 %6475 }
 0xd9f   : > { %6392 = vrot.lane.b32.xlu1 %v13585_v42, %s8910_s29  ;;  %6084 = vrot.lane.b32.xlu0 %v13609_v14, %s8908_s14 }
 0xda0   : > { %v13656_v54 = vpop.permute.xlu1 %6523 }
 0xda1   : > { %v13666_v62 = vpop.permute.xlu0 %6487 }
 0xda2   : > { %14467 = vst [vmem:[#allocation18_spill] sm:$0xff] %v13666_v62 }
 0xda3   : > { %6456 = vrot.lane.b32.xlu1 %v13585_v42, %s8891_s17  ;;  %6148 = vrot.lane.b32.xlu0 %v13609_v14, %s14178_s23 }
 0xda4   : > { %v13668_v11 = vpop.permute.xlu1 %6527 }
 0xda5   : > { %v13674_v9 = vpop.permute.xlu0 %6491 }
 0xda6   : > { %14468 = vst [vmem:[#allocation47_spill] sm:$0xff] %v13674_v9 }
 0xda7   : > { %6260 = vrot.lane.b32.xlu0 %v13609_v14, %s14179_s16  ;;  %5964 = vrot.lane.b32.xlu1 %v13609_v14, %s8890_s28 }
 0xda8   : > { %v13676_v13 = vpop.permute.xlu1 %6431 }
 0xda9   : > { %14469 = vst [vmem:[#allocation27_spill] sm:$0xff] %v13676_v13  ;;  %v13686_v62 = vpop.permute.xlu0 %6519 }
 0xdaa   : > { %14470 = vst [vmem:[#allocation15_spill] sm:$0xff] %v13686_v62 }
 0xdab   : > { %6324 = vrot.lane.b32.xlu0 %v13609_v14, %s14454_s21  ;;  %6020 = vrot.lane.b32.xlu1 %v13609_v14, %s8909_s0 }
 0xdac   : > { %v13688_v16 = vpop.permute.xlu1 %6563 }
 0xdad   : > { %v13694_v9 = vpop.permute.xlu0 %6535 }
 0xdae   : > { %14471 = vst [vmem:[#allocation25_spill] sm:$0xff] %v13694_v9 }
 0xdaf   : > { %6388 = vrot.lane.b32.xlu1 %v13609_v14, %s8910_s29  ;;  %6030 = vrot.lane.b32.xlu0 %v13640_v21, %s8909_s0 }
 0xdb0   : > { %v13696_v13 = vpop.permute.xlu1 %6495 }
 0xdb1   : > { %14472 = vst [vmem:[#allocation43_spill] sm:$0xff] %v13696_v13  ;;  %v13706_v35 = vpop.permute.xlu0 %6543  ;;  %v13715_v13 = vld [vmem:[%s14000_s1 + $0x30] sm:$0xff] }
 0xdb2   : > { %14473 = vst [vmem:[#allocation14_spill] sm:$0xff] %v13706_v35  ;;  %14475 = vst [vmem:[#allocation24_spill] sm:$0xff] %v13715_v13 }
 0xdb3   : > { %6452 = vrot.lane.b32.xlu1 %v13609_v14, %s8891_s17  ;;  %6094 = vrot.lane.b32.xlu0 %v13640_v21, %s8908_s14 }
 0xdb4   : > { %v13708_v23 = vpop.permute.xlu1 %6531 }
 0xdb5   : > { %14474 = vst [vmem:[#allocation13_spill] sm:$0xff] %v13708_v23  ;;  %v13718_v9 = vpop.permute.xlu0 %6567 }
 0xdb7   : > { %6158 = vrot.lane.b32.xlu0 %v13640_v21, %s14178_s23  ;;  %5974 = vrot.lane.b32.xlu1 %v13640_v21, %s8890_s28 }
 0xdb8   : > { %v13720_v6 = vpop.permute.xlu1 %6575 }
 0xdb9   : > { %14476 = vst [vmem:[#allocation50_spill] sm:$0xff] %v13720_v6  ;;  %v13730_v35 = vpop.permute.xlu0 %6571 }
 0xdba   : > { %14477 = vst [vmem:[#allocation12_spill] sm:$0xff] %v13730_v35 }
 0xdbb   : > { %6270 = vrot.lane.b32.xlu1 %v13640_v21, %s14179_s16  ;;  %6154 = vrot.lane.b32.xlu0 %v13529_v32, %s14178_s23 }
 0xdbc   : > { %v13732_v23 = vpop.permute.xlu1 %6539 }
 0xdbd   : > { %14478 = vst [vmem:[#allocation57_spill] sm:$0xff] %v13732_v23 }
 0xdbf   : > { %6334 = vrot.lane.b32.xlu1 %v13640_v21, %s14454_s21  ;;  %6266 = vrot.lane.b32.xlu0 %v13529_v32, %s14179_s16 }
 0xdc3   : > { %6398 = vrot.lane.b32.xlu1 %v13640_v21, %s8910_s29  ;;  %6394 = vrot.lane.b32.xlu0 %v13529_v32, %s8910_s29 }
 0xdc7   : > { %5970 = vrot.lane.b32.xlu1 %v13529_v32, %s8890_s28  ;;  %6336 = vrot.lane.b32.xlu0 %v13532_v43, %s14454_s21 }
 0xdcb   : > { %6026 = vrot.lane.b32.xlu1 %v13529_v32, %s8909_s0  ;;  %5972 = vrot.lane.b32.xlu0 %v13543_v40, %s8890_s28 }
 0xdcf   : > { %6090 = vrot.lane.b32.xlu1 %v13529_v32, %s8908_s14  ;;  %6028 = vrot.lane.b32.xlu0 %v13543_v40, %s8909_s0 }
 0xdd3   : > { %6330 = vrot.lane.b32.xlu1 %v13529_v32, %s14454_s21  ;;  %6092 = vrot.lane.b32.xlu0 %v13543_v40, %s8908_s14 }
 0xdd7   : > { %6458 = vrot.lane.b32.xlu1 %v13529_v32, %s8891_s17  ;;  %6579 = vperm.xlu0 %8335, %v13715_v13  }
 0xddb   : > { %5976 = vrot.lane.b32.xlu1 %v13532_v43, %s8890_s28  ;;  %6460 = vrot.lane.b32.xlu0 %v13543_v40, %s8891_s17 }
 0xddf   : > { %6032 = vrot.lane.b32.xlu1 %v13532_v43, %s8909_s0  ;;  %6464 = vrot.lane.b32.xlu0 %v13532_v43, %s8891_s17 }
 0xde3   : > { %6096 = vrot.lane.b32.xlu1 %v13532_v43, %s8908_s14 }
 0xde5   : > { %v6087_v6 = vpop.permute.xlu0 %6086  ;;  %v5967_v32 = vpop.permute.xlu1 %5966 }
 0xde6   : > { %v6012_v35 = vmul.f32 %v13450_v61, %v5967_v32  ;;  %v6132_v7 = vmul.f32 %v13463_v57, %v6087_v6 }
 0xde7   : > { %6160 = vrot.lane.b32.xlu1 %v13532_v43, %s14178_s23 }
 0xde9   : > { %v6263_v13 = vpop.permute.xlu0 %6262  ;;  %v6023_v31 = vpop.permute.xlu1 %6022 }
 0xdea   : > { %v6068_v53 = vmul.f32 %v13388_v25, %v6023_v31 }
 0xdeb   : > { %6272 = vrot.lane.b32.xlu1 %v13532_v43, %s14179_s16 }
 0xdec   : > { %v6076_v23 = vadd.f32 %v6068_v53, %v6012_v35  ;;  %v6244_v35 = vmul.f32 %v13418_v34, %v13507_v44 }
 0xded   : > { %v6327_v41 = vpop.permute.xlu0 %6326  ;;  %v6151_v22 = vpop.permute.xlu1 %6150 }
 0xdee   : > { %v6140_v1 = vadd.f32 %v6132_v7, %v6076_v23  ;;  %v6196_v30 = vmul.f32 %v13410_v39, %v6151_v22  ;;  %v6308_v23 = vmul.f32 %v13440_v37, %v6263_v13  ;;  %v6372_v34 = vmul.f32 %v13460_v33, %v6327_v41 }
 0xdef   : > { %6400 = vrot.lane.b32.xlu1 %v13532_v43, %s8910_s29 }
 0xdf0   : > { %v6204_v61 = vadd.f32 %v6196_v30, %v6140_v1 }
 0xdf1   : > { %v6391_v62 = vpop.permute.xlu0 %6390  ;;  %v5963_v10 = vpop.permute.xlu1 %5962 }
 0xdf2   : > { %v6252_v6 = vadd.f32 %v6244_v35, %v6204_v61  ;;  %v6010_v1 = vmul.f32 %v13446_v2, %v5963_v10  ;;  %v13763_v61 = vld [vmem:[%s14000_s1 + $0x38] sm:$0xff]  ;;  %v6436_v35 = vmul.f32 %v13611_v48, %v6391_v62  ;;  %v6242_v62 = vmul.f32 %v13404_v0, %v13546_v15 }
 0xdf3   : > { %6156 = vrot.lane.b32.xlu1 %v13543_v40, %s14178_s23  ;;  %s7301_s23 = sshll.u32 %s8988_s13, 5 }
 0xdf4   : > { %v6316_v7 = vadd.f32 %v6308_v23, %v6252_v6  ;;  %s13957_s25 = scalar_lea.hbm %s14008_s9, %s7301_s23 }
 0xdf5   : > { %v6455_v50 = vpop.permute.xlu0 %6454  ;;  %v6083_v25 = vpop.permute.xlu1 %6082 }
 0xdf6   : > { %v6380_v37 = vadd.f32 %v6372_v34, %v6316_v7  ;;  %v6500_v23 = vmul.f32 %v13654_v27, %v6455_v50 }
 0xdf7   : > { %6268 = vrot.lane.b32.xlu1 %v13543_v40, %s14179_s16 }
 0xdf8   : > { %v6444_v33 = vadd.f32 %v6436_v35, %v6380_v37 }
 0xdf9   : > { %v6019_v32 = vpop.permute.xlu0 %6018  ;;  %v6147_v31 = vpop.permute.xlu1 %6146 }
 0xdfa   : > { %v6066_v39 = vmul.f32 %v13366_v52, %v6019_v32  ;;  %v6130_v52 = vmul.f32 %v13376_v19, %v6083_v25  ;;  %v6194_v10 = vmul.f32 %v13393_v12, %v6147_v31  ;;  %v6508_v25 = vadd.f32 %v6500_v23, %v6444_v33 }
 0xdfb   : > { %6332 = vrot.lane.b32.xlu1 %v13543_v40, %s14454_s21  ;;  %s339_s21 = sand.u32 1, %s8804_s10  }
 0xdfc   : > { %v6074_v44 = vadd.f32 %v6066_v39, %v6010_v1  ;;  %v6548_v50 = vmul.f32 %v13656_v54, %v6508_v25  ;;  %s7051_s11 = scalar_lea.sflag [#allocation4], %s339_s21 }
 0xdfd   : > { %v6387_v57 = vpop.permute.xlu0 %6386  ;;  %v6259_v53 = vpop.permute.xlu1 %6258 }
 0xdfe   : > { %v6138_v2 = vadd.f32 %v6130_v52, %v6074_v44  ;;  %v13784_v15 = vadd.f32 %v13688_v16, %v6548_v50 }
 0xdff   : > { %6396 = vrot.lane.b32.xlu1 %v13543_v40, %s8910_s29  ;;  %s7141_s29 = sshll.u32 %s339_s21, 1 }
 0xe00   : > { %v6202_v19 = vadd.f32 %v6194_v10, %v6138_v2  ;;  %s341_s16 = scalar_lea.vmem [#allocation5], %s7141_s29 }
 0xe01   : > { %v6451_v30 = vpop.permute.xlu0 %6450  ;;  %v6323_v22 = vpop.permute.xlu1 %6322  ;;  %s7064_s28 = sshll.u32 %s341_s16, 4  ;;  %s13959_s28 = int_to_ptr.vmem [resolvable:$true] %s7064_s28 }
 0xe02   : > { %v6250_v31 = vadd.f32 %v6242_v62, %v6202_v19  ;;  %v6370_v54 = vmul.f32 %v13587_v49, %v6323_v22  ;;  %v6498_v22 = vmul.f32 %v13646_v8, %v6451_v30  ;;  %s8746_s13 = scalar_lea.vmem %s13959_s28, 32  ;;  %p8753_p2 = scmp.lt.s32.totalorder %s13959_s28, %s8751_s6 }
 0xe03   : > { %6583 = vperm.xlu1 %8336, %v13763_v61   ;;  %p8747_p6 = scmp.ne.s32.totalorder %s13959_s28, %s8746_s13  ;;  %p8754_p3 = scmp.lt.s32.totalorder %s8752_s18, %s8746_s13 }
 0xe05   : > { %v6089_v13 = vpop.permute.xlu1 %6088  ;;  %v5969_v32 = vpop.permute.xlu0 %5968  ;;  %p8748_p10 = pnand %p8747_p6, %p14527_p9  ;;  %p8755_p4 = por %p8754_p3, %p8753_p2 }
 0xe06   : > { %v6013_v39 = vmul.f32 %v13383_v58, %v5969_v32  ;;  %v6133_v1 = vmul.f32 %v13401_v20, %v6089_v13  ;;  %v6245_v58 = vmul.f32 %v13420_v3, %v13585_v42  ;;  %v7272_v42 = vmul.f32 -1.442695, %v13784_v15 }
 0xe07   : > { %6462 = vrot.lane.b32.xlu1 %v13640_v21, %s8891_s17  ;;  %p8749_p12 = pneg %p8748_p10 }
 0xe08   : > { %8634 = vpow2.f32 %v7272_v42  ;;  %v14484_v42 = vld [vmem:[#allocation15_spill] sm:$0xff] }
 0xe09   : > { %v6265_v41 = vpop.permute.xlu1 %6264  ;;  %v6025_v6 = vpop.permute.xlu0 %6024  ;;  %p8756_p7 = pnand %p8755_p4, %p8749_p12 }
 0xe0a   : > { %v6069_v7 = vmul.f32 %v13438_v29, %v6025_v6  ;;  %v6306_v29 = vmul.f32 %v13554_v60, %v6259_v53  ;;  %v6309_v13 = vmul.f32 %v13563_v56, %v6265_v41  ;;  %v6434_v41 = vmul.f32 %v13444_v36, %v6387_v57 }
 0xe0c   : > { %v6077_v48 = vadd.f32 %v6069_v7, %v6013_v39  ;;  %v6314_v0 = vadd.f32 %v6306_v29, %v6250_v31 }
 0xe0d   : > { %v6329_v34 = vpop.permute.xlu1 %6328  ;;  %v6153_v44 = vpop.permute.xlu0 %6152 }
 0xe0e   : > { %v6141_v37 = vadd.f32 %v6133_v1, %v6077_v48  ;;  %v6197_v12 = vmul.f32 %v13412_v47, %v6153_v44  ;;  %v6373_v47 = vmul.f32 %v13465_v59, %v6329_v34  ;;  %v6378_v60 = vadd.f32 %v6370_v54, %v6314_v0  ;;  %v14481_v0 = vld [vmem:[#allocation41_spill] sm:$0xff] }
 0xe10   : > { %v6205_v27 = vadd.f32 %v6197_v12, %v6141_v37  ;;  %v6442_v59 = vadd.f32 %v6434_v41, %v6378_v60 }
 0xe11   : > { %v6393_v52 = vpop.permute.xlu1 %6392  ;;  %v6085_v20 = vpop.permute.xlu0 %6084 }
 0xe12   : > { %v6253_v32 = vadd.f32 %v6245_v58, %v6205_v27  ;;  %v6437_v3 = vmul.f32 %v13509_v24, %v6393_v52  ;;  %v6506_v25 = vadd.f32 %v6498_v22, %v6442_v59  ;;  %v6131_v36 = vmul.f32 %v13379_v55, %v6085_v20  ;;  %v8635_v44 = vpop.eup %8634  ;;  %v14486_v59 = vld [vmem:[#allocation20_spill] sm:$0xff] }
 0xe14   : > { %v6317_v35 = vadd.f32 %v6309_v13, %v6253_v32  ;;  %v6546_v30 = vmul.f32 %v13577_v26, %v6506_v25  ;;  %v14480_v32 = vld [vmem:[#allocation54_spill] sm:$0xff] }
 0xe15   : > { %v6457_v2 = vpop.permute.xlu1 %6456  ;;  %v6149_v33 = vpop.permute.xlu0 %6148 }
 0xe16   : > { %v6381_v10 = vadd.f32 %v6373_v47, %v6317_v35  ;;  %v6501_v56 = vmul.f32 %v13565_v28, %v6457_v2  ;;  %v6195_v8 = vmul.f32 %v13397_v17, %v6149_v33  ;;  %v13807_v12 = vadd.f32 %v13613_v5, %v6546_v30  ;;  %v14482_v33 = vld [vmem:[#allocation48_spill] sm:$0xff] }
 0xe17   : > { %v6620_v17 = vadd.f32 1.0, %v8635_v44 }
 0xe18   : > { %v6445_v53 = vadd.f32 %v6437_v3, %v6381_v10  ;;  %v7270_v20 = vmul.f32 -1.442695, %v13807_v12  ;;  %v14483_v3 = vld [vmem:[#allocation29_spill] sm:$0xff] }
 0xe19   : > { %v6261_v16 = vpop.permute.xlu0 %6260  ;;  %v5965_v6 = vpop.permute.xlu1 %5964  ;;  %v6248_v60 = vmul.f32 %v14483_v3, %v13640_v21  ;;  %v14488_v21 = vld [vmem:[#allocation21_spill] sm:$0xff] }
 0xe1a   : > { %v6509_v23 = vadd.f32 %v6501_v56, %v6445_v53  ;;  %v6011_v19 = vmul.f32 %v13361_v51, %v5965_v6  ;;  %v6307_v55 = vmul.f32 %v13414_v18, %v6261_v16  ;;  %v14485_v16 = vld [vmem:[#allocation39_spill] sm:$0xff] }
 0xe1c   : > { %v6549_v49 = vmul.f32 %v13668_v11, %v6509_v23 }
 0xe1d   : > { %v6325_v39 = vpop.permute.xlu0 %6324  ;;  %v6021_v7 = vpop.permute.xlu1 %6020 }
 0xe1e   : > { %v13795_v24 = vadd.f32 %v13718_v9, %v6549_v49  ;;  %v6067_v28 = vmul.f32 %v13434_v63, %v6021_v7  ;;  %v6243_v9 = vmul.f32 %v13504_v4, %v13609_v14  ;;  %v6371_v31 = vmul.f32 %v13424_v38, %v6325_v39  ;;  %v14479_v14 = vld [vmem:[#allocation31_spill] sm:$0xff]  ;;  %v14487_v7 = vld [vmem:[#allocation42_spill] sm:$0xff] }
 0xe20   : > { %v7273_v57 = vmul.f32 -1.442695, %v13795_v24  ;;  %v6075_v1 = vadd.f32 %v6067_v28, %v6011_v19 }
 0xe21   : > { %v6389_v48 = vpop.permute.xlu1 %6388  ;;  %v6031_v62 = vpop.permute.xlu0 %6030 }
 0xe22   : > { %8636 = vpow2.f32 %v7273_v57  ;;  %v6139_v11 = vadd.f32 %v6131_v36, %v6075_v1  ;;  %v6435_v26 = vmul.f32 %v13448_v46, %v6389_v48  ;;  %v6072_v4 = vmul.f32 %v13428_v45, %v6031_v62  ;;  %v8370_v45 = vld [vmem:[%s14001_s2 + $0x14] ss:$28 sps:$4 sm:$0xff]  }
 0xe23   : > { %8638 = vrcp.f32 %v6620_v17  ;;  %7488 = vmatprep.mubr.msk.bf16.mxu0 %vm5733_vm5, %v8370_v45 }
 0xe24   : > { %v6203_v51 = vadd.f32 %v6195_v8, %v6139_v11 }
 0xe25   : > { %v6453_v34 = vpop.permute.xlu1 %6452  ;;  %v6095_v63 = vpop.permute.xlu0 %6094 }
 0xe26   : > { %v6251_v37 = vadd.f32 %v6243_v9, %v6203_v51  ;;  %v6499_v5 = vmul.f32 %v14480_v32, %v6453_v34  ;;  %v6136_v47 = vmul.f32 %v14481_v0, %v6095_v63  ;;  %v8911_v9 = vmov 65   ;;  %v14489_v34 = vld [vmem:[#allocation56_spill] sm:$0xff]  ;;  %v8714_v63 = vld [vmem:[%s14000_s1 + $0x8] sm:$0xff] }
 0xe27   : > { %8337 = vset.pattern.permute.xlu1 %v8911_v9  ;;  %8338 = vset.pattern.permute.xlu0 %v8911_v9 }
 0xe28   : > { %v6315_v50 = vadd.f32 %v6307_v55, %v6251_v37  ;;  %6760 = vperm.xlu1 %8337, %v14489_v34   ;;  %6764 = vperm.xlu0 %8338, %v8714_v63  }
 0xe29   : > { %v5975_v27 = vpop.permute.xlu1 %5974  ;;  %v6159_v52 = vpop.permute.xlu0 %6158 }
 0xe2a   : > { %v6379_v58 = vadd.f32 %v6371_v31, %v6315_v50  ;;  %v6016_v29 = vmul.f32 %v14479_v14, %v5975_v27  ;;  %v6200_v46 = vmul.f32 %v14482_v33, %v6159_v52  ;;  %v8912_v31 = vmov 66   ;;  %v8716_v14 = vld [vmem:[%s14000_s1 + $0x18] sm:$0xff]  ;;  %v14490_v52 = vld [vmem:[#allocation19_spill] sm:$0xff] }
 0xe2c   : > { %v8637_v18 = vpop.eup %8636  ;;  %v6443_v13 = vadd.f32 %v6435_v26, %v6379_v58  ;;  %v6080_v38 = vadd.f32 %v6072_v4, %v6016_v29  ;;  %8339 = vset.pattern.permute.xlu1 %v8912_v31  ;;  %v8717_v29 = vld [vmem:[%s14000_s1 + $0x28] sm:$0xff] }
 0xe2d   : > { %v6621_v35 = vadd.f32 1.0, %v8637_v18  ;;  %v6271_v54 = vpop.permute.xlu1 %6270  ;;  %v8639_v57 = vpop.eup %8638  ;;  %6800 = vperm.xlu1 %8339, %v14489_v34  }
 0xe2e   : > { %v6507_v2 = vadd.f32 %v6499_v5, %v6443_v13  ;;  %v6144_v10 = vadd.f32 %v6136_v47, %v6080_v38  ;;  %v6312_v49 = vmul.f32 %v14486_v59, %v6271_v54  ;;  %v6644_v11 = vmul.f32 %v8639_v57, %v13784_v15  ;;  %v6155_v51 = vpop.permute.xlu0 %6154  ;;  %v8715_v15 = vld [vmem:[%s14000_s1 + $0x10] sm:$0xff]  ;;  %v14492_v5 = vld [vmem:[#allocation37_spill] sm:$0xff] }
 0xe2f   : > { %8640 = vrcp.f32 %v6621_v35  ;;  %6768 = vperm.xlu0 %8338, %v8715_v15   ;;  %v14491_v13 = vld [vmem:[#allocation11_spill] sm:$0xff]  ;;  %v14493_v54 = vld [vmem:[#allocation24_spill] sm:$0xff] }
 0xe30   : > { %v6547_v53 = vmul.f32 %v14484_v42, %v6507_v2  ;;  %v6208_v56 = vadd.f32 %v6200_v46, %v6144_v10  ;;  %8642 = vpow2.f32 %v7270_v20  ;;  %v14500_v57 = vld [vmem:[#allocation40_spill] sm:$0xff] }
 0xe31   : > { %v6335_v41 = vpop.permute.xlu1 %6334  ;;  %6804 = vperm.xlu1 %8339, %v8714_v63   ;;  %v14503_v63 = vld [vmem:[#allocation33_spill] sm:$0xff] }
 0xe32   : > { %v6587_v6 = vadd.f32 %v14485_v16, %v6547_v53  ;;  %v6256_v23 = vadd.f32 %v6248_v60, %v6208_v56  ;;  %v6376_v19 = vmul.f32 %v14487_v7, %v6335_v41  ;;  %v6267_v17 = vpop.permute.xlu0 %6266  ;;  %v14494_v60 = vld [vmem:[#allocation32_spill] sm:$0xff]  ;;  %v14495_v56 = vld [vmem:[#allocation10_spill] sm:$0xff] }
 0xe33   : > { %8341 = vset.pattern.permute.xlu0 %v8912_v31  ;;  %v6198_v42 = vmul.f32 %v14494_v60, %v6155_v51  ;;  %v14496_v16 = vld [vmem:[#allocation36_spill] sm:$0xff]  ;;  %v14502_v51 = vld [vmem:[#allocation51_spill] sm:$0xff] }
 0xe34   : > { %v7271_v22 = vmul.f32 -1.442695, %v6587_v6  ;;  %v6320_v39 = vadd.f32 %v6312_v49, %v6256_v23  ;;  %6808 = vperm.xlu0 %8341, %v8715_v15   ;;  %v14505_v15 = vld [vmem:[#allocation16_spill] sm:$0xff] }
 0xe35   : > { %v6399_v28 = vpop.permute.xlu1 %6398  ;;  %8340 = vset.pattern.permute.xlu1 %v8911_v9 }
 0xe36   : > { %8644 = vpow2.f32 %v7271_v22  ;;  %v6384_v25 = vadd.f32 %v6376_v19, %v6320_v39  ;;  %v6440_v36 = vmul.f32 %v14488_v21, %v6399_v28  ;;  %v6395_v26 = vpop.permute.xlu0 %6394  ;;  %6772 = vperm.xlu1 %8340, %v8716_v14   ;;  %v14498_v39 = vld [vmem:[#allocation28_spill] sm:$0xff] }
 0xe37   : > { %v6310_v7 = vmul.f32 %v14498_v39, %v6267_v17  ;;  %v6438_v34 = vmul.f32 %v14502_v51, %v6395_v26 }
 0xe38   : > { %v13828_v1 = vadd.f32 %v6440_v36, %v6384_v25  ;;  %8344 = vset.pattern.permute.xlu0 %v8911_v9  ;;  %v14499_v25 = vld [vmem:[#allocation26_spill] sm:$0xff] }
 0xe39   : > { %v8641_v48 = vpop.eup %8640  ;;  %v5971_v62 = vpop.permute.xlu1 %5970  ;;  %6780 = vperm.xlu0 %8344, %v8717_v29  }
 0xe3a   : > { %v8643_v8 = vpop.eup %8642  ;;  %v6645_v30 = vmul.f32 %v8641_v48, %v13795_v24  ;;  %v6014_v32 = vmul.f32 %v14491_v13, %v5971_v62  ;;  %v13857_v38 = vpop.permute.xlu0 %6336  ;;  %8342 = vset.pattern.permute.xlu1 %v8912_v31  ;;  %v14509_v13 = vld [vmem:[#allocation55_spill] sm:$0xff] }
 0xe3b   : > { %v6618_v37 = vadd.f32 1.0, %v8643_v8  ;;  %6812 = vperm.xlu1 %8342, %v8716_v14   ;;  %v14501_v8 = vld [vmem:[#allocation35_spill] sm:$0xff] }
 0xe3c   : > { %v6659_v44 = vpack.c.bf16 %v6645_v30, %v6644_v11 }
 0xe3d   : > { %v6027_v55 = vpop.permute.xlu1 %6026  ;;  %8646 = vrcp.f32 %v6618_v37  ;;  %6784 = vperm.xlu0 %8344, %v14493_v54  }
 0xe3e   : > { %v6070_v20 = vmul.f32 %v14490_v52, %v6027_v55  ;;  %v5973_v53 = vpop.permute.xlu0 %5972  ;;  %v14504_v55 = vld [vmem:[#allocation17_spill] sm:$0xff] }
 0xe3f   : > { %8343 = vset.pattern.permute.xlu1 %v8911_v9 }
 0xe40   : > { %v8645_v24 = vpop.eup %8644  ;;  %v6078_v2 = vadd.f32 %v6070_v20, %v6014_v32  ;;  %6776 = vperm.xlu1 %8343, %v14495_v56  }
 0xe41   : > { %v6619_v50 = vadd.f32 1.0, %v8645_v24  ;;  %v6091_v27 = vpop.permute.xlu1 %6090  ;;  %8347 = vset.pattern.permute.xlu0 %v8912_v31 }
 0xe42   : > { %v6134_v0 = vmul.f32 %v14492_v5, %v6091_v27  ;;  %6824 = vperm.xlu0 %8347, %v14493_v54   ;;  %v6029_v49 = vpop.permute.xlu0 %6028 }
 0xe43   : > { %8648 = vrcp.f32 %v6619_v50  ;;  %v6071_v48 = vmul.f32 %v14500_v57, %v6029_v49  ;;  %v14506_v50 = vld [vmem:[#allocation30_spill] sm:$0xff] }
 0xe44   : > { %v6142_v10 = vadd.f32 %v6134_v0, %v6078_v2  ;;  %8345 = vset.pattern.permute.xlu1 %v8912_v31  ;;  %v14510_v2 = vld [vmem:[#allocation23_spill] sm:$0xff] }
 0xe45   : > { %v6331_v58 = vpop.permute.xlu1 %6330  ;;  %6816 = vperm.xlu1 %8345, %v14495_v56   ;;  %v14514_v56 = vld [vmem:[#allocation44_spill] sm:$0xff] }
 0xe46   : > { %v6206_v41 = vadd.f32 %v6198_v42, %v6142_v10  ;;  %v6374_v21 = vmul.f32 %v14499_v25, %v6331_v58  ;;  %v6093_v36 = vpop.permute.xlu0 %6092 }
 0xe47   : > { %v8647_v18 = vpop.eup %8646  ;;  %v6135_v37 = vmul.f32 %v14504_v55, %v6093_v36  ;;  %v14519_v36 = vld [vmem:[#allocation18_spill] sm:$0xff] }
 0xe48   : > { %v6642_v33 = vmul.f32 %v8647_v18, %v13807_v12  ;;  %v14508_v18 = vld [vmem:[#allocation49_spill] sm:$0xff]  ;;  %v14522_v55 = vld [vmem:[#allocation50_spill] sm:$0xff] }
 0xe49   : > { %v13846_v4 = vpop.permute.xlu1 %6458  ;;  %6820 = vperm.xlu1 %8345, %v8717_v29   ;;  %v14507_v29 = vld [vmem:[#allocation45_spill] sm:$0xff] }
 0xe4a   : > { %v6502_v26 = vmul.f32 %v14508_v18, %v13846_v4  ;;  %v14513_v4 = vld [vmem:[#allocation34_spill] sm:$0xff] }
 0xe4d   : > { %v8649_v47 = vpop.eup %8648  ;;  %v5977_v35 = vpop.permute.xlu1 %5976  ;;  %8346 = vset.pattern.permute.xlu1 %v8911_v9 }
 0xe4e   : > { %v6643_v46 = vmul.f32 %v8649_v47, %v6587_v6  ;;  %v14497_v6 = vld [vmem:[#allocation53_spill] sm:$0xff]  ;;  %6788 = vperm.xlu1 %8346, %v13763_v61   ;;  %v6017_v24 = vmul.f32 %v14505_v15, %v5977_v35  ;;  %v14523_v15 = vld [vmem:[#allocation43_spill] sm:$0xff] }
 0xe4f   : > { %v6246_v23 = vmul.f32 %v14497_v6, %v14496_v16  ;;  %v14516_v6 = vld [vmem:[#allocation12_spill] sm:$0xff] }
 0xe50   : > { %v6658_v45 = vpack.c.bf16 %v6643_v46, %v6642_v33  ;;  %v6247_v33 = vmul.f32 %v14510_v2, %v13543_v40  ;;  %v14511_v46 = vld [vmem:[#allocation22_spill] sm:$0xff] }
 0xe51   : > { %v6033_v3 = vpop.permute.xlu1 %6032  ;;  %v6254_v59 = vadd.f32 %v6246_v23, %v6206_v41  ;;  %v6249_v10 = vmul.f32 %v14511_v46, %v13532_v43  ;;  %v14517_v43 = vld [vmem:[#allocation38_spill] sm:$0xff] }
 0xe52   : > { %7480 = vmatprep.subr.bf16.mxu0 %v6658_v45  ;;  %v6073_v11 = vmul.f32 %v14501_v8, %v6033_v3  ;;  %8348 = vset.pattern.permute.xlu1 %v8912_v31 }
 0xe53   : > { %7481 = vmatpush3.bf16.msra.mxu0 %v6658_v45  ;;  %v6318_v19 = vadd.f32 %v6310_v7, %v6254_v59  ;;  %6828 = vperm.xlu1 %8348, %v13763_v61   ;;  %v14512_v45 = vld [vmem:[#allocation13_spill] sm:$0xff] }
 0xe54   : > { %7482 = vmatprep.subr.bf16.mxu0 %v6659_v44  ;;  %v6081_v14 = vadd.f32 %v6073_v11, %v6017_v24 }
 0xe55   : > { %v6097_v12 = vpop.permute.xlu1 %6096  ;;  %v6382_v62 = vadd.f32 %v6374_v21, %v6318_v19  ;;  %v14518_v19 = vld [vmem:[#allocation46_spill] sm:$0xff] }
 0xe56   : > { %v6137_v17 = vmul.f32 %v14506_v50, %v6097_v12  ;;  %v6580_v31 = vpop.permute.xlu0 %6579  ;;  %v14515_v12 = vld [vmem:[#allocation52_spill] sm:$0xff]  ;;  %v6377_v25 = vmul.f32 %v14518_v19, %v13857_v38  ;;  %v14524_v38 = vld [vmem:[#allocation14_spill] sm:$0xff] }
 0xe57   : > { %7483 = vmatpush3.bf16.msra.mxu0 %v6659_v44  ;;  %v6015_v44 = vmul.f32 %v14503_v63, %v5973_v53  ;;  %v6446_v58 = vadd.f32 %v6438_v34, %v6382_v62  ;;  %v14520_v62 = vld [vmem:[#allocation27_spill] sm:$0xff]  ;;  %v14521_v34 = vld [vmem:[#allocation25_spill] sm:$0xff] }
 0xe58   : > { %v6145_v5 = vadd.f32 %v6137_v17, %v6081_v14 }
 0xe59   : > { %v6161_v22 = vpop.permute.xlu1 %6160  ;;  %v6079_v27 = vadd.f32 %v6071_v48, %v6015_v44  ;;  %v6510_v0 = vadd.f32 %v6502_v26, %v6446_v58 }
 0xe5a   : > { %v6201_v9 = vmul.f32 %v14507_v29, %v6161_v22  ;;  %v6461_v49 = vpop.permute.xlu0 %6460 }
 0xe5b   : > { %v6143_v20 = vadd.f32 %v6135_v37, %v6079_v27  ;;  %v6550_v3 = vmul.f32 %v14512_v45, %v6510_v0  ;;  %v6503_v57 = vmul.f32 %v14519_v36, %v6461_v49  ;;  %v8376_v49 = vld [vmem:[%s14001_s2 + $0x88] ss:$28 sps:$4 sm:$0xff]  }
 0xe5c   : > { %v6209_v35 = vadd.f32 %v6201_v9, %v6145_v5  ;;  %v14526_v5 = vld [vmem:[#allocation57_spill] sm:$0xff] }
 0xe5d   : > { %v6273_v28 = vpop.permute.xlu1 %6272  ;;  %v6590_v23 = vadd.f32 %v14516_v6, %v6550_v3  ;;  %v8915_v6 = vmov 0.0  }
 0xe5e   : > { %v6257_v53 = vadd.f32 %v6249_v10, %v6209_v35  ;;  %v6313_v61 = vmul.f32 %v14514_v56, %v6273_v28  ;;  %v6465_v51 = vpop.permute.xlu0 %6464  ;;  %7515 = vmatprep.subr.bf16.mxu1 %v8915_v6  ;;  %7523 = vmatprep.mubr.msk.bf16.mxu1 %vm8914_vm6, %v8915_v6 }
 0xe5f   : > { %v7274_v21 = vmul.f32 -1.442695, %v6590_v23  ;;  %v6505_v24 = vmul.f32 %v14523_v15, %v6465_v51 }
 0xe60   : > { %v6321_v40 = vadd.f32 %v6313_v61, %v6257_v53  ;;  %v8371_v61 = vld [vmem:[%s14001_s2 + $0x4c] ss:$28 sps:$4 sm:$0xff]  }
 0xe61   : > { %v6401_v30 = vpop.permute.xlu1 %6400  ;;  %8650 = vpow2.f32 %v7274_v21 }
 0xe62   : > { %v6385_v28 = vadd.f32 %v6377_v25, %v6321_v40  ;;  %v6441_v8 = vmul.f32 %v14520_v62, %v6401_v30 }
 0xe64   : > { %v6449_v44 = vadd.f32 %v6441_v8, %v6385_v28 }
 0xe65   : > { %v6157_v52 = vpop.permute.xlu1 %6156 }
 0xe66   : > { %v6199_v32 = vmul.f32 %v14509_v13, %v6157_v52  ;;  %v6513_v17 = vadd.f32 %v6505_v24, %v6449_v44 }
 0xe68   : > { %v6207_v47 = vadd.f32 %v6199_v32, %v6143_v20  ;;  %v6553_v27 = vmul.f32 %v14524_v38, %v6513_v17  ;;  %v14525_v20 = vld [vmem:[#allocation47_spill] sm:$0xff] }
 0xe69   : > { %v6269_v54 = vpop.permute.xlu1 %6268 }
 0xe6a   : > { %v6255_v60 = vadd.f32 %v6247_v33, %v6207_v47  ;;  %v6311_v42 = vmul.f32 %v14513_v4, %v6269_v54 }
 0xe6b   : > { %v8651_v58 = vpop.eup %8650 }
 0xe6c   : > { %v6319_v59 = vadd.f32 %v6311_v42, %v6255_v60  ;;  %v6622_v9 = vadd.f32 1.0, %v8651_v58 }
 0xe6d   : > { %v6333_v41 = vpop.permute.xlu1 %6332 }
 0xe6e   : > { %v6375_v16 = vmul.f32 %v14515_v12, %v6333_v41  ;;  %v8372_v41 = vld [vmem:[%s14001_s2 + $0x84] ss:$28 sps:$4 sm:$0xff]   ;;  %v8373_v12 = vld [vmem:[%s14001_s2 + $0xbc] ss:$28 sps:$4 sm:$0xff]  }
 0xe70   : > { %v6383_v39 = vadd.f32 %v6375_v16, %v6319_v59  ;;  %v8913_v16 = vmov 0.0|0.0   ;;  %v8375_v59 = vld [vmem:[%s14001_s2 + $0x50] ss:$28 sps:$4 sm:$0xff]  }
 0xe71   : > { %v6397_v22 = vpop.permute.xlu1 %6396 }
 0xe72   : > { %v6439_v7 = vmul.f32 %v14517_v43, %v6397_v22 }
 0xe74   : > { %v6447_v48 = vadd.f32 %v6439_v7, %v6383_v39 }
 0xe76   : > { %v6511_v11 = vadd.f32 %v6503_v57, %v6447_v48 }
 0xe78   : > { %v6551_v63 = vmul.f32 %v14521_v34, %v6511_v11 }
 0xe7a   : > { %v6591_v37 = vadd.f32 %v14522_v55, %v6551_v63 }
 0xe7c   : > { %v7275_v50 = vmul.f32 -1.442695, %v6591_v37 }
 0xe7e   : > { %8652 = vpow2.f32 %v7275_v50 }
 0xe7f   : > { %8654 = vrcp.f32 %v6622_v9 }
 0xe82   : > { %v6584_v14 = vpop.permute.xlu1 %6583 }
 0xe83   : > { %v6593_v29 = vadd.f32 %v6584_v14, %v6553_v27 }
 0xe85   : > { %v7277_v30 = vmul.f32 -1.442695, %v6593_v29 }
 0xe86   : > { %v6463_v52 = vpop.permute.xlu1 %6462 }
 0xe87   : > { %v6504_v18 = vmul.f32 %v14525_v20, %v6463_v52  ;;  %8656 = vpow2.f32 %v7277_v30 }
 0xe88   : > { %v8653_v26 = vpop.eup %8652 }
 0xe89   : > { %v6512_v13 = vadd.f32 %v6504_v18, %v13828_v1  ;;  %v6623_v32 = vadd.f32 1.0, %v8653_v26  ;;  %v8655_v54 = vpop.eup %8654 }
 0xe8a   : > { %v6646_v46 = vmul.f32 %v8655_v54, %v6590_v23  ;;  %v8374_v23 = vld [vmem:[%s14001_s2 + $0x18] ss:$28 sps:$4 sm:$0xff]  }
 0xe8b   : > { %v6552_v0 = vmul.f32 %v14526_v5, %v6512_v13  ;;  %8658 = vrcp.f32 %v6623_v32  ;;  %7516 = vmatpush3.bf16.msra.mxu1 %v8374_v23 }
 0xe8c   : > { %7517 = vmatprep.subr.bf16.mxu1 %v8915_v6 }
 0xe8d   : > { %v6592_v47 = vadd.f32 %v6580_v31, %v6552_v0 }
 0xe8f   : > { %v7276_v35 = vmul.f32 -1.442695, %v6592_v47  ;;  %7518 = vmatpush3.bf16.msra.mxu1 %v8375_v59 }
 0xe90   : > { %7519 = vmatprep.subr.bf16.mxu1 %v8915_v6 }
 0xe91   : > { %8660 = vpow2.f32 %v7276_v35  ;;  %v8657_v2 = vpop.eup %8656 }
 0xe92   : > { %v6625_v45 = vadd.f32 1.0, %v8657_v2 }
 0xe93   : > { %7520 = vmatpush3.bf16.msra.mxu1 %v8376_v49 }
 0xe94   : > { %8662 = vrcp.f32 %v6625_v45  ;;  %7521 = vmatprep.subr.bf16.mxu1 %v8915_v6 }
 0xe95   : > { %v8659_v33 = vpop.eup %8658 }
 0xe96   : > { %v6647_v10 = vmul.f32 %v8659_v33, %v6591_v37 }
 0xe98   : > { %v6660_v3 = vpack.c.bf16 %v6647_v10, %v6646_v46 }
 0xe9a   : > { %7484 = vmatprep.subr.bf16.mxu0 %v6660_v3 }
 0xe9b   : > { %v8661_v60 = vpop.eup %8660  ;;  %7485 = vmatpush3.bf16.msra.mxu0 %v6660_v3 }
 0xe9c   : > { %v6624_v1 = vadd.f32 1.0, %v8661_v60 }
 0xe9e   : > { %8664 = vrcp.f32 %v6624_v1  ;;  %v8663_v4 = vpop.eup %8662 }
 0xe9f   : > { %v6649_v53 = vmul.f32 %v8663_v4, %v6593_v29 }
 0xea7   : > { %v6761_v40 = vpop.permute.xlu1 %6760  ;;  %v6765_v7 = vpop.permute.xlu0 %6764 }
 0xea8   : > { %v8665_v42 = vpop.eup %8664 }
 0xea9   : > { %v6648_v56 = vmul.f32 %v8665_v42, %v6592_v47 }
 0xeab   : > { %v6661_v31 = vpack.c.bf16 %v6649_v53, %v6648_v56 }
 0xeac   : > { %v6801_v22 = vpop.permute.xlu1 %6800 }
 0xead   : > { %7486 = vmatprep.subr.bf16.mxu0 %v6661_v31 }
 0xeae   : > { %7487 = vmatpush3.bf16.msra.mxu0 %v6661_v31  ;;  %v6769_v25 = vpop.permute.xlu0 %6768 }
 0xeaf   : > { %7783 = vmatprep.subr.bf16.mxu0 %v8913_v16 }
 0xeb0   : > { %v6805_v39 = vpop.permute.xlu1 %6804 }
 0xeb1   : > { %7489 = vmatmul.mubr.msk.bf16.vlgmr.msra.gmra.mrb[52].mxu0 %vm5733_vm5, %v8371_v61 }
 0xeb2   : > { %7492 = vmatprep.mubr.msk.bf16.mxu0 %vm5733_vm5, %v8372_v41 }
 0xeb3   : > { %v6809_v36 = vpop.permute.xlu0 %6808 }
 0xeb5   : > { %v6773_v43 = vpop.permute.xlu1 %6772 }
 0xeb8   : > { %v6781_v48 = vpop.permute.xlu0 %6780 }
 0xeb9   : > { %7493 = vmatmul.mubr.msk.bf16.gmra.mrb[56].mxu0 %vm5733_vm5, %v8373_v12 }
 0xeba   : > { %7512 = vmatprep.mubr.msk.f32.mxu0 %vm8914_vm6, %v8915_v6  ;;  %v6813_v19 = vpop.permute.xlu1 %6812 }
 0xebc   : > { %v6785_v63 = vpop.permute.xlu0 %6784 }
 0xebf   : > { %v6777_v21 = vpop.permute.xlu1 %6776 }
 0xec1   : > { %v6825_v30 = vpop.permute.xlu0 %6824 }
 0xec4   : > { %v6817_v57 = vpop.permute.xlu1 %6816 }
 0xec8   : > { %v6821_v28 = vpop.permute.xlu1 %6820 }
 0xecd   : > { %v6789_v50 = vpop.permute.xlu1 %6788 }
 0xed2   : > { %v6829_v13 = vpop.permute.xlu1 %6828 }
 0xf84   : > { %v7490_v62 = vpop.f32.mrb[52].mxu0 }
 0xf85   : > { %v6793_v8 = vmul.f32 %v7490_v62, %v6769_v25  ;;  %v6728_v11 = vpop.f32.mrb[53].mxu0 }
 0xf86   : > { %v6791_v51 = vmul.f32 %v6761_v40, %v6728_v11  ;;  %v7491_v34 = vpop.f32.mrb[54].mxu0 }
 0xf87   : > { %v13931_v44 = vadd.f32 %v6809_v36, %v6793_v8  ;;  %v6794_v55 = vmul.f32 %v7491_v34, %v6773_v43  ;;  %v6731_v37 = vpop.f32.mrb[55].mxu0 }
 0xf88   : > { %v13933_v15 = vadd.f32 %v6801_v22, %v6791_v51  ;;  %v6792_v24 = vmul.f32 %v6765_v7, %v6731_v37 }
 0xf89   : > { %v7288_v17 = vmul.f32 -1.442695, %v13931_v44  ;;  %v6834_v38 = vadd.f32 %v6813_v19, %v6794_v55 }
 0xf8a   : > { %v7286_v27 = vmul.f32 -1.442695, %v13933_v15  ;;  %v6832_v58 = vadd.f32 %v6805_v39, %v6792_v24  ;;  %v8377_v24 = vld [vmem:[%s14001_s2 + $0xc0] ss:$28 sps:$4 sm:$0xff]  }
 0xf8b   : > { %8666 = vpow2.f32 %v7288_v17  ;;  %v7289_v14 = vmul.f32 -1.442695, %v6834_v38  ;;  %7522 = vmatpush3.bf16.msra.mxu1 %v8377_v24 }
 0xf8c   : > { %8668 = vpow2.f32 %v7286_v27  ;;  %v7287_v29 = vmul.f32 -1.442695, %v6832_v58  ;;  %v7494_v9 = vpop.f32.mrb[56].mxu0 }
 0xf8d   : > { %8670 = vpow2.f32 %v7289_v14  ;;  %v6797_v52 = vmul.f32 %v7494_v9, %v6785_v63  ;;  %v6744_v20 = vpop.f32.mrb[57].mxu0 }
 0xf8e   : > { %8672 = vpow2.f32 %v7287_v29  ;;  %v6795_v18 = vmul.f32 %v6777_v21, %v6744_v20  ;;  %v7495_v26 = vpop.f32.mrb[58].mxu0 }
 0xf8f   : > { %v6837_v32 = vadd.f32 %v6825_v30, %v6797_v52  ;;  %v6798_v5 = vmul.f32 %v7495_v26, %v6789_v50  ;;  %v6747_v0 = vpop.f32.mrb[59].mxu0 }
 0xf90   : > { %v6835_v47 = vadd.f32 %v6817_v57, %v6795_v18  ;;  %v6796_v35 = vmul.f32 %v6781_v48, %v6747_v0 }
 0xf91   : > { %v7292_v54 = vmul.f32 -1.442695, %v6837_v32  ;;  %v6838_v2 = vadd.f32 %v6829_v13, %v6798_v5 }
 0xf92   : > { %v7290_v33 = vmul.f32 -1.442695, %v6835_v47  ;;  %v6836_v46 = vadd.f32 %v6821_v28, %v6796_v35 }
 0xf93   : > { %8674 = vpow2.f32 %v7292_v54  ;;  %v7293_v10 = vmul.f32 -1.442695, %v6838_v2 }
 0xf94   : > { %8676 = vpow2.f32 %v7290_v33  ;;  %v7291_v45 = vmul.f32 -1.442695, %v6836_v46 }
 0xf95   : > { %v8667_v3 = vpop.eup %8666  ;;  %8678 = vpow2.f32 %v7293_v10 }
 0xf96   : > { %v8669_v60 = vpop.eup %8668  ;;  %v6865_v1 = vadd.f32 1.0, %v8667_v3  ;;  %8680 = vpow2.f32 %v7291_v45 }
 0xf97   : > { %v8671_v4 = vpop.eup %8670  ;;  %v6863_v42 = vadd.f32 1.0, %v8669_v60 }
 0xf98   : > { %v8673_v53 = vpop.eup %8672  ;;  %8682 = vrcp.f32 %v6865_v1  ;;  %v6866_v56 = vadd.f32 1.0, %v8671_v4 }
 0xf99   : > { %8684 = vrcp.f32 %v6863_v42  ;;  %v6864_v31 = vadd.f32 1.0, %v8673_v53 }
 0xf9a   : > { %8686 = vrcp.f32 %v6866_v56 }
 0xf9b   : > { %8688 = vrcp.f32 %v6864_v31 }
 0xf9d   : > { %v8675_v61 = vpop.eup %8674 }
 0xf9e   : > { %v8677_v41 = vpop.eup %8676  ;;  %v6869_v12 = vadd.f32 1.0, %v8675_v61 }
 0xf9f   : > { %v8679_v6 = vpop.eup %8678  ;;  %v6867_v23 = vadd.f32 1.0, %v8677_v41 }
 0xfa0   : > { %v8681_v59 = vpop.eup %8680  ;;  %8690 = vrcp.f32 %v6869_v12  ;;  %v6870_v49 = vadd.f32 1.0, %v8679_v6 }
 0xfa1   : > { %8692 = vrcp.f32 %v6867_v23  ;;  %v6868_v40 = vadd.f32 1.0, %v8681_v59 }
 0xfa2   : > { %v8683_v22 = vpop.eup %8682  ;;  %8694 = vrcp.f32 %v6870_v49 }
 0xfa3   : > { %v8685_v39 = vpop.eup %8684  ;;  %8696 = vrcp.f32 %v6868_v40  ;;  %v6889_v19 = vmul.f32 %v8683_v22, %v13931_v44 }
 0xfa4   : > { %v8687_v43 = vpop.eup %8686  ;;  %v6887_v21 = vmul.f32 %v8685_v39, %v13933_v15  ;;  %v6895_v15 = vld [vmem:[%s14007_s8] sm:$0x3] }
 0xfa5   : > { %v8689_v7 = vpop.eup %8688  ;;  %v6890_v25 = vmul.f32 %v8687_v43, %v6834_v38 }
 0xfa6   : > { %v6888_v36 = vmul.f32 %v8689_v7, %v6832_v58 }
 0xfa7   : > { %v7787_v57 = vpack.c.bf16 %v6890_v25, %v6889_v19 }
 0xfa8   : > { %v7784_v48 = vpack.c.bf16 %v6888_v36, %v6887_v21 }
 0xfaa   : > { %v8691_v28 = vpop.eup %8690  ;;  %7785 = vmatpush3.bf16.xpose.msra.mxu0 %v7784_v48 }
 0xfab   : > { %v8693_v62 = vpop.eup %8692  ;;  %7786 = vmatprep.subr.bf16.mxu0 %v8913_v16  ;;  %v6893_v51 = vmul.f32 %v8691_v28, %v6837_v32 }
 0xfac   : > { %v8695_v8 = vpop.eup %8694  ;;  %v6891_v63 = vmul.f32 %v8693_v62, %v6835_v47 }
 0xfad   : > { %v8697_v11 = vpop.eup %8696  ;;  %v6894_v34 = vmul.f32 %v8695_v8, %v6838_v2 }
 0xfae   : > { %v6892_v55 = vmul.f32 %v8697_v11, %v6836_v46 }
 0xfaf   : > { %v7793_v37 = vpack.c.bf16 %v6894_v34, %v6893_v51 }
 0xfb0   : > { %v7790_v44 = vpack.c.bf16 %v6892_v55, %v6891_v63 }
 0xfb2   : > { %7788 = vmatpush3.bf16.xpose.msra.mxu0 %v7787_v57 }
 0xfb3   : > { %7789 = vmatprep.subr.bf16.mxu0 %v8913_v16 }
 0xfba   : > { %7791 = vmatpush3.bf16.xpose.msra.mxu0 %v7790_v44 }
 0xfbb   : > { %7792 = vmatprep.subr.bf16.mxu0 %v8913_v16  ;;  %v7294_v16 = vld [vmem:[%s14002_s3] ss:$0 sm:$0xff] }
 0xfc2   : > { %7794 = vmatpush3.bf16.xpose.msra.mxu0 %v7793_v37 }
 0xfc9   : > { %7513 = vmatmul.mubr.f32.vlgmr.msra.gmra.mrb[60].mxu0 %v6895_v15 }
0x109c   : > { %v6962_v50 = vpop.f32.mrb[60].mxu0 }
0x109d   : > { %v6974_v17 = vpack.c.bf16 %v6962_v50, %v6962_v50  ;;  %v7514_v38 = vpop.f32.mrb[61].mxu0 }
0x109f   : > { %7524 = vmatmul.mubr.msk.bf16.vlgmr.msra.gmra.mrb[20].mxu1 %vm5733_vm5, %v6974_v17 }
0x1172   : > { %v7043_v27 = vpop.f32.mrb[20].mxu1 }
0x1173   : > { %v7044_v58 = vadd.f32 %v7294_v16, %v7043_v27  ;;  %v7525_v14 = vpop.f32.mrb[21].mxu1 }
0x1174   : > { %v7046_v29 = vpop.f32.mrb[22].mxu1 }
0x1175   : > { %7049 = vst [vmem:[%s341_s16] sm:$0x3] %v7044_v58  ;;  %v7526_v9 = vpop.f32.mrb[23].mxu1 }
0x1176   : > { %8759 = shalt.err (!%p8756_p7)
}
0x1177   : > { %s8760_s14 = scalar_lea.hbm %s13957_s25, 32  ;;  %s8764_s29 = scalar_lea.hbm %s14008_s9, 128 }
0x1178   : > { %p8761_p8 = scmp.ne.s32.totalorder %s13957_s25, %s8760_s14  ;;  %p8765_p1 = scmp.lt.u32.totalorder %s13957_s25, %s14008_s9 }
0x1179   : > { %p8766_p0 = scmp.lt.u32.totalorder %s8764_s29, %s8760_s14  ;;  %p8768_p6 = scmp.lt.u32.totalorder %s8760_s14, %s13957_s25 }
0x117a   : > { %p8762_p11 = pnand %p8761_p8, %p14527_p9 }
0x117b   : > { %p8767_p5 = por %p8766_p0, %p8765_p1 }
0x117c   : > { %p8763_p13 = pneg %p8762_p11 }
0x117d   : > { %p8769_p10 = por %p8768_p6, %p8767_p5 }
0x117f   : > { %p8770_p12 = pnand %p8769_p10, %p8763_p13 }
0x1181   : > { %8773 = shalt.err (!%p8770_p12)
}
0x1182   : > { %7901 = dma.vmem_to_hbm [thread:$0]  (%p14527_p9), %s13959_s28, 32, %s13957_s25, %s7051_s11  }
0x1183 PF: > { %p7913_p2 = scmp.ge.s32.totalorder %s8812_s12, 2  ;;  %s7076_s23 = sand.u32 1, %s8800_s30  }
0x1184   : > { %p14528_p3 = scmp.ne.s32.totalorder %s14157_s20, 0  ;;  %s7077_s16 = scalar_lea.sflag [#allocation4], %s7076_s23 }
0x1186   : > { %p7908_p4 = pnand %p7913_p2, %p14528_p3 }
0x1188   : > { %8795 = dma.done.wait (!%p7908_p4), %s7077_s16, 32  }
0x1189   : > { %8797 = vsyncadd (!%p7908_p4), %s7077_s16, 4294967264  ;;  %s14529_s17 = sld [smem:[#allocation8_spill]]  ;;  %s14530_s11 = sld [smem:[#allocation9_spill]] }
0x118a   : > { %p20_p7 = scmp.ge.s32.totalorder %s8992_s15, 6   ;;  %s14531_s30 = smov %s8804_s10 }
0x118b   : > { %s14533_s12 = smov %s8992_s15 }
0x118c   :  { %22 = sbr.rel (!%p20_p7) target bundleno = 7 (0x7), region = 96 }
0x118f   : > { %s14532_s10 = smov %s14529_s17 }
0x1193   :  { %7082 = vsyncpa [#allocation3], 1 }
0x1194   :  { %7084 = vsyncpa [#allocation3 + $0x1], 1 }
0x1195   :  { %7085 = vsyncpa [#allocation4], 1 }
0x1196   :  { %7087 = vsyncpa [#allocation4 + $0x1], 1 }

</bundles_post_ra>
